<compile_context>
chip_gen: v7x
topology: tpu7x:2x2x1
jax: 0.10.0
libtpu: 0.0.40
codegen_flags: <defaults>
</compile_context>

<pallas_src>
import jax
import jax.numpy as jnp
from jax import lax
from jax.experimental import pallas as pl
from jax.experimental.pallas import tpu as pltpu

k = 32                      # growth rate (matches the PyTorch module)
compression_factor = 0.5
EPS = 1e-5
MAX_ROW_TILE = 512
VMEM_LIMIT = 48 * 1024 * 1024


# ----------------------------- small helpers ------------------------------

def _row_tile(m, target=MAX_ROW_TILE):
    """Largest divisor of m that is <= target and a multiple of 8 (else m)."""
    if m <= target:
        return m
    t = (target // 8) * 8
    while t >= 8:
        if m % t == 0:
            return t
        t -= 8
    return m


def _cparams(semantics):
    return pltpu.CompilerParams(dimension_semantics=semantics,
                                vmem_limit_bytes=VMEM_LIMIT)


# ----------------------------- Pallas kernels -----------------------------

def make_chunked_matmul_kernel(chunk_dims, apply_bn, relu, emit_stats, inv_count):
    """Fused per-chunk BN(affine)+(ReLU)+1x1-conv (accumulated MXU matmuls).

    Optionally emits per-channel sum / sum-of-squares of the output
    (accumulated across the row-grid) for the next BatchNorm.
    """
    n = len(chunk_dims)

    def kernel(*refs):
        xs = refs[:n]
        i = n
        if apply_bn:
            g_ref, b_ref, sm_ref, sq_ref = refs[i:i + 4]
            i += 4
        w_ref = refs[i]; i += 1
        o_ref = refs[i]; i += 1
        if emit_stats:
            osum_ref, osq_ref = refs[i], refs[i + 1]

        if apply_bn:
            mean = sm_ref[...] * inv_count
            var = sq_ref[...] * inv_count - mean * mean
            scale = g_ref[...] * lax.rsqrt(var + EPS)       # (1, Ctot)
            shift = b_ref[...] - mean * scale

        acc = None
        off = 0
        for idx, cdim in enumerate(chunk_dims):
            t = xs[idx][...]                                # (TM, c)
            if apply_bn:
                t = t * scale[:, off:off + cdim] + shift[:, off:off + cdim]
            if relu:
                t = jnp.maximum(t, 0.0)
            part = jnp.dot(t.astype(jnp.bfloat16), w_ref[off:off + cdim, :],
                           preferred_element_type=jnp.float32)
            acc = part if acc is None else acc + part
            off += cdim

        o_ref[...] = acc

        if emit_stats:
            @pl.when(pl.program_id(0) == 0)
            def _():
                osum_ref[...] = jnp.zeros_like(osum_ref)
                osq_ref[...] = jnp.zeros_like(osq_ref)
            osum_ref[...] += jnp.sum(acc, axis=0, keepdims=True)
            osq_ref[...] += jnp.sum(acc * acc, axis=0, keepdims=True)

    return kernel


def make_conv3x3_kernel(H, W, C, KOUT, inv_count):
    """Fused BN2(affine)+ReLU + 3x3 conv (padding=1) for one image per step.

    No im2col: the activated input is written into a zero-bordered bf16 VMEM
    scratch and the conv is 9 accumulated matmuls per output row.  Also emits
    per-channel sum / sum-of-squares of the new features.
    """
    def kernel(x_ref, g_ref, b_ref, sm_ref, sq_ref, w_ref,
               o_ref, osum_ref, osq_ref, hh_ref):
        nstep = pl.program_id(0)

        @pl.when(nstep == 0)
        def _():
            hh_ref[...] = jnp.zeros_like(hh_ref)            # zero border (kept)
            osum_ref[...] = jnp.zeros_like(osum_ref)
            osq_ref[...] = jnp.zeros_like(osq_ref)

        mean = sm_ref[...] * inv_count
        var = sq_ref[...] * inv_count - mean * mean
        scale = g_ref[...] * lax.rsqrt(var + EPS)           # (1, C)
        shift = b_ref[...] - mean * scale

        hh = jnp.maximum(x_ref[...] * scale + shift, 0.0)   # (H, W, C)
        hh_ref[pl.ds(1, H), pl.ds(1, W), :] = hh.astype(jnp.bfloat16)

        def row_body(y, carry):
            rsum, rsq = carry
            acc = jnp.zeros((W, KOUT), jnp.float32)
            for j in range(9):
                dy, dx = j // 3, j % 3
                patch = hh_ref[y + dy, pl.ds(dx, W), :]     # (W, C) bf16
                acc = acc + jnp.dot(patch, w_ref[j],
                                    preferred_element_type=jnp.float32)
            o_ref[y] = acc
            rsum = rsum + jnp.sum(acc, axis=0, keepdims=True)
            rsq = rsq + jnp.sum(acc * acc, axis=0, keepdims=True)
            return rsum, rsq

        z = jnp.zeros((1, KOUT), jnp.float32)
        tsum, tsq = lax.fori_loop(0, H, row_body, (z, z))
        osum_ref[...] += tsum
        osq_ref[...] += tsq

    return kernel


def make_pool_kernel(half, op_max, with_act, emit_stats):
    """Pairwise reduce of the two lane-halves of a (rows, 2*half) slab.

    Optionally applies a fused affine+ReLU prologue (stem BN1), optionally
    emits per-channel sum / sum-of-squares of the pooled output.
    """
    def kernel(*refs):
        i = 0
        x_ref = refs[i]; i += 1
        if with_act:
            s_ref, t_ref = refs[i], refs[i + 1]; i += 2
        o_ref = refs[i]; i += 1
        if emit_stats:
            osum_ref, osq_ref = refs[i], refs[i + 1]

        x = x_ref[...]
        a = x[:, :half]
        b = x[:, half:]
        if with_act:
            a = jnp.maximum(a * s_ref[...] + t_ref[...], 0.0)
            b = jnp.maximum(b * s_ref[...] + t_ref[...], 0.0)
        r = jnp.maximum(a, b) if op_max else (a + b) * 0.5
        o_ref[...] = r

        if emit_stats:
            @pl.when(pl.program_id(0) == 0)
            def _():
                osum_ref[...] = jnp.zeros_like(osum_ref)
                osq_ref[...] = jnp.zeros_like(osq_ref)
            osum_ref[...] += jnp.sum(r, axis=0, keepdims=True)
            osq_ref[...] += jnp.sum(r * r, axis=0, keepdims=True)

    return kernel


def make_head_kernel(chunk_dims, inv_rows):
    """Final BN2+ReLU -> global average pool -> FC, over the chunk list."""
    n = len(chunk_dims)

    def kernel(*refs):
        xs = refs[:n]
        g_ref, b_ref, sm_ref, sq_ref, w_ref, bias_ref, o_ref = refs[n:]
        mean = sm_ref[...] * inv_rows
        var = sq_ref[...] * inv_rows - mean * mean
        scale = g_ref[...] * lax.rsqrt(var + EPS)
        shift = b_ref[...] - mean * scale

        acc = None
        off = 0
        for idx, cdim in enumerate(chunk_dims):
            t = xs[idx][...]                                # (N, HW, c)
            t = jnp.maximum(t * scale[:, off:off + cdim]
                            + shift[:, off:off + cdim], 0.0)
            p = jnp.mean(t, axis=1)                         # (N, c)
            part = jnp.dot(p.astype(jnp.bfloat16), w_ref[off:off + cdim, :],
                           preferred_element_type=jnp.float32)
            acc = part if acc is None else acc + part
            off += cdim
        o_ref[...] = acc + bias_ref[...]

    return kernel


# ----------------------------- Pallas wrappers -----------------------------

def fused_chunk_matmul(chunks, gamma, beta, weight, *, relu, emit_stats,
                       row_count):
    """chunks: list of (arr2d (M, C_i), sum (1, C_i), sumsq (1, C_i))."""
    m_rows = chunks[0][0].shape[0]
    chunk_dims = [c[0].shape[1] for c in chunks]
    cout = weight.shape[1]
    tm = _row_tile(m_rows)
    grid = (m_rows // tm,)
    apply_bn = gamma is not None

    arrays = [c[0] for c in chunks]
    in_specs = [pl.BlockSpec((tm, d), lambda m: (m, 0)) for d in chunk_dims]
    if apply_bn:
        ctot = sum(chunk_dims)
        arrays += [gamma.reshape(1, ctot), beta.reshape(1, ctot),
                   jnp.concatenate([c[1] for c in chunks], axis=1),
                   jnp.concatenate([c[2] for c in chunks], axis=1)]
        in_specs += [pl.BlockSpec((1, ctot), lambda m: (0, 0))] * 4
    arrays.append(weight)
    in_specs.append(pl.BlockSpec(weight.shape, lambda m: (0, 0)))

    kern = make_chunked_matmul_kernel(chunk_dims, apply_bn, relu, emit_stats,
                                      1.0 / float(row_count))
    if emit_stats:
        out_shape = (jax.ShapeDtypeStruct((m_rows, cout), jnp.float32),
                     jax.ShapeDtypeStruct((1, cout), jnp.float32),
                     jax.ShapeDtypeStruct((1, cout), jnp.float32))
        out_specs = (pl.BlockSpec((tm, cout), lambda m: (m, 0)),
                     pl.BlockSpec((1, cout), lambda m: (0, 0)),
                     pl.BlockSpec((1, cout), lambda m: (0, 0)))
        sem = ("arbitrary",)        # stat accumulators revisit their block
    else:
        out_shape = jax.ShapeDtypeStruct((m_rows, cout), jnp.float32)
        out_specs = pl.BlockSpec((tm, cout), lambda m: (m, 0))
        sem = ("parallel",)
    return pl.pallas_call(kern, grid=grid, in_specs=in_specs,
                          out_specs=out_specs, out_shape=out_shape,
                          compiler_params=_cparams(sem))(*arrays)


def fused_conv3x3(h2d, gamma, beta, hsum, hsq, w9, n_img, H, W):
    """3x3 conv (pad 1) with fused BN2+ReLU; one image per grid step."""
    C = h2d.shape[1]
    KOUT = w9.shape[2]
    x4 = h2d.reshape(n_img, H, W, C)
    kern = make_conv3x3_kernel(H, W, C, KOUT, 1.0 / float(n_img * H * W))
    out, osum, osq = pl.pallas_call(
        kern,
        grid=(n_img,),
        in_specs=[
            pl.BlockSpec((None, H, W, C), lambda n: (n, 0, 0, 0)),
            pl.BlockSpec((1, C), lambda n: (0, 0)),
            pl.BlockSpec((1, C), lambda n: (0, 0)),
            pl.BlockSpec((1, C), lambda n: (0, 0)),
            pl.BlockSpec((1, C), lambda n: (0, 0)),
            pl.BlockSpec((9, C, KOUT), lambda n: (0, 0, 0)),
        ],
        out_specs=(
            pl.BlockSpec((None, H, W, KOUT), lambda n: (n, 0, 0, 0)),
            pl.BlockSpec((1, KOUT), lambda n: (0, 0)),
            pl.BlockSpec((1, KOUT), lambda n: (0, 0)),
        ),
        out_shape=(
            jax.ShapeDtypeStruct((n_img, H, W, KOUT), jnp.float32),
            jax.ShapeDtypeStruct((1, KOUT), jnp.float32),
            jax.ShapeDtypeStruct((1, KOUT), jnp.float32),
        ),
        scratch_shapes=[pltpu.VMEM((H + 2, W + 2, C), jnp.bfloat16)],
        compiler_params=_cparams(("arbitrary",)),
    )(x4, gamma.reshape(1, C), beta.reshape(1, C), hsum, hsq, w9)
    # TODO(synk): for very large H*W, tile H with a 1-row halo instead of one
    # whole image per grid step; lane-pad KOUT=32 to 128 if the store path
    # becomes the bottleneck.
    return out.reshape(n_img * H * W, KOUT), osum, osq


def pool2x2(x2d, n_img, h, w, c, *, op_max, act_scale=None, act_shift=None):
    """2x2/stride-2 pooling as two tiled pairwise reductions over contiguous
    views; optional fused affine+ReLU prologue (stem); emits pooled stats."""
    # pass 1: reduce adjacent H rows  (view: (N*H/2, 2*W*C))
    half1 = w * c
    r1 = n_img * h // 2
    x1 = x2d.reshape(r1, 2 * half1)
    tr1 = _row_tile(r1)
    with_act = act_scale is not None
    arrays = [x1]
    in_specs = [pl.BlockSpec((tr1, 2 * half1), lambda m: (m, 0))]
    if with_act:
        arrays += [jnp.tile(act_scale.reshape(1, c), (1, w)),
                   jnp.tile(act_shift.reshape(1, c), (1, w))]
        in_specs += [pl.BlockSpec((1, half1), lambda m: (0, 0))] * 2
    y1 = pl.pallas_call(
        make_pool_kernel(half1, op_max, with_act, False),
        grid=(r1 // tr1,), in_specs=in_specs,
        out_specs=pl.BlockSpec((tr1, half1), lambda m: (m, 0)),
        out_shape=jax.ShapeDtypeStruct((r1, half1), jnp.float32),
        compiler_params=_cparams(("parallel",)))(*arrays)

    # pass 2: reduce adjacent W pixels (view: (N*Ho*Wo, 2*C)) + chunk stats
    ho, wo = h // 2, w // 2
    r2 = n_img * ho * wo
    x2 = y1.reshape(r2, 2 * c)
    tr2 = _row_tile(r2)
    y2, psum, psq = pl.pallas_call(
        make_pool_kernel(c, op_max, False, True),
        grid=(r2 // tr2,),
        in_specs=[pl.BlockSpec((tr2, 2 * c), lambda m: (m, 0))],
        out_specs=(pl.BlockSpec((tr2, c), lambda m: (m, 0)),
                   pl.BlockSpec((1, c), lambda m: (0, 0)),
                   pl.BlockSpec((1, c), lambda m: (0, 0))),
        out_shape=(jax.ShapeDtypeStruct((r2, c), jnp.float32),
                   jax.ShapeDtypeStruct((1, c), jnp.float32),
                   jax.ShapeDtypeStruct((1, c), jnp.float32)),
        compiler_params=_cparams(("arbitrary",)))(x2)
    return y2, psum, psq, ho, wo


def head_fc(chunks, gamma, beta, fc_w_pad, fc_b_pad, n_img, h, w):
    chunk_dims = [c[0].shape[1] for c in chunks]
    ctot = sum(chunk_dims)
    hw = h * w
    xs = [c[0].reshape(n_img, hw, d) for c, d in zip(chunks, chunk_dims)]
    sm = jnp.concatenate([c[1] for c in chunks], axis=1)
    sq = jnp.concatenate([c[2] for c in chunks], axis=1)
    nout = fc_w_pad.shape[1]
    vmem = pl.BlockSpec(memory_space=pltpu.MemorySpace.VMEM)
    return pl.pallas_call(
        make_head_kernel(chunk_dims, 1.0 / float(n_img * hw)),
        in_specs=[vmem] * (len(xs) + 6),
        out_specs=vmem,
        out_shape=jax.ShapeDtypeStruct((n_img, nout), jnp.float32),
        compiler_params=pltpu.CompilerParams(vmem_limit_bytes=VMEM_LIMIT),
    )(*xs, gamma.reshape(1, ctot), beta.reshape(1, ctot), sm, sq,
      fc_w_pad, fc_b_pad)


# ------------------------------- JAX glue ----------------------------------

def im2col(x_nhwc, kh, kw, stride, pad):
    """NHWC im2col (used only for the one-time 7x7 stem conv)."""
    N, H, W, C = x_nhwc.shape
    xp = jnp.pad(x_nhwc, ((0, 0), (pad, pad), (pad, pad), (0, 0)))
    Ho = (H + 2 * pad - kh) // stride + 1
    Wo = (W + 2 * pad - kw) // stride + 1
    patches = []
    for dy in range(kh):
        for dx in range(kw):
            patches.append(xp[:, dy:dy + stride * (Ho - 1) + 1:stride,
                              dx:dx + stride * (Wo - 1) + 1:stride, :])
    cols = jnp.concatenate(patches, axis=-1)
    return cols.reshape(N * Ho * Wo, kh * kw * C), (N, Ho, Wo)


def conv_w2d_kxk(w):
    """(Cout, Cin, kh, kw) -> (kh*kw*Cin, Cout) matching im2col order."""
    cout, cin, kh, kw = w.shape
    return jnp.transpose(w, (2, 3, 1, 0)).reshape(kh * kw * cin, cout)


def conv_w2d_1x1(w):
    """(Cout, Cin, 1, 1) -> (Cin, Cout)."""
    return jnp.transpose(w[:, :, 0, 0], (1, 0))


def conv_w_3x3_split(w):
    """(Cout, Cin, 3, 3) -> (9, Cin, Cout), index = dy*3+dx."""
    cout, cin, kh, kw = w.shape
    return jnp.transpose(w, (2, 3, 1, 0)).reshape(kh * kw, cin, cout)


# ------------------------------ forward pass -------------------------------

def densenet_forward(x_nchw, params):
    x = jnp.transpose(x_nchw, (0, 2, 3, 1)).astype(jnp.float32)   # NCHW -> NHWC
    n_img = x.shape[0]

    # ---- stem: 7x7/s2/p3 conv -> BN1 -> ReLU -> 2x2 maxpool ----
    cols, (_, H, W) = im2col(x, 7, 7, 2, 3)
    M = n_img * H * W
    h, ssum, ssq = fused_chunk_matmul([(cols, None, None)], None, None,
                                      params['conv1_w'], relu=False,
                                      emit_stats=True, row_count=M)
    # stem BN fold is (1,64)-sized, done once; affine+ReLU fused into the pool
    mean = ssum / M
    var = ssq / M - mean * mean
    scale = params['bn1_gamma'].reshape(1, -1) * lax.rsqrt(var + EPS)
    shift = params['bn1_beta'].reshape(1, -1) - mean * scale
    x0, psum, psq, H, W = pool2x2(h, n_img, H, W, 64, op_max=True,
                                  act_scale=scale, act_shift=shift)
    chunks = [(x0, psum, psq)]          # dense features kept as a chunk list

    # ---- dense blocks / transition layers ----
    for blk in params['deep_nn']:
        if blk['type'] == 'dense':
            for lp in blk['layers']:
                M = n_img * H * W
                h1, hsum, hsq = fused_chunk_matmul(
                    chunks, lp['bn1_gamma'], lp['bn1_beta'], lp['conv1_w'],
                    relu=True, emit_stats=True, row_count=M)
                newf, fsum, fsq = fused_conv3x3(
                    h1, lp['bn2_gamma'], lp['bn2_beta'], hsum, hsq,
                    lp['conv2_w'], n_img, H, W)
                chunks.append((newf, fsum, fsq))   # no torch.cat copy needed
        else:
            M = n_img * H * W
            y = fused_chunk_matmul(chunks, blk['bn_gamma'], blk['bn_beta'],
                                   blk['conv_w'], relu=False,
                                   emit_stats=False, row_count=M)
            cout = blk['conv_w'].shape[1]
            x0, psum, psq, H, W = pool2x2(y, n_img, H, W, cout, op_max=False)
            chunks = [(x0, psum, psq)]

    # ---- head: BN2 + ReLU -> global average pool -> FC ----
    logits = head_fc(chunks, params['bn2_gamma'], params['bn2_beta'],
                     params['fc_w_pad'], params['fc_b_pad'], n_img, H, W)
    return logits[:, :params['num_classes']]


# ----------------------------- parameter init ------------------------------

def init_params(key, densenet_variant, in_channels, num_classes):
    keys = iter(jax.random.split(key, 512))

    def conv_w(cout, cin, kh, kw):
        fan_in = cin * kh * kw
        return (jax.random.normal(next(keys), (cout, cin, kh, kw), jnp.float32)
                * jnp.sqrt(2.0 / fan_in))

    def dense_layer_params(cin):
        return {
            'bn1_gamma': jnp.ones((cin,), jnp.float32),
            'bn1_beta': jnp.zeros((cin,), jnp.float32),
            'conv1_w': conv_w2d_1x1(conv_w(4 * k, cin, 1, 1)).astype(jnp.bfloat16),
            'bn2_gamma': jnp.ones((4 * k,), jnp.float32),
            'bn2_beta': jnp.zeros((4 * k,), jnp.float32),
            'conv2_w': conv_w_3x3_split(conv_w(k, 4 * k, 3, 3)).astype(jnp.bfloat16),
        }

    params = {
        'conv1_w': conv_w2d_kxk(conv_w(64, in_channels, 7, 7)).astype(jnp.bfloat16),
        'bn1_gamma': jnp.ones((64,), jnp.float32),
        'bn1_beta': jnp.zeros((64,), jnp.float32),
    }
    deep = []
    c = 64
    for num in range(len(densenet_variant) - 1):
        layers = [dense_layer_params(c + k * l) for l in range(densenet_variant[num])]
        deep.append({'type': 'dense', 'layers': layers})
        c = c + k * densenet_variant[num]
        cout_t = int(c * compression_factor)
        deep.append({'type': 'trans',
                     'bn_gamma': jnp.ones((c,), jnp.float32),
                     'bn_beta': jnp.zeros((c,), jnp.float32),
                     'conv_w': conv_w2d_1x1(conv_w(cout_t, c, 1, 1)).astype(jnp.bfloat16)})
        c = cout_t
    layers = [dense_layer_params(c + k * l) for l in range(densenet_variant[-1])]
    deep.append({'type': 'dense', 'layers': layers})
    c = c + k * densenet_variant[-1]

    params['deep_nn'] = deep
    params['bn2_gamma'] = jnp.ones((c,), jnp.float32)
    params['bn2_beta'] = jnp.zeros((c,), jnp.float32)
    nout_pad = ((num_classes + 127) // 128) * 128          # lane-dense FC output
    fc_w = (jax.random.normal(next(keys), (num_classes, c), jnp.float32)
            * (1.0 / jnp.sqrt(c)))
    params['fc_w_pad'] = (jnp.zeros((c, nout_pad), jnp.float32)
                          .at[:, :num_classes].set(fc_w.T)
                          .astype(jnp.bfloat16))
    params['fc_b_pad'] = jnp.zeros((1, nout_pad), jnp.float32)
    params['num_classes'] = num_classes
    return params


# --------------------------------- main -------------------------------------

if __name__ == "__main__":
    key = jax.random.PRNGKey(0)
    kx, kp = jax.random.split(key)
    # small DenseNet variant [2, 2, 2], RGB input, 10 classes, 32x32 images
    x = jax.random.normal(kx, (2, 3, 32, 32), dtype=jnp.float32)   # NCHW
    params = init_params(kp, densenet_variant=[2, 2, 2], in_channels=3,
                         num_classes=10)
    fwd = jax.jit(lambda inp: densenet_forward(inp, params))
    logits = jax.block_until_ready(fwd(x))
    assert logits.shape == (2, 10)
    assert bool(jnp.all(jnp.isfinite(logits)))
    print("KERNEL_OK")
</pallas_src>

<mosaic_0001>
module attributes {stable_mosaic.version = 11 : i64} {
  func.func @kernel(%arg0: i32, %arg1: memref<512x147xf32, #tpu.memory_space<vmem>>, %arg2: memref<147x64xbf16, #tpu.memory_space<vmem>>, %arg3: memref<512x64xf32, #tpu.memory_space<vmem>>, %arg4: memref<1x64xf32, #tpu.memory_space<vmem>>, %arg5: memref<1x64xf32, #tpu.memory_space<vmem>>) attributes {dimension_semantics = [#tpu.dimension_semantics<arbitrary>], iteration_bounds = array<i64: 1>, scalar_prefetch = 0 : i64, scratch_operands = 0 : i64, tpu.core_type = #tpu.core_type<tc>, window_params = [{transform_indices = @transform_0, window_bounds = array<i64: 512, 147>}, {pipeline_mode = #tpu.pipeline_mode<synchronous>, transform_indices = @transform_1, window_bounds = array<i64: 147, 64>}, {transform_indices = @transform_2, window_bounds = array<i64: 512, 64>}, {pipeline_mode = #tpu.pipeline_mode<synchronous>, transform_indices = @transform_3, window_bounds = array<i64: 1, 64>}, {pipeline_mode = #tpu.pipeline_mode<synchronous>, transform_indices = @transform_4, window_bounds = array<i64: 1, 64>}]} {
    %c0 = arith.constant 0 : index
    %c0_0 = arith.constant 0 : index
    %0 = vector.load %arg1[%c0, %c0_0] : memref<512x147xf32, #tpu.memory_space<vmem>>, vector<512x147xf32>
    %1 = arith.truncf %0 : vector<512x147xf32> to vector<512x147xbf16>
    %c0_1 = arith.constant 0 : index
    %c0_2 = arith.constant 0 : index
    %2 = vector.load %arg2[%c0_1, %c0_2] : memref<147x64xbf16, #tpu.memory_space<vmem>>, vector<147x64xbf16>
    %cst = arith.constant dense<0.000000e+00> : vector<512x64xf32>
    %3 = tpu.matmul %1, %2, %cst {dimension_numbers = #tpu.dot_dimension_numbers<[1], [0], [0], [1], [0, 0, 1, 1], [], []>} : vector<512x147xbf16>, vector<147x64xbf16>, vector<512x64xf32> -> vector<512x64xf32>
    %c0_3 = arith.constant 0 : index
    %c0_4 = arith.constant 0 : index
    %4 = vector.load %arg3[%c0_3, %c0_4] : memref<512x64xf32, #tpu.memory_space<vmem>>, vector<512x64xf32>
    tpu.vector_store %arg3[%c0_3, %c0_4], %3 {strides = array<i32>} : memref<512x64xf32, #tpu.memory_space<vmem>>, vector<512x64xf32>,
    %c0_i32 = arith.constant 0 : i32
    %5 = arith.cmpi eq, %arg0, %c0_i32 : i32
    %6 = arith.extui %5 : i1 to i32
    %c0_i32_5 = arith.constant 0 : i32
    %7 = arith.cmpi ne, %6, %c0_i32_5 : i32
    scf.if %7 {
      %cst_16 = arith.constant 0.000000e+00 : f32
      %19 = vector.broadcast %cst_16 : f32 to vector<1x64xf32>
      %c0_17 = arith.constant 0 : index
      %c0_18 = arith.constant 0 : index
      %20 = vector.load %arg4[%c0_17, %c0_18] : memref<1x64xf32, #tpu.memory_space<vmem>>, vector<1x64xf32>
      tpu.vector_store %arg4[%c0_17, %c0_18], %19 {strides = array<i32>} : memref<1x64xf32, #tpu.memory_space<vmem>>, vector<1x64xf32>,
      %cst_19 = arith.constant 0.000000e+00 : f32
      %21 = vector.broadcast %cst_19 : f32 to vector<1x64xf32>
      %c0_20 = arith.constant 0 : index
      %c0_21 = arith.constant 0 : index
      %22 = vector.load %arg5[%c0_20, %c0_21] : memref<1x64xf32, #tpu.memory_space<vmem>>, vector<1x64xf32>
      tpu.vector_store %arg5[%c0_20, %c0_21], %21 {strides = array<i32>} : memref<1x64xf32, #tpu.memory_space<vmem>>, vector<1x64xf32>,
    } else {
    }
    %c0_6 = arith.constant 0 : index
    %c0_7 = arith.constant 0 : index
    %8 = vector.load %arg4[%c0_6, %c0_7] : memref<1x64xf32, #tpu.memory_space<vmem>>, vector<1x64xf32>
    %cst_8 = arith.constant dense<0.000000e+00> : vector<64xf32>
    %9 = vector.multi_reduction <add>, %3, %cst_8 [0] : vector<512x64xf32> to vector<64xf32>
    %10 = vector.shape_cast %9 : vector<64xf32> to vector<1x64xf32>
    %11 = arith.addf %8, %10 : vector<1x64xf32>
    %c0_9 = arith.constant 0 : index
    %c0_10 = arith.constant 0 : index
    %12 = vector.load %arg4[%c0_9, %c0_10] : memref<1x64xf32, #tpu.memory_space<vmem>>, vector<1x64xf32>
    tpu.vector_store %arg4[%c0_9, %c0_10], %11 {strides = array<i32>} : memref<1x64xf32, #tpu.memory_space<vmem>>, vector<1x64xf32>,
    %c0_11 = arith.constant 0 : index
    %c0_12 = arith.constant 0 : index
    %13 = vector.load %arg5[%c0_11, %c0_12] : memref<1x64xf32, #tpu.memory_space<vmem>>, vector<1x64xf32>
    %14 = arith.mulf %3, %3 : vector<512x64xf32>
    %cst_13 = arith.constant dense<0.000000e+00> : vector<64xf32>
    %15 = vector.multi_reduction <add>, %14, %cst_13 [0] : vector<512x64xf32> to vector<64xf32>
    %16 = vector.shape_cast %15 : vector<64xf32> to vector<1x64xf32>
    %17 = arith.addf %13, %16 : vector<1x64xf32>
    %c0_14 = arith.constant 0 : index
    %c0_15 = arith.constant 0 : index
    %18 = vector.load %arg5[%c0_14, %c0_15] : memref<1x64xf32, #tpu.memory_space<vmem>>, vector<1x64xf32>
    tpu.vector_store %arg5[%c0_14, %c0_15], %17 {strides = array<i32>} : memref<1x64xf32, #tpu.memory_space<vmem>>, vector<1x64xf32>,
    return
  }
  func.func @transform_0(%arg0: i32) -> (i32, i32) {
    %c0_i32 = arith.constant 0 : i32
    %c0_i32_0 = arith.constant 0 : i32
    return %arg0, %c0_i32 : i32, i32
  }
  func.func @transform_1(%arg0: i32) -> (i32, i32) {
    %c0_i32 = arith.constant 0 : i32
    %c0_i32_0 = arith.constant 0 : i32
    %c0_i32_1 = arith.constant 0 : i32
    return %c0_i32, %c0_i32_0 : i32, i32
  }
  func.func @transform_2(%arg0: i32) -> (i32, i32) {
    %c0_i32 = arith.constant 0 : i32
    %c0_i32_0 = arith.constant 0 : i32
    return %arg0, %c0_i32 : i32, i32
  }
  func.func @transform_3(%arg0: i32) -> (i32, i32) {
    %c0_i32 = arith.constant 0 : i32
    %c0_i32_0 = arith.constant 0 : i32
    %c0_i32_1 = arith.constant 0 : i32
    return %c0_i32, %c0_i32_0 : i32, i32
  }
  func.func @transform_4(%arg0: i32) -> (i32, i32) {
    %c0_i32 = arith.constant 0 : i32
    %c0_i32_0 = arith.constant 0 : i32
    %c0_i32_1 = arith.constant 0 : i32
    return %c0_i32, %c0_i32_0 : i32, i32
  }
}

module attributes {stable_mosaic.version = 11 : i64} {
  func.func @kernel(%arg0: i32, %arg1: memref<16x2048xf32, #tpu.memory_space<vmem>>, %arg2: memref<1x1024xf32, #tpu.memory_space<vmem>>, %arg3: memref<1x1024xf32, #tpu.memory_space<vmem>>, %arg4: memref<16x1024xf32, #tpu.memory_space<vmem>>) attributes {dimension_semantics = [#tpu.dimension_semantics<parallel>], iteration_bounds = array<i64: 1>, scalar_prefetch = 0 : i64, scratch_operands = 0 : i64, tpu.core_type = #tpu.core_type<tc>, window_params = [{transform_indices = @transform_0, window_bounds = array<i64: 16, 2048>}, {pipeline_mode = #tpu.pipeline_mode<synchronous>, transform_indices = @transform_1, window_bounds = array<i64: 1, 1024>}, {pipeline_mode = #tpu.pipeline_mode<synchronous>, transform_indices = @transform_2, window_bounds = array<i64: 1, 1024>}, {transform_indices = @transform_3, window_bounds = array<i64: 16, 1024>}]} {
    %c0 = arith.constant 0 : index
    %c0_0 = arith.constant 0 : index
    %0 = vector.load %arg1[%c0, %c0_0] : memref<16x2048xf32, #tpu.memory_space<vmem>>, vector<16x2048xf32>
    %1 = vector.extract_strided_slice %0 {offsets = [0, 0], sizes = [16, 1024], strides = [1, 1]} : vector<16x2048xf32> to vector<16x1024xf32>
    %2 = vector.extract_strided_slice %0 {offsets = [0, 1024], sizes = [16, 1024], strides = [1, 1]} : vector<16x2048xf32> to vector<16x1024xf32>
    %c0_1 = arith.constant 0 : index
    %c0_2 = arith.constant 0 : index
    %3 = vector.load %arg2[%c0_1, %c0_2] : memref<1x1024xf32, #tpu.memory_space<vmem>>, vector<1x1024xf32>
    %4 = vector.broadcast %3 : vector<1x1024xf32> to vector<16x1024xf32>
    %5 = arith.mulf %1, %4 : vector<16x1024xf32>
    %c0_3 = arith.constant 0 : index
    %c0_4 = arith.constant 0 : index
    %6 = vector.load %arg3[%c0_3, %c0_4] : memref<1x1024xf32, #tpu.memory_space<vmem>>, vector<1x1024xf32>
    %7 = vector.broadcast %6 : vector<1x1024xf32> to vector<16x1024xf32>
    %8 = arith.addf %5, %7 : vector<16x1024xf32>
    %cst = arith.constant 0.000000e+00 : f32
    %9 = vector.broadcast %cst : f32 to vector<16x1024xf32>
    %10 = arith.maximumf %8, %9 : vector<16x1024xf32>
    %c0_5 = arith.constant 0 : index
    %c0_6 = arith.constant 0 : index
    %11 = vector.load %arg2[%c0_5, %c0_6] : memref<1x1024xf32, #tpu.memory_space<vmem>>, vector<1x1024xf32>
    %12 = vector.broadcast %11 : vector<1x1024xf32> to vector<16x1024xf32>
    %13 = arith.mulf %2, %12 : vector<16x1024xf32>
    %c0_7 = arith.constant 0 : index
    %c0_8 = arith.constant 0 : index
    %14 = vector.load %arg3[%c0_7, %c0_8] : memref<1x1024xf32, #tpu.memory_space<vmem>>, vector<1x1024xf32>
    %15 = vector.broadcast %14 : vector<1x1024xf32> to vector<16x1024xf32>
    %16 = arith.addf %13, %15 : vector<16x1024xf32>
    %cst_9 = arith.constant 0.000000e+00 : f32
    %17 = vector.broadcast %cst_9 : f32 to vector<16x1024xf32>
    %18 = arith.maximumf %16, %17 : vector<16x1024xf32>
    %19 = arith.maximumf %10, %18 : vector<16x1024xf32>
    %c0_10 = arith.constant 0 : index
    %c0_11 = arith.constant 0 : index
    %20 = vector.load %arg4[%c0_10, %c0_11] : memref<16x1024xf32, #tpu.memory_space<vmem>>, vector<16x1024xf32>
    tpu.vector_store %arg4[%c0_10, %c0_11], %19 {strides = array<i32>} : memref<16x1024xf32, #tpu.memory_space<vmem>>, vector<16x1024xf32>,
    return
  }
  func.func @transform_0(%arg0: i32) -> (i32, i32) {
    %c0_i32 = arith.constant 0 : i32
    %c0_i32_0 = arith.constant 0 : i32
    return %arg0, %c0_i32 : i32, i32
  }
  func.func @transform_1(%arg0: i32) -> (i32, i32) {
    %c0_i32 = arith.constant 0 : i32
    %c0_i32_0 = arith.constant 0 : i32
    %c0_i32_1 = arith.constant 0 : i32
    return %c0_i32, %c0_i32_0 : i32, i32
  }
  func.func @transform_2(%arg0: i32) -> (i32, i32) {
    %c0_i32 = arith.constant 0 : i32
    %c0_i32_0 = arith.constant 0 : i32
    %c0_i32_1 = arith.constant 0 : i32
    return %c0_i32, %c0_i32_0 : i32, i32
  }
  func.func @transform_3(%arg0: i32) -> (i32, i32) {
    %c0_i32 = arith.constant 0 : i32
    %c0_i32_0 = arith.constant 0 : i32
    return %arg0, %c0_i32 : i32, i32
  }
}

module attributes {stable_mosaic.version = 11 : i64} {
  func.func @kernel(%arg0: i32, %arg1: memref<128x128xf32, #tpu.memory_space<vmem>>, %arg2: memref<128x64xf32, #tpu.memory_space<vmem>>, %arg3: memref<1x64xf32, #tpu.memory_space<vmem>>, %arg4: memref<1x64xf32, #tpu.memory_space<vmem>>) attributes {dimension_semantics = [#tpu.dimension_semantics<arbitrary>], iteration_bounds = array<i64: 1>, scalar_prefetch = 0 : i64, scratch_operands = 0 : i64, tpu.core_type = #tpu.core_type<tc>, window_params = [{transform_indices = @transform_0, window_bounds = array<i64: 128, 128>}, {transform_indices = @transform_1, window_bounds = array<i64: 128, 64>}, {pipeline_mode = #tpu.pipeline_mode<synchronous>, transform_indices = @transform_2, window_bounds = array<i64: 1, 64>}, {pipeline_mode = #tpu.pipeline_mode<synchronous>, transform_indices = @transform_3, window_bounds = array<i64: 1, 64>}]} {
    %c0 = arith.constant 0 : index
    %c0_0 = arith.constant 0 : index
    %0 = vector.load %arg1[%c0, %c0_0] : memref<128x128xf32, #tpu.memory_space<vmem>>, vector<128x128xf32>
    %1 = vector.extract_strided_slice %0 {offsets = [0, 0], sizes = [128, 64], strides = [1, 1]} : vector<128x128xf32> to vector<128x64xf32>
    %2 = vector.extract_strided_slice %0 {offsets = [0, 64], sizes = [128, 64], strides = [1, 1]} : vector<128x128xf32> to vector<128x64xf32>
    %3 = arith.maximumf %1, %2 : vector<128x64xf32>
    %c0_1 = arith.constant 0 : index
    %c0_2 = arith.constant 0 : index
    %4 = vector.load %arg2[%c0_1, %c0_2] : memref<128x64xf32, #tpu.memory_space<vmem>>, vector<128x64xf32>
    tpu.vector_store %arg2[%c0_1, %c0_2], %3 {strides = array<i32>} : memref<128x64xf32, #tpu.memory_space<vmem>>, vector<128x64xf32>,
    %c0_i32 = arith.constant 0 : i32
    %5 = arith.cmpi eq, %arg0, %c0_i32 : i32
    %6 = arith.extui %5 : i1 to i32
    %c0_i32_3 = arith.constant 0 : i32
    %7 = arith.cmpi ne, %6, %c0_i32_3 : i32
    scf.if %7 {
      %cst_13 = arith.constant 0.000000e+00 : f32
      %19 = vector.broadcast %cst_13 : f32 to vector<1x64xf32>
      %c0_14 = arith.constant 0 : index
      %c0_15 = arith.constant 0 : index
      %20 = vector.load %arg3[%c0_14, %c0_15] : memref<1x64xf32, #tpu.memory_space<vmem>>, vector<1x64xf32>
      tpu.vector_store %arg3[%c0_14, %c0_15], %19 {strides = array<i32>} : memref<1x64xf32, #tpu.memory_space<vmem>>, vector<1x64xf32>,
      %cst_16 = arith.constant 0.000000e+00 : f32
      %21 = vector.broadcast %cst_16 : f32 to vector<1x64xf32>
      %c0_17 = arith.constant 0 : index
      %c0_18 = arith.constant 0 : index
      %22 = vector.load %arg4[%c0_17, %c0_18] : memref<1x64xf32, #tpu.memory_space<vmem>>, vector<1x64xf32>
      tpu.vector_store %arg4[%c0_17, %c0_18], %21 {strides = array<i32>} : memref<1x64xf32, #tpu.memory_space<vmem>>, vector<1x64xf32>,
    } else {
    }
    %c0_4 = arith.constant 0 : index
    %c0_5 = arith.constant 0 : index
    %8 = vector.load %arg3[%c0_4, %c0_5] : memref<1x64xf32, #tpu.memory_space<vmem>>, vector<1x64xf32>
    %cst = arith.constant dense<0.000000e+00> : vector<64xf32>
    %9 = vector.multi_reduction <add>, %3, %cst [0] : vector<128x64xf32> to vector<64xf32>
    %10 = vector.shape_cast %9 : vector<64xf32> to vector<1x64xf32>
    %11 = arith.addf %8, %10 : vector<1x64xf32>
    %c0_6 = arith.constant 0 : index
    %c0_7 = arith.constant 0 : index
    %12 = vector.load %arg3[%c0_6, %c0_7] : memref<1x64xf32, #tpu.memory_space<vmem>>, vector<1x64xf32>
    tpu.vector_store %arg3[%c0_6, %c0_7], %11 {strides = array<i32>} : memref<1x64xf32, #tpu.memory_space<vmem>>, vector<1x64xf32>,
    %c0_8 = arith.constant 0 : index
    %c0_9 = arith.constant 0 : index
    %13 = vector.load %arg4[%c0_8, %c0_9] : memref<1x64xf32, #tpu.memory_space<vmem>>, vector<1x64xf32>
    %14 = arith.mulf %3, %3 : vector<128x64xf32>
    %cst_10 = arith.constant dense<0.000000e+00> : vector<64xf32>
    %15 = vector.multi_reduction <add>, %14, %cst_10 [0] : vector<128x64xf32> to vector<64xf32>
    %16 = vector.shape_cast %15 : vector<64xf32> to vector<1x64xf32>
    %17 = arith.addf %13, %16 : vector<1x64xf32>
    %c0_11 = arith.constant 0 : index
    %c0_12 = arith.constant 0 : index
    %18 = vector.load %arg4[%c0_11, %c0_12] : memref<1x64xf32, #tpu.memory_space<vmem>>, vector<1x64xf32>
    tpu.vector_store %arg4[%c0_11, %c0_12], %17 {strides = array<i32>} : memref<1x64xf32, #tpu.memory_space<vmem>>, vector<1x64xf32>,
    return
  }
  func.func @transform_0(%arg0: i32) -> (i32, i32) {
    %c0_i32 = arith.constant 0 : i32
    %c0_i32_0 = arith.constant 0 : i32
    return %arg0, %c0_i32 : i32, i32
  }
  func.func @transform_1(%arg0: i32) -> (i32, i32) {
    %c0_i32 = arith.constant 0 : i32
    %c0_i32_0 = arith.constant 0 : i32
    return %arg0, %c0_i32 : i32, i32
  }
  func.func @transform_2(%arg0: i32) -> (i32, i32) {
    %c0_i32 = arith.constant 0 : i32
    %c0_i32_0 = arith.constant 0 : i32
    %c0_i32_1 = arith.constant 0 : i32
    return %c0_i32, %c0_i32_0 : i32, i32
  }
  func.func @transform_3(%arg0: i32) -> (i32, i32) {
    %c0_i32 = arith.constant 0 : i32
    %c0_i32_0 = arith.constant 0 : i32
    %c0_i32_1 = arith.constant 0 : i32
    return %c0_i32, %c0_i32_0 : i32, i32
  }
}

module attributes {stable_mosaic.version = 11 : i64} {
  func.func @kernel(%arg0: i32, %arg1: memref<128x64xf32, #tpu.memory_space<vmem>>, %arg2: memref<1x64xf32, #tpu.memory_space<vmem>>, %arg3: memref<1x64xf32, #tpu.memory_space<vmem>>, %arg4: memref<1x64xf32, #tpu.memory_space<vmem>>, %arg5: memref<1x64xf32, #tpu.memory_space<vmem>>, %arg6: memref<64x128xbf16, #tpu.memory_space<vmem>>, %arg7: memref<128x128xf32, #tpu.memory_space<vmem>>, %arg8: memref<1x128xf32, #tpu.memory_space<vmem>>, %arg9: memref<1x128xf32, #tpu.memory_space<vmem>>) attributes {dimension_semantics = [#tpu.dimension_semantics<arbitrary>], iteration_bounds = array<i64: 1>, scalar_prefetch = 0 : i64, scratch_operands = 0 : i64, tpu.core_type = #tpu.core_type<tc>, window_params = [{transform_indices = @transform_0, window_bounds = array<i64: 128, 64>}, {pipeline_mode = #tpu.pipeline_mode<synchronous>, transform_indices = @transform_1, window_bounds = array<i64: 1, 64>}, {pipeline_mode = #tpu.pipeline_mode<synchronous>, transform_indices = @transform_2, window_bounds = array<i64: 1, 64>}, {pipeline_mode = #tpu.pipeline_mode<synchronous>, transform_indices = @transform_3, window_bounds = array<i64: 1, 64>}, {pipeline_mode = #tpu.pipeline_mode<synchronous>, transform_indices = @transform_4, window_bounds = array<i64: 1, 64>}, {pipeline_mode = #tpu.pipeline_mode<synchronous>, transform_indices = @transform_5, window_bounds = array<i64: 64, 128>}, {transform_indices = @transform_6, window_bounds = array<i64: 128, 128>}, {pipeline_mode = #tpu.pipeline_mode<synchronous>, transform_indices = @transform_7, window_bounds = array<i64: 1, 128>}, {pipeline_mode = #tpu.pipeline_mode<synchronous>, transform_indices = @transform_8, window_bounds = array<i64: 1, 128>}]} {
    %c0 = arith.constant 0 : index
    %c0_0 = arith.constant 0 : index
    %0 = vector.load %arg4[%c0, %c0_0] : memref<1x64xf32, #tpu.memory_space<vmem>>, vector<1x64xf32>
    %cst = arith.constant 7.812500e-03 : f32
    %1 = vector.broadcast %cst : f32 to vector<1x64xf32>
    %2 = arith.mulf %0, %1 : vector<1x64xf32>
    %c0_1 = arith.constant 0 : index
    %c0_2 = arith.constant 0 : index
    %3 = vector.load %arg5[%c0_1, %c0_2] : memref<1x64xf32, #tpu.memory_space<vmem>>, vector<1x64xf32>
    %cst_3 = arith.constant 7.812500e-03 : f32
    %4 = vector.broadcast %cst_3 : f32 to vector<1x64xf32>
    %5 = arith.mulf %3, %4 : vector<1x64xf32>
    %6 = arith.mulf %2, %2 : vector<1x64xf32>
    %7 = arith.subf %5, %6 : vector<1x64xf32>
    %c0_4 = arith.constant 0 : index
    %c0_5 = arith.constant 0 : index
    %8 = vector.load %arg2[%c0_4, %c0_5] : memref<1x64xf32, #tpu.memory_space<vmem>>, vector<1x64xf32>
    %cst_6 = arith.constant 9.99999974E-6 : f32
    %9 = vector.broadcast %cst_6 : f32 to vector<1x64xf32>
    %10 = arith.addf %7, %9 : vector<1x64xf32>
    %11 = math.rsqrt %10 : vector<1x64xf32>
    %12 = arith.mulf %8, %11 : vector<1x64xf32>
    %c0_7 = arith.constant 0 : index
    %c0_8 = arith.constant 0 : index
    %13 = vector.load %arg3[%c0_7, %c0_8] : memref<1x64xf32, #tpu.memory_space<vmem>>, vector<1x64xf32>
    %14 = arith.mulf %2, %12 : vector<1x64xf32>
    %15 = arith.subf %13, %14 : vector<1x64xf32>
    %c0_9 = arith.constant 0 : index
    %c0_10 = arith.constant 0 : index
    %16 = vector.load %arg1[%c0_9, %c0_10] : memref<128x64xf32, #tpu.memory_space<vmem>>, vector<128x64xf32>
    %17 = vector.broadcast %12 : vector<1x64xf32> to vector<128x64xf32>
    %18 = arith.mulf %16, %17 : vector<128x64xf32>
    %19 = vector.broadcast %15 : vector<1x64xf32> to vector<128x64xf32>
    %20 = arith.addf %18, %19 : vector<128x64xf32>
    %cst_11 = arith.constant 0.000000e+00 : f32
    %21 = vector.broadcast %cst_11 : f32 to vector<128x64xf32>
    %22 = arith.maximumf %20, %21 : vector<128x64xf32>
    %23 = arith.truncf %22 : vector<128x64xf32> to vector<128x64xbf16>
    %c0_12 = arith.constant 0 : index
    %c0_13 = arith.constant 0 : index
    %24 = vector.load %arg6[%c0_12, %c0_13] : memref<64x128xbf16, #tpu.memory_space<vmem>>, vector<64x128xbf16>
    %cst_14 = arith.constant dense<0.000000e+00> : vector<128x128xf32>
    %25 = tpu.matmul %23, %24, %cst_14 {dimension_numbers = #tpu.dot_dimension_numbers<[1], [0], [0], [1], [0, 0, 1, 1], [], []>} : vector<128x64xbf16>, vector<64x128xbf16>, vector<128x128xf32> -> vector<128x128xf32>
    %c0_15 = arith.constant 0 : index
    %c0_16 = arith.constant 0 : index
    %26 = vector.load %arg7[%c0_15, %c0_16] : memref<128x128xf32, #tpu.memory_space<vmem>>, vector<128x128xf32>
    tpu.vector_store %arg7[%c0_15, %c0_16], %25 {strides = array<i32>} : memref<128x128xf32, #tpu.memory_space<vmem>>, vector<128x128xf32>,
    %c0_i32 = arith.constant 0 : i32
    %27 = arith.cmpi eq, %arg0, %c0_i32 : i32
    %28 = arith.extui %27 : i1 to i32
    %c0_i32_17 = arith.constant 0 : i32
    %29 = arith.cmpi ne, %28, %c0_i32_17 : i32
    scf.if %29 {
      %cst_28 = arith.constant 0.000000e+00 : f32
      %41 = vector.broadcast %cst_28 : f32 to vector<1x128xf32>
      %c0_29 = arith.constant 0 : index
      %c0_30 = arith.constant 0 : index
      %42 = vector.load %arg8[%c0_29, %c0_30] : memref<1x128xf32, #tpu.memory_space<vmem>>, vector<1x128xf32>
      tpu.vector_store %arg8[%c0_29, %c0_30], %41 {strides = array<i32>} : memref<1x128xf32, #tpu.memory_space<vmem>>, vector<1x128xf32>,
      %cst_31 = arith.constant 0.000000e+00 : f32
      %43 = vector.broadcast %cst_31 : f32 to vector<1x128xf32>
      %c0_32 = arith.constant 0 : index
      %c0_33 = arith.constant 0 : index
      %44 = vector.load %arg9[%c0_32, %c0_33] : memref<1x128xf32, #tpu.memory_space<vmem>>, vector<1x128xf32>
      tpu.vector_store %arg9[%c0_32, %c0_33], %43 {strides = array<i32>} : memref<1x128xf32, #tpu.memory_space<vmem>>, vector<1x128xf32>,
    } else {
    }
    %c0_18 = arith.constant 0 : index
    %c0_19 = arith.constant 0 : index
    %30 = vector.load %arg8[%c0_18, %c0_19] : memref<1x128xf32, #tpu.memory_space<vmem>>, vector<1x128xf32>
    %cst_20 = arith.constant dense<0.000000e+00> : vector<128xf32>
    %31 = vector.multi_reduction <add>, %25, %cst_20 [0] : vector<128x128xf32> to vector<128xf32>
    %32 = vector.shape_cast %31 : vector<128xf32> to vector<1x128xf32>
    %33 = arith.addf %30, %32 : vector<1x128xf32>
    %c0_21 = arith.constant 0 : index
    %c0_22 = arith.constant 0 : index
    %34 = vector.load %arg8[%c0_21, %c0_22] : memref<1x128xf32, #tpu.memory_space<vmem>>, vector<1x128xf32>
    tpu.vector_store %arg8[%c0_21, %c0_22], %33 {strides = array<i32>} : memref<1x128xf32, #tpu.memory_space<vmem>>, vector<1x128xf32>,
    %c0_23 = arith.constant 0 : index
    %c0_24 = arith.constant 0 : index
    %35 = vector.load %arg9[%c0_23, %c0_24] : memref<1x128xf32, #tpu.memory_space<vmem>>, vector<1x128xf32>
    %36 = arith.mulf %25, %25 : vector<128x128xf32>
    %cst_25 = arith.constant dense<0.000000e+00> : vector<128xf32>
    %37 = vector.multi_reduction <add>, %36, %cst_25 [0] : vector<128x128xf32> to vector<128xf32>
    %38 = vector.shape_cast %37 : vector<128xf32> to vector<1x128xf32>
    %39 = arith.addf %35, %38 : vector<1x128xf32>
    %c0_26 = arith.constant 0 : index
    %c0_27 = arith.constant 0 : index
    %40 = vector.load %arg9[%c0_26, %c0_27] : memref<1x128xf32, #tpu.memory_space<vmem>>, vector<1x128xf32>
    tpu.vector_store %arg9[%c0_26, %c0_27], %39 {strides = array<i32>} : memref<1x128xf32, #tpu.memory_space<vmem>>, vector<1x128xf32>,
    return
  }
  func.func @transform_0(%arg0: i32) -> (i32, i32) {
    %c0_i32 = arith.constant 0 : i32
    %c0_i32_0 = arith.constant 0 : i32
    return %arg0, %c0_i32 : i32, i32
  }
  func.func @transform_1(%arg0: i32) -> (i32, i32) {
    %c0_i32 = arith.constant 0 : i32
    %c0_i32_0 = arith.constant 0 : i32
    %c0_i32_1 = arith.constant 0 : i32
    return %c0_i32, %c0_i32_0 : i32, i32
  }
  func.func @transform_2(%arg0: i32) -> (i32, i32) {
    %c0_i32 = arith.constant 0 : i32
    %c0_i32_0 = arith.constant 0 : i32
    %c0_i32_1 = arith.constant 0 : i32
    return %c0_i32, %c0_i32_0 : i32, i32
  }
  func.func @transform_3(%arg0: i32) -> (i32, i32) {
    %c0_i32 = arith.constant 0 : i32
    %c0_i32_0 = arith.constant 0 : i32
    %c0_i32_1 = arith.constant 0 : i32
    return %c0_i32, %c0_i32_0 : i32, i32
  }
  func.func @transform_4(%arg0: i32) -> (i32, i32) {
    %c0_i32 = arith.constant 0 : i32
    %c0_i32_0 = arith.constant 0 : i32
    %c0_i32_1 = arith.constant 0 : i32
    return %c0_i32, %c0_i32_0 : i32, i32
  }
  func.func @transform_5(%arg0: i32) -> (i32, i32) {
    %c0_i32 = arith.constant 0 : i32
    %c0_i32_0 = arith.constant 0 : i32
    %c0_i32_1 = arith.constant 0 : i32
    return %c0_i32, %c0_i32_0 : i32, i32
  }
  func.func @transform_6(%arg0: i32) -> (i32, i32) {
    %c0_i32 = arith.constant 0 : i32
    %c0_i32_0 = arith.constant 0 : i32
    return %arg0, %c0_i32 : i32, i32
  }
  func.func @transform_7(%arg0: i32) -> (i32, i32) {
    %c0_i32 = arith.constant 0 : i32
    %c0_i32_0 = arith.constant 0 : i32
    %c0_i32_1 = arith.constant 0 : i32
    return %c0_i32, %c0_i32_0 : i32, i32
  }
  func.func @transform_8(%arg0: i32) -> (i32, i32) {
    %c0_i32 = arith.constant 0 : i32
    %c0_i32_0 = arith.constant 0 : i32
    %c0_i32_1 = arith.constant 0 : i32
    return %c0_i32, %c0_i32_0 : i32, i32
  }
}

module attributes {stable_mosaic.version = 11 : i64} {
  func.func @kernel(%arg0: i32, %arg1: memref<1x8x8x128xf32, #tpu.memory_space<vmem>>, %arg2: memref<1x128xf32, #tpu.memory_space<vmem>>, %arg3: memref<1x128xf32, #tpu.memory_space<vmem>>, %arg4: memref<1x128xf32, #tpu.memory_space<vmem>>, %arg5: memref<1x128xf32, #tpu.memory_space<vmem>>, %arg6: memref<9x128x32xbf16, #tpu.memory_space<vmem>>, %arg7: memref<1x8x8x32xf32, #tpu.memory_space<vmem>>, %arg8: memref<1x32xf32, #tpu.memory_space<vmem>>, %arg9: memref<1x32xf32, #tpu.memory_space<vmem>>, %arg10: memref<10x10x128xbf16, #tpu.memory_space<vmem>>) attributes {dimension_semantics = [#tpu.dimension_semantics<arbitrary>], iteration_bounds = array<i64: 2>, scalar_prefetch = 0 : i64, scratch_operands = 1 : i64, tpu.core_type = #tpu.core_type<tc>, window_params = [{transform_indices = @transform_0, window_bounds = array<i64: 1, 8, 8, 128>}, {pipeline_mode = #tpu.pipeline_mode<synchronous>, transform_indices = @transform_1, window_bounds = array<i64: 1, 128>}, {pipeline_mode = #tpu.pipeline_mode<synchronous>, transform_indices = @transform_2, window_bounds = array<i64: 1, 128>}, {pipeline_mode = #tpu.pipeline_mode<synchronous>, transform_indices = @transform_3, window_bounds = array<i64: 1, 128>}, {pipeline_mode = #tpu.pipeline_mode<synchronous>, transform_indices = @transform_4, window_bounds = array<i64: 1, 128>}, {pipeline_mode = #tpu.pipeline_mode<synchronous>, transform_indices = @transform_5, window_bounds = array<i64: 9, 128, 32>}, {transform_indices = @transform_6, window_bounds = array<i64: 1, 8, 8, 32>}, {pipeline_mode = #tpu.pipeline_mode<synchronous>, transform_indices = @transform_7, window_bounds = array<i64: 1, 32>}, {pipeline_mode = #tpu.pipeline_mode<synchronous>, transform_indices = @transform_8, window_bounds = array<i64: 1, 32>}]} {
    %c0_i32 = arith.constant 0 : i32
    %0 = arith.cmpi eq, %arg0, %c0_i32 : i32
    %1 = arith.extui %0 : i1 to i32
    %c0_i32_0 = arith.constant 0 : i32
    %2 = arith.cmpi ne, %1, %c0_i32_0 : i32
    scf.if %2 {
      %cst_28 = arith.constant 0.000000e+00 : bf16
      %40 = vector.broadcast %cst_28 : bf16 to vector<10x10x128xbf16>
      %c0_29 = arith.constant 0 : index
      %c0_30 = arith.constant 0 : index
      %c0_31 = arith.constant 0 : index
      %41 = vector.load %arg10[%c0_29, %c0_30, %c0_31] : memref<10x10x128xbf16, #tpu.memory_space<vmem>>, vector<10x10x128xbf16>
      tpu.vector_store %arg10[%c0_29, %c0_30, %c0_31], %40 {strides = array<i32>} : memref<10x10x128xbf16, #tpu.memory_space<vmem>>, vector<10x10x128xbf16>,
      %cst_32 = arith.constant 0.000000e+00 : f32
      %42 = vector.broadcast %cst_32 : f32 to vector<1x32xf32>
      %c0_33 = arith.constant 0 : index
      %c0_34 = arith.constant 0 : index
      %43 = vector.load %arg8[%c0_33, %c0_34] : memref<1x32xf32, #tpu.memory_space<vmem>>, vector<1x32xf32>
      tpu.vector_store %arg8[%c0_33, %c0_34], %42 {strides = array<i32>} : memref<1x32xf32, #tpu.memory_space<vmem>>, vector<1x32xf32>,
      %cst_35 = arith.constant 0.000000e+00 : f32
      %44 = vector.broadcast %cst_35 : f32 to vector<1x32xf32>
      %c0_36 = arith.constant 0 : index
      %c0_37 = arith.constant 0 : index
      %45 = vector.load %arg9[%c0_36, %c0_37] : memref<1x32xf32, #tpu.memory_space<vmem>>, vector<1x32xf32>
      tpu.vector_store %arg9[%c0_36, %c0_37], %44 {strides = array<i32>} : memref<1x32xf32, #tpu.memory_space<vmem>>, vector<1x32xf32>,
    } else {
    }
    %c0 = arith.constant 0 : index
    %c0_1 = arith.constant 0 : index
    %3 = vector.load %arg4[%c0, %c0_1] : memref<1x128xf32, #tpu.memory_space<vmem>>, vector<1x128xf32>
    %cst = arith.constant 7.812500e-03 : f32
    %4 = vector.broadcast %cst : f32 to vector<1x128xf32>
    %5 = arith.mulf %3, %4 : vector<1x128xf32>
    %c0_2 = arith.constant 0 : index
    %c0_3 = arith.constant 0 : index
    %6 = vector.load %arg5[%c0_2, %c0_3] : memref<1x128xf32, #tpu.memory_space<vmem>>, vector<1x128xf32>
    %cst_4 = arith.constant 7.812500e-03 : f32
    %7 = vector.broadcast %cst_4 : f32 to vector<1x128xf32>
    %8 = arith.mulf %6, %7 : vector<1x128xf32>
    %9 = arith.mulf %5, %5 : vector<1x128xf32>
    %10 = arith.subf %8, %9 : vector<1x128xf32>
    %c0_5 = arith.constant 0 : index
    %c0_6 = arith.constant 0 : index
    %11 = vector.load %arg2[%c0_5, %c0_6] : memref<1x128xf32, #tpu.memory_space<vmem>>, vector<1x128xf32>
    %cst_7 = arith.constant 9.99999974E-6 : f32
    %12 = vector.broadcast %cst_7 : f32 to vector<1x128xf32>
    %13 = arith.addf %10, %12 : vector<1x128xf32>
    %14 = math.rsqrt %13 : vector<1x128xf32>
    %15 = arith.mulf %11, %14 : vector<1x128xf32>
    %c0_8 = arith.constant 0 : index
    %c0_9 = arith.constant 0 : index
    %16 = vector.load %arg3[%c0_8, %c0_9] : memref<1x128xf32, #tpu.memory_space<vmem>>, vector<1x128xf32>
    %17 = arith.mulf %5, %15 : vector<1x128xf32>
    %18 = arith.subf %16, %17 : vector<1x128xf32>
    %c0_10 = arith.constant 0 : index
    %c0_11 = arith.constant 0 : index
    %c0_12 = arith.constant 0 : index
    %c0_13 = arith.constant 0 : index
    %19 = vector.load %arg1[%c0_10, %c0_11, %c0_12, %c0_13] : memref<1x8x8x128xf32, #tpu.memory_space<vmem>>, vector<1x8x8x128xf32>
    %20 = vector.shape_cast %19 : vector<1x8x8x128xf32> to vector<8x8x128xf32>
    %21 = vector.shape_cast %15 : vector<1x128xf32> to vector<1x1x128xf32>
    %22 = vector.broadcast %21 : vector<1x1x128xf32> to vector<8x8x128xf32>
    %23 = arith.mulf %20, %22 : vector<8x8x128xf32>
    %24 = vector.shape_cast %18 : vector<1x128xf32> to vector<1x1x128xf32>
    %25 = vector.broadcast %24 : vector<1x1x128xf32> to vector<8x8x128xf32>
    %26 = arith.addf %23, %25 : vector<8x8x128xf32>
    %cst_14 = arith.constant 0.000000e+00 : f32
    %27 = vector.broadcast %cst_14 : f32 to vector<8x8x128xf32>
    %28 = arith.maximumf %26, %27 : vector<8x8x128xf32>
    %29 = arith.truncf %28 : vector<8x8x128xf32> to vector<8x8x128xbf16>
    %c1 = arith.constant 1 : index
    %c1_15 = arith.constant 1 : index
    %c0_16 = arith.constant 0 : index
    %30 = vector.load %arg10[%c1, %c1_15, %c0_16] : memref<10x10x128xbf16, #tpu.memory_space<vmem>>, vector<8x8x128xbf16>
    tpu.vector_store %arg10[%c1, %c1_15, %c0_16], %29 {strides = array<i32>} : memref<10x10x128xbf16, #tpu.memory_space<vmem>>, vector<8x8x128xbf16>,
    %cst_17 = arith.constant 0.000000e+00 : f32
    %31 = vector.broadcast %cst_17 : f32 to vector<1x32xf32>
    %c0_i32_18 = arith.constant 0 : i32
    %c8_i32 = arith.constant 8 : i32
    %32 = arith.addi %c0_i32_18, %c8_i32 : i32
    %c1_i32 = arith.constant 1 : i32
    %33:2 = scf.for %arg11 = %c0_i32_18 to %32 step %c1_i32 iter_args(%arg12 = %31, %arg13 = %31) -> (vector<1x32xf32>, vector<1x32xf32>)  : i32 {
      %cst_28 = arith.constant 0.000000e+00 : f32
      %40 = vector.broadcast %cst_28 : f32 to vector<8x32xf32>
      %c0_i32_29 = arith.constant 0 : i32
      %41 = arith.addi %arg11, %c0_i32_29 : i32
      %42 = arith.index_cast %41 : i32 to index
      %c0_30 = arith.constant 0 : index
      %c0_31 = arith.constant 0 : index
      %43 = vector.load %arg10[%42, %c0_30, %c0_31] : memref<10x10x128xbf16, #tpu.memory_space<vmem>>, vector<1x8x128xbf16>
      %44 = vector.shape_cast %43 : vector<1x8x128xbf16> to vector<8x128xbf16>
      %c0_32 = arith.constant 0 : index
      %c0_33 = arith.constant 0 : index
      %c0_34 = arith.constant 0 : index
      %45 = vector.load %arg6[%c0_32, %c0_33, %c0_34] : memref<9x128x32xbf16, #tpu.memory_space<vmem>>, vector<1x128x32xbf16>
      %46 = vector.shape_cast %45 : vector<1x128x32xbf16> to vector<128x32xbf16>
      %cst_35 = arith.constant dense<0.000000e+00> : vector<8x32xf32>
      %47 = tpu.matmul %44, %46, %cst_35 {dimension_numbers = #tpu.dot_dimension_numbers<[1], [0], [0], [1], [0, 0, 1, 1], [], []>} : vector<8x128xbf16>, vector<128x32xbf16>, vector<8x32xf32> -> vector<8x32xf32>
      %48 = arith.addf %40, %47 : vector<8x32xf32>
      %c0_i32_36 = arith.constant 0 : i32
      %49 = arith.addi %arg11, %c0_i32_36 : i32
      %50 = arith.index_cast %49 : i32 to index
      %c1_37 = arith.constant 1 : index
      %c0_38 = arith.constant 0 : index
      %51 = vector.load %arg10[%50, %c1_37, %c0_38] : memref<10x10x128xbf16, #tpu.memory_space<vmem>>, vector<1x8x128xbf16>
      %52 = vector.shape_cast %51 : vector<1x8x128xbf16> to vector<8x128xbf16>
      %c1_39 = arith.constant 1 : index
      %c0_40 = arith.constant 0 : index
      %c0_41 = arith.constant 0 : index
      %53 = vector.load %arg6[%c1_39, %c0_40, %c0_41] : memref<9x128x32xbf16, #tpu.memory_space<vmem>>, vector<1x128x32xbf16>
      %54 = vector.shape_cast %53 : vector<1x128x32xbf16> to vector<128x32xbf16>
      %cst_42 = arith.constant dense<0.000000e+00> : vector<8x32xf32>
      %55 = tpu.matmul %52, %54, %cst_42 {dimension_numbers = #tpu.dot_dimension_numbers<[1], [0], [0], [1], [0, 0, 1, 1], [], []>} : vector<8x128xbf16>, vector<128x32xbf16>, vector<8x32xf32> -> vector<8x32xf32>
      %56 = arith.addf %48, %55 : vector<8x32xf32>
      %c0_i32_43 = arith.constant 0 : i32
      %57 = arith.addi %arg11, %c0_i32_43 : i32
      %58 = arith.index_cast %57 : i32 to index
      %c2 = arith.constant 2 : index
      %c0_44 = arith.constant 0 : index
      %59 = vector.load %arg10[%58, %c2, %c0_44] : memref<10x10x128xbf16, #tpu.memory_space<vmem>>, vector<1x8x128xbf16>
      %60 = vector.shape_cast %59 : vector<1x8x128xbf16> to vector<8x128xbf16>
      %c2_45 = arith.constant 2 : index
      %c0_46 = arith.constant 0 : index
      %c0_47 = arith.constant 0 : index
      %61 = vector.load %arg6[%c2_45, %c0_46, %c0_47] : memref<9x128x32xbf16, #tpu.memory_space<vmem>>, vector<1x128x32xbf16>
      %62 = vector.shape_cast %61 : vector<1x128x32xbf16> to vector<128x32xbf16>
      %cst_48 = arith.constant dense<0.000000e+00> : vector<8x32xf32>
      %63 = tpu.matmul %60, %62, %cst_48 {dimension_numbers = #tpu.dot_dimension_numbers<[1], [0], [0], [1], [0, 0, 1, 1], [], []>} : vector<8x128xbf16>, vector<128x32xbf16>, vector<8x32xf32> -> vector<8x32xf32>
      %64 = arith.addf %56, %63 : vector<8x32xf32>
      %c1_i32_49 = arith.constant 1 : i32
      %65 = arith.addi %arg11, %c1_i32_49 : i32
      %66 = arith.index_cast %65 : i32 to index
      %c0_50 = arith.constant 0 : index
      %c0_51 = arith.constant 0 : index
      %67 = vector.load %arg10[%66, %c0_50, %c0_51] : memref<10x10x128xbf16, #tpu.memory_space<vmem>>, vector<1x8x128xbf16>
      %68 = vector.shape_cast %67 : vector<1x8x128xbf16> to vector<8x128xbf16>
      %c3 = arith.constant 3 : index
      %c0_52 = arith.constant 0 : index
      %c0_53 = arith.constant 0 : index
      %69 = vector.load %arg6[%c3, %c0_52, %c0_53] : memref<9x128x32xbf16, #tpu.memory_space<vmem>>, vector<1x128x32xbf16>
      %70 = vector.shape_cast %69 : vector<1x128x32xbf16> to vector<128x32xbf16>
      %cst_54 = arith.constant dense<0.000000e+00> : vector<8x32xf32>
      %71 = tpu.matmul %68, %70, %cst_54 {dimension_numbers = #tpu.dot_dimension_numbers<[1], [0], [0], [1], [0, 0, 1, 1], [], []>} : vector<8x128xbf16>, vector<128x32xbf16>, vector<8x32xf32> -> vector<8x32xf32>
      %72 = arith.addf %64, %71 : vector<8x32xf32>
      %c1_i32_55 = arith.constant 1 : i32
      %73 = arith.addi %arg11, %c1_i32_55 : i32
      %74 = arith.index_cast %73 : i32 to index
      %c1_56 = arith.constant 1 : index
      %c0_57 = arith.constant 0 : index
      %75 = vector.load %arg10[%74, %c1_56, %c0_57] : memref<10x10x128xbf16, #tpu.memory_space<vmem>>, vector<1x8x128xbf16>
      %76 = vector.shape_cast %75 : vector<1x8x128xbf16> to vector<8x128xbf16>
      %c4 = arith.constant 4 : index
      %c0_58 = arith.constant 0 : index
      %c0_59 = arith.constant 0 : index
      %77 = vector.load %arg6[%c4, %c0_58, %c0_59] : memref<9x128x32xbf16, #tpu.memory_space<vmem>>, vector<1x128x32xbf16>
      %78 = vector.shape_cast %77 : vector<1x128x32xbf16> to vector<128x32xbf16>
      %cst_60 = arith.constant dense<0.000000e+00> : vector<8x32xf32>
      %79 = tpu.matmul %76, %78, %cst_60 {dimension_numbers = #tpu.dot_dimension_numbers<[1], [0], [0], [1], [0, 0, 1, 1], [], []>} : vector<8x128xbf16>, vector<128x32xbf16>, vector<8x32xf32> -> vector<8x32xf32>
      %80 = arith.addf %72, %79 : vector<8x32xf32>
      %c1_i32_61 = arith.constant 1 : i32
      %81 = arith.addi %arg11, %c1_i32_61 : i32
      %82 = arith.index_cast %81 : i32 to index
      %c2_62 = arith.constant 2 : index
      %c0_63 = arith.constant 0 : index
      %83 = vector.load %arg10[%82, %c2_62, %c0_63] : memref<10x10x128xbf16, #tpu.memory_space<vmem>>, vector<1x8x128xbf16>
      %84 = vector.shape_cast %83 : vector<1x8x128xbf16> to vector<8x128xbf16>
      %c5 = arith.constant 5 : index
      %c0_64 = arith.constant 0 : index
      %c0_65 = arith.constant 0 : index
      %85 = vector.load %arg6[%c5, %c0_64, %c0_65] : memref<9x128x32xbf16, #tpu.memory_space<vmem>>, vector<1x128x32xbf16>
      %86 = vector.shape_cast %85 : vector<1x128x32xbf16> to vector<128x32xbf16>
      %cst_66 = arith.constant dense<0.000000e+00> : vector<8x32xf32>
      %87 = tpu.matmul %84, %86, %cst_66 {dimension_numbers = #tpu.dot_dimension_numbers<[1], [0], [0], [1], [0, 0, 1, 1], [], []>} : vector<8x128xbf16>, vector<128x32xbf16>, vector<8x32xf32> -> vector<8x32xf32>
      %88 = arith.addf %80, %87 : vector<8x32xf32>
      %c2_i32 = arith.constant 2 : i32
      %89 = arith.addi %arg11, %c2_i32 : i32
      %90 = arith.index_cast %89 : i32 to index
      %c0_67 = arith.constant 0 : index
      %c0_68 = arith.constant 0 : index
      %91 = vector.load %arg10[%90, %c0_67, %c0_68] : memref<10x10x128xbf16, #tpu.memory_space<vmem>>, vector<1x8x128xbf16>
      %92 = vector.shape_cast %91 : vector<1x8x128xbf16> to vector<8x128xbf16>
      %c6 = arith.constant 6 : index
      %c0_69 = arith.constant 0 : index
      %c0_70 = arith.constant 0 : index
      %93 = vector.load %arg6[%c6, %c0_69, %c0_70] : memref<9x128x32xbf16, #tpu.memory_space<vmem>>, vector<1x128x32xbf16>
      %94 = vector.shape_cast %93 : vector<1x128x32xbf16> to vector<128x32xbf16>
      %cst_71 = arith.constant dense<0.000000e+00> : vector<8x32xf32>
      %95 = tpu.matmul %92, %94, %cst_71 {dimension_numbers = #tpu.dot_dimension_numbers<[1], [0], [0], [1], [0, 0, 1, 1], [], []>} : vector<8x128xbf16>, vector<128x32xbf16>, vector<8x32xf32> -> vector<8x32xf32>
      %96 = arith.addf %88, %95 : vector<8x32xf32>
      %c2_i32_72 = arith.constant 2 : i32
      %97 = arith.addi %arg11, %c2_i32_72 : i32
      %98 = arith.index_cast %97 : i32 to index
      %c1_73 = arith.constant 1 : index
      %c0_74 = arith.constant 0 : index
      %99 = vector.load %arg10[%98, %c1_73, %c0_74] : memref<10x10x128xbf16, #tpu.memory_space<vmem>>, vector<1x8x128xbf16>
      %100 = vector.shape_cast %99 : vector<1x8x128xbf16> to vector<8x128xbf16>
      %c7 = arith.constant 7 : index
      %c0_75 = arith.constant 0 : index
      %c0_76 = arith.constant 0 : index
      %101 = vector.load %arg6[%c7, %c0_75, %c0_76] : memref<9x128x32xbf16, #tpu.memory_space<vmem>>, vector<1x128x32xbf16>
      %102 = vector.shape_cast %101 : vector<1x128x32xbf16> to vector<128x32xbf16>
      %cst_77 = arith.constant dense<0.000000e+00> : vector<8x32xf32>
      %103 = tpu.matmul %100, %102, %cst_77 {dimension_numbers = #tpu.dot_dimension_numbers<[1], [0], [0], [1], [0, 0, 1, 1], [], []>} : vector<8x128xbf16>, vector<128x32xbf16>, vector<8x32xf32> -> vector<8x32xf32>
      %104 = arith.addf %96, %103 : vector<8x32xf32>
      %c2_i32_78 = arith.constant 2 : i32
      %105 = arith.addi %arg11, %c2_i32_78 : i32
      %106 = arith.index_cast %105 : i32 to index
      %c2_79 = arith.constant 2 : index
      %c0_80 = arith.constant 0 : index
      %107 = vector.load %arg10[%106, %c2_79, %c0_80] : memref<10x10x128xbf16, #tpu.memory_space<vmem>>, vector<1x8x128xbf16>
      %108 = vector.shape_cast %107 : vector<1x8x128xbf16> to vector<8x128xbf16>
      %c8 = arith.constant 8 : index
      %c0_81 = arith.constant 0 : index
      %c0_82 = arith.constant 0 : index
      %109 = vector.load %arg6[%c8, %c0_81, %c0_82] : memref<9x128x32xbf16, #tpu.memory_space<vmem>>, vector<1x128x32xbf16>
      %110 = vector.shape_cast %109 : vector<1x128x32xbf16> to vector<128x32xbf16>
      %cst_83 = arith.constant dense<0.000000e+00> : vector<8x32xf32>
      %111 = tpu.matmul %108, %110, %cst_83 {dimension_numbers = #tpu.dot_dimension_numbers<[1], [0], [0], [1], [0, 0, 1, 1], [], []>} : vector<8x128xbf16>, vector<128x32xbf16>, vector<8x32xf32> -> vector<8x32xf32>
      %112 = arith.addf %104, %111 : vector<8x32xf32>
      %c0_84 = arith.constant 0 : index
      %113 = arith.index_cast %arg11 : i32 to index
      %c0_85 = arith.constant 0 : index
      %c0_86 = arith.constant 0 : index
      %114 = vector.load %arg7[%c0_84, %113, %c0_85, %c0_86] : memref<1x8x8x32xf32, #tpu.memory_space<vmem>>, vector<1x1x8x32xf32>
      %115 = vector.shape_cast %114 : vector<1x1x8x32xf32> to vector<8x32xf32>
      %116 = vector.shape_cast %112 : vector<8x32xf32> to vector<1x1x8x32xf32>
      tpu.vector_store %arg7[%c0_84, %113, %c0_85, %c0_86], %116 {strides = array<i32>} : memref<1x8x8x32xf32, #tpu.memory_space<vmem>>, vector<1x1x8x32xf32>,
      %cst_87 = arith.constant dense<0.000000e+00> : vector<32xf32>
      %117 = vector.multi_reduction <add>, %112, %cst_87 [0] : vector<8x32xf32> to vector<32xf32>
      %118 = vector.shape_cast %117 : vector<32xf32> to vector<1x32xf32>
      %119 = arith.addf %arg12, %118 : vector<1x32xf32>
      %120 = arith.mulf %112, %112 : vector<8x32xf32>
      %cst_88 = arith.constant dense<0.000000e+00> : vector<32xf32>
      %121 = vector.multi_reduction <add>, %120, %cst_88 [0] : vector<8x32xf32> to vector<32xf32>
      %122 = vector.shape_cast %121 : vector<32xf32> to vector<1x32xf32>
      %123 = arith.addf %arg13, %122 : vector<1x32xf32>
      scf.yield %119, %123 : vector<1x32xf32>, vector<1x32xf32>
    }
    %c8_i32_19 = arith.constant 8 : i32
    %c0_20 = arith.constant 0 : index
    %c0_21 = arith.constant 0 : index
    %34 = vector.load %arg8[%c0_20, %c0_21] : memref<1x32xf32, #tpu.memory_space<vmem>>, vector<1x32xf32>
    %35 = arith.addf %34, %33#0 : vector<1x32xf32>
    %c0_22 = arith.constant 0 : index
    %c0_23 = arith.constant 0 : index
    %36 = vector.load %arg8[%c0_22, %c0_23] : memref<1x32xf32, #tpu.memory_space<vmem>>, vector<1x32xf32>
    tpu.vector_store %arg8[%c0_22, %c0_23], %35 {strides = array<i32>} : memref<1x32xf32, #tpu.memory_space<vmem>>, vector<1x32xf32>,
    %c0_24 = arith.constant 0 : index
    %c0_25 = arith.constant 0 : index
    %37 = vector.load %arg9[%c0_24, %c0_25] : memref<1x32xf32, #tpu.memory_space<vmem>>, vector<1x32xf32>
    %38 = arith.addf %37, %33#1 : vector<1x32xf32>
    %c0_26 = arith.constant 0 : index
    %c0_27 = arith.constant 0 : index
    %39 = vector.load %arg9[%c0_26, %c0_27] : memref<1x32xf32, #tpu.memory_space<vmem>>, vector<1x32xf32>
    tpu.vector_store %arg9[%c0_26, %c0_27], %38 {strides = array<i32>} : memref<1x32xf32, #tpu.memory_space<vmem>>, vector<1x32xf32>,
    return
  }
  func.func @transform_0(%arg0: i32) -> (i32, i32, i32, i32) {
    %c0_i32 = arith.constant 0 : i32
    %c0_i32_0 = arith.constant 0 : i32
    %c0_i32_1 = arith.constant 0 : i32
    %c0_i32_2 = arith.constant 0 : i32
    return %arg0, %c0_i32, %c0_i32_0, %c0_i32_1 : i32, i32, i32, i32
  }
  func.func @transform_1(%arg0: i32) -> (i32, i32) {
    %c0_i32 = arith.constant 0 : i32
    %c0_i32_0 = arith.constant 0 : i32
    %c0_i32_1 = arith.constant 0 : i32
    return %c0_i32, %c0_i32_0 : i32, i32
  }
  func.func @transform_2(%arg0: i32) -> (i32, i32) {
    %c0_i32 = arith.constant 0 : i32
    %c0_i32_0 = arith.constant 0 : i32
    %c0_i32_1 = arith.constant 0 : i32
    return %c0_i32, %c0_i32_0 : i32, i32
  }
  func.func @transform_3(%arg0: i32) -> (i32, i32) {
    %c0_i32 = arith.constant 0 : i32
    %c0_i32_0 = arith.constant 0 : i32
    %c0_i32_1 = arith.constant 0 : i32
    return %c0_i32, %c0_i32_0 : i32, i32
  }
  func.func @transform_4(%arg0: i32) -> (i32, i32) {
    %c0_i32 = arith.constant 0 : i32
    %c0_i32_0 = arith.constant 0 : i32
    %c0_i32_1 = arith.constant 0 : i32
    return %c0_i32, %c0_i32_0 : i32, i32
  }
  func.func @transform_5(%arg0: i32) -> (i32, i32, i32) {
    %c0_i32 = arith.constant 0 : i32
    %c0_i32_0 = arith.constant 0 : i32
    %c0_i32_1 = arith.constant 0 : i32
    %c0_i32_2 = arith.constant 0 : i32
    return %c0_i32, %c0_i32_0, %c0_i32_1 : i32, i32, i32
  }
  func.func @transform_6(%arg0: i32) -> (i32, i32, i32, i32) {
    %c0_i32 = arith.constant 0 : i32
    %c0_i32_0 = arith.constant 0 : i32
    %c0_i32_1 = arith.constant 0 : i32
    %c0_i32_2 = arith.constant 0 : i32
    return %arg0, %c0_i32, %c0_i32_0, %c0_i32_1 : i32, i32, i32, i32
  }
  func.func @transform_7(%arg0: i32) -> (i32, i32) {
    %c0_i32 = arith.constant 0 : i32
    %c0_i32_0 = arith.constant 0 : i32
    %c0_i32_1 = arith.constant 0 : i32
    return %c0_i32, %c0_i32_0 : i32, i32
  }
  func.func @transform_8(%arg0: i32) -> (i32, i32) {
    %c0_i32 = arith.constant 0 : i32
    %c0_i32_0 = arith.constant 0 : i32
    %c0_i32_1 = arith.constant 0 : i32
    return %c0_i32, %c0_i32_0 : i32, i32
  }
}

module attributes {stable_mosaic.version = 11 : i64} {
  func.func @kernel(%arg0: i32, %arg1: memref<128x64xf32, #tpu.memory_space<vmem>>, %arg2: memref<128x32xf32, #tpu.memory_space<vmem>>, %arg3: memref<1x96xf32, #tpu.memory_space<vmem>>, %arg4: memref<1x96xf32, #tpu.memory_space<vmem>>, %arg5: memref<1x96xf32, #tpu.memory_space<vmem>>, %arg6: memref<1x96xf32, #tpu.memory_space<vmem>>, %arg7: memref<96x128xbf16, #tpu.memory_space<vmem>>, %arg8: memref<128x128xf32, #tpu.memory_space<vmem>>, %arg9: memref<1x128xf32, #tpu.memory_space<vmem>>, %arg10: memref<1x128xf32, #tpu.memory_space<vmem>>) attributes {dimension_semantics = [#tpu.dimension_semantics<arbitrary>], iteration_bounds = array<i64: 1>, scalar_prefetch = 0 : i64, scratch_operands = 0 : i64, tpu.core_type = #tpu.core_type<tc>, window_params = [{transform_indices = @transform_0, window_bounds = array<i64: 128, 64>}, {transform_indices = @transform_1, window_bounds = array<i64: 128, 32>}, {pipeline_mode = #tpu.pipeline_mode<synchronous>, transform_indices = @transform_2, window_bounds = array<i64: 1, 96>}, {pipeline_mode = #tpu.pipeline_mode<synchronous>, transform_indices = @transform_3, window_bounds = array<i64: 1, 96>}, {pipeline_mode = #tpu.pipeline_mode<synchronous>, transform_indices = @transform_4, window_bounds = array<i64: 1, 96>}, {pipeline_mode = #tpu.pipeline_mode<synchronous>, transform_indices = @transform_5, window_bounds = array<i64: 1, 96>}, {pipeline_mode = #tpu.pipeline_mode<synchronous>, transform_indices = @transform_6, window_bounds = array<i64: 96, 128>}, {transform_indices = @transform_7, window_bounds = array<i64: 128, 128>}, {pipeline_mode = #tpu.pipeline_mode<synchronous>, transform_indices = @transform_8, window_bounds = array<i64: 1, 128>}, {pipeline_mode = #tpu.pipeline_mode<synchronous>, transform_indices = @transform_9, window_bounds = array<i64: 1, 128>}]} {
    %c0 = arith.constant 0 : index
    %c0_0 = arith.constant 0 : index
    %0 = vector.load %arg5[%c0, %c0_0] : memref<1x96xf32, #tpu.memory_space<vmem>>, vector<1x96xf32>
    %cst = arith.constant 7.812500e-03 : f32
    %1 = vector.broadcast %cst : f32 to vector<1x96xf32>
    %2 = arith.mulf %0, %1 : vector<1x96xf32>
    %c0_1 = arith.constant 0 : index
    %c0_2 = arith.constant 0 : index
    %3 = vector.load %arg6[%c0_1, %c0_2] : memref<1x96xf32, #tpu.memory_space<vmem>>, vector<1x96xf32>
    %cst_3 = arith.constant 7.812500e-03 : f32
    %4 = vector.broadcast %cst_3 : f32 to vector<1x96xf32>
    %5 = arith.mulf %3, %4 : vector<1x96xf32>
    %6 = arith.mulf %2, %2 : vector<1x96xf32>
    %7 = arith.subf %5, %6 : vector<1x96xf32>
    %c0_4 = arith.constant 0 : index
    %c0_5 = arith.constant 0 : index
    %8 = vector.load %arg3[%c0_4, %c0_5] : memref<1x96xf32, #tpu.memory_space<vmem>>, vector<1x96xf32>
    %cst_6 = arith.constant 9.99999974E-6 : f32
    %9 = vector.broadcast %cst_6 : f32 to vector<1x96xf32>
    %10 = arith.addf %7, %9 : vector<1x96xf32>
    %11 = math.rsqrt %10 : vector<1x96xf32>
    %12 = arith.mulf %8, %11 : vector<1x96xf32>
    %c0_7 = arith.constant 0 : index
    %c0_8 = arith.constant 0 : index
    %13 = vector.load %arg4[%c0_7, %c0_8] : memref<1x96xf32, #tpu.memory_space<vmem>>, vector<1x96xf32>
    %14 = arith.mulf %2, %12 : vector<1x96xf32>
    %15 = arith.subf %13, %14 : vector<1x96xf32>
    %c0_9 = arith.constant 0 : index
    %c0_10 = arith.constant 0 : index
    %16 = vector.load %arg1[%c0_9, %c0_10] : memref<128x64xf32, #tpu.memory_space<vmem>>, vector<128x64xf32>
    %17 = vector.extract_strided_slice %12 {offsets = [0, 0], sizes = [1, 64], strides = [1, 1]} : vector<1x96xf32> to vector<1x64xf32>
    %18 = vector.broadcast %17 : vector<1x64xf32> to vector<128x64xf32>
    %19 = arith.mulf %16, %18 : vector<128x64xf32>
    %20 = vector.extract_strided_slice %15 {offsets = [0, 0], sizes = [1, 64], strides = [1, 1]} : vector<1x96xf32> to vector<1x64xf32>
    %21 = vector.broadcast %20 : vector<1x64xf32> to vector<128x64xf32>
    %22 = arith.addf %19, %21 : vector<128x64xf32>
    %cst_11 = arith.constant 0.000000e+00 : f32
    %23 = vector.broadcast %cst_11 : f32 to vector<128x64xf32>
    %24 = arith.maximumf %22, %23 : vector<128x64xf32>
    %25 = arith.truncf %24 : vector<128x64xf32> to vector<128x64xbf16>
    %c0_12 = arith.constant 0 : index
    %c0_13 = arith.constant 0 : index
    %26 = vector.load %arg7[%c0_12, %c0_13] : memref<96x128xbf16, #tpu.memory_space<vmem>>, vector<64x128xbf16>
    %cst_14 = arith.constant dense<0.000000e+00> : vector<128x128xf32>
    %27 = tpu.matmul %25, %26, %cst_14 {dimension_numbers = #tpu.dot_dimension_numbers<[1], [0], [0], [1], [0, 0, 1, 1], [], []>} : vector<128x64xbf16>, vector<64x128xbf16>, vector<128x128xf32> -> vector<128x128xf32>
    %c0_15 = arith.constant 0 : index
    %c0_16 = arith.constant 0 : index
    %28 = vector.load %arg2[%c0_15, %c0_16] : memref<128x32xf32, #tpu.memory_space<vmem>>, vector<128x32xf32>
    %29 = vector.extract_strided_slice %12 {offsets = [0, 64], sizes = [1, 32], strides = [1, 1]} : vector<1x96xf32> to vector<1x32xf32>
    %30 = vector.broadcast %29 : vector<1x32xf32> to vector<128x32xf32>
    %31 = arith.mulf %28, %30 : vector<128x32xf32>
    %32 = vector.extract_strided_slice %15 {offsets = [0, 64], sizes = [1, 32], strides = [1, 1]} : vector<1x96xf32> to vector<1x32xf32>
    %33 = vector.broadcast %32 : vector<1x32xf32> to vector<128x32xf32>
    %34 = arith.addf %31, %33 : vector<128x32xf32>
    %cst_17 = arith.constant 0.000000e+00 : f32
    %35 = vector.broadcast %cst_17 : f32 to vector<128x32xf32>
    %36 = arith.maximumf %34, %35 : vector<128x32xf32>
    %37 = arith.truncf %36 : vector<128x32xf32> to vector<128x32xbf16>
    %c64 = arith.constant 64 : index
    %c0_18 = arith.constant 0 : index
    %38 = vector.load %arg7[%c64, %c0_18] : memref<96x128xbf16, #tpu.memory_space<vmem>>, vector<32x128xbf16>
    %cst_19 = arith.constant dense<0.000000e+00> : vector<128x128xf32>
    %39 = tpu.matmul %37, %38, %cst_19 {dimension_numbers = #tpu.dot_dimension_numbers<[1], [0], [0], [1], [0, 0, 1, 1], [], []>} : vector<128x32xbf16>, vector<32x128xbf16>, vector<128x128xf32> -> vector<128x128xf32>
    %40 = arith.addf %27, %39 : vector<128x128xf32>
    %c0_20 = arith.constant 0 : index
    %c0_21 = arith.constant 0 : index
    %41 = vector.load %arg8[%c0_20, %c0_21] : memref<128x128xf32, #tpu.memory_space<vmem>>, vector<128x128xf32>
    tpu.vector_store %arg8[%c0_20, %c0_21], %40 {strides = array<i32>} : memref<128x128xf32, #tpu.memory_space<vmem>>, vector<128x128xf32>,
    %c0_i32 = arith.constant 0 : i32
    %42 = arith.cmpi eq, %arg0, %c0_i32 : i32
    %43 = arith.extui %42 : i1 to i32
    %c0_i32_22 = arith.constant 0 : i32
    %44 = arith.cmpi ne, %43, %c0_i32_22 : i32
    scf.if %44 {
      %cst_33 = arith.constant 0.000000e+00 : f32
      %56 = vector.broadcast %cst_33 : f32 to vector<1x128xf32>
      %c0_34 = arith.constant 0 : index
      %c0_35 = arith.constant 0 : index
      %57 = vector.load %arg9[%c0_34, %c0_35] : memref<1x128xf32, #tpu.memory_space<vmem>>, vector<1x128xf32>
      tpu.vector_store %arg9[%c0_34, %c0_35], %56 {strides = array<i32>} : memref<1x128xf32, #tpu.memory_space<vmem>>, vector<1x128xf32>,
      %cst_36 = arith.constant 0.000000e+00 : f32
      %58 = vector.broadcast %cst_36 : f32 to vector<1x128xf32>
      %c0_37 = arith.constant 0 : index
      %c0_38 = arith.constant 0 : index
      %59 = vector.load %arg10[%c0_37, %c0_38] : memref<1x128xf32, #tpu.memory_space<vmem>>, vector<1x128xf32>
      tpu.vector_store %arg10[%c0_37, %c0_38], %58 {strides = array<i32>} : memref<1x128xf32, #tpu.memory_space<vmem>>, vector<1x128xf32>,
    } else {
    }
    %c0_23 = arith.constant 0 : index
    %c0_24 = arith.constant 0 : index
    %45 = vector.load %arg9[%c0_23, %c0_24] : memref<1x128xf32, #tpu.memory_space<vmem>>, vector<1x128xf32>
    %cst_25 = arith.constant dense<0.000000e+00> : vector<128xf32>
    %46 = vector.multi_reduction <add>, %40, %cst_25 [0] : vector<128x128xf32> to vector<128xf32>
    %47 = vector.shape_cast %46 : vector<128xf32> to vector<1x128xf32>
    %48 = arith.addf %45, %47 : vector<1x128xf32>
    %c0_26 = arith.constant 0 : index
    %c0_27 = arith.constant 0 : index
    %49 = vector.load %arg9[%c0_26, %c0_27] : memref<1x128xf32, #tpu.memory_space<vmem>>, vector<1x128xf32>
    tpu.vector_store %arg9[%c0_26, %c0_27], %48 {strides = array<i32>} : memref<1x128xf32, #tpu.memory_space<vmem>>, vector<1x128xf32>,
    %c0_28 = arith.constant 0 : index
    %c0_29 = arith.constant 0 : index
    %50 = vector.load %arg10[%c0_28, %c0_29] : memref<1x128xf32, #tpu.memory_space<vmem>>, vector<1x128xf32>
    %51 = arith.mulf %40, %40 : vector<128x128xf32>
    %cst_30 = arith.constant dense<0.000000e+00> : vector<128xf32>
    %52 = vector.multi_reduction <add>, %51, %cst_30 [0] : vector<128x128xf32> to vector<128xf32>
    %53 = vector.shape_cast %52 : vector<128xf32> to vector<1x128xf32>
    %54 = arith.addf %50, %53 : vector<1x128xf32>
    %c0_31 = arith.constant 0 : index
    %c0_32 = arith.constant 0 : index
    %55 = vector.load %arg10[%c0_31, %c0_32] : memref<1x128xf32, #tpu.memory_space<vmem>>, vector<1x128xf32>
    tpu.vector_store %arg10[%c0_31, %c0_32], %54 {strides = array<i32>} : memref<1x128xf32, #tpu.memory_space<vmem>>, vector<1x128xf32>,
    return
  }
  func.func @transform_0(%arg0: i32) -> (i32, i32) {
    %c0_i32 = arith.constant 0 : i32
    %c0_i32_0 = arith.constant 0 : i32
    return %arg0, %c0_i32 : i32, i32
  }
  func.func @transform_1(%arg0: i32) -> (i32, i32) {
    %c0_i32 = arith.constant 0 : i32
    %c0_i32_0 = arith.constant 0 : i32
    return %arg0, %c0_i32 : i32, i32
  }
  func.func @transform_2(%arg0: i32) -> (i32, i32) {
    %c0_i32 = arith.constant 0 : i32
    %c0_i32_0 = arith.constant 0 : i32
    %c0_i32_1 = arith.constant 0 : i32
    return %c0_i32, %c0_i32_0 : i32, i32
  }
  func.func @transform_3(%arg0: i32) -> (i32, i32) {
    %c0_i32 = arith.constant 0 : i32
    %c0_i32_0 = arith.constant 0 : i32
    %c0_i32_1 = arith.constant 0 : i32
    return %c0_i32, %c0_i32_0 : i32, i32
  }
  func.func @transform_4(%arg0: i32) -> (i32, i32) {
    %c0_i32 = arith.constant 0 : i32
    %c0_i32_0 = arith.constant 0 : i32
    %c0_i32_1 = arith.constant 0 : i32
    return %c0_i32, %c0_i32_0 : i32, i32
  }
  func.func @transform_5(%arg0: i32) -> (i32, i32) {
    %c0_i32 = arith.constant 0 : i32
    %c0_i32_0 = arith.constant 0 : i32
    %c0_i32_1 = arith.constant 0 : i32
    return %c0_i32, %c0_i32_0 : i32, i32
  }
  func.func @transform_6(%arg0: i32) -> (i32, i32) {
    %c0_i32 = arith.constant 0 : i32
    %c0_i32_0 = arith.constant 0 : i32
    %c0_i32_1 = arith.constant 0 : i32
    return %c0_i32, %c0_i32_0 : i32, i32
  }
  func.func @transform_7(%arg0: i32) -> (i32, i32) {
    %c0_i32 = arith.constant 0 : i32
    %c0_i32_0 = arith.constant 0 : i32
    return %arg0, %c0_i32 : i32, i32
  }
  func.func @transform_8(%arg0: i32) -> (i32, i32) {
    %c0_i32 = arith.constant 0 : i32
    %c0_i32_0 = arith.constant 0 : i32
    %c0_i32_1 = arith.constant 0 : i32
    return %c0_i32, %c0_i32_0 : i32, i32
  }
  func.func @transform_9(%arg0: i32) -> (i32, i32) {
    %c0_i32 = arith.constant 0 : i32
    %c0_i32_0 = arith.constant 0 : i32
    %c0_i32_1 = arith.constant 0 : i32
    return %c0_i32, %c0_i32_0 : i32, i32
  }
}

module attributes {stable_mosaic.version = 11 : i64} {
  func.func @kernel(%arg0: i32, %arg1: memref<128x64xf32, #tpu.memory_space<vmem>>, %arg2: memref<128x32xf32, #tpu.memory_space<vmem>>, %arg3: memref<128x32xf32, #tpu.memory_space<vmem>>, %arg4: memref<1x128xf32, #tpu.memory_space<vmem>>, %arg5: memref<1x128xf32, #tpu.memory_space<vmem>>, %arg6: memref<1x128xf32, #tpu.memory_space<vmem>>, %arg7: memref<1x128xf32, #tpu.memory_space<vmem>>, %arg8: memref<128x64xbf16, #tpu.memory_space<vmem>>, %arg9: memref<128x64xf32, #tpu.memory_space<vmem>>) attributes {dimension_semantics = [#tpu.dimension_semantics<parallel>], iteration_bounds = array<i64: 1>, scalar_prefetch = 0 : i64, scratch_operands = 0 : i64, tpu.core_type = #tpu.core_type<tc>, window_params = [{transform_indices = @transform_0, window_bounds = array<i64: 128, 64>}, {transform_indices = @transform_1, window_bounds = array<i64: 128, 32>}, {transform_indices = @transform_2, window_bounds = array<i64: 128, 32>}, {pipeline_mode = #tpu.pipeline_mode<synchronous>, transform_indices = @transform_3, window_bounds = array<i64: 1, 128>}, {pipeline_mode = #tpu.pipeline_mode<synchronous>, transform_indices = @transform_4, window_bounds = array<i64: 1, 128>}, {pipeline_mode = #tpu.pipeline_mode<synchronous>, transform_indices = @transform_5, window_bounds = array<i64: 1, 128>}, {pipeline_mode = #tpu.pipeline_mode<synchronous>, transform_indices = @transform_6, window_bounds = array<i64: 1, 128>}, {pipeline_mode = #tpu.pipeline_mode<synchronous>, transform_indices = @transform_7, window_bounds = array<i64: 128, 64>}, {transform_indices = @transform_8, window_bounds = array<i64: 128, 64>}]} {
    %c0 = arith.constant 0 : index
    %c0_0 = arith.constant 0 : index
    %0 = vector.load %arg6[%c0, %c0_0] : memref<1x128xf32, #tpu.memory_space<vmem>>, vector<1x128xf32>
    %cst = arith.constant 7.812500e-03 : f32
    %1 = vector.broadcast %cst : f32 to vector<1x128xf32>
    %2 = arith.mulf %0, %1 : vector<1x128xf32>
    %c0_1 = arith.constant 0 : index
    %c0_2 = arith.constant 0 : index
    %3 = vector.load %arg7[%c0_1, %c0_2] : memref<1x128xf32, #tpu.memory_space<vmem>>, vector<1x128xf32>
    %cst_3 = arith.constant 7.812500e-03 : f32
    %4 = vector.broadcast %cst_3 : f32 to vector<1x128xf32>
    %5 = arith.mulf %3, %4 : vector<1x128xf32>
    %6 = arith.mulf %2, %2 : vector<1x128xf32>
    %7 = arith.subf %5, %6 : vector<1x128xf32>
    %c0_4 = arith.constant 0 : index
    %c0_5 = arith.constant 0 : index
    %8 = vector.load %arg4[%c0_4, %c0_5] : memref<1x128xf32, #tpu.memory_space<vmem>>, vector<1x128xf32>
    %cst_6 = arith.constant 9.99999974E-6 : f32
    %9 = vector.broadcast %cst_6 : f32 to vector<1x128xf32>
    %10 = arith.addf %7, %9 : vector<1x128xf32>
    %11 = math.rsqrt %10 : vector<1x128xf32>
    %12 = arith.mulf %8, %11 : vector<1x128xf32>
    %c0_7 = arith.constant 0 : index
    %c0_8 = arith.constant 0 : index
    %13 = vector.load %arg5[%c0_7, %c0_8] : memref<1x128xf32, #tpu.memory_space<vmem>>, vector<1x128xf32>
    %14 = arith.mulf %2, %12 : vector<1x128xf32>
    %15 = arith.subf %13, %14 : vector<1x128xf32>
    %c0_9 = arith.constant 0 : index
    %c0_10 = arith.constant 0 : index
    %16 = vector.load %arg1[%c0_9, %c0_10] : memref<128x64xf32, #tpu.memory_space<vmem>>, vector<128x64xf32>
    %17 = vector.extract_strided_slice %12 {offsets = [0, 0], sizes = [1, 64], strides = [1, 1]} : vector<1x128xf32> to vector<1x64xf32>
    %18 = vector.broadcast %17 : vector<1x64xf32> to vector<128x64xf32>
    %19 = arith.mulf %16, %18 : vector<128x64xf32>
    %20 = vector.extract_strided_slice %15 {offsets = [0, 0], sizes = [1, 64], strides = [1, 1]} : vector<1x128xf32> to vector<1x64xf32>
    %21 = vector.broadcast %20 : vector<1x64xf32> to vector<128x64xf32>
    %22 = arith.addf %19, %21 : vector<128x64xf32>
    %23 = arith.truncf %22 : vector<128x64xf32> to vector<128x64xbf16>
    %c0_11 = arith.constant 0 : index
    %c0_12 = arith.constant 0 : index
    %24 = vector.load %arg8[%c0_11, %c0_12] : memref<128x64xbf16, #tpu.memory_space<vmem>>, vector<64x64xbf16>
    %cst_13 = arith.constant dense<0.000000e+00> : vector<128x64xf32>
    %25 = tpu.matmul %23, %24, %cst_13 {dimension_numbers = #tpu.dot_dimension_numbers<[1], [0], [0], [1], [0, 0, 1, 1], [], []>} : vector<128x64xbf16>, vector<64x64xbf16>, vector<128x64xf32> -> vector<128x64xf32>
    %c0_14 = arith.constant 0 : index
    %c0_15 = arith.constant 0 : index
    %26 = vector.load %arg2[%c0_14, %c0_15] : memref<128x32xf32, #tpu.memory_space<vmem>>, vector<128x32xf32>
    %27 = vector.extract_strided_slice %12 {offsets = [0, 64], sizes = [1, 32], strides = [1, 1]} : vector<1x128xf32> to vector<1x32xf32>
    %28 = vector.broadcast %27 : vector<1x32xf32> to vector<128x32xf32>
    %29 = arith.mulf %26, %28 : vector<128x32xf32>
    %30 = vector.extract_strided_slice %15 {offsets = [0, 64], sizes = [1, 32], strides = [1, 1]} : vector<1x128xf32> to vector<1x32xf32>
    %31 = vector.broadcast %30 : vector<1x32xf32> to vector<128x32xf32>
    %32 = arith.addf %29, %31 : vector<128x32xf32>
    %33 = arith.truncf %32 : vector<128x32xf32> to vector<128x32xbf16>
    %c64 = arith.constant 64 : index
    %c0_16 = arith.constant 0 : index
    %34 = vector.load %arg8[%c64, %c0_16] : memref<128x64xbf16, #tpu.memory_space<vmem>>, vector<32x64xbf16>
    %cst_17 = arith.constant dense<0.000000e+00> : vector<128x64xf32>
    %35 = tpu.matmul %33, %34, %cst_17 {dimension_numbers = #tpu.dot_dimension_numbers<[1], [0], [0], [1], [0, 0, 1, 1], [], []>} : vector<128x32xbf16>, vector<32x64xbf16>, vector<128x64xf32> -> vector<128x64xf32>
    %36 = arith.addf %25, %35 : vector<128x64xf32>
    %c0_18 = arith.constant 0 : index
    %c0_19 = arith.constant 0 : index
    %37 = vector.load %arg3[%c0_18, %c0_19] : memref<128x32xf32, #tpu.memory_space<vmem>>, vector<128x32xf32>
    %38 = vector.extract_strided_slice %12 {offsets = [0, 96], sizes = [1, 32], strides = [1, 1]} : vector<1x128xf32> to vector<1x32xf32>
    %39 = vector.broadcast %38 : vector<1x32xf32> to vector<128x32xf32>
    %40 = arith.mulf %37, %39 : vector<128x32xf32>
    %41 = vector.extract_strided_slice %15 {offsets = [0, 96], sizes = [1, 32], strides = [1, 1]} : vector<1x128xf32> to vector<1x32xf32>
    %42 = vector.broadcast %41 : vector<1x32xf32> to vector<128x32xf32>
    %43 = arith.addf %40, %42 : vector<128x32xf32>
    %44 = arith.truncf %43 : vector<128x32xf32> to vector<128x32xbf16>
    %c96 = arith.constant 96 : index
    %c0_20 = arith.constant 0 : index
    %45 = vector.load %arg8[%c96, %c0_20] : memref<128x64xbf16, #tpu.memory_space<vmem>>, vector<32x64xbf16>
    %cst_21 = arith.constant dense<0.000000e+00> : vector<128x64xf32>
    %46 = tpu.matmul %44, %45, %cst_21 {dimension_numbers = #tpu.dot_dimension_numbers<[1], [0], [0], [1], [0, 0, 1, 1], [], []>} : vector<128x32xbf16>, vector<32x64xbf16>, vector<128x64xf32> -> vector<128x64xf32>
    %47 = arith.addf %36, %46 : vector<128x64xf32>
    %c0_22 = arith.constant 0 : index
    %c0_23 = arith.constant 0 : index
    %48 = vector.load %arg9[%c0_22, %c0_23] : memref<128x64xf32, #tpu.memory_space<vmem>>, vector<128x64xf32>
    tpu.vector_store %arg9[%c0_22, %c0_23], %47 {strides = array<i32>} : memref<128x64xf32, #tpu.memory_space<vmem>>, vector<128x64xf32>,
    return
  }
  func.func @transform_0(%arg0: i32) -> (i32, i32) {
    %c0_i32 = arith.constant 0 : i32
    %c0_i32_0 = arith.constant 0 : i32
    return %arg0, %c0_i32 : i32, i32
  }
  func.func @transform_1(%arg0: i32) -> (i32, i32) {
    %c0_i32 = arith.constant 0 : i32
    %c0_i32_0 = arith.constant 0 : i32
    return %arg0, %c0_i32 : i32, i32
  }
  func.func @transform_2(%arg0: i32) -> (i32, i32) {
    %c0_i32 = arith.constant 0 : i32
    %c0_i32_0 = arith.constant 0 : i32
    return %arg0, %c0_i32 : i32, i32
  }
  func.func @transform_3(%arg0: i32) -> (i32, i32) {
    %c0_i32 = arith.constant 0 : i32
    %c0_i32_0 = arith.constant 0 : i32
    %c0_i32_1 = arith.constant 0 : i32
    return %c0_i32, %c0_i32_0 : i32, i32
  }
  func.func @transform_4(%arg0: i32) -> (i32, i32) {
    %c0_i32 = arith.constant 0 : i32
    %c0_i32_0 = arith.constant 0 : i32
    %c0_i32_1 = arith.constant 0 : i32
    return %c0_i32, %c0_i32_0 : i32, i32
  }
  func.func @transform_5(%arg0: i32) -> (i32, i32) {
    %c0_i32 = arith.constant 0 : i32
    %c0_i32_0 = arith.constant 0 : i32
    %c0_i32_1 = arith.constant 0 : i32
    return %c0_i32, %c0_i32_0 : i32, i32
  }
  func.func @transform_6(%arg0: i32) -> (i32, i32) {
    %c0_i32 = arith.constant 0 : i32
    %c0_i32_0 = arith.constant 0 : i32
    %c0_i32_1 = arith.constant 0 : i32
    return %c0_i32, %c0_i32_0 : i32, i32
  }
  func.func @transform_7(%arg0: i32) -> (i32, i32) {
    %c0_i32 = arith.constant 0 : i32
    %c0_i32_0 = arith.constant 0 : i32
    %c0_i32_1 = arith.constant 0 : i32
    return %c0_i32, %c0_i32_0 : i32, i32
  }
  func.func @transform_8(%arg0: i32) -> (i32, i32) {
    %c0_i32 = arith.constant 0 : i32
    %c0_i32_0 = arith.constant 0 : i32
    return %arg0, %c0_i32 : i32, i32
  }
}

module attributes {stable_mosaic.version = 11 : i64} {
  func.func @kernel(%arg0: i32, %arg1: memref<8x1024xf32, #tpu.memory_space<vmem>>, %arg2: memref<8x512xf32, #tpu.memory_space<vmem>>) attributes {dimension_semantics = [#tpu.dimension_semantics<parallel>], iteration_bounds = array<i64: 1>, scalar_prefetch = 0 : i64, scratch_operands = 0 : i64, tpu.core_type = #tpu.core_type<tc>, window_params = [{transform_indices = @transform_0, window_bounds = array<i64: 8, 1024>}, {transform_indices = @transform_1, window_bounds = array<i64: 8, 512>}]} {
    %c0 = arith.constant 0 : index
    %c0_0 = arith.constant 0 : index
    %0 = vector.load %arg1[%c0, %c0_0] : memref<8x1024xf32, #tpu.memory_space<vmem>>, vector<8x1024xf32>
    %1 = vector.extract_strided_slice %0 {offsets = [0, 0], sizes = [8, 512], strides = [1, 1]} : vector<8x1024xf32> to vector<8x512xf32>
    %2 = vector.extract_strided_slice %0 {offsets = [0, 512], sizes = [8, 512], strides = [1, 1]} : vector<8x1024xf32> to vector<8x512xf32>
    %3 = arith.addf %1, %2 : vector<8x512xf32>
    %cst = arith.constant 5.000000e-01 : f32
    %4 = vector.broadcast %cst : f32 to vector<8x512xf32>
    %5 = arith.mulf %3, %4 : vector<8x512xf32>
    %c0_1 = arith.constant 0 : index
    %c0_2 = arith.constant 0 : index
    %6 = vector.load %arg2[%c0_1, %c0_2] : memref<8x512xf32, #tpu.memory_space<vmem>>, vector<8x512xf32>
    tpu.vector_store %arg2[%c0_1, %c0_2], %5 {strides = array<i32>} : memref<8x512xf32, #tpu.memory_space<vmem>>, vector<8x512xf32>,
    return
  }
  func.func @transform_0(%arg0: i32) -> (i32, i32) {
    %c0_i32 = arith.constant 0 : i32
    %c0_i32_0 = arith.constant 0 : i32
    return %arg0, %c0_i32 : i32, i32
  }
  func.func @transform_1(%arg0: i32) -> (i32, i32) {
    %c0_i32 = arith.constant 0 : i32
    %c0_i32_0 = arith.constant 0 : i32
    return %arg0, %c0_i32 : i32, i32
  }
}

module attributes {stable_mosaic.version = 11 : i64} {
  func.func @kernel(%arg0: i32, %arg1: memref<32x128xf32, #tpu.memory_space<vmem>>, %arg2: memref<32x64xf32, #tpu.memory_space<vmem>>, %arg3: memref<1x64xf32, #tpu.memory_space<vmem>>, %arg4: memref<1x64xf32, #tpu.memory_space<vmem>>) attributes {dimension_semantics = [#tpu.dimension_semantics<arbitrary>], iteration_bounds = array<i64: 1>, scalar_prefetch = 0 : i64, scratch_operands = 0 : i64, tpu.core_type = #tpu.core_type<tc>, window_params = [{transform_indices = @transform_0, window_bounds = array<i64: 32, 128>}, {transform_indices = @transform_1, window_bounds = array<i64: 32, 64>}, {pipeline_mode = #tpu.pipeline_mode<synchronous>, transform_indices = @transform_2, window_bounds = array<i64: 1, 64>}, {pipeline_mode = #tpu.pipeline_mode<synchronous>, transform_indices = @transform_3, window_bounds = array<i64: 1, 64>}]} {
    %c0 = arith.constant 0 : index
    %c0_0 = arith.constant 0 : index
    %0 = vector.load %arg1[%c0, %c0_0] : memref<32x128xf32, #tpu.memory_space<vmem>>, vector<32x128xf32>
    %1 = vector.extract_strided_slice %0 {offsets = [0, 0], sizes = [32, 64], strides = [1, 1]} : vector<32x128xf32> to vector<32x64xf32>
    %2 = vector.extract_strided_slice %0 {offsets = [0, 64], sizes = [32, 64], strides = [1, 1]} : vector<32x128xf32> to vector<32x64xf32>
    %3 = arith.addf %1, %2 : vector<32x64xf32>
    %cst = arith.constant 5.000000e-01 : f32
    %4 = vector.broadcast %cst : f32 to vector<32x64xf32>
    %5 = arith.mulf %3, %4 : vector<32x64xf32>
    %c0_1 = arith.constant 0 : index
    %c0_2 = arith.constant 0 : index
    %6 = vector.load %arg2[%c0_1, %c0_2] : memref<32x64xf32, #tpu.memory_space<vmem>>, vector<32x64xf32>
    tpu.vector_store %arg2[%c0_1, %c0_2], %5 {strides = array<i32>} : memref<32x64xf32, #tpu.memory_space<vmem>>, vector<32x64xf32>,
    %c0_i32 = arith.constant 0 : i32
    %7 = arith.cmpi eq, %arg0, %c0_i32 : i32
    %8 = arith.extui %7 : i1 to i32
    %c0_i32_3 = arith.constant 0 : i32
    %9 = arith.cmpi ne, %8, %c0_i32_3 : i32
    scf.if %9 {
      %cst_14 = arith.constant 0.000000e+00 : f32
      %21 = vector.broadcast %cst_14 : f32 to vector<1x64xf32>
      %c0_15 = arith.constant 0 : index
      %c0_16 = arith.constant 0 : index
      %22 = vector.load %arg3[%c0_15, %c0_16] : memref<1x64xf32, #tpu.memory_space<vmem>>, vector<1x64xf32>
      tpu.vector_store %arg3[%c0_15, %c0_16], %21 {strides = array<i32>} : memref<1x64xf32, #tpu.memory_space<vmem>>, vector<1x64xf32>,
      %cst_17 = arith.constant 0.000000e+00 : f32
      %23 = vector.broadcast %cst_17 : f32 to vector<1x64xf32>
      %c0_18 = arith.constant 0 : index
      %c0_19 = arith.constant 0 : index
      %24 = vector.load %arg4[%c0_18, %c0_19] : memref<1x64xf32, #tpu.memory_space<vmem>>, vector<1x64xf32>
      tpu.vector_store %arg4[%c0_18, %c0_19], %23 {strides = array<i32>} : memref<1x64xf32, #tpu.memory_space<vmem>>, vector<1x64xf32>,
    } else {
    }
    %c0_4 = arith.constant 0 : index
    %c0_5 = arith.constant 0 : index
    %10 = vector.load %arg3[%c0_4, %c0_5] : memref<1x64xf32, #tpu.memory_space<vmem>>, vector<1x64xf32>
    %cst_6 = arith.constant dense<0.000000e+00> : vector<64xf32>
    %11 = vector.multi_reduction <add>, %5, %cst_6 [0] : vector<32x64xf32> to vector<64xf32>
    %12 = vector.shape_cast %11 : vector<64xf32> to vector<1x64xf32>
    %13 = arith.addf %10, %12 : vector<1x64xf32>
    %c0_7 = arith.constant 0 : index
    %c0_8 = arith.constant 0 : index
    %14 = vector.load %arg3[%c0_7, %c0_8] : memref<1x64xf32, #tpu.memory_space<vmem>>, vector<1x64xf32>
    tpu.vector_store %arg3[%c0_7, %c0_8], %13 {strides = array<i32>} : memref<1x64xf32, #tpu.memory_space<vmem>>, vector<1x64xf32>,
    %c0_9 = arith.constant 0 : index
    %c0_10 = arith.constant 0 : index
    %15 = vector.load %arg4[%c0_9, %c0_10] : memref<1x64xf32, #tpu.memory_space<vmem>>, vector<1x64xf32>
    %16 = arith.mulf %5, %5 : vector<32x64xf32>
    %cst_11 = arith.constant dense<0.000000e+00> : vector<64xf32>
    %17 = vector.multi_reduction <add>, %16, %cst_11 [0] : vector<32x64xf32> to vector<64xf32>
    %18 = vector.shape_cast %17 : vector<64xf32> to vector<1x64xf32>
    %19 = arith.addf %15, %18 : vector<1x64xf32>
    %c0_12 = arith.constant 0 : index
    %c0_13 = arith.constant 0 : index
    %20 = vector.load %arg4[%c0_12, %c0_13] : memref<1x64xf32, #tpu.memory_space<vmem>>, vector<1x64xf32>
    tpu.vector_store %arg4[%c0_12, %c0_13], %19 {strides = array<i32>} : memref<1x64xf32, #tpu.memory_space<vmem>>, vector<1x64xf32>,
    return
  }
  func.func @transform_0(%arg0: i32) -> (i32, i32) {
    %c0_i32 = arith.constant 0 : i32
    %c0_i32_0 = arith.constant 0 : i32
    return %arg0, %c0_i32 : i32, i32
  }
  func.func @transform_1(%arg0: i32) -> (i32, i32) {
    %c0_i32 = arith.constant 0 : i32
    %c0_i32_0 = arith.constant 0 : i32
    return %arg0, %c0_i32 : i32, i32
  }
  func.func @transform_2(%arg0: i32) -> (i32, i32) {
    %c0_i32 = arith.constant 0 : i32
    %c0_i32_0 = arith.constant 0 : i32
    %c0_i32_1 = arith.constant 0 : i32
    return %c0_i32, %c0_i32_0 : i32, i32
  }
  func.func @transform_3(%arg0: i32) -> (i32, i32) {
    %c0_i32 = arith.constant 0 : i32
    %c0_i32_0 = arith.constant 0 : i32
    %c0_i32_1 = arith.constant 0 : i32
    return %c0_i32, %c0_i32_0 : i32, i32
  }
}

module attributes {stable_mosaic.version = 11 : i64} {
  func.func @kernel(%arg0: i32, %arg1: memref<32x64xf32, #tpu.memory_space<vmem>>, %arg2: memref<1x64xf32, #tpu.memory_space<vmem>>, %arg3: memref<1x64xf32, #tpu.memory_space<vmem>>, %arg4: memref<1x64xf32, #tpu.memory_space<vmem>>, %arg5: memref<1x64xf32, #tpu.memory_space<vmem>>, %arg6: memref<64x128xbf16, #tpu.memory_space<vmem>>, %arg7: memref<32x128xf32, #tpu.memory_space<vmem>>, %arg8: memref<1x128xf32, #tpu.memory_space<vmem>>, %arg9: memref<1x128xf32, #tpu.memory_space<vmem>>) attributes {dimension_semantics = [#tpu.dimension_semantics<arbitrary>], iteration_bounds = array<i64: 1>, scalar_prefetch = 0 : i64, scratch_operands = 0 : i64, tpu.core_type = #tpu.core_type<tc>, window_params = [{transform_indices = @transform_0, window_bounds = array<i64: 32, 64>}, {pipeline_mode = #tpu.pipeline_mode<synchronous>, transform_indices = @transform_1, window_bounds = array<i64: 1, 64>}, {pipeline_mode = #tpu.pipeline_mode<synchronous>, transform_indices = @transform_2, window_bounds = array<i64: 1, 64>}, {pipeline_mode = #tpu.pipeline_mode<synchronous>, transform_indices = @transform_3, window_bounds = array<i64: 1, 64>}, {pipeline_mode = #tpu.pipeline_mode<synchronous>, transform_indices = @transform_4, window_bounds = array<i64: 1, 64>}, {pipeline_mode = #tpu.pipeline_mode<synchronous>, transform_indices = @transform_5, window_bounds = array<i64: 64, 128>}, {transform_indices = @transform_6, window_bounds = array<i64: 32, 128>}, {pipeline_mode = #tpu.pipeline_mode<synchronous>, transform_indices = @transform_7, window_bounds = array<i64: 1, 128>}, {pipeline_mode = #tpu.pipeline_mode<synchronous>, transform_indices = @transform_8, window_bounds = array<i64: 1, 128>}]} {
    %c0 = arith.constant 0 : index
    %c0_0 = arith.constant 0 : index
    %0 = vector.load %arg4[%c0, %c0_0] : memref<1x64xf32, #tpu.memory_space<vmem>>, vector<1x64xf32>
    %cst = arith.constant 3.125000e-02 : f32
    %1 = vector.broadcast %cst : f32 to vector<1x64xf32>
    %2 = arith.mulf %0, %1 : vector<1x64xf32>
    %c0_1 = arith.constant 0 : index
    %c0_2 = arith.constant 0 : index
    %3 = vector.load %arg5[%c0_1, %c0_2] : memref<1x64xf32, #tpu.memory_space<vmem>>, vector<1x64xf32>
    %cst_3 = arith.constant 3.125000e-02 : f32
    %4 = vector.broadcast %cst_3 : f32 to vector<1x64xf32>
    %5 = arith.mulf %3, %4 : vector<1x64xf32>
    %6 = arith.mulf %2, %2 : vector<1x64xf32>
    %7 = arith.subf %5, %6 : vector<1x64xf32>
    %c0_4 = arith.constant 0 : index
    %c0_5 = arith.constant 0 : index
    %8 = vector.load %arg2[%c0_4, %c0_5] : memref<1x64xf32, #tpu.memory_space<vmem>>, vector<1x64xf32>
    %cst_6 = arith.constant 9.99999974E-6 : f32
    %9 = vector.broadcast %cst_6 : f32 to vector<1x64xf32>
    %10 = arith.addf %7, %9 : vector<1x64xf32>
    %11 = math.rsqrt %10 : vector<1x64xf32>
    %12 = arith.mulf %8, %11 : vector<1x64xf32>
    %c0_7 = arith.constant 0 : index
    %c0_8 = arith.constant 0 : index
    %13 = vector.load %arg3[%c0_7, %c0_8] : memref<1x64xf32, #tpu.memory_space<vmem>>, vector<1x64xf32>
    %14 = arith.mulf %2, %12 : vector<1x64xf32>
    %15 = arith.subf %13, %14 : vector<1x64xf32>
    %c0_9 = arith.constant 0 : index
    %c0_10 = arith.constant 0 : index
    %16 = vector.load %arg1[%c0_9, %c0_10] : memref<32x64xf32, #tpu.memory_space<vmem>>, vector<32x64xf32>
    %17 = vector.broadcast %12 : vector<1x64xf32> to vector<32x64xf32>
    %18 = arith.mulf %16, %17 : vector<32x64xf32>
    %19 = vector.broadcast %15 : vector<1x64xf32> to vector<32x64xf32>
    %20 = arith.addf %18, %19 : vector<32x64xf32>
    %cst_11 = arith.constant 0.000000e+00 : f32
    %21 = vector.broadcast %cst_11 : f32 to vector<32x64xf32>
    %22 = arith.maximumf %20, %21 : vector<32x64xf32>
    %23 = arith.truncf %22 : vector<32x64xf32> to vector<32x64xbf16>
    %c0_12 = arith.constant 0 : index
    %c0_13 = arith.constant 0 : index
    %24 = vector.load %arg6[%c0_12, %c0_13] : memref<64x128xbf16, #tpu.memory_space<vmem>>, vector<64x128xbf16>
    %cst_14 = arith.constant dense<0.000000e+00> : vector<32x128xf32>
    %25 = tpu.matmul %23, %24, %cst_14 {dimension_numbers = #tpu.dot_dimension_numbers<[1], [0], [0], [1], [0, 0, 1, 1], [], []>} : vector<32x64xbf16>, vector<64x128xbf16>, vector<32x128xf32> -> vector<32x128xf32>
    %c0_15 = arith.constant 0 : index
    %c0_16 = arith.constant 0 : index
    %26 = vector.load %arg7[%c0_15, %c0_16] : memref<32x128xf32, #tpu.memory_space<vmem>>, vector<32x128xf32>
    tpu.vector_store %arg7[%c0_15, %c0_16], %25 {strides = array<i32>} : memref<32x128xf32, #tpu.memory_space<vmem>>, vector<32x128xf32>,
    %c0_i32 = arith.constant 0 : i32
    %27 = arith.cmpi eq, %arg0, %c0_i32 : i32
    %28 = arith.extui %27 : i1 to i32
    %c0_i32_17 = arith.constant 0 : i32
    %29 = arith.cmpi ne, %28, %c0_i32_17 : i32
    scf.if %29 {
      %cst_28 = arith.constant 0.000000e+00 : f32
      %41 = vector.broadcast %cst_28 : f32 to vector<1x128xf32>
      %c0_29 = arith.constant 0 : index
      %c0_30 = arith.constant 0 : index
      %42 = vector.load %arg8[%c0_29, %c0_30] : memref<1x128xf32, #tpu.memory_space<vmem>>, vector<1x128xf32>
      tpu.vector_store %arg8[%c0_29, %c0_30], %41 {strides = array<i32>} : memref<1x128xf32, #tpu.memory_space<vmem>>, vector<1x128xf32>,
      %cst_31 = arith.constant 0.000000e+00 : f32
      %43 = vector.broadcast %cst_31 : f32 to vector<1x128xf32>
      %c0_32 = arith.constant 0 : index
      %c0_33 = arith.constant 0 : index
      %44 = vector.load %arg9[%c0_32, %c0_33] : memref<1x128xf32, #tpu.memory_space<vmem>>, vector<1x128xf32>
      tpu.vector_store %arg9[%c0_32, %c0_33], %43 {strides = array<i32>} : memref<1x128xf32, #tpu.memory_space<vmem>>, vector<1x128xf32>,
    } else {
    }
    %c0_18 = arith.constant 0 : index
    %c0_19 = arith.constant 0 : index
    %30 = vector.load %arg8[%c0_18, %c0_19] : memref<1x128xf32, #tpu.memory_space<vmem>>, vector<1x128xf32>
    %cst_20 = arith.constant dense<0.000000e+00> : vector<128xf32>
    %31 = vector.multi_reduction <add>, %25, %cst_20 [0] : vector<32x128xf32> to vector<128xf32>
    %32 = vector.shape_cast %31 : vector<128xf32> to vector<1x128xf32>
    %33 = arith.addf %30, %32 : vector<1x128xf32>
    %c0_21 = arith.constant 0 : index
    %c0_22 = arith.constant 0 : index
    %34 = vector.load %arg8[%c0_21, %c0_22] : memref<1x128xf32, #tpu.memory_space<vmem>>, vector<1x128xf32>
    tpu.vector_store %arg8[%c0_21, %c0_22], %33 {strides = array<i32>} : memref<1x128xf32, #tpu.memory_space<vmem>>, vector<1x128xf32>,
    %c0_23 = arith.constant 0 : index
    %c0_24 = arith.constant 0 : index
    %35 = vector.load %arg9[%c0_23, %c0_24] : memref<1x128xf32, #tpu.memory_space<vmem>>, vector<1x128xf32>
    %36 = arith.mulf %25, %25 : vector<32x128xf32>
    %cst_25 = arith.constant dense<0.000000e+00> : vector<128xf32>
    %37 = vector.multi_reduction <add>, %36, %cst_25 [0] : vector<32x128xf32> to vector<128xf32>
    %38 = vector.shape_cast %37 : vector<128xf32> to vector<1x128xf32>
    %39 = arith.addf %35, %38 : vector<1x128xf32>
    %c0_26 = arith.constant 0 : index
    %c0_27 = arith.constant 0 : index
    %40 = vector.load %arg9[%c0_26, %c0_27] : memref<1x128xf32, #tpu.memory_space<vmem>>, vector<1x128xf32>
    tpu.vector_store %arg9[%c0_26, %c0_27], %39 {strides = array<i32>} : memref<1x128xf32, #tpu.memory_space<vmem>>, vector<1x128xf32>,
    return
  }
  func.func @transform_0(%arg0: i32) -> (i32, i32) {
    %c0_i32 = arith.constant 0 : i32
    %c0_i32_0 = arith.constant 0 : i32
    return %arg0, %c0_i32 : i32, i32
  }
  func.func @transform_1(%arg0: i32) -> (i32, i32) {
    %c0_i32 = arith.constant 0 : i32
    %c0_i32_0 = arith.constant 0 : i32
    %c0_i32_1 = arith.constant 0 : i32
    return %c0_i32, %c0_i32_0 : i32, i32
  }
  func.func @transform_2(%arg0: i32) -> (i32, i32) {
    %c0_i32 = arith.constant 0 : i32
    %c0_i32_0 = arith.constant 0 : i32
    %c0_i32_1 = arith.constant 0 : i32
    return %c0_i32, %c0_i32_0 : i32, i32
  }
  func.func @transform_3(%arg0: i32) -> (i32, i32) {
    %c0_i32 = arith.constant 0 : i32
    %c0_i32_0 = arith.constant 0 : i32
    %c0_i32_1 = arith.constant 0 : i32
    return %c0_i32, %c0_i32_0 : i32, i32
  }
  func.func @transform_4(%arg0: i32) -> (i32, i32) {
    %c0_i32 = arith.constant 0 : i32
    %c0_i32_0 = arith.constant 0 : i32
    %c0_i32_1 = arith.constant 0 : i32
    return %c0_i32, %c0_i32_0 : i32, i32
  }
  func.func @transform_5(%arg0: i32) -> (i32, i32) {
    %c0_i32 = arith.constant 0 : i32
    %c0_i32_0 = arith.constant 0 : i32
    %c0_i32_1 = arith.constant 0 : i32
    return %c0_i32, %c0_i32_0 : i32, i32
  }
  func.func @transform_6(%arg0: i32) -> (i32, i32) {
    %c0_i32 = arith.constant 0 : i32
    %c0_i32_0 = arith.constant 0 : i32
    return %arg0, %c0_i32 : i32, i32
  }
  func.func @transform_7(%arg0: i32) -> (i32, i32) {
    %c0_i32 = arith.constant 0 : i32
    %c0_i32_0 = arith.constant 0 : i32
    %c0_i32_1 = arith.constant 0 : i32
    return %c0_i32, %c0_i32_0 : i32, i32
  }
  func.func @transform_8(%arg0: i32) -> (i32, i32) {
    %c0_i32 = arith.constant 0 : i32
    %c0_i32_0 = arith.constant 0 : i32
    %c0_i32_1 = arith.constant 0 : i32
    return %c0_i32, %c0_i32_0 : i32, i32
  }
}

module attributes {stable_mosaic.version = 11 : i64} {
  func.func @kernel(%arg0: i32, %arg1: memref<32x64xf32, #tpu.memory_space<vmem>>, %arg2: memref<32x32xf32, #tpu.memory_space<vmem>>, %arg3: memref<1x96xf32, #tpu.memory_space<vmem>>, %arg4: memref<1x96xf32, #tpu.memory_space<vmem>>, %arg5: memref<1x96xf32, #tpu.memory_space<vmem>>, %arg6: memref<1x96xf32, #tpu.memory_space<vmem>>, %arg7: memref<96x128xbf16, #tpu.memory_space<vmem>>, %arg8: memref<32x128xf32, #tpu.memory_space<vmem>>, %arg9: memref<1x128xf32, #tpu.memory_space<vmem>>, %arg10: memref<1x128xf32, #tpu.memory_space<vmem>>) attributes {dimension_semantics = [#tpu.dimension_semantics<arbitrary>], iteration_bounds = array<i64: 1>, scalar_prefetch = 0 : i64, scratch_operands = 0 : i64, tpu.core_type = #tpu.core_type<tc>, window_params = [{transform_indices = @transform_0, window_bounds = array<i64: 32, 64>}, {transform_indices = @transform_1, window_bounds = array<i64: 32, 32>}, {pipeline_mode = #tpu.pipeline_mode<synchronous>, transform_indices = @transform_2, window_bounds = array<i64: 1, 96>}, {pipeline_mode = #tpu.pipeline_mode<synchronous>, transform_indices = @transform_3, window_bounds = array<i64: 1, 96>}, {pipeline_mode = #tpu.pipeline_mode<synchronous>, transform_indices = @transform_4, window_bounds = array<i64: 1, 96>}, {pipeline_mode = #tpu.pipeline_mode<synchronous>, transform_indices = @transform_5, window_bounds = array<i64: 1, 96>}, {pipeline_mode = #tpu.pipeline_mode<synchronous>, transform_indices = @transform_6, window_bounds = array<i64: 96, 128>}, {transform_indices = @transform_7, window_bounds = array<i64: 32, 128>}, {pipeline_mode = #tpu.pipeline_mode<synchronous>, transform_indices = @transform_8, window_bounds = array<i64: 1, 128>}, {pipeline_mode = #tpu.pipeline_mode<synchronous>, transform_indices = @transform_9, window_bounds = array<i64: 1, 128>}]} {
    %c0 = arith.constant 0 : index
    %c0_0 = arith.constant 0 : index
    %0 = vector.load %arg5[%c0, %c0_0] : memref<1x96xf32, #tpu.memory_space<vmem>>, vector<1x96xf32>
    %cst = arith.constant 3.125000e-02 : f32
    %1 = vector.broadcast %cst : f32 to vector<1x96xf32>
    %2 = arith.mulf %0, %1 : vector<1x96xf32>
    %c0_1 = arith.constant 0 : index
    %c0_2 = arith.constant 0 : index
    %3 = vector.load %arg6[%c0_1, %c0_2] : memref<1x96xf32, #tpu.memory_space<vmem>>, vector<1x96xf32>
    %cst_3 = arith.constant 3.125000e-02 : f32
    %4 = vector.broadcast %cst_3 : f32 to vector<1x96xf32>
    %5 = arith.mulf %3, %4 : vector<1x96xf32>
    %6 = arith.mulf %2, %2 : vector<1x96xf32>
    %7 = arith.subf %5, %6 : vector<1x96xf32>
    %c0_4 = arith.constant 0 : index
    %c0_5 = arith.constant 0 : index
    %8 = vector.load %arg3[%c0_4, %c0_5] : memref<1x96xf32, #tpu.memory_space<vmem>>, vector<1x96xf32>
    %cst_6 = arith.constant 9.99999974E-6 : f32
    %9 = vector.broadcast %cst_6 : f32 to vector<1x96xf32>
    %10 = arith.addf %7, %9 : vector<1x96xf32>
    %11 = math.rsqrt %10 : vector<1x96xf32>
    %12 = arith.mulf %8, %11 : vector<1x96xf32>
    %c0_7 = arith.constant 0 : index
    %c0_8 = arith.constant 0 : index
    %13 = vector.load %arg4[%c0_7, %c0_8] : memref<1x96xf32, #tpu.memory_space<vmem>>, vector<1x96xf32>
    %14 = arith.mulf %2, %12 : vector<1x96xf32>
    %15 = arith.subf %13, %14 : vector<1x96xf32>
    %c0_9 = arith.constant 0 : index
    %c0_10 = arith.constant 0 : index
    %16 = vector.load %arg1[%c0_9, %c0_10] : memref<32x64xf32, #tpu.memory_space<vmem>>, vector<32x64xf32>
    %17 = vector.extract_strided_slice %12 {offsets = [0, 0], sizes = [1, 64], strides = [1, 1]} : vector<1x96xf32> to vector<1x64xf32>
    %18 = vector.broadcast %17 : vector<1x64xf32> to vector<32x64xf32>
    %19 = arith.mulf %16, %18 : vector<32x64xf32>
    %20 = vector.extract_strided_slice %15 {offsets = [0, 0], sizes = [1, 64], strides = [1, 1]} : vector<1x96xf32> to vector<1x64xf32>
    %21 = vector.broadcast %20 : vector<1x64xf32> to vector<32x64xf32>
    %22 = arith.addf %19, %21 : vector<32x64xf32>
    %cst_11 = arith.constant 0.000000e+00 : f32
    %23 = vector.broadcast %cst_11 : f32 to vector<32x64xf32>
    %24 = arith.maximumf %22, %23 : vector<32x64xf32>
    %25 = arith.truncf %24 : vector<32x64xf32> to vector<32x64xbf16>
    %c0_12 = arith.constant 0 : index
    %c0_13 = arith.constant 0 : index
    %26 = vector.load %arg7[%c0_12, %c0_13] : memref<96x128xbf16, #tpu.memory_space<vmem>>, vector<64x128xbf16>
    %cst_14 = arith.constant dense<0.000000e+00> : vector<32x128xf32>
    %27 = tpu.matmul %25, %26, %cst_14 {dimension_numbers = #tpu.dot_dimension_numbers<[1], [0], [0], [1], [0, 0, 1, 1], [], []>} : vector<32x64xbf16>, vector<64x128xbf16>, vector<32x128xf32> -> vector<32x128xf32>
    %c0_15 = arith.constant 0 : index
    %c0_16 = arith.constant 0 : index
    %28 = vector.load %arg2[%c0_15, %c0_16] : memref<32x32xf32, #tpu.memory_space<vmem>>, vector<32x32xf32>
    %29 = vector.extract_strided_slice %12 {offsets = [0, 64], sizes = [1, 32], strides = [1, 1]} : vector<1x96xf32> to vector<1x32xf32>
    %30 = vector.broadcast %29 : vector<1x32xf32> to vector<32x32xf32>
    %31 = arith.mulf %28, %30 : vector<32x32xf32>
    %32 = vector.extract_strided_slice %15 {offsets = [0, 64], sizes = [1, 32], strides = [1, 1]} : vector<1x96xf32> to vector<1x32xf32>
    %33 = vector.broadcast %32 : vector<1x32xf32> to vector<32x32xf32>
    %34 = arith.addf %31, %33 : vector<32x32xf32>
    %cst_17 = arith.constant 0.000000e+00 : f32
    %35 = vector.broadcast %cst_17 : f32 to vector<32x32xf32>
    %36 = arith.maximumf %34, %35 : vector<32x32xf32>
    %37 = arith.truncf %36 : vector<32x32xf32> to vector<32x32xbf16>
    %c64 = arith.constant 64 : index
    %c0_18 = arith.constant 0 : index
    %38 = vector.load %arg7[%c64, %c0_18] : memref<96x128xbf16, #tpu.memory_space<vmem>>, vector<32x128xbf16>
    %cst_19 = arith.constant dense<0.000000e+00> : vector<32x128xf32>
    %39 = tpu.matmul %37, %38, %cst_19 {dimension_numbers = #tpu.dot_dimension_numbers<[1], [0], [0], [1], [0, 0, 1, 1], [], []>} : vector<32x32xbf16>, vector<32x128xbf16>, vector<32x128xf32> -> vector<32x128xf32>
    %40 = arith.addf %27, %39 : vector<32x128xf32>
    %c0_20 = arith.constant 0 : index
    %c0_21 = arith.constant 0 : index
    %41 = vector.load %arg8[%c0_20, %c0_21] : memref<32x128xf32, #tpu.memory_space<vmem>>, vector<32x128xf32>
    tpu.vector_store %arg8[%c0_20, %c0_21], %40 {strides = array<i32>} : memref<32x128xf32, #tpu.memory_space<vmem>>, vector<32x128xf32>,
    %c0_i32 = arith.constant 0 : i32
    %42 = arith.cmpi eq, %arg0, %c0_i32 : i32
    %43 = arith.extui %42 : i1 to i32
    %c0_i32_22 = arith.constant 0 : i32
    %44 = arith.cmpi ne, %43, %c0_i32_22 : i32
    scf.if %44 {
      %cst_33 = arith.constant 0.000000e+00 : f32
      %56 = vector.broadcast %cst_33 : f32 to vector<1x128xf32>
      %c0_34 = arith.constant 0 : index
      %c0_35 = arith.constant 0 : index
      %57 = vector.load %arg9[%c0_34, %c0_35] : memref<1x128xf32, #tpu.memory_space<vmem>>, vector<1x128xf32>
      tpu.vector_store %arg9[%c0_34, %c0_35], %56 {strides = array<i32>} : memref<1x128xf32, #tpu.memory_space<vmem>>, vector<1x128xf32>,
      %cst_36 = arith.constant 0.000000e+00 : f32
      %58 = vector.broadcast %cst_36 : f32 to vector<1x128xf32>
      %c0_37 = arith.constant 0 : index
      %c0_38 = arith.constant 0 : index
      %59 = vector.load %arg10[%c0_37, %c0_38] : memref<1x128xf32, #tpu.memory_space<vmem>>, vector<1x128xf32>
      tpu.vector_store %arg10[%c0_37, %c0_38], %58 {strides = array<i32>} : memref<1x128xf32, #tpu.memory_space<vmem>>, vector<1x128xf32>,
    } else {
    }
    %c0_23 = arith.constant 0 : index
    %c0_24 = arith.constant 0 : index
    %45 = vector.load %arg9[%c0_23, %c0_24] : memref<1x128xf32, #tpu.memory_space<vmem>>, vector<1x128xf32>
    %cst_25 = arith.constant dense<0.000000e+00> : vector<128xf32>
    %46 = vector.multi_reduction <add>, %40, %cst_25 [0] : vector<32x128xf32> to vector<128xf32>
    %47 = vector.shape_cast %46 : vector<128xf32> to vector<1x128xf32>
    %48 = arith.addf %45, %47 : vector<1x128xf32>
    %c0_26 = arith.constant 0 : index
    %c0_27 = arith.constant 0 : index
    %49 = vector.load %arg9[%c0_26, %c0_27] : memref<1x128xf32, #tpu.memory_space<vmem>>, vector<1x128xf32>
    tpu.vector_store %arg9[%c0_26, %c0_27], %48 {strides = array<i32>} : memref<1x128xf32, #tpu.memory_space<vmem>>, vector<1x128xf32>,
    %c0_28 = arith.constant 0 : index
    %c0_29 = arith.constant 0 : index
    %50 = vector.load %arg10[%c0_28, %c0_29] : memref<1x128xf32, #tpu.memory_space<vmem>>, vector<1x128xf32>
    %51 = arith.mulf %40, %40 : vector<32x128xf32>
    %cst_30 = arith.constant dense<0.000000e+00> : vector<128xf32>
    %52 = vector.multi_reduction <add>, %51, %cst_30 [0] : vector<32x128xf32> to vector<128xf32>
    %53 = vector.shape_cast %52 : vector<128xf32> to vector<1x128xf32>
    %54 = arith.addf %50, %53 : vector<1x128xf32>
    %c0_31 = arith.constant 0 : index
    %c0_32 = arith.constant 0 : index
    %55 = vector.load %arg10[%c0_31, %c0_32] : memref<1x128xf32, #tpu.memory_space<vmem>>, vector<1x128xf32>
    tpu.vector_store %arg10[%c0_31, %c0_32], %54 {strides = array<i32>} : memref<1x128xf32, #tpu.memory_space<vmem>>, vector<1x128xf32>,
    return
  }
  func.func @transform_0(%arg0: i32) -> (i32, i32) {
    %c0_i32 = arith.constant 0 : i32
    %c0_i32_0 = arith.constant 0 : i32
    return %arg0, %c0_i32 : i32, i32
  }
  func.func @transform_1(%arg0: i32) -> (i32, i32) {
    %c0_i32 = arith.constant 0 : i32
    %c0_i32_0 = arith.constant 0 : i32
    return %arg0, %c0_i32 : i32, i32
  }
  func.func @transform_2(%arg0: i32) -> (i32, i32) {
    %c0_i32 = arith.constant 0 : i32
    %c0_i32_0 = arith.constant 0 : i32
    %c0_i32_1 = arith.constant 0 : i32
    return %c0_i32, %c0_i32_0 : i32, i32
  }
  func.func @transform_3(%arg0: i32) -> (i32, i32) {
    %c0_i32 = arith.constant 0 : i32
    %c0_i32_0 = arith.constant 0 : i32
    %c0_i32_1 = arith.constant 0 : i32
    return %c0_i32, %c0_i32_0 : i32, i32
  }
  func.func @transform_4(%arg0: i32) -> (i32, i32) {
    %c0_i32 = arith.constant 0 : i32
    %c0_i32_0 = arith.constant 0 : i32
    %c0_i32_1 = arith.constant 0 : i32
    return %c0_i32, %c0_i32_0 : i32, i32
  }
  func.func @transform_5(%arg0: i32) -> (i32, i32) {
    %c0_i32 = arith.constant 0 : i32
    %c0_i32_0 = arith.constant 0 : i32
    %c0_i32_1 = arith.constant 0 : i32
    return %c0_i32, %c0_i32_0 : i32, i32
  }
  func.func @transform_6(%arg0: i32) -> (i32, i32) {
    %c0_i32 = arith.constant 0 : i32
    %c0_i32_0 = arith.constant 0 : i32
    %c0_i32_1 = arith.constant 0 : i32
    return %c0_i32, %c0_i32_0 : i32, i32
  }
  func.func @transform_7(%arg0: i32) -> (i32, i32) {
    %c0_i32 = arith.constant 0 : i32
    %c0_i32_0 = arith.constant 0 : i32
    return %arg0, %c0_i32 : i32, i32
  }
  func.func @transform_8(%arg0: i32) -> (i32, i32) {
    %c0_i32 = arith.constant 0 : i32
    %c0_i32_0 = arith.constant 0 : i32
    %c0_i32_1 = arith.constant 0 : i32
    return %c0_i32, %c0_i32_0 : i32, i32
  }
  func.func @transform_9(%arg0: i32) -> (i32, i32) {
    %c0_i32 = arith.constant 0 : i32
    %c0_i32_0 = arith.constant 0 : i32
    %c0_i32_1 = arith.constant 0 : i32
    return %c0_i32, %c0_i32_0 : i32, i32
  }
}

module attributes {stable_mosaic.version = 11 : i64} {
  func.func @kernel(%arg0: i32, %arg1: memref<1x4x4x128xf32, #tpu.memory_space<vmem>>, %arg2: memref<1x128xf32, #tpu.memory_space<vmem>>, %arg3: memref<1x128xf32, #tpu.memory_space<vmem>>, %arg4: memref<1x128xf32, #tpu.memory_space<vmem>>, %arg5: memref<1x128xf32, #tpu.memory_space<vmem>>, %arg6: memref<9x128x32xbf16, #tpu.memory_space<vmem>>, %arg7: memref<1x4x4x32xf32, #tpu.memory_space<vmem>>, %arg8: memref<1x32xf32, #tpu.memory_space<vmem>>, %arg9: memref<1x32xf32, #tpu.memory_space<vmem>>, %arg10: memref<6x6x128xbf16, #tpu.memory_space<vmem>>) attributes {dimension_semantics = [#tpu.dimension_semantics<arbitrary>], iteration_bounds = array<i64: 2>, scalar_prefetch = 0 : i64, scratch_operands = 1 : i64, tpu.core_type = #tpu.core_type<tc>, window_params = [{transform_indices = @transform_0, window_bounds = array<i64: 1, 4, 4, 128>}, {pipeline_mode = #tpu.pipeline_mode<synchronous>, transform_indices = @transform_1, window_bounds = array<i64: 1, 128>}, {pipeline_mode = #tpu.pipeline_mode<synchronous>, transform_indices = @transform_2, window_bounds = array<i64: 1, 128>}, {pipeline_mode = #tpu.pipeline_mode<synchronous>, transform_indices = @transform_3, window_bounds = array<i64: 1, 128>}, {pipeline_mode = #tpu.pipeline_mode<synchronous>, transform_indices = @transform_4, window_bounds = array<i64: 1, 128>}, {pipeline_mode = #tpu.pipeline_mode<synchronous>, transform_indices = @transform_5, window_bounds = array<i64: 9, 128, 32>}, {transform_indices = @transform_6, window_bounds = array<i64: 1, 4, 4, 32>}, {pipeline_mode = #tpu.pipeline_mode<synchronous>, transform_indices = @transform_7, window_bounds = array<i64: 1, 32>}, {pipeline_mode = #tpu.pipeline_mode<synchronous>, transform_indices = @transform_8, window_bounds = array<i64: 1, 32>}]} {
    %c0_i32 = arith.constant 0 : i32
    %0 = arith.cmpi eq, %arg0, %c0_i32 : i32
    %1 = arith.extui %0 : i1 to i32
    %c0_i32_0 = arith.constant 0 : i32
    %2 = arith.cmpi ne, %1, %c0_i32_0 : i32
    scf.if %2 {
      %cst_28 = arith.constant 0.000000e+00 : bf16
      %40 = vector.broadcast %cst_28 : bf16 to vector<6x6x128xbf16>
      %c0_29 = arith.constant 0 : index
      %c0_30 = arith.constant 0 : index
      %c0_31 = arith.constant 0 : index
      %41 = vector.load %arg10[%c0_29, %c0_30, %c0_31] : memref<6x6x128xbf16, #tpu.memory_space<vmem>>, vector<6x6x128xbf16>
      tpu.vector_store %arg10[%c0_29, %c0_30, %c0_31], %40 {strides = array<i32>} : memref<6x6x128xbf16, #tpu.memory_space<vmem>>, vector<6x6x128xbf16>,
      %cst_32 = arith.constant 0.000000e+00 : f32
      %42 = vector.broadcast %cst_32 : f32 to vector<1x32xf32>
      %c0_33 = arith.constant 0 : index
      %c0_34 = arith.constant 0 : index
      %43 = vector.load %arg8[%c0_33, %c0_34] : memref<1x32xf32, #tpu.memory_space<vmem>>, vector<1x32xf32>
      tpu.vector_store %arg8[%c0_33, %c0_34], %42 {strides = array<i32>} : memref<1x32xf32, #tpu.memory_space<vmem>>, vector<1x32xf32>,
      %cst_35 = arith.constant 0.000000e+00 : f32
      %44 = vector.broadcast %cst_35 : f32 to vector<1x32xf32>
      %c0_36 = arith.constant 0 : index
      %c0_37 = arith.constant 0 : index
      %45 = vector.load %arg9[%c0_36, %c0_37] : memref<1x32xf32, #tpu.memory_space<vmem>>, vector<1x32xf32>
      tpu.vector_store %arg9[%c0_36, %c0_37], %44 {strides = array<i32>} : memref<1x32xf32, #tpu.memory_space<vmem>>, vector<1x32xf32>,
    } else {
    }
    %c0 = arith.constant 0 : index
    %c0_1 = arith.constant 0 : index
    %3 = vector.load %arg4[%c0, %c0_1] : memref<1x128xf32, #tpu.memory_space<vmem>>, vector<1x128xf32>
    %cst = arith.constant 3.125000e-02 : f32
    %4 = vector.broadcast %cst : f32 to vector<1x128xf32>
    %5 = arith.mulf %3, %4 : vector<1x128xf32>
    %c0_2 = arith.constant 0 : index
    %c0_3 = arith.constant 0 : index
    %6 = vector.load %arg5[%c0_2, %c0_3] : memref<1x128xf32, #tpu.memory_space<vmem>>, vector<1x128xf32>
    %cst_4 = arith.constant 3.125000e-02 : f32
    %7 = vector.broadcast %cst_4 : f32 to vector<1x128xf32>
    %8 = arith.mulf %6, %7 : vector<1x128xf32>
    %9 = arith.mulf %5, %5 : vector<1x128xf32>
    %10 = arith.subf %8, %9 : vector<1x128xf32>
    %c0_5 = arith.constant 0 : index
    %c0_6 = arith.constant 0 : index
    %11 = vector.load %arg2[%c0_5, %c0_6] : memref<1x128xf32, #tpu.memory_space<vmem>>, vector<1x128xf32>
    %cst_7 = arith.constant 9.99999974E-6 : f32
    %12 = vector.broadcast %cst_7 : f32 to vector<1x128xf32>
    %13 = arith.addf %10, %12 : vector<1x128xf32>
    %14 = math.rsqrt %13 : vector<1x128xf32>
    %15 = arith.mulf %11, %14 : vector<1x128xf32>
    %c0_8 = arith.constant 0 : index
    %c0_9 = arith.constant 0 : index
    %16 = vector.load %arg3[%c0_8, %c0_9] : memref<1x128xf32, #tpu.memory_space<vmem>>, vector<1x128xf32>
    %17 = arith.mulf %5, %15 : vector<1x128xf32>
    %18 = arith.subf %16, %17 : vector<1x128xf32>
    %c0_10 = arith.constant 0 : index
    %c0_11 = arith.constant 0 : index
    %c0_12 = arith.constant 0 : index
    %c0_13 = arith.constant 0 : index
    %19 = vector.load %arg1[%c0_10, %c0_11, %c0_12, %c0_13] : memref<1x4x4x128xf32, #tpu.memory_space<vmem>>, vector<1x4x4x128xf32>
    %20 = vector.shape_cast %19 : vector<1x4x4x128xf32> to vector<4x4x128xf32>
    %21 = vector.shape_cast %15 : vector<1x128xf32> to vector<1x1x128xf32>
    %22 = vector.broadcast %21 : vector<1x1x128xf32> to vector<4x4x128xf32>
    %23 = arith.mulf %20, %22 : vector<4x4x128xf32>
    %24 = vector.shape_cast %18 : vector<1x128xf32> to vector<1x1x128xf32>
    %25 = vector.broadcast %24 : vector<1x1x128xf32> to vector<4x4x128xf32>
    %26 = arith.addf %23, %25 : vector<4x4x128xf32>
    %cst_14 = arith.constant 0.000000e+00 : f32
    %27 = vector.broadcast %cst_14 : f32 to vector<4x4x128xf32>
    %28 = arith.maximumf %26, %27 : vector<4x4x128xf32>
    %29 = arith.truncf %28 : vector<4x4x128xf32> to vector<4x4x128xbf16>
    %c1 = arith.constant 1 : index
    %c1_15 = arith.constant 1 : index
    %c0_16 = arith.constant 0 : index
    %30 = vector.load %arg10[%c1, %c1_15, %c0_16] : memref<6x6x128xbf16, #tpu.memory_space<vmem>>, vector<4x4x128xbf16>
    tpu.vector_store %arg10[%c1, %c1_15, %c0_16], %29 {strides = array<i32>} : memref<6x6x128xbf16, #tpu.memory_space<vmem>>, vector<4x4x128xbf16>,
    %cst_17 = arith.constant 0.000000e+00 : f32
    %31 = vector.broadcast %cst_17 : f32 to vector<1x32xf32>
    %c0_i32_18 = arith.constant 0 : i32
    %c4_i32 = arith.constant 4 : i32
    %32 = arith.addi %c0_i32_18, %c4_i32 : i32
    %c1_i32 = arith.constant 1 : i32
    %33:2 = scf.for %arg11 = %c0_i32_18 to %32 step %c1_i32 iter_args(%arg12 = %31, %arg13 = %31) -> (vector<1x32xf32>, vector<1x32xf32>)  : i32 {
      %cst_28 = arith.constant 0.000000e+00 : f32
      %40 = vector.broadcast %cst_28 : f32 to vector<4x32xf32>
      %c0_i32_29 = arith.constant 0 : i32
      %41 = arith.addi %arg11, %c0_i32_29 : i32
      %42 = arith.index_cast %41 : i32 to index
      %c0_30 = arith.constant 0 : index
      %c0_31 = arith.constant 0 : index
      %43 = vector.load %arg10[%42, %c0_30, %c0_31] : memref<6x6x128xbf16, #tpu.memory_space<vmem>>, vector<1x4x128xbf16>
      %44 = vector.shape_cast %43 : vector<1x4x128xbf16> to vector<4x128xbf16>
      %c0_32 = arith.constant 0 : index
      %c0_33 = arith.constant 0 : index
      %c0_34 = arith.constant 0 : index
      %45 = vector.load %arg6[%c0_32, %c0_33, %c0_34] : memref<9x128x32xbf16, #tpu.memory_space<vmem>>, vector<1x128x32xbf16>
      %46 = vector.shape_cast %45 : vector<1x128x32xbf16> to vector<128x32xbf16>
      %cst_35 = arith.constant dense<0.000000e+00> : vector<4x32xf32>
      %47 = tpu.matmul %44, %46, %cst_35 {dimension_numbers = #tpu.dot_dimension_numbers<[1], [0], [0], [1], [0, 0, 1, 1], [], []>} : vector<4x128xbf16>, vector<128x32xbf16>, vector<4x32xf32> -> vector<4x32xf32>
      %48 = arith.addf %40, %47 : vector<4x32xf32>
      %c0_i32_36 = arith.constant 0 : i32
      %49 = arith.addi %arg11, %c0_i32_36 : i32
      %50 = arith.index_cast %49 : i32 to index
      %c1_37 = arith.constant 1 : index
      %c0_38 = arith.constant 0 : index
      %51 = vector.load %arg10[%50, %c1_37, %c0_38] : memref<6x6x128xbf16, #tpu.memory_space<vmem>>, vector<1x4x128xbf16>
      %52 = vector.shape_cast %51 : vector<1x4x128xbf16> to vector<4x128xbf16>
      %c1_39 = arith.constant 1 : index
      %c0_40 = arith.constant 0 : index
      %c0_41 = arith.constant 0 : index
      %53 = vector.load %arg6[%c1_39, %c0_40, %c0_41] : memref<9x128x32xbf16, #tpu.memory_space<vmem>>, vector<1x128x32xbf16>
      %54 = vector.shape_cast %53 : vector<1x128x32xbf16> to vector<128x32xbf16>
      %cst_42 = arith.constant dense<0.000000e+00> : vector<4x32xf32>
      %55 = tpu.matmul %52, %54, %cst_42 {dimension_numbers = #tpu.dot_dimension_numbers<[1], [0], [0], [1], [0, 0, 1, 1], [], []>} : vector<4x128xbf16>, vector<128x32xbf16>, vector<4x32xf32> -> vector<4x32xf32>
      %56 = arith.addf %48, %55 : vector<4x32xf32>
      %c0_i32_43 = arith.constant 0 : i32
      %57 = arith.addi %arg11, %c0_i32_43 : i32
      %58 = arith.index_cast %57 : i32 to index
      %c2 = arith.constant 2 : index
      %c0_44 = arith.constant 0 : index
      %59 = vector.load %arg10[%58, %c2, %c0_44] : memref<6x6x128xbf16, #tpu.memory_space<vmem>>, vector<1x4x128xbf16>
      %60 = vector.shape_cast %59 : vector<1x4x128xbf16> to vector<4x128xbf16>
      %c2_45 = arith.constant 2 : index
      %c0_46 = arith.constant 0 : index
      %c0_47 = arith.constant 0 : index
      %61 = vector.load %arg6[%c2_45, %c0_46, %c0_47] : memref<9x128x32xbf16, #tpu.memory_space<vmem>>, vector<1x128x32xbf16>
      %62 = vector.shape_cast %61 : vector<1x128x32xbf16> to vector<128x32xbf16>
      %cst_48 = arith.constant dense<0.000000e+00> : vector<4x32xf32>
      %63 = tpu.matmul %60, %62, %cst_48 {dimension_numbers = #tpu.dot_dimension_numbers<[1], [0], [0], [1], [0, 0, 1, 1], [], []>} : vector<4x128xbf16>, vector<128x32xbf16>, vector<4x32xf32> -> vector<4x32xf32>
      %64 = arith.addf %56, %63 : vector<4x32xf32>
      %c1_i32_49 = arith.constant 1 : i32
      %65 = arith.addi %arg11, %c1_i32_49 : i32
      %66 = arith.index_cast %65 : i32 to index
      %c0_50 = arith.constant 0 : index
      %c0_51 = arith.constant 0 : index
      %67 = vector.load %arg10[%66, %c0_50, %c0_51] : memref<6x6x128xbf16, #tpu.memory_space<vmem>>, vector<1x4x128xbf16>
      %68 = vector.shape_cast %67 : vector<1x4x128xbf16> to vector<4x128xbf16>
      %c3 = arith.constant 3 : index
      %c0_52 = arith.constant 0 : index
      %c0_53 = arith.constant 0 : index
      %69 = vector.load %arg6[%c3, %c0_52, %c0_53] : memref<9x128x32xbf16, #tpu.memory_space<vmem>>, vector<1x128x32xbf16>
      %70 = vector.shape_cast %69 : vector<1x128x32xbf16> to vector<128x32xbf16>
      %cst_54 = arith.constant dense<0.000000e+00> : vector<4x32xf32>
      %71 = tpu.matmul %68, %70, %cst_54 {dimension_numbers = #tpu.dot_dimension_numbers<[1], [0], [0], [1], [0, 0, 1, 1], [], []>} : vector<4x128xbf16>, vector<128x32xbf16>, vector<4x32xf32> -> vector<4x32xf32>
      %72 = arith.addf %64, %71 : vector<4x32xf32>
      %c1_i32_55 = arith.constant 1 : i32
      %73 = arith.addi %arg11, %c1_i32_55 : i32
      %74 = arith.index_cast %73 : i32 to index
      %c1_56 = arith.constant 1 : index
      %c0_57 = arith.constant 0 : index
      %75 = vector.load %arg10[%74, %c1_56, %c0_57] : memref<6x6x128xbf16, #tpu.memory_space<vmem>>, vector<1x4x128xbf16>
      %76 = vector.shape_cast %75 : vector<1x4x128xbf16> to vector<4x128xbf16>
      %c4 = arith.constant 4 : index
      %c0_58 = arith.constant 0 : index
      %c0_59 = arith.constant 0 : index
      %77 = vector.load %arg6[%c4, %c0_58, %c0_59] : memref<9x128x32xbf16, #tpu.memory_space<vmem>>, vector<1x128x32xbf16>
      %78 = vector.shape_cast %77 : vector<1x128x32xbf16> to vector<128x32xbf16>
      %cst_60 = arith.constant dense<0.000000e+00> : vector<4x32xf32>
      %79 = tpu.matmul %76, %78, %cst_60 {dimension_numbers = #tpu.dot_dimension_numbers<[1], [0], [0], [1], [0, 0, 1, 1], [], []>} : vector<4x128xbf16>, vector<128x32xbf16>, vector<4x32xf32> -> vector<4x32xf32>
      %80 = arith.addf %72, %79 : vector<4x32xf32>
      %c1_i32_61 = arith.constant 1 : i32
      %81 = arith.addi %arg11, %c1_i32_61 : i32
      %82 = arith.index_cast %81 : i32 to index
      %c2_62 = arith.constant 2 : index
      %c0_63 = arith.constant 0 : index
      %83 = vector.load %arg10[%82, %c2_62, %c0_63] : memref<6x6x128xbf16, #tpu.memory_space<vmem>>, vector<1x4x128xbf16>
      %84 = vector.shape_cast %83 : vector<1x4x128xbf16> to vector<4x128xbf16>
      %c5 = arith.constant 5 : index
      %c0_64 = arith.constant 0 : index
      %c0_65 = arith.constant 0 : index
      %85 = vector.load %arg6[%c5, %c0_64, %c0_65] : memref<9x128x32xbf16, #tpu.memory_space<vmem>>, vector<1x128x32xbf16>
      %86 = vector.shape_cast %85 : vector<1x128x32xbf16> to vector<128x32xbf16>
      %cst_66 = arith.constant dense<0.000000e+00> : vector<4x32xf32>
      %87 = tpu.matmul %84, %86, %cst_66 {dimension_numbers = #tpu.dot_dimension_numbers<[1], [0], [0], [1], [0, 0, 1, 1], [], []>} : vector<4x128xbf16>, vector<128x32xbf16>, vector<4x32xf32> -> vector<4x32xf32>
      %88 = arith.addf %80, %87 : vector<4x32xf32>
      %c2_i32 = arith.constant 2 : i32
      %89 = arith.addi %arg11, %c2_i32 : i32
      %90 = arith.index_cast %89 : i32 to index
      %c0_67 = arith.constant 0 : index
      %c0_68 = arith.constant 0 : index
      %91 = vector.load %arg10[%90, %c0_67, %c0_68] : memref<6x6x128xbf16, #tpu.memory_space<vmem>>, vector<1x4x128xbf16>
      %92 = vector.shape_cast %91 : vector<1x4x128xbf16> to vector<4x128xbf16>
      %c6 = arith.constant 6 : index
      %c0_69 = arith.constant 0 : index
      %c0_70 = arith.constant 0 : index
      %93 = vector.load %arg6[%c6, %c0_69, %c0_70] : memref<9x128x32xbf16, #tpu.memory_space<vmem>>, vector<1x128x32xbf16>
      %94 = vector.shape_cast %93 : vector<1x128x32xbf16> to vector<128x32xbf16>
      %cst_71 = arith.constant dense<0.000000e+00> : vector<4x32xf32>
      %95 = tpu.matmul %92, %94, %cst_71 {dimension_numbers = #tpu.dot_dimension_numbers<[1], [0], [0], [1], [0, 0, 1, 1], [], []>} : vector<4x128xbf16>, vector<128x32xbf16>, vector<4x32xf32> -> vector<4x32xf32>
      %96 = arith.addf %88, %95 : vector<4x32xf32>
      %c2_i32_72 = arith.constant 2 : i32
      %97 = arith.addi %arg11, %c2_i32_72 : i32
      %98 = arith.index_cast %97 : i32 to index
      %c1_73 = arith.constant 1 : index
      %c0_74 = arith.constant 0 : index
      %99 = vector.load %arg10[%98, %c1_73, %c0_74] : memref<6x6x128xbf16, #tpu.memory_space<vmem>>, vector<1x4x128xbf16>
      %100 = vector.shape_cast %99 : vector<1x4x128xbf16> to vector<4x128xbf16>
      %c7 = arith.constant 7 : index
      %c0_75 = arith.constant 0 : index
      %c0_76 = arith.constant 0 : index
      %101 = vector.load %arg6[%c7, %c0_75, %c0_76] : memref<9x128x32xbf16, #tpu.memory_space<vmem>>, vector<1x128x32xbf16>
      %102 = vector.shape_cast %101 : vector<1x128x32xbf16> to vector<128x32xbf16>
      %cst_77 = arith.constant dense<0.000000e+00> : vector<4x32xf32>
      %103 = tpu.matmul %100, %102, %cst_77 {dimension_numbers = #tpu.dot_dimension_numbers<[1], [0], [0], [1], [0, 0, 1, 1], [], []>} : vector<4x128xbf16>, vector<128x32xbf16>, vector<4x32xf32> -> vector<4x32xf32>
      %104 = arith.addf %96, %103 : vector<4x32xf32>
      %c2_i32_78 = arith.constant 2 : i32
      %105 = arith.addi %arg11, %c2_i32_78 : i32
      %106 = arith.index_cast %105 : i32 to index
      %c2_79 = arith.constant 2 : index
      %c0_80 = arith.constant 0 : index
      %107 = vector.load %arg10[%106, %c2_79, %c0_80] : memref<6x6x128xbf16, #tpu.memory_space<vmem>>, vector<1x4x128xbf16>
      %108 = vector.shape_cast %107 : vector<1x4x128xbf16> to vector<4x128xbf16>
      %c8 = arith.constant 8 : index
      %c0_81 = arith.constant 0 : index
      %c0_82 = arith.constant 0 : index
      %109 = vector.load %arg6[%c8, %c0_81, %c0_82] : memref<9x128x32xbf16, #tpu.memory_space<vmem>>, vector<1x128x32xbf16>
      %110 = vector.shape_cast %109 : vector<1x128x32xbf16> to vector<128x32xbf16>
      %cst_83 = arith.constant dense<0.000000e+00> : vector<4x32xf32>
      %111 = tpu.matmul %108, %110, %cst_83 {dimension_numbers = #tpu.dot_dimension_numbers<[1], [0], [0], [1], [0, 0, 1, 1], [], []>} : vector<4x128xbf16>, vector<128x32xbf16>, vector<4x32xf32> -> vector<4x32xf32>
      %112 = arith.addf %104, %111 : vector<4x32xf32>
      %c0_84 = arith.constant 0 : index
      %113 = arith.index_cast %arg11 : i32 to index
      %c0_85 = arith.constant 0 : index
      %c0_86 = arith.constant 0 : index
      %114 = vector.load %arg7[%c0_84, %113, %c0_85, %c0_86] : memref<1x4x4x32xf32, #tpu.memory_space<vmem>>, vector<1x1x4x32xf32>
      %115 = vector.shape_cast %114 : vector<1x1x4x32xf32> to vector<4x32xf32>
      %116 = vector.shape_cast %112 : vector<4x32xf32> to vector<1x1x4x32xf32>
      tpu.vector_store %arg7[%c0_84, %113, %c0_85, %c0_86], %116 {strides = array<i32>} : memref<1x4x4x32xf32, #tpu.memory_space<vmem>>, vector<1x1x4x32xf32>,
      %cst_87 = arith.constant dense<0.000000e+00> : vector<32xf32>
      %117 = vector.multi_reduction <add>, %112, %cst_87 [0] : vector<4x32xf32> to vector<32xf32>
      %118 = vector.shape_cast %117 : vector<32xf32> to vector<1x32xf32>
      %119 = arith.addf %arg12, %118 : vector<1x32xf32>
      %120 = arith.mulf %112, %112 : vector<4x32xf32>
      %cst_88 = arith.constant dense<0.000000e+00> : vector<32xf32>
      %121 = vector.multi_reduction <add>, %120, %cst_88 [0] : vector<4x32xf32> to vector<32xf32>
      %122 = vector.shape_cast %121 : vector<32xf32> to vector<1x32xf32>
      %123 = arith.addf %arg13, %122 : vector<1x32xf32>
      scf.yield %119, %123 : vector<1x32xf32>, vector<1x32xf32>
    }
    %c4_i32_19 = arith.constant 4 : i32
    %c0_20 = arith.constant 0 : index
    %c0_21 = arith.constant 0 : index
    %34 = vector.load %arg8[%c0_20, %c0_21] : memref<1x32xf32, #tpu.memory_space<vmem>>, vector<1x32xf32>
    %35 = arith.addf %34, %33#0 : vector<1x32xf32>
    %c0_22 = arith.constant 0 : index
    %c0_23 = arith.constant 0 : index
    %36 = vector.load %arg8[%c0_22, %c0_23] : memref<1x32xf32, #tpu.memory_space<vmem>>, vector<1x32xf32>
    tpu.vector_store %arg8[%c0_22, %c0_23], %35 {strides = array<i32>} : memref<1x32xf32, #tpu.memory_space<vmem>>, vector<1x32xf32>,
    %c0_24 = arith.constant 0 : index
    %c0_25 = arith.constant 0 : index
    %37 = vector.load %arg9[%c0_24, %c0_25] : memref<1x32xf32, #tpu.memory_space<vmem>>, vector<1x32xf32>
    %38 = arith.addf %37, %33#1 : vector<1x32xf32>
    %c0_26 = arith.constant 0 : index
    %c0_27 = arith.constant 0 : index
    %39 = vector.load %arg9[%c0_26, %c0_27] : memref<1x32xf32, #tpu.memory_space<vmem>>, vector<1x32xf32>
    tpu.vector_store %arg9[%c0_26, %c0_27], %38 {strides = array<i32>} : memref<1x32xf32, #tpu.memory_space<vmem>>, vector<1x32xf32>,
    return
  }
  func.func @transform_0(%arg0: i32) -> (i32, i32, i32, i32) {
    %c0_i32 = arith.constant 0 : i32
    %c0_i32_0 = arith.constant 0 : i32
    %c0_i32_1 = arith.constant 0 : i32
    %c0_i32_2 = arith.constant 0 : i32
    return %arg0, %c0_i32, %c0_i32_0, %c0_i32_1 : i32, i32, i32, i32
  }
  func.func @transform_1(%arg0: i32) -> (i32, i32) {
    %c0_i32 = arith.constant 0 : i32
    %c0_i32_0 = arith.constant 0 : i32
    %c0_i32_1 = arith.constant 0 : i32
    return %c0_i32, %c0_i32_0 : i32, i32
  }
  func.func @transform_2(%arg0: i32) -> (i32, i32) {
    %c0_i32 = arith.constant 0 : i32
    %c0_i32_0 = arith.constant 0 : i32
    %c0_i32_1 = arith.constant 0 : i32
    return %c0_i32, %c0_i32_0 : i32, i32
  }
  func.func @transform_3(%arg0: i32) -> (i32, i32) {
    %c0_i32 = arith.constant 0 : i32
    %c0_i32_0 = arith.constant 0 : i32
    %c0_i32_1 = arith.constant 0 : i32
    return %c0_i32, %c0_i32_0 : i32, i32
  }
  func.func @transform_4(%arg0: i32) -> (i32, i32) {
    %c0_i32 = arith.constant 0 : i32
    %c0_i32_0 = arith.constant 0 : i32
    %c0_i32_1 = arith.constant 0 : i32
    return %c0_i32, %c0_i32_0 : i32, i32
  }
  func.func @transform_5(%arg0: i32) -> (i32, i32, i32) {
    %c0_i32 = arith.constant 0 : i32
    %c0_i32_0 = arith.constant 0 : i32
    %c0_i32_1 = arith.constant 0 : i32
    %c0_i32_2 = arith.constant 0 : i32
    return %c0_i32, %c0_i32_0, %c0_i32_1 : i32, i32, i32
  }
  func.func @transform_6(%arg0: i32) -> (i32, i32, i32, i32) {
    %c0_i32 = arith.constant 0 : i32
    %c0_i32_0 = arith.constant 0 : i32
    %c0_i32_1 = arith.constant 0 : i32
    %c0_i32_2 = arith.constant 0 : i32
    return %arg0, %c0_i32, %c0_i32_0, %c0_i32_1 : i32, i32, i32, i32
  }
  func.func @transform_7(%arg0: i32) -> (i32, i32) {
    %c0_i32 = arith.constant 0 : i32
    %c0_i32_0 = arith.constant 0 : i32
    %c0_i32_1 = arith.constant 0 : i32
    return %c0_i32, %c0_i32_0 : i32, i32
  }
  func.func @transform_8(%arg0: i32) -> (i32, i32) {
    %c0_i32 = arith.constant 0 : i32
    %c0_i32_0 = arith.constant 0 : i32
    %c0_i32_1 = arith.constant 0 : i32
    return %c0_i32, %c0_i32_0 : i32, i32
  }
}

module attributes {stable_mosaic.version = 11 : i64} {
  func.func @kernel(%arg0: i32, %arg1: memref<32x64xf32, #tpu.memory_space<vmem>>, %arg2: memref<32x32xf32, #tpu.memory_space<vmem>>, %arg3: memref<32x32xf32, #tpu.memory_space<vmem>>, %arg4: memref<1x128xf32, #tpu.memory_space<vmem>>, %arg5: memref<1x128xf32, #tpu.memory_space<vmem>>, %arg6: memref<1x128xf32, #tpu.memory_space<vmem>>, %arg7: memref<1x128xf32, #tpu.memory_space<vmem>>, %arg8: memref<128x64xbf16, #tpu.memory_space<vmem>>, %arg9: memref<32x64xf32, #tpu.memory_space<vmem>>) attributes {dimension_semantics = [#tpu.dimension_semantics<parallel>], iteration_bounds = array<i64: 1>, scalar_prefetch = 0 : i64, scratch_operands = 0 : i64, tpu.core_type = #tpu.core_type<tc>, window_params = [{transform_indices = @transform_0, window_bounds = array<i64: 32, 64>}, {transform_indices = @transform_1, window_bounds = array<i64: 32, 32>}, {transform_indices = @transform_2, window_bounds = array<i64: 32, 32>}, {pipeline_mode = #tpu.pipeline_mode<synchronous>, transform_indices = @transform_3, window_bounds = array<i64: 1, 128>}, {pipeline_mode = #tpu.pipeline_mode<synchronous>, transform_indices = @transform_4, window_bounds = array<i64: 1, 128>}, {pipeline_mode = #tpu.pipeline_mode<synchronous>, transform_indices = @transform_5, window_bounds = array<i64: 1, 128>}, {pipeline_mode = #tpu.pipeline_mode<synchronous>, transform_indices = @transform_6, window_bounds = array<i64: 1, 128>}, {pipeline_mode = #tpu.pipeline_mode<synchronous>, transform_indices = @transform_7, window_bounds = array<i64: 128, 64>}, {transform_indices = @transform_8, window_bounds = array<i64: 32, 64>}]} {
    %c0 = arith.constant 0 : index
    %c0_0 = arith.constant 0 : index
    %0 = vector.load %arg6[%c0, %c0_0] : memref<1x128xf32, #tpu.memory_space<vmem>>, vector<1x128xf32>
    %cst = arith.constant 3.125000e-02 : f32
    %1 = vector.broadcast %cst : f32 to vector<1x128xf32>
    %2 = arith.mulf %0, %1 : vector<1x128xf32>
    %c0_1 = arith.constant 0 : index
    %c0_2 = arith.constant 0 : index
    %3 = vector.load %arg7[%c0_1, %c0_2] : memref<1x128xf32, #tpu.memory_space<vmem>>, vector<1x128xf32>
    %cst_3 = arith.constant 3.125000e-02 : f32
    %4 = vector.broadcast %cst_3 : f32 to vector<1x128xf32>
    %5 = arith.mulf %3, %4 : vector<1x128xf32>
    %6 = arith.mulf %2, %2 : vector<1x128xf32>
    %7 = arith.subf %5, %6 : vector<1x128xf32>
    %c0_4 = arith.constant 0 : index
    %c0_5 = arith.constant 0 : index
    %8 = vector.load %arg4[%c0_4, %c0_5] : memref<1x128xf32, #tpu.memory_space<vmem>>, vector<1x128xf32>
    %cst_6 = arith.constant 9.99999974E-6 : f32
    %9 = vector.broadcast %cst_6 : f32 to vector<1x128xf32>
    %10 = arith.addf %7, %9 : vector<1x128xf32>
    %11 = math.rsqrt %10 : vector<1x128xf32>
    %12 = arith.mulf %8, %11 : vector<1x128xf32>
    %c0_7 = arith.constant 0 : index
    %c0_8 = arith.constant 0 : index
    %13 = vector.load %arg5[%c0_7, %c0_8] : memref<1x128xf32, #tpu.memory_space<vmem>>, vector<1x128xf32>
    %14 = arith.mulf %2, %12 : vector<1x128xf32>
    %15 = arith.subf %13, %14 : vector<1x128xf32>
    %c0_9 = arith.constant 0 : index
    %c0_10 = arith.constant 0 : index
    %16 = vector.load %arg1[%c0_9, %c0_10] : memref<32x64xf32, #tpu.memory_space<vmem>>, vector<32x64xf32>
    %17 = vector.extract_strided_slice %12 {offsets = [0, 0], sizes = [1, 64], strides = [1, 1]} : vector<1x128xf32> to vector<1x64xf32>
    %18 = vector.broadcast %17 : vector<1x64xf32> to vector<32x64xf32>
    %19 = arith.mulf %16, %18 : vector<32x64xf32>
    %20 = vector.extract_strided_slice %15 {offsets = [0, 0], sizes = [1, 64], strides = [1, 1]} : vector<1x128xf32> to vector<1x64xf32>
    %21 = vector.broadcast %20 : vector<1x64xf32> to vector<32x64xf32>
    %22 = arith.addf %19, %21 : vector<32x64xf32>
    %23 = arith.truncf %22 : vector<32x64xf32> to vector<32x64xbf16>
    %c0_11 = arith.constant 0 : index
    %c0_12 = arith.constant 0 : index
    %24 = vector.load %arg8[%c0_11, %c0_12] : memref<128x64xbf16, #tpu.memory_space<vmem>>, vector<64x64xbf16>
    %cst_13 = arith.constant dense<0.000000e+00> : vector<32x64xf32>
    %25 = tpu.matmul %23, %24, %cst_13 {dimension_numbers = #tpu.dot_dimension_numbers<[1], [0], [0], [1], [0, 0, 1, 1], [], []>} : vector<32x64xbf16>, vector<64x64xbf16>, vector<32x64xf32> -> vector<32x64xf32>
    %c0_14 = arith.constant 0 : index
    %c0_15 = arith.constant 0 : index
    %26 = vector.load %arg2[%c0_14, %c0_15] : memref<32x32xf32, #tpu.memory_space<vmem>>, vector<32x32xf32>
    %27 = vector.extract_strided_slice %12 {offsets = [0, 64], sizes = [1, 32], strides = [1, 1]} : vector<1x128xf32> to vector<1x32xf32>
    %28 = vector.broadcast %27 : vector<1x32xf32> to vector<32x32xf32>
    %29 = arith.mulf %26, %28 : vector<32x32xf32>
    %30 = vector.extract_strided_slice %15 {offsets = [0, 64], sizes = [1, 32], strides = [1, 1]} : vector<1x128xf32> to vector<1x32xf32>
    %31 = vector.broadcast %30 : vector<1x32xf32> to vector<32x32xf32>
    %32 = arith.addf %29, %31 : vector<32x32xf32>
    %33 = arith.truncf %32 : vector<32x32xf32> to vector<32x32xbf16>
    %c64 = arith.constant 64 : index
    %c0_16 = arith.constant 0 : index
    %34 = vector.load %arg8[%c64, %c0_16] : memref<128x64xbf16, #tpu.memory_space<vmem>>, vector<32x64xbf16>
    %cst_17 = arith.constant dense<0.000000e+00> : vector<32x64xf32>
    %35 = tpu.matmul %33, %34, %cst_17 {dimension_numbers = #tpu.dot_dimension_numbers<[1], [0], [0], [1], [0, 0, 1, 1], [], []>} : vector<32x32xbf16>, vector<32x64xbf16>, vector<32x64xf32> -> vector<32x64xf32>
    %36 = arith.addf %25, %35 : vector<32x64xf32>
    %c0_18 = arith.constant 0 : index
    %c0_19 = arith.constant 0 : index
    %37 = vector.load %arg3[%c0_18, %c0_19] : memref<32x32xf32, #tpu.memory_space<vmem>>, vector<32x32xf32>
    %38 = vector.extract_strided_slice %12 {offsets = [0, 96], sizes = [1, 32], strides = [1, 1]} : vector<1x128xf32> to vector<1x32xf32>
    %39 = vector.broadcast %38 : vector<1x32xf32> to vector<32x32xf32>
    %40 = arith.mulf %37, %39 : vector<32x32xf32>
    %41 = vector.extract_strided_slice %15 {offsets = [0, 96], sizes = [1, 32], strides = [1, 1]} : vector<1x128xf32> to vector<1x32xf32>
    %42 = vector.broadcast %41 : vector<1x32xf32> to vector<32x32xf32>
    %43 = arith.addf %40, %42 : vector<32x32xf32>
    %44 = arith.truncf %43 : vector<32x32xf32> to vector<32x32xbf16>
    %c96 = arith.constant 96 : index
    %c0_20 = arith.constant 0 : index
    %45 = vector.load %arg8[%c96, %c0_20] : memref<128x64xbf16, #tpu.memory_space<vmem>>, vector<32x64xbf16>
    %cst_21 = arith.constant dense<0.000000e+00> : vector<32x64xf32>
    %46 = tpu.matmul %44, %45, %cst_21 {dimension_numbers = #tpu.dot_dimension_numbers<[1], [0], [0], [1], [0, 0, 1, 1], [], []>} : vector<32x32xbf16>, vector<32x64xbf16>, vector<32x64xf32> -> vector<32x64xf32>
    %47 = arith.addf %36, %46 : vector<32x64xf32>
    %c0_22 = arith.constant 0 : index
    %c0_23 = arith.constant 0 : index
    %48 = vector.load %arg9[%c0_22, %c0_23] : memref<32x64xf32, #tpu.memory_space<vmem>>, vector<32x64xf32>
    tpu.vector_store %arg9[%c0_22, %c0_23], %47 {strides = array<i32>} : memref<32x64xf32, #tpu.memory_space<vmem>>, vector<32x64xf32>,
    return
  }
  func.func @transform_0(%arg0: i32) -> (i32, i32) {
    %c0_i32 = arith.constant 0 : i32
    %c0_i32_0 = arith.constant 0 : i32
    return %arg0, %c0_i32 : i32, i32
  }
  func.func @transform_1(%arg0: i32) -> (i32, i32) {
    %c0_i32 = arith.constant 0 : i32
    %c0_i32_0 = arith.constant 0 : i32
    return %arg0, %c0_i32 : i32, i32
  }
  func.func @transform_2(%arg0: i32) -> (i32, i32) {
    %c0_i32 = arith.constant 0 : i32
    %c0_i32_0 = arith.constant 0 : i32
    return %arg0, %c0_i32 : i32, i32
  }
  func.func @transform_3(%arg0: i32) -> (i32, i32) {
    %c0_i32 = arith.constant 0 : i32
    %c0_i32_0 = arith.constant 0 : i32
    %c0_i32_1 = arith.constant 0 : i32
    return %c0_i32, %c0_i32_0 : i32, i32
  }
  func.func @transform_4(%arg0: i32) -> (i32, i32) {
    %c0_i32 = arith.constant 0 : i32
    %c0_i32_0 = arith.constant 0 : i32
    %c0_i32_1 = arith.constant 0 : i32
    return %c0_i32, %c0_i32_0 : i32, i32
  }
  func.func @transform_5(%arg0: i32) -> (i32, i32) {
    %c0_i32 = arith.constant 0 : i32
    %c0_i32_0 = arith.constant 0 : i32
    %c0_i32_1 = arith.constant 0 : i32
    return %c0_i32, %c0_i32_0 : i32, i32
  }
  func.func @transform_6(%arg0: i32) -> (i32, i32) {
    %c0_i32 = arith.constant 0 : i32
    %c0_i32_0 = arith.constant 0 : i32
    %c0_i32_1 = arith.constant 0 : i32
    return %c0_i32, %c0_i32_0 : i32, i32
  }
  func.func @transform_7(%arg0: i32) -> (i32, i32) {
    %c0_i32 = arith.constant 0 : i32
    %c0_i32_0 = arith.constant 0 : i32
    %c0_i32_1 = arith.constant 0 : i32
    return %c0_i32, %c0_i32_0 : i32, i32
  }
  func.func @transform_8(%arg0: i32) -> (i32, i32) {
    %c0_i32 = arith.constant 0 : i32
    %c0_i32_0 = arith.constant 0 : i32
    return %arg0, %c0_i32 : i32, i32
  }
}

module attributes {stable_mosaic.version = 11 : i64} {
  func.func @kernel(%arg0: i32, %arg1: memref<4x512xf32, #tpu.memory_space<vmem>>, %arg2: memref<4x256xf32, #tpu.memory_space<vmem>>) attributes {dimension_semantics = [#tpu.dimension_semantics<parallel>], iteration_bounds = array<i64: 1>, scalar_prefetch = 0 : i64, scratch_operands = 0 : i64, tpu.core_type = #tpu.core_type<tc>, window_params = [{transform_indices = @transform_0, window_bounds = array<i64: 4, 512>}, {transform_indices = @transform_1, window_bounds = array<i64: 4, 256>}]} {
    %c0 = arith.constant 0 : index
    %c0_0 = arith.constant 0 : index
    %0 = vector.load %arg1[%c0, %c0_0] : memref<4x512xf32, #tpu.memory_space<vmem>>, vector<4x512xf32>
    %1 = vector.extract_strided_slice %0 {offsets = [0, 0], sizes = [4, 256], strides = [1, 1]} : vector<4x512xf32> to vector<4x256xf32>
    %2 = vector.extract_strided_slice %0 {offsets = [0, 256], sizes = [4, 256], strides = [1, 1]} : vector<4x512xf32> to vector<4x256xf32>
    %3 = arith.addf %1, %2 : vector<4x256xf32>
    %cst = arith.constant 5.000000e-01 : f32
    %4 = vector.broadcast %cst : f32 to vector<4x256xf32>
    %5 = arith.mulf %3, %4 : vector<4x256xf32>
    %c0_1 = arith.constant 0 : index
    %c0_2 = arith.constant 0 : index
    %6 = vector.load %arg2[%c0_1, %c0_2] : memref<4x256xf32, #tpu.memory_space<vmem>>, vector<4x256xf32>
    tpu.vector_store %arg2[%c0_1, %c0_2], %5 {strides = array<i32>} : memref<4x256xf32, #tpu.memory_space<vmem>>, vector<4x256xf32>,
    return
  }
  func.func @transform_0(%arg0: i32) -> (i32, i32) {
    %c0_i32 = arith.constant 0 : i32
    %c0_i32_0 = arith.constant 0 : i32
    return %arg0, %c0_i32 : i32, i32
  }
  func.func @transform_1(%arg0: i32) -> (i32, i32) {
    %c0_i32 = arith.constant 0 : i32
    %c0_i32_0 = arith.constant 0 : i32
    return %arg0, %c0_i32 : i32, i32
  }
}

module attributes {stable_mosaic.version = 11 : i64} {
  func.func @kernel(%arg0: i32, %arg1: memref<8x128xf32, #tpu.memory_space<vmem>>, %arg2: memref<8x64xf32, #tpu.memory_space<vmem>>, %arg3: memref<1x64xf32, #tpu.memory_space<vmem>>, %arg4: memref<1x64xf32, #tpu.memory_space<vmem>>) attributes {dimension_semantics = [#tpu.dimension_semantics<arbitrary>], iteration_bounds = array<i64: 1>, scalar_prefetch = 0 : i64, scratch_operands = 0 : i64, tpu.core_type = #tpu.core_type<tc>, window_params = [{transform_indices = @transform_0, window_bounds = array<i64: 8, 128>}, {transform_indices = @transform_1, window_bounds = array<i64: 8, 64>}, {pipeline_mode = #tpu.pipeline_mode<synchronous>, transform_indices = @transform_2, window_bounds = array<i64: 1, 64>}, {pipeline_mode = #tpu.pipeline_mode<synchronous>, transform_indices = @transform_3, window_bounds = array<i64: 1, 64>}]} {
    %c0 = arith.constant 0 : index
    %c0_0 = arith.constant 0 : index
    %0 = vector.load %arg1[%c0, %c0_0] : memref<8x128xf32, #tpu.memory_space<vmem>>, vector<8x128xf32>
    %1 = vector.extract_strided_slice %0 {offsets = [0, 0], sizes = [8, 64], strides = [1, 1]} : vector<8x128xf32> to vector<8x64xf32>
    %2 = vector.extract_strided_slice %0 {offsets = [0, 64], sizes = [8, 64], strides = [1, 1]} : vector<8x128xf32> to vector<8x64xf32>
    %3 = arith.addf %1, %2 : vector<8x64xf32>
    %cst = arith.constant 5.000000e-01 : f32
    %4 = vector.broadcast %cst : f32 to vector<8x64xf32>
    %5 = arith.mulf %3, %4 : vector<8x64xf32>
    %c0_1 = arith.constant 0 : index
    %c0_2 = arith.constant 0 : index
    %6 = vector.load %arg2[%c0_1, %c0_2] : memref<8x64xf32, #tpu.memory_space<vmem>>, vector<8x64xf32>
    tpu.vector_store %arg2[%c0_1, %c0_2], %5 {strides = array<i32>} : memref<8x64xf32, #tpu.memory_space<vmem>>, vector<8x64xf32>,
    %c0_i32 = arith.constant 0 : i32
    %7 = arith.cmpi eq, %arg0, %c0_i32 : i32
    %8 = arith.extui %7 : i1 to i32
    %c0_i32_3 = arith.constant 0 : i32
    %9 = arith.cmpi ne, %8, %c0_i32_3 : i32
    scf.if %9 {
      %cst_14 = arith.constant 0.000000e+00 : f32
      %21 = vector.broadcast %cst_14 : f32 to vector<1x64xf32>
      %c0_15 = arith.constant 0 : index
      %c0_16 = arith.constant 0 : index
      %22 = vector.load %arg3[%c0_15, %c0_16] : memref<1x64xf32, #tpu.memory_space<vmem>>, vector<1x64xf32>
      tpu.vector_store %arg3[%c0_15, %c0_16], %21 {strides = array<i32>} : memref<1x64xf32, #tpu.memory_space<vmem>>, vector<1x64xf32>,
      %cst_17 = arith.constant 0.000000e+00 : f32
      %23 = vector.broadcast %cst_17 : f32 to vector<1x64xf32>
      %c0_18 = arith.constant 0 : index
      %c0_19 = arith.constant 0 : index
      %24 = vector.load %arg4[%c0_18, %c0_19] : memref<1x64xf32, #tpu.memory_space<vmem>>, vector<1x64xf32>
      tpu.vector_store %arg4[%c0_18, %c0_19], %23 {strides = array<i32>} : memref<1x64xf32, #tpu.memory_space<vmem>>, vector<1x64xf32>,
    } else {
    }
    %c0_4 = arith.constant 0 : index
    %c0_5 = arith.constant 0 : index
    %10 = vector.load %arg3[%c0_4, %c0_5] : memref<1x64xf32, #tpu.memory_space<vmem>>, vector<1x64xf32>
    %cst_6 = arith.constant dense<0.000000e+00> : vector<64xf32>
    %11 = vector.multi_reduction <add>, %5, %cst_6 [0] : vector<8x64xf32> to vector<64xf32>
    %12 = vector.shape_cast %11 : vector<64xf32> to vector<1x64xf32>
    %13 = arith.addf %10, %12 : vector<1x64xf32>
    %c0_7 = arith.constant 0 : index
    %c0_8 = arith.constant 0 : index
    %14 = vector.load %arg3[%c0_7, %c0_8] : memref<1x64xf32, #tpu.memory_space<vmem>>, vector<1x64xf32>
    tpu.vector_store %arg3[%c0_7, %c0_8], %13 {strides = array<i32>} : memref<1x64xf32, #tpu.memory_space<vmem>>, vector<1x64xf32>,
    %c0_9 = arith.constant 0 : index
    %c0_10 = arith.constant 0 : index
    %15 = vector.load %arg4[%c0_9, %c0_10] : memref<1x64xf32, #tpu.memory_space<vmem>>, vector<1x64xf32>
    %16 = arith.mulf %5, %5 : vector<8x64xf32>
    %cst_11 = arith.constant dense<0.000000e+00> : vector<64xf32>
    %17 = vector.multi_reduction <add>, %16, %cst_11 [0] : vector<8x64xf32> to vector<64xf32>
    %18 = vector.shape_cast %17 : vector<64xf32> to vector<1x64xf32>
    %19 = arith.addf %15, %18 : vector<1x64xf32>
    %c0_12 = arith.constant 0 : index
    %c0_13 = arith.constant 0 : index
    %20 = vector.load %arg4[%c0_12, %c0_13] : memref<1x64xf32, #tpu.memory_space<vmem>>, vector<1x64xf32>
    tpu.vector_store %arg4[%c0_12, %c0_13], %19 {strides = array<i32>} : memref<1x64xf32, #tpu.memory_space<vmem>>, vector<1x64xf32>,
    return
  }
  func.func @transform_0(%arg0: i32) -> (i32, i32) {
    %c0_i32 = arith.constant 0 : i32
    %c0_i32_0 = arith.constant 0 : i32
    return %arg0, %c0_i32 : i32, i32
  }
  func.func @transform_1(%arg0: i32) -> (i32, i32) {
    %c0_i32 = arith.constant 0 : i32
    %c0_i32_0 = arith.constant 0 : i32
    return %arg0, %c0_i32 : i32, i32
  }
  func.func @transform_2(%arg0: i32) -> (i32, i32) {
    %c0_i32 = arith.constant 0 : i32
    %c0_i32_0 = arith.constant 0 : i32
    %c0_i32_1 = arith.constant 0 : i32
    return %c0_i32, %c0_i32_0 : i32, i32
  }
  func.func @transform_3(%arg0: i32) -> (i32, i32) {
    %c0_i32 = arith.constant 0 : i32
    %c0_i32_0 = arith.constant 0 : i32
    %c0_i32_1 = arith.constant 0 : i32
    return %c0_i32, %c0_i32_0 : i32, i32
  }
}

module attributes {stable_mosaic.version = 11 : i64} {
  func.func @kernel(%arg0: i32, %arg1: memref<8x64xf32, #tpu.memory_space<vmem>>, %arg2: memref<1x64xf32, #tpu.memory_space<vmem>>, %arg3: memref<1x64xf32, #tpu.memory_space<vmem>>, %arg4: memref<1x64xf32, #tpu.memory_space<vmem>>, %arg5: memref<1x64xf32, #tpu.memory_space<vmem>>, %arg6: memref<64x128xbf16, #tpu.memory_space<vmem>>, %arg7: memref<8x128xf32, #tpu.memory_space<vmem>>, %arg8: memref<1x128xf32, #tpu.memory_space<vmem>>, %arg9: memref<1x128xf32, #tpu.memory_space<vmem>>) attributes {dimension_semantics = [#tpu.dimension_semantics<arbitrary>], iteration_bounds = array<i64: 1>, scalar_prefetch = 0 : i64, scratch_operands = 0 : i64, tpu.core_type = #tpu.core_type<tc>, window_params = [{transform_indices = @transform_0, window_bounds = array<i64: 8, 64>}, {pipeline_mode = #tpu.pipeline_mode<synchronous>, transform_indices = @transform_1, window_bounds = array<i64: 1, 64>}, {pipeline_mode = #tpu.pipeline_mode<synchronous>, transform_indices = @transform_2, window_bounds = array<i64: 1, 64>}, {pipeline_mode = #tpu.pipeline_mode<synchronous>, transform_indices = @transform_3, window_bounds = array<i64: 1, 64>}, {pipeline_mode = #tpu.pipeline_mode<synchronous>, transform_indices = @transform_4, window_bounds = array<i64: 1, 64>}, {pipeline_mode = #tpu.pipeline_mode<synchronous>, transform_indices = @transform_5, window_bounds = array<i64: 64, 128>}, {transform_indices = @transform_6, window_bounds = array<i64: 8, 128>}, {pipeline_mode = #tpu.pipeline_mode<synchronous>, transform_indices = @transform_7, window_bounds = array<i64: 1, 128>}, {pipeline_mode = #tpu.pipeline_mode<synchronous>, transform_indices = @transform_8, window_bounds = array<i64: 1, 128>}]} {
    %c0 = arith.constant 0 : index
    %c0_0 = arith.constant 0 : index
    %0 = vector.load %arg4[%c0, %c0_0] : memref<1x64xf32, #tpu.memory_space<vmem>>, vector<1x64xf32>
    %cst = arith.constant 1.250000e-01 : f32
    %1 = vector.broadcast %cst : f32 to vector<1x64xf32>
    %2 = arith.mulf %0, %1 : vector<1x64xf32>
    %c0_1 = arith.constant 0 : index
    %c0_2 = arith.constant 0 : index
    %3 = vector.load %arg5[%c0_1, %c0_2] : memref<1x64xf32, #tpu.memory_space<vmem>>, vector<1x64xf32>
    %cst_3 = arith.constant 1.250000e-01 : f32
    %4 = vector.broadcast %cst_3 : f32 to vector<1x64xf32>
    %5 = arith.mulf %3, %4 : vector<1x64xf32>
    %6 = arith.mulf %2, %2 : vector<1x64xf32>
    %7 = arith.subf %5, %6 : vector<1x64xf32>
    %c0_4 = arith.constant 0 : index
    %c0_5 = arith.constant 0 : index
    %8 = vector.load %arg2[%c0_4, %c0_5] : memref<1x64xf32, #tpu.memory_space<vmem>>, vector<1x64xf32>
    %cst_6 = arith.constant 9.99999974E-6 : f32
    %9 = vector.broadcast %cst_6 : f32 to vector<1x64xf32>
    %10 = arith.addf %7, %9 : vector<1x64xf32>
    %11 = math.rsqrt %10 : vector<1x64xf32>
    %12 = arith.mulf %8, %11 : vector<1x64xf32>
    %c0_7 = arith.constant 0 : index
    %c0_8 = arith.constant 0 : index
    %13 = vector.load %arg3[%c0_7, %c0_8] : memref<1x64xf32, #tpu.memory_space<vmem>>, vector<1x64xf32>
    %14 = arith.mulf %2, %12 : vector<1x64xf32>
    %15 = arith.subf %13, %14 : vector<1x64xf32>
    %c0_9 = arith.constant 0 : index
    %c0_10 = arith.constant 0 : index
    %16 = vector.load %arg1[%c0_9, %c0_10] : memref<8x64xf32, #tpu.memory_space<vmem>>, vector<8x64xf32>
    %17 = vector.broadcast %12 : vector<1x64xf32> to vector<8x64xf32>
    %18 = arith.mulf %16, %17 : vector<8x64xf32>
    %19 = vector.broadcast %15 : vector<1x64xf32> to vector<8x64xf32>
    %20 = arith.addf %18, %19 : vector<8x64xf32>
    %cst_11 = arith.constant 0.000000e+00 : f32
    %21 = vector.broadcast %cst_11 : f32 to vector<8x64xf32>
    %22 = arith.maximumf %20, %21 : vector<8x64xf32>
    %23 = arith.truncf %22 : vector<8x64xf32> to vector<8x64xbf16>
    %c0_12 = arith.constant 0 : index
    %c0_13 = arith.constant 0 : index
    %24 = vector.load %arg6[%c0_12, %c0_13] : memref<64x128xbf16, #tpu.memory_space<vmem>>, vector<64x128xbf16>
    %cst_14 = arith.constant dense<0.000000e+00> : vector<8x128xf32>
    %25 = tpu.matmul %23, %24, %cst_14 {dimension_numbers = #tpu.dot_dimension_numbers<[1], [0], [0], [1], [0, 0, 1, 1], [], []>} : vector<8x64xbf16>, vector<64x128xbf16>, vector<8x128xf32> -> vector<8x128xf32>
    %c0_15 = arith.constant 0 : index
    %c0_16 = arith.constant 0 : index
    %26 = vector.load %arg7[%c0_15, %c0_16] : memref<8x128xf32, #tpu.memory_space<vmem>>, vector<8x128xf32>
    tpu.vector_store %arg7[%c0_15, %c0_16], %25 {strides = array<i32>} : memref<8x128xf32, #tpu.memory_space<vmem>>, vector<8x128xf32>,
    %c0_i32 = arith.constant 0 : i32
    %27 = arith.cmpi eq, %arg0, %c0_i32 : i32
    %28 = arith.extui %27 : i1 to i32
    %c0_i32_17 = arith.constant 0 : i32
    %29 = arith.cmpi ne, %28, %c0_i32_17 : i32
    scf.if %29 {
      %cst_28 = arith.constant 0.000000e+00 : f32
      %41 = vector.broadcast %cst_28 : f32 to vector<1x128xf32>
      %c0_29 = arith.constant 0 : index
      %c0_30 = arith.constant 0 : index
      %42 = vector.load %arg8[%c0_29, %c0_30] : memref<1x128xf32, #tpu.memory_space<vmem>>, vector<1x128xf32>
      tpu.vector_store %arg8[%c0_29, %c0_30], %41 {strides = array<i32>} : memref<1x128xf32, #tpu.memory_space<vmem>>, vector<1x128xf32>,
      %cst_31 = arith.constant 0.000000e+00 : f32
      %43 = vector.broadcast %cst_31 : f32 to vector<1x128xf32>
      %c0_32 = arith.constant 0 : index
      %c0_33 = arith.constant 0 : index
      %44 = vector.load %arg9[%c0_32, %c0_33] : memref<1x128xf32, #tpu.memory_space<vmem>>, vector<1x128xf32>
      tpu.vector_store %arg9[%c0_32, %c0_33], %43 {strides = array<i32>} : memref<1x128xf32, #tpu.memory_space<vmem>>, vector<1x128xf32>,
    } else {
    }
    %c0_18 = arith.constant 0 : index
    %c0_19 = arith.constant 0 : index
    %30 = vector.load %arg8[%c0_18, %c0_19] : memref<1x128xf32, #tpu.memory_space<vmem>>, vector<1x128xf32>
    %cst_20 = arith.constant dense<0.000000e+00> : vector<128xf32>
    %31 = vector.multi_reduction <add>, %25, %cst_20 [0] : vector<8x128xf32> to vector<128xf32>
    %32 = vector.shape_cast %31 : vector<128xf32> to vector<1x128xf32>
    %33 = arith.addf %30, %32 : vector<1x128xf32>
    %c0_21 = arith.constant 0 : index
    %c0_22 = arith.constant 0 : index
    %34 = vector.load %arg8[%c0_21, %c0_22] : memref<1x128xf32, #tpu.memory_space<vmem>>, vector<1x128xf32>
    tpu.vector_store %arg8[%c0_21, %c0_22], %33 {strides = array<i32>} : memref<1x128xf32, #tpu.memory_space<vmem>>, vector<1x128xf32>,
    %c0_23 = arith.constant 0 : index
    %c0_24 = arith.constant 0 : index
    %35 = vector.load %arg9[%c0_23, %c0_24] : memref<1x128xf32, #tpu.memory_space<vmem>>, vector<1x128xf32>
    %36 = arith.mulf %25, %25 : vector<8x128xf32>
    %cst_25 = arith.constant dense<0.000000e+00> : vector<128xf32>
    %37 = vector.multi_reduction <add>, %36, %cst_25 [0] : vector<8x128xf32> to vector<128xf32>
    %38 = vector.shape_cast %37 : vector<128xf32> to vector<1x128xf32>
    %39 = arith.addf %35, %38 : vector<1x128xf32>
    %c0_26 = arith.constant 0 : index
    %c0_27 = arith.constant 0 : index
    %40 = vector.load %arg9[%c0_26, %c0_27] : memref<1x128xf32, #tpu.memory_space<vmem>>, vector<1x128xf32>
    tpu.vector_store %arg9[%c0_26, %c0_27], %39 {strides = array<i32>} : memref<1x128xf32, #tpu.memory_space<vmem>>, vector<1x128xf32>,
    return
  }
  func.func @transform_0(%arg0: i32) -> (i32, i32) {
    %c0_i32 = arith.constant 0 : i32
    %c0_i32_0 = arith.constant 0 : i32
    return %arg0, %c0_i32 : i32, i32
  }
  func.func @transform_1(%arg0: i32) -> (i32, i32) {
    %c0_i32 = arith.constant 0 : i32
    %c0_i32_0 = arith.constant 0 : i32
    %c0_i32_1 = arith.constant 0 : i32
    return %c0_i32, %c0_i32_0 : i32, i32
  }
  func.func @transform_2(%arg0: i32) -> (i32, i32) {
    %c0_i32 = arith.constant 0 : i32
    %c0_i32_0 = arith.constant 0 : i32
    %c0_i32_1 = arith.constant 0 : i32
    return %c0_i32, %c0_i32_0 : i32, i32
  }
  func.func @transform_3(%arg0: i32) -> (i32, i32) {
    %c0_i32 = arith.constant 0 : i32
    %c0_i32_0 = arith.constant 0 : i32
    %c0_i32_1 = arith.constant 0 : i32
    return %c0_i32, %c0_i32_0 : i32, i32
  }
  func.func @transform_4(%arg0: i32) -> (i32, i32) {
    %c0_i32 = arith.constant 0 : i32
    %c0_i32_0 = arith.constant 0 : i32
    %c0_i32_1 = arith.constant 0 : i32
    return %c0_i32, %c0_i32_0 : i32, i32
  }
  func.func @transform_5(%arg0: i32) -> (i32, i32) {
    %c0_i32 = arith.constant 0 : i32
    %c0_i32_0 = arith.constant 0 : i32
    %c0_i32_1 = arith.constant 0 : i32
    return %c0_i32, %c0_i32_0 : i32, i32
  }
  func.func @transform_6(%arg0: i32) -> (i32, i32) {
    %c0_i32 = arith.constant 0 : i32
    %c0_i32_0 = arith.constant 0 : i32
    return %arg0, %c0_i32 : i32, i32
  }
  func.func @transform_7(%arg0: i32) -> (i32, i32) {
    %c0_i32 = arith.constant 0 : i32
    %c0_i32_0 = arith.constant 0 : i32
    %c0_i32_1 = arith.constant 0 : i32
    return %c0_i32, %c0_i32_0 : i32, i32
  }
  func.func @transform_8(%arg0: i32) -> (i32, i32) {
    %c0_i32 = arith.constant 0 : i32
    %c0_i32_0 = arith.constant 0 : i32
    %c0_i32_1 = arith.constant 0 : i32
    return %c0_i32, %c0_i32_0 : i32, i32
  }
}

module attributes {stable_mosaic.version = 11 : i64} {
  func.func @kernel(%arg0: i32, %arg1: memref<1x2x2x128xf32, #tpu.memory_space<vmem>>, %arg2: memref<1x128xf32, #tpu.memory_space<vmem>>, %arg3: memref<1x128xf32, #tpu.memory_space<vmem>>, %arg4: memref<1x128xf32, #tpu.memory_space<vmem>>, %arg5: memref<1x128xf32, #tpu.memory_space<vmem>>, %arg6: memref<9x128x32xbf16, #tpu.memory_space<vmem>>, %arg7: memref<1x2x2x32xf32, #tpu.memory_space<vmem>>, %arg8: memref<1x32xf32, #tpu.memory_space<vmem>>, %arg9: memref<1x32xf32, #tpu.memory_space<vmem>>, %arg10: memref<4x4x128xbf16, #tpu.memory_space<vmem>>) attributes {dimension_semantics = [#tpu.dimension_semantics<arbitrary>], iteration_bounds = array<i64: 2>, scalar_prefetch = 0 : i64, scratch_operands = 1 : i64, tpu.core_type = #tpu.core_type<tc>, window_params = [{transform_indices = @transform_0, window_bounds = array<i64: 1, 2, 2, 128>}, {pipeline_mode = #tpu.pipeline_mode<synchronous>, transform_indices = @transform_1, window_bounds = array<i64: 1, 128>}, {pipeline_mode = #tpu.pipeline_mode<synchronous>, transform_indices = @transform_2, window_bounds = array<i64: 1, 128>}, {pipeline_mode = #tpu.pipeline_mode<synchronous>, transform_indices = @transform_3, window_bounds = array<i64: 1, 128>}, {pipeline_mode = #tpu.pipeline_mode<synchronous>, transform_indices = @transform_4, window_bounds = array<i64: 1, 128>}, {pipeline_mode = #tpu.pipeline_mode<synchronous>, transform_indices = @transform_5, window_bounds = array<i64: 9, 128, 32>}, {transform_indices = @transform_6, window_bounds = array<i64: 1, 2, 2, 32>}, {pipeline_mode = #tpu.pipeline_mode<synchronous>, transform_indices = @transform_7, window_bounds = array<i64: 1, 32>}, {pipeline_mode = #tpu.pipeline_mode<synchronous>, transform_indices = @transform_8, window_bounds = array<i64: 1, 32>}]} {
    %c0_i32 = arith.constant 0 : i32
    %0 = arith.cmpi eq, %arg0, %c0_i32 : i32
    %1 = arith.extui %0 : i1 to i32
    %c0_i32_0 = arith.constant 0 : i32
    %2 = arith.cmpi ne, %1, %c0_i32_0 : i32
    scf.if %2 {
      %cst_28 = arith.constant 0.000000e+00 : bf16
      %40 = vector.broadcast %cst_28 : bf16 to vector<4x4x128xbf16>
      %c0_29 = arith.constant 0 : index
      %c0_30 = arith.constant 0 : index
      %c0_31 = arith.constant 0 : index
      %41 = vector.load %arg10[%c0_29, %c0_30, %c0_31] : memref<4x4x128xbf16, #tpu.memory_space<vmem>>, vector<4x4x128xbf16>
      tpu.vector_store %arg10[%c0_29, %c0_30, %c0_31], %40 {strides = array<i32>} : memref<4x4x128xbf16, #tpu.memory_space<vmem>>, vector<4x4x128xbf16>,
      %cst_32 = arith.constant 0.000000e+00 : f32
      %42 = vector.broadcast %cst_32 : f32 to vector<1x32xf32>
      %c0_33 = arith.constant 0 : index
      %c0_34 = arith.constant 0 : index
      %43 = vector.load %arg8[%c0_33, %c0_34] : memref<1x32xf32, #tpu.memory_space<vmem>>, vector<1x32xf32>
      tpu.vector_store %arg8[%c0_33, %c0_34], %42 {strides = array<i32>} : memref<1x32xf32, #tpu.memory_space<vmem>>, vector<1x32xf32>,
      %cst_35 = arith.constant 0.000000e+00 : f32
      %44 = vector.broadcast %cst_35 : f32 to vector<1x32xf32>
      %c0_36 = arith.constant 0 : index
      %c0_37 = arith.constant 0 : index
      %45 = vector.load %arg9[%c0_36, %c0_37] : memref<1x32xf32, #tpu.memory_space<vmem>>, vector<1x32xf32>
      tpu.vector_store %arg9[%c0_36, %c0_37], %44 {strides = array<i32>} : memref<1x32xf32, #tpu.memory_space<vmem>>, vector<1x32xf32>,
    } else {
    }
    %c0 = arith.constant 0 : index
    %c0_1 = arith.constant 0 : index
    %3 = vector.load %arg4[%c0, %c0_1] : memref<1x128xf32, #tpu.memory_space<vmem>>, vector<1x128xf32>
    %cst = arith.constant 1.250000e-01 : f32
    %4 = vector.broadcast %cst : f32 to vector<1x128xf32>
    %5 = arith.mulf %3, %4 : vector<1x128xf32>
    %c0_2 = arith.constant 0 : index
    %c0_3 = arith.constant 0 : index
    %6 = vector.load %arg5[%c0_2, %c0_3] : memref<1x128xf32, #tpu.memory_space<vmem>>, vector<1x128xf32>
    %cst_4 = arith.constant 1.250000e-01 : f32
    %7 = vector.broadcast %cst_4 : f32 to vector<1x128xf32>
    %8 = arith.mulf %6, %7 : vector<1x128xf32>
    %9 = arith.mulf %5, %5 : vector<1x128xf32>
    %10 = arith.subf %8, %9 : vector<1x128xf32>
    %c0_5 = arith.constant 0 : index
    %c0_6 = arith.constant 0 : index
    %11 = vector.load %arg2[%c0_5, %c0_6] : memref<1x128xf32, #tpu.memory_space<vmem>>, vector<1x128xf32>
    %cst_7 = arith.constant 9.99999974E-6 : f32
    %12 = vector.broadcast %cst_7 : f32 to vector<1x128xf32>
    %13 = arith.addf %10, %12 : vector<1x128xf32>
    %14 = math.rsqrt %13 : vector<1x128xf32>
    %15 = arith.mulf %11, %14 : vector<1x128xf32>
    %c0_8 = arith.constant 0 : index
    %c0_9 = arith.constant 0 : index
    %16 = vector.load %arg3[%c0_8, %c0_9] : memref<1x128xf32, #tpu.memory_space<vmem>>, vector<1x128xf32>
    %17 = arith.mulf %5, %15 : vector<1x128xf32>
    %18 = arith.subf %16, %17 : vector<1x128xf32>
    %c0_10 = arith.constant 0 : index
    %c0_11 = arith.constant 0 : index
    %c0_12 = arith.constant 0 : index
    %c0_13 = arith.constant 0 : index
    %19 = vector.load %arg1[%c0_10, %c0_11, %c0_12, %c0_13] : memref<1x2x2x128xf32, #tpu.memory_space<vmem>>, vector<1x2x2x128xf32>
    %20 = vector.shape_cast %19 : vector<1x2x2x128xf32> to vector<2x2x128xf32>
    %21 = vector.shape_cast %15 : vector<1x128xf32> to vector<1x1x128xf32>
    %22 = vector.broadcast %21 : vector<1x1x128xf32> to vector<2x2x128xf32>
    %23 = arith.mulf %20, %22 : vector<2x2x128xf32>
    %24 = vector.shape_cast %18 : vector<1x128xf32> to vector<1x1x128xf32>
    %25 = vector.broadcast %24 : vector<1x1x128xf32> to vector<2x2x128xf32>
    %26 = arith.addf %23, %25 : vector<2x2x128xf32>
    %cst_14 = arith.constant 0.000000e+00 : f32
    %27 = vector.broadcast %cst_14 : f32 to vector<2x2x128xf32>
    %28 = arith.maximumf %26, %27 : vector<2x2x128xf32>
    %29 = arith.truncf %28 : vector<2x2x128xf32> to vector<2x2x128xbf16>
    %c1 = arith.constant 1 : index
    %c1_15 = arith.constant 1 : index
    %c0_16 = arith.constant 0 : index
    %30 = vector.load %arg10[%c1, %c1_15, %c0_16] : memref<4x4x128xbf16, #tpu.memory_space<vmem>>, vector<2x2x128xbf16>
    tpu.vector_store %arg10[%c1, %c1_15, %c0_16], %29 {strides = array<i32>} : memref<4x4x128xbf16, #tpu.memory_space<vmem>>, vector<2x2x128xbf16>,
    %cst_17 = arith.constant 0.000000e+00 : f32
    %31 = vector.broadcast %cst_17 : f32 to vector<1x32xf32>
    %c0_i32_18 = arith.constant 0 : i32
    %c2_i32 = arith.constant 2 : i32
    %32 = arith.addi %c0_i32_18, %c2_i32 : i32
    %c1_i32 = arith.constant 1 : i32
    %33:2 = scf.for %arg11 = %c0_i32_18 to %32 step %c1_i32 iter_args(%arg12 = %31, %arg13 = %31) -> (vector<1x32xf32>, vector<1x32xf32>)  : i32 {
      %cst_28 = arith.constant 0.000000e+00 : f32
      %40 = vector.broadcast %cst_28 : f32 to vector<2x32xf32>
      %c0_i32_29 = arith.constant 0 : i32
      %41 = arith.addi %arg11, %c0_i32_29 : i32
      %42 = arith.index_cast %41 : i32 to index
      %c0_30 = arith.constant 0 : index
      %c0_31 = arith.constant 0 : index
      %43 = vector.load %arg10[%42, %c0_30, %c0_31] : memref<4x4x128xbf16, #tpu.memory_space<vmem>>, vector<1x2x128xbf16>
      %44 = vector.shape_cast %43 : vector<1x2x128xbf16> to vector<2x128xbf16>
      %c0_32 = arith.constant 0 : index
      %c0_33 = arith.constant 0 : index
      %c0_34 = arith.constant 0 : index
      %45 = vector.load %arg6[%c0_32, %c0_33, %c0_34] : memref<9x128x32xbf16, #tpu.memory_space<vmem>>, vector<1x128x32xbf16>
      %46 = vector.shape_cast %45 : vector<1x128x32xbf16> to vector<128x32xbf16>
      %cst_35 = arith.constant dense<0.000000e+00> : vector<2x32xf32>
      %47 = tpu.matmul %44, %46, %cst_35 {dimension_numbers = #tpu.dot_dimension_numbers<[1], [0], [0], [1], [0, 0, 1, 1], [], []>} : vector<2x128xbf16>, vector<128x32xbf16>, vector<2x32xf32> -> vector<2x32xf32>
      %48 = arith.addf %40, %47 : vector<2x32xf32>
      %c0_i32_36 = arith.constant 0 : i32
      %49 = arith.addi %arg11, %c0_i32_36 : i32
      %50 = arith.index_cast %49 : i32 to index
      %c1_37 = arith.constant 1 : index
      %c0_38 = arith.constant 0 : index
      %51 = vector.load %arg10[%50, %c1_37, %c0_38] : memref<4x4x128xbf16, #tpu.memory_space<vmem>>, vector<1x2x128xbf16>
      %52 = vector.shape_cast %51 : vector<1x2x128xbf16> to vector<2x128xbf16>
      %c1_39 = arith.constant 1 : index
      %c0_40 = arith.constant 0 : index
      %c0_41 = arith.constant 0 : index
      %53 = vector.load %arg6[%c1_39, %c0_40, %c0_41] : memref<9x128x32xbf16, #tpu.memory_space<vmem>>, vector<1x128x32xbf16>
      %54 = vector.shape_cast %53 : vector<1x128x32xbf16> to vector<128x32xbf16>
      %cst_42 = arith.constant dense<0.000000e+00> : vector<2x32xf32>
      %55 = tpu.matmul %52, %54, %cst_42 {dimension_numbers = #tpu.dot_dimension_numbers<[1], [0], [0], [1], [0, 0, 1, 1], [], []>} : vector<2x128xbf16>, vector<128x32xbf16>, vector<2x32xf32> -> vector<2x32xf32>
      %56 = arith.addf %48, %55 : vector<2x32xf32>
      %c0_i32_43 = arith.constant 0 : i32
      %57 = arith.addi %arg11, %c0_i32_43 : i32
      %58 = arith.index_cast %57 : i32 to index
      %c2 = arith.constant 2 : index
      %c0_44 = arith.constant 0 : index
      %59 = vector.load %arg10[%58, %c2, %c0_44] : memref<4x4x128xbf16, #tpu.memory_space<vmem>>, vector<1x2x128xbf16>
      %60 = vector.shape_cast %59 : vector<1x2x128xbf16> to vector<2x128xbf16>
      %c2_45 = arith.constant 2 : index
      %c0_46 = arith.constant 0 : index
      %c0_47 = arith.constant 0 : index
      %61 = vector.load %arg6[%c2_45, %c0_46, %c0_47] : memref<9x128x32xbf16, #tpu.memory_space<vmem>>, vector<1x128x32xbf16>
      %62 = vector.shape_cast %61 : vector<1x128x32xbf16> to vector<128x32xbf16>
      %cst_48 = arith.constant dense<0.000000e+00> : vector<2x32xf32>
      %63 = tpu.matmul %60, %62, %cst_48 {dimension_numbers = #tpu.dot_dimension_numbers<[1], [0], [0], [1], [0, 0, 1, 1], [], []>} : vector<2x128xbf16>, vector<128x32xbf16>, vector<2x32xf32> -> vector<2x32xf32>
      %64 = arith.addf %56, %63 : vector<2x32xf32>
      %c1_i32_49 = arith.constant 1 : i32
      %65 = arith.addi %arg11, %c1_i32_49 : i32
      %66 = arith.index_cast %65 : i32 to index
      %c0_50 = arith.constant 0 : index
      %c0_51 = arith.constant 0 : index
      %67 = vector.load %arg10[%66, %c0_50, %c0_51] : memref<4x4x128xbf16, #tpu.memory_space<vmem>>, vector<1x2x128xbf16>
      %68 = vector.shape_cast %67 : vector<1x2x128xbf16> to vector<2x128xbf16>
      %c3 = arith.constant 3 : index
      %c0_52 = arith.constant 0 : index
      %c0_53 = arith.constant 0 : index
      %69 = vector.load %arg6[%c3, %c0_52, %c0_53] : memref<9x128x32xbf16, #tpu.memory_space<vmem>>, vector<1x128x32xbf16>
      %70 = vector.shape_cast %69 : vector<1x128x32xbf16> to vector<128x32xbf16>
      %cst_54 = arith.constant dense<0.000000e+00> : vector<2x32xf32>
      %71 = tpu.matmul %68, %70, %cst_54 {dimension_numbers = #tpu.dot_dimension_numbers<[1], [0], [0], [1], [0, 0, 1, 1], [], []>} : vector<2x128xbf16>, vector<128x32xbf16>, vector<2x32xf32> -> vector<2x32xf32>
      %72 = arith.addf %64, %71 : vector<2x32xf32>
      %c1_i32_55 = arith.constant 1 : i32
      %73 = arith.addi %arg11, %c1_i32_55 : i32
      %74 = arith.index_cast %73 : i32 to index
      %c1_56 = arith.constant 1 : index
      %c0_57 = arith.constant 0 : index
      %75 = vector.load %arg10[%74, %c1_56, %c0_57] : memref<4x4x128xbf16, #tpu.memory_space<vmem>>, vector<1x2x128xbf16>
      %76 = vector.shape_cast %75 : vector<1x2x128xbf16> to vector<2x128xbf16>
      %c4 = arith.constant 4 : index
      %c0_58 = arith.constant 0 : index
      %c0_59 = arith.constant 0 : index
      %77 = vector.load %arg6[%c4, %c0_58, %c0_59] : memref<9x128x32xbf16, #tpu.memory_space<vmem>>, vector<1x128x32xbf16>
      %78 = vector.shape_cast %77 : vector<1x128x32xbf16> to vector<128x32xbf16>
      %cst_60 = arith.constant dense<0.000000e+00> : vector<2x32xf32>
      %79 = tpu.matmul %76, %78, %cst_60 {dimension_numbers = #tpu.dot_dimension_numbers<[1], [0], [0], [1], [0, 0, 1, 1], [], []>} : vector<2x128xbf16>, vector<128x32xbf16>, vector<2x32xf32> -> vector<2x32xf32>
      %80 = arith.addf %72, %79 : vector<2x32xf32>
      %c1_i32_61 = arith.constant 1 : i32
      %81 = arith.addi %arg11, %c1_i32_61 : i32
      %82 = arith.index_cast %81 : i32 to index
      %c2_62 = arith.constant 2 : index
      %c0_63 = arith.constant 0 : index
      %83 = vector.load %arg10[%82, %c2_62, %c0_63] : memref<4x4x128xbf16, #tpu.memory_space<vmem>>, vector<1x2x128xbf16>
      %84 = vector.shape_cast %83 : vector<1x2x128xbf16> to vector<2x128xbf16>
      %c5 = arith.constant 5 : index
      %c0_64 = arith.constant 0 : index
      %c0_65 = arith.constant 0 : index
      %85 = vector.load %arg6[%c5, %c0_64, %c0_65] : memref<9x128x32xbf16, #tpu.memory_space<vmem>>, vector<1x128x32xbf16>
      %86 = vector.shape_cast %85 : vector<1x128x32xbf16> to vector<128x32xbf16>
      %cst_66 = arith.constant dense<0.000000e+00> : vector<2x32xf32>
      %87 = tpu.matmul %84, %86, %cst_66 {dimension_numbers = #tpu.dot_dimension_numbers<[1], [0], [0], [1], [0, 0, 1, 1], [], []>} : vector<2x128xbf16>, vector<128x32xbf16>, vector<2x32xf32> -> vector<2x32xf32>
      %88 = arith.addf %80, %87 : vector<2x32xf32>
      %c2_i32_67 = arith.constant 2 : i32
      %89 = arith.addi %arg11, %c2_i32_67 : i32
      %90 = arith.index_cast %89 : i32 to index
      %c0_68 = arith.constant 0 : index
      %c0_69 = arith.constant 0 : index
      %91 = vector.load %arg10[%90, %c0_68, %c0_69] : memref<4x4x128xbf16, #tpu.memory_space<vmem>>, vector<1x2x128xbf16>
      %92 = vector.shape_cast %91 : vector<1x2x128xbf16> to vector<2x128xbf16>
      %c6 = arith.constant 6 : index
      %c0_70 = arith.constant 0 : index
      %c0_71 = arith.constant 0 : index
      %93 = vector.load %arg6[%c6, %c0_70, %c0_71] : memref<9x128x32xbf16, #tpu.memory_space<vmem>>, vector<1x128x32xbf16>
      %94 = vector.shape_cast %93 : vector<1x128x32xbf16> to vector<128x32xbf16>
      %cst_72 = arith.constant dense<0.000000e+00> : vector<2x32xf32>
      %95 = tpu.matmul %92, %94, %cst_72 {dimension_numbers = #tpu.dot_dimension_numbers<[1], [0], [0], [1], [0, 0, 1, 1], [], []>} : vector<2x128xbf16>, vector<128x32xbf16>, vector<2x32xf32> -> vector<2x32xf32>
      %96 = arith.addf %88, %95 : vector<2x32xf32>
      %c2_i32_73 = arith.constant 2 : i32
      %97 = arith.addi %arg11, %c2_i32_73 : i32
      %98 = arith.index_cast %97 : i32 to index
      %c1_74 = arith.constant 1 : index
      %c0_75 = arith.constant 0 : index
      %99 = vector.load %arg10[%98, %c1_74, %c0_75] : memref<4x4x128xbf16, #tpu.memory_space<vmem>>, vector<1x2x128xbf16>
      %100 = vector.shape_cast %99 : vector<1x2x128xbf16> to vector<2x128xbf16>
      %c7 = arith.constant 7 : index
      %c0_76 = arith.constant 0 : index
      %c0_77 = arith.constant 0 : index
      %101 = vector.load %arg6[%c7, %c0_76, %c0_77] : memref<9x128x32xbf16, #tpu.memory_space<vmem>>, vector<1x128x32xbf16>
      %102 = vector.shape_cast %101 : vector<1x128x32xbf16> to vector<128x32xbf16>
      %cst_78 = arith.constant dense<0.000000e+00> : vector<2x32xf32>
      %103 = tpu.matmul %100, %102, %cst_78 {dimension_numbers = #tpu.dot_dimension_numbers<[1], [0], [0], [1], [0, 0, 1, 1], [], []>} : vector<2x128xbf16>, vector<128x32xbf16>, vector<2x32xf32> -> vector<2x32xf32>
      %104 = arith.addf %96, %103 : vector<2x32xf32>
      %c2_i32_79 = arith.constant 2 : i32
      %105 = arith.addi %arg11, %c2_i32_79 : i32
      %106 = arith.index_cast %105 : i32 to index
      %c2_80 = arith.constant 2 : index
      %c0_81 = arith.constant 0 : index
      %107 = vector.load %arg10[%106, %c2_80, %c0_81] : memref<4x4x128xbf16, #tpu.memory_space<vmem>>, vector<1x2x128xbf16>
      %108 = vector.shape_cast %107 : vector<1x2x128xbf16> to vector<2x128xbf16>
      %c8 = arith.constant 8 : index
      %c0_82 = arith.constant 0 : index
      %c0_83 = arith.constant 0 : index
      %109 = vector.load %arg6[%c8, %c0_82, %c0_83] : memref<9x128x32xbf16, #tpu.memory_space<vmem>>, vector<1x128x32xbf16>
      %110 = vector.shape_cast %109 : vector<1x128x32xbf16> to vector<128x32xbf16>
      %cst_84 = arith.constant dense<0.000000e+00> : vector<2x32xf32>
      %111 = tpu.matmul %108, %110, %cst_84 {dimension_numbers = #tpu.dot_dimension_numbers<[1], [0], [0], [1], [0, 0, 1, 1], [], []>} : vector<2x128xbf16>, vector<128x32xbf16>, vector<2x32xf32> -> vector<2x32xf32>
      %112 = arith.addf %104, %111 : vector<2x32xf32>
      %c0_85 = arith.constant 0 : index
      %113 = arith.index_cast %arg11 : i32 to index
      %c0_86 = arith.constant 0 : index
      %c0_87 = arith.constant 0 : index
      %114 = vector.load %arg7[%c0_85, %113, %c0_86, %c0_87] : memref<1x2x2x32xf32, #tpu.memory_space<vmem>>, vector<1x1x2x32xf32>
      %115 = vector.shape_cast %114 : vector<1x1x2x32xf32> to vector<2x32xf32>
      %116 = vector.shape_cast %112 : vector<2x32xf32> to vector<1x1x2x32xf32>
      tpu.vector_store %arg7[%c0_85, %113, %c0_86, %c0_87], %116 {strides = array<i32>} : memref<1x2x2x32xf32, #tpu.memory_space<vmem>>, vector<1x1x2x32xf32>,
      %cst_88 = arith.constant dense<0.000000e+00> : vector<32xf32>
      %117 = vector.multi_reduction <add>, %112, %cst_88 [0] : vector<2x32xf32> to vector<32xf32>
      %118 = vector.shape_cast %117 : vector<32xf32> to vector<1x32xf32>
      %119 = arith.addf %arg12, %118 : vector<1x32xf32>
      %120 = arith.mulf %112, %112 : vector<2x32xf32>
      %cst_89 = arith.constant dense<0.000000e+00> : vector<32xf32>
      %121 = vector.multi_reduction <add>, %120, %cst_89 [0] : vector<2x32xf32> to vector<32xf32>
      %122 = vector.shape_cast %121 : vector<32xf32> to vector<1x32xf32>
      %123 = arith.addf %arg13, %122 : vector<1x32xf32>
      scf.yield %119, %123 : vector<1x32xf32>, vector<1x32xf32>
    }
    %c2_i32_19 = arith.constant 2 : i32
    %c0_20 = arith.constant 0 : index
    %c0_21 = arith.constant 0 : index
    %34 = vector.load %arg8[%c0_20, %c0_21] : memref<1x32xf32, #tpu.memory_space<vmem>>, vector<1x32xf32>
    %35 = arith.addf %34, %33#0 : vector<1x32xf32>
    %c0_22 = arith.constant 0 : index
    %c0_23 = arith.constant 0 : index
    %36 = vector.load %arg8[%c0_22, %c0_23] : memref<1x32xf32, #tpu.memory_space<vmem>>, vector<1x32xf32>
    tpu.vector_store %arg8[%c0_22, %c0_23], %35 {strides = array<i32>} : memref<1x32xf32, #tpu.memory_space<vmem>>, vector<1x32xf32>,
    %c0_24 = arith.constant 0 : index
    %c0_25 = arith.constant 0 : index
    %37 = vector.load %arg9[%c0_24, %c0_25] : memref<1x32xf32, #tpu.memory_space<vmem>>, vector<1x32xf32>
    %38 = arith.addf %37, %33#1 : vector<1x32xf32>
    %c0_26 = arith.constant 0 : index
    %c0_27 = arith.constant 0 : index
    %39 = vector.load %arg9[%c0_26, %c0_27] : memref<1x32xf32, #tpu.memory_space<vmem>>, vector<1x32xf32>
    tpu.vector_store %arg9[%c0_26, %c0_27], %38 {strides = array<i32>} : memref<1x32xf32, #tpu.memory_space<vmem>>, vector<1x32xf32>,
    return
  }
  func.func @transform_0(%arg0: i32) -> (i32, i32, i32, i32) {
    %c0_i32 = arith.constant 0 : i32
    %c0_i32_0 = arith.constant 0 : i32
    %c0_i32_1 = arith.constant 0 : i32
    %c0_i32_2 = arith.constant 0 : i32
    return %arg0, %c0_i32, %c0_i32_0, %c0_i32_1 : i32, i32, i32, i32
  }
  func.func @transform_1(%arg0: i32) -> (i32, i32) {
    %c0_i32 = arith.constant 0 : i32
    %c0_i32_0 = arith.constant 0 : i32
    %c0_i32_1 = arith.constant 0 : i32
    return %c0_i32, %c0_i32_0 : i32, i32
  }
  func.func @transform_2(%arg0: i32) -> (i32, i32) {
    %c0_i32 = arith.constant 0 : i32
    %c0_i32_0 = arith.constant 0 : i32
    %c0_i32_1 = arith.constant 0 : i32
    return %c0_i32, %c0_i32_0 : i32, i32
  }
  func.func @transform_3(%arg0: i32) -> (i32, i32) {
    %c0_i32 = arith.constant 0 : i32
    %c0_i32_0 = arith.constant 0 : i32
    %c0_i32_1 = arith.constant 0 : i32
    return %c0_i32, %c0_i32_0 : i32, i32
  }
  func.func @transform_4(%arg0: i32) -> (i32, i32) {
    %c0_i32 = arith.constant 0 : i32
    %c0_i32_0 = arith.constant 0 : i32
    %c0_i32_1 = arith.constant 0 : i32
    return %c0_i32, %c0_i32_0 : i32, i32
  }
  func.func @transform_5(%arg0: i32) -> (i32, i32, i32) {
    %c0_i32 = arith.constant 0 : i32
    %c0_i32_0 = arith.constant 0 : i32
    %c0_i32_1 = arith.constant 0 : i32
    %c0_i32_2 = arith.constant 0 : i32
    return %c0_i32, %c0_i32_0, %c0_i32_1 : i32, i32, i32
  }
  func.func @transform_6(%arg0: i32) -> (i32, i32, i32, i32) {
    %c0_i32 = arith.constant 0 : i32
    %c0_i32_0 = arith.constant 0 : i32
    %c0_i32_1 = arith.constant 0 : i32
    %c0_i32_2 = arith.constant 0 : i32
    return %arg0, %c0_i32, %c0_i32_0, %c0_i32_1 : i32, i32, i32, i32
  }
  func.func @transform_7(%arg0: i32) -> (i32, i32) {
    %c0_i32 = arith.constant 0 : i32
    %c0_i32_0 = arith.constant 0 : i32
    %c0_i32_1 = arith.constant 0 : i32
    return %c0_i32, %c0_i32_0 : i32, i32
  }
  func.func @transform_8(%arg0: i32) -> (i32, i32) {
    %c0_i32 = arith.constant 0 : i32
    %c0_i32_0 = arith.constant 0 : i32
    %c0_i32_1 = arith.constant 0 : i32
    return %c0_i32, %c0_i32_0 : i32, i32
  }
}

module attributes {stable_mosaic.version = 11 : i64} {
  func.func @kernel(%arg0: i32, %arg1: memref<8x64xf32, #tpu.memory_space<vmem>>, %arg2: memref<8x32xf32, #tpu.memory_space<vmem>>, %arg3: memref<1x96xf32, #tpu.memory_space<vmem>>, %arg4: memref<1x96xf32, #tpu.memory_space<vmem>>, %arg5: memref<1x96xf32, #tpu.memory_space<vmem>>, %arg6: memref<1x96xf32, #tpu.memory_space<vmem>>, %arg7: memref<96x128xbf16, #tpu.memory_space<vmem>>, %arg8: memref<8x128xf32, #tpu.memory_space<vmem>>, %arg9: memref<1x128xf32, #tpu.memory_space<vmem>>, %arg10: memref<1x128xf32, #tpu.memory_space<vmem>>) attributes {dimension_semantics = [#tpu.dimension_semantics<arbitrary>], iteration_bounds = array<i64: 1>, scalar_prefetch = 0 : i64, scratch_operands = 0 : i64, tpu.core_type = #tpu.core_type<tc>, window_params = [{transform_indices = @transform_0, window_bounds = array<i64: 8, 64>}, {transform_indices = @transform_1, window_bounds = array<i64: 8, 32>}, {pipeline_mode = #tpu.pipeline_mode<synchronous>, transform_indices = @transform_2, window_bounds = array<i64: 1, 96>}, {pipeline_mode = #tpu.pipeline_mode<synchronous>, transform_indices = @transform_3, window_bounds = array<i64: 1, 96>}, {pipeline_mode = #tpu.pipeline_mode<synchronous>, transform_indices = @transform_4, window_bounds = array<i64: 1, 96>}, {pipeline_mode = #tpu.pipeline_mode<synchronous>, transform_indices = @transform_5, window_bounds = array<i64: 1, 96>}, {pipeline_mode = #tpu.pipeline_mode<synchronous>, transform_indices = @transform_6, window_bounds = array<i64: 96, 128>}, {transform_indices = @transform_7, window_bounds = array<i64: 8, 128>}, {pipeline_mode = #tpu.pipeline_mode<synchronous>, transform_indices = @transform_8, window_bounds = array<i64: 1, 128>}, {pipeline_mode = #tpu.pipeline_mode<synchronous>, transform_indices = @transform_9, window_bounds = array<i64: 1, 128>}]} {
    %c0 = arith.constant 0 : index
    %c0_0 = arith.constant 0 : index
    %0 = vector.load %arg5[%c0, %c0_0] : memref<1x96xf32, #tpu.memory_space<vmem>>, vector<1x96xf32>
    %cst = arith.constant 1.250000e-01 : f32
    %1 = vector.broadcast %cst : f32 to vector<1x96xf32>
    %2 = arith.mulf %0, %1 : vector<1x96xf32>
    %c0_1 = arith.constant 0 : index
    %c0_2 = arith.constant 0 : index
    %3 = vector.load %arg6[%c0_1, %c0_2] : memref<1x96xf32, #tpu.memory_space<vmem>>, vector<1x96xf32>
    %cst_3 = arith.constant 1.250000e-01 : f32
    %4 = vector.broadcast %cst_3 : f32 to vector<1x96xf32>
    %5 = arith.mulf %3, %4 : vector<1x96xf32>
    %6 = arith.mulf %2, %2 : vector<1x96xf32>
    %7 = arith.subf %5, %6 : vector<1x96xf32>
    %c0_4 = arith.constant 0 : index
    %c0_5 = arith.constant 0 : index
    %8 = vector.load %arg3[%c0_4, %c0_5] : memref<1x96xf32, #tpu.memory_space<vmem>>, vector<1x96xf32>
    %cst_6 = arith.constant 9.99999974E-6 : f32
    %9 = vector.broadcast %cst_6 : f32 to vector<1x96xf32>
    %10 = arith.addf %7, %9 : vector<1x96xf32>
    %11 = math.rsqrt %10 : vector<1x96xf32>
    %12 = arith.mulf %8, %11 : vector<1x96xf32>
    %c0_7 = arith.constant 0 : index
    %c0_8 = arith.constant 0 : index
    %13 = vector.load %arg4[%c0_7, %c0_8] : memref<1x96xf32, #tpu.memory_space<vmem>>, vector<1x96xf32>
    %14 = arith.mulf %2, %12 : vector<1x96xf32>
    %15 = arith.subf %13, %14 : vector<1x96xf32>
    %c0_9 = arith.constant 0 : index
    %c0_10 = arith.constant 0 : index
    %16 = vector.load %arg1[%c0_9, %c0_10] : memref<8x64xf32, #tpu.memory_space<vmem>>, vector<8x64xf32>
    %17 = vector.extract_strided_slice %12 {offsets = [0, 0], sizes = [1, 64], strides = [1, 1]} : vector<1x96xf32> to vector<1x64xf32>
    %18 = vector.broadcast %17 : vector<1x64xf32> to vector<8x64xf32>
    %19 = arith.mulf %16, %18 : vector<8x64xf32>
    %20 = vector.extract_strided_slice %15 {offsets = [0, 0], sizes = [1, 64], strides = [1, 1]} : vector<1x96xf32> to vector<1x64xf32>
    %21 = vector.broadcast %20 : vector<1x64xf32> to vector<8x64xf32>
    %22 = arith.addf %19, %21 : vector<8x64xf32>
    %cst_11 = arith.constant 0.000000e+00 : f32
    %23 = vector.broadcast %cst_11 : f32 to vector<8x64xf32>
    %24 = arith.maximumf %22, %23 : vector<8x64xf32>
    %25 = arith.truncf %24 : vector<8x64xf32> to vector<8x64xbf16>
    %c0_12 = arith.constant 0 : index
    %c0_13 = arith.constant 0 : index
    %26 = vector.load %arg7[%c0_12, %c0_13] : memref<96x128xbf16, #tpu.memory_space<vmem>>, vector<64x128xbf16>
    %cst_14 = arith.constant dense<0.000000e+00> : vector<8x128xf32>
    %27 = tpu.matmul %25, %26, %cst_14 {dimension_numbers = #tpu.dot_dimension_numbers<[1], [0], [0], [1], [0, 0, 1, 1], [], []>} : vector<8x64xbf16>, vector<64x128xbf16>, vector<8x128xf32> -> vector<8x128xf32>
    %c0_15 = arith.constant 0 : index
    %c0_16 = arith.constant 0 : index
    %28 = vector.load %arg2[%c0_15, %c0_16] : memref<8x32xf32, #tpu.memory_space<vmem>>, vector<8x32xf32>
    %29 = vector.extract_strided_slice %12 {offsets = [0, 64], sizes = [1, 32], strides = [1, 1]} : vector<1x96xf32> to vector<1x32xf32>
    %30 = vector.broadcast %29 : vector<1x32xf32> to vector<8x32xf32>
    %31 = arith.mulf %28, %30 : vector<8x32xf32>
    %32 = vector.extract_strided_slice %15 {offsets = [0, 64], sizes = [1, 32], strides = [1, 1]} : vector<1x96xf32> to vector<1x32xf32>
    %33 = vector.broadcast %32 : vector<1x32xf32> to vector<8x32xf32>
    %34 = arith.addf %31, %33 : vector<8x32xf32>
    %cst_17 = arith.constant 0.000000e+00 : f32
    %35 = vector.broadcast %cst_17 : f32 to vector<8x32xf32>
    %36 = arith.maximumf %34, %35 : vector<8x32xf32>
    %37 = arith.truncf %36 : vector<8x32xf32> to vector<8x32xbf16>
    %c64 = arith.constant 64 : index
    %c0_18 = arith.constant 0 : index
    %38 = vector.load %arg7[%c64, %c0_18] : memref<96x128xbf16, #tpu.memory_space<vmem>>, vector<32x128xbf16>
    %cst_19 = arith.constant dense<0.000000e+00> : vector<8x128xf32>
    %39 = tpu.matmul %37, %38, %cst_19 {dimension_numbers = #tpu.dot_dimension_numbers<[1], [0], [0], [1], [0, 0, 1, 1], [], []>} : vector<8x32xbf16>, vector<32x128xbf16>, vector<8x128xf32> -> vector<8x128xf32>
    %40 = arith.addf %27, %39 : vector<8x128xf32>
    %c0_20 = arith.constant 0 : index
    %c0_21 = arith.constant 0 : index
    %41 = vector.load %arg8[%c0_20, %c0_21] : memref<8x128xf32, #tpu.memory_space<vmem>>, vector<8x128xf32>
    tpu.vector_store %arg8[%c0_20, %c0_21], %40 {strides = array<i32>} : memref<8x128xf32, #tpu.memory_space<vmem>>, vector<8x128xf32>,
    %c0_i32 = arith.constant 0 : i32
    %42 = arith.cmpi eq, %arg0, %c0_i32 : i32
    %43 = arith.extui %42 : i1 to i32
    %c0_i32_22 = arith.constant 0 : i32
    %44 = arith.cmpi ne, %43, %c0_i32_22 : i32
    scf.if %44 {
      %cst_33 = arith.constant 0.000000e+00 : f32
      %56 = vector.broadcast %cst_33 : f32 to vector<1x128xf32>
      %c0_34 = arith.constant 0 : index
      %c0_35 = arith.constant 0 : index
      %57 = vector.load %arg9[%c0_34, %c0_35] : memref<1x128xf32, #tpu.memory_space<vmem>>, vector<1x128xf32>
      tpu.vector_store %arg9[%c0_34, %c0_35], %56 {strides = array<i32>} : memref<1x128xf32, #tpu.memory_space<vmem>>, vector<1x128xf32>,
      %cst_36 = arith.constant 0.000000e+00 : f32
      %58 = vector.broadcast %cst_36 : f32 to vector<1x128xf32>
      %c0_37 = arith.constant 0 : index
      %c0_38 = arith.constant 0 : index
      %59 = vector.load %arg10[%c0_37, %c0_38] : memref<1x128xf32, #tpu.memory_space<vmem>>, vector<1x128xf32>
      tpu.vector_store %arg10[%c0_37, %c0_38], %58 {strides = array<i32>} : memref<1x128xf32, #tpu.memory_space<vmem>>, vector<1x128xf32>,
    } else {
    }
    %c0_23 = arith.constant 0 : index
    %c0_24 = arith.constant 0 : index
    %45 = vector.load %arg9[%c0_23, %c0_24] : memref<1x128xf32, #tpu.memory_space<vmem>>, vector<1x128xf32>
    %cst_25 = arith.constant dense<0.000000e+00> : vector<128xf32>
    %46 = vector.multi_reduction <add>, %40, %cst_25 [0] : vector<8x128xf32> to vector<128xf32>
    %47 = vector.shape_cast %46 : vector<128xf32> to vector<1x128xf32>
    %48 = arith.addf %45, %47 : vector<1x128xf32>
    %c0_26 = arith.constant 0 : index
    %c0_27 = arith.constant 0 : index
    %49 = vector.load %arg9[%c0_26, %c0_27] : memref<1x128xf32, #tpu.memory_space<vmem>>, vector<1x128xf32>
    tpu.vector_store %arg9[%c0_26, %c0_27], %48 {strides = array<i32>} : memref<1x128xf32, #tpu.memory_space<vmem>>, vector<1x128xf32>,
    %c0_28 = arith.constant 0 : index
    %c0_29 = arith.constant 0 : index
    %50 = vector.load %arg10[%c0_28, %c0_29] : memref<1x128xf32, #tpu.memory_space<vmem>>, vector<1x128xf32>
    %51 = arith.mulf %40, %40 : vector<8x128xf32>
    %cst_30 = arith.constant dense<0.000000e+00> : vector<128xf32>
    %52 = vector.multi_reduction <add>, %51, %cst_30 [0] : vector<8x128xf32> to vector<128xf32>
    %53 = vector.shape_cast %52 : vector<128xf32> to vector<1x128xf32>
    %54 = arith.addf %50, %53 : vector<1x128xf32>
    %c0_31 = arith.constant 0 : index
    %c0_32 = arith.constant 0 : index
    %55 = vector.load %arg10[%c0_31, %c0_32] : memref<1x128xf32, #tpu.memory_space<vmem>>, vector<1x128xf32>
    tpu.vector_store %arg10[%c0_31, %c0_32], %54 {strides = array<i32>} : memref<1x128xf32, #tpu.memory_space<vmem>>, vector<1x128xf32>,
    return
  }
  func.func @transform_0(%arg0: i32) -> (i32, i32) {
    %c0_i32 = arith.constant 0 : i32
    %c0_i32_0 = arith.constant 0 : i32
    return %arg0, %c0_i32 : i32, i32
  }
  func.func @transform_1(%arg0: i32) -> (i32, i32) {
    %c0_i32 = arith.constant 0 : i32
    %c0_i32_0 = arith.constant 0 : i32
    return %arg0, %c0_i32 : i32, i32
  }
  func.func @transform_2(%arg0: i32) -> (i32, i32) {
    %c0_i32 = arith.constant 0 : i32
    %c0_i32_0 = arith.constant 0 : i32
    %c0_i32_1 = arith.constant 0 : i32
    return %c0_i32, %c0_i32_0 : i32, i32
  }
  func.func @transform_3(%arg0: i32) -> (i32, i32) {
    %c0_i32 = arith.constant 0 : i32
    %c0_i32_0 = arith.constant 0 : i32
    %c0_i32_1 = arith.constant 0 : i32
    return %c0_i32, %c0_i32_0 : i32, i32
  }
  func.func @transform_4(%arg0: i32) -> (i32, i32) {
    %c0_i32 = arith.constant 0 : i32
    %c0_i32_0 = arith.constant 0 : i32
    %c0_i32_1 = arith.constant 0 : i32
    return %c0_i32, %c0_i32_0 : i32, i32
  }
  func.func @transform_5(%arg0: i32) -> (i32, i32) {
    %c0_i32 = arith.constant 0 : i32
    %c0_i32_0 = arith.constant 0 : i32
    %c0_i32_1 = arith.constant 0 : i32
    return %c0_i32, %c0_i32_0 : i32, i32
  }
  func.func @transform_6(%arg0: i32) -> (i32, i32) {
    %c0_i32 = arith.constant 0 : i32
    %c0_i32_0 = arith.constant 0 : i32
    %c0_i32_1 = arith.constant 0 : i32
    return %c0_i32, %c0_i32_0 : i32, i32
  }
  func.func @transform_7(%arg0: i32) -> (i32, i32) {
    %c0_i32 = arith.constant 0 : i32
    %c0_i32_0 = arith.constant 0 : i32
    return %arg0, %c0_i32 : i32, i32
  }
  func.func @transform_8(%arg0: i32) -> (i32, i32) {
    %c0_i32 = arith.constant 0 : i32
    %c0_i32_0 = arith.constant 0 : i32
    %c0_i32_1 = arith.constant 0 : i32
    return %c0_i32, %c0_i32_0 : i32, i32
  }
  func.func @transform_9(%arg0: i32) -> (i32, i32) {
    %c0_i32 = arith.constant 0 : i32
    %c0_i32_0 = arith.constant 0 : i32
    %c0_i32_1 = arith.constant 0 : i32
    return %c0_i32, %c0_i32_0 : i32, i32
  }
}

module attributes {stable_mosaic.version = 11 : i64} {
  func.func @kernel(%arg0: memref<2x4x64xf32, #tpu.memory_space<vmem>>, %arg1: memref<2x4x32xf32, #tpu.memory_space<vmem>>, %arg2: memref<2x4x32xf32, #tpu.memory_space<vmem>>, %arg3: memref<1x128xf32, #tpu.memory_space<vmem>>, %arg4: memref<1x128xf32, #tpu.memory_space<vmem>>, %arg5: memref<1x128xf32, #tpu.memory_space<vmem>>, %arg6: memref<1x128xf32, #tpu.memory_space<vmem>>, %arg7: memref<128x128xbf16, #tpu.memory_space<vmem>>, %arg8: memref<1x128xf32, #tpu.memory_space<vmem>>, %arg9: memref<2x128xf32, #tpu.memory_space<vmem>>) attributes {dimension_semantics = [], scalar_prefetch = 0 : i64, scratch_operands = 0 : i64, tpu.core_type = #tpu.core_type<tc>} {
    %c0 = arith.constant 0 : index
    %c0_0 = arith.constant 0 : index
    %0 = vector.load %arg5[%c0, %c0_0] : memref<1x128xf32, #tpu.memory_space<vmem>>, vector<1x128xf32>
    %cst = arith.constant 1.250000e-01 : f32
    %1 = vector.broadcast %cst : f32 to vector<1x128xf32>
    %2 = arith.mulf %0, %1 : vector<1x128xf32>
    %c0_1 = arith.constant 0 : index
    %c0_2 = arith.constant 0 : index
    %3 = vector.load %arg6[%c0_1, %c0_2] : memref<1x128xf32, #tpu.memory_space<vmem>>, vector<1x128xf32>
    %cst_3 = arith.constant 1.250000e-01 : f32
    %4 = vector.broadcast %cst_3 : f32 to vector<1x128xf32>
    %5 = arith.mulf %3, %4 : vector<1x128xf32>
    %6 = arith.mulf %2, %2 : vector<1x128xf32>
    %7 = arith.subf %5, %6 : vector<1x128xf32>
    %c0_4 = arith.constant 0 : index
    %c0_5 = arith.constant 0 : index
    %8 = vector.load %arg3[%c0_4, %c0_5] : memref<1x128xf32, #tpu.memory_space<vmem>>, vector<1x128xf32>
    %cst_6 = arith.constant 9.99999974E-6 : f32
    %9 = vector.broadcast %cst_6 : f32 to vector<1x128xf32>
    %10 = arith.addf %7, %9 : vector<1x128xf32>
    %11 = math.rsqrt %10 : vector<1x128xf32>
    %12 = arith.mulf %8, %11 : vector<1x128xf32>
    %c0_7 = arith.constant 0 : index
    %c0_8 = arith.constant 0 : index
    %13 = vector.load %arg4[%c0_7, %c0_8] : memref<1x128xf32, #tpu.memory_space<vmem>>, vector<1x128xf32>
    %14 = arith.mulf %2, %12 : vector<1x128xf32>
    %15 = arith.subf %13, %14 : vector<1x128xf32>
    %c0_9 = arith.constant 0 : index
    %c0_10 = arith.constant 0 : index
    %c0_11 = arith.constant 0 : index
    %16 = vector.load %arg0[%c0_9, %c0_10, %c0_11] : memref<2x4x64xf32, #tpu.memory_space<vmem>>, vector<2x4x64xf32>
    %17 = vector.extract_strided_slice %12 {offsets = [0, 0], sizes = [1, 64], strides = [1, 1]} : vector<1x128xf32> to vector<1x64xf32>
    %18 = vector.shape_cast %17 : vector<1x64xf32> to vector<1x1x64xf32>
    %19 = vector.broadcast %18 : vector<1x1x64xf32> to vector<2x4x64xf32>
    %20 = arith.mulf %16, %19 : vector<2x4x64xf32>
    %21 = vector.extract_strided_slice %15 {offsets = [0, 0], sizes = [1, 64], strides = [1, 1]} : vector<1x128xf32> to vector<1x64xf32>
    %22 = vector.shape_cast %21 : vector<1x64xf32> to vector<1x1x64xf32>
    %23 = vector.broadcast %22 : vector<1x1x64xf32> to vector<2x4x64xf32>
    %24 = arith.addf %20, %23 : vector<2x4x64xf32>
    %cst_12 = arith.constant 0.000000e+00 : f32
    %25 = vector.broadcast %cst_12 : f32 to vector<2x4x64xf32>
    %26 = arith.maximumf %24, %25 : vector<2x4x64xf32>
    %cst_13 = arith.constant dense<0.000000e+00> : vector<2x64xf32>
    %27 = vector.multi_reduction <add>, %26, %cst_13 [1] : vector<2x4x64xf32> to vector<2x64xf32>
    %cst_14 = arith.constant 4.000000e+00 : f32
    %28 = vector.broadcast %cst_14 : f32 to vector<2x64xf32>
    %29 = arith.divf %27, %28 : vector<2x64xf32>
    %30 = arith.truncf %29 : vector<2x64xf32> to vector<2x64xbf16>
    %c0_15 = arith.constant 0 : index
    %c0_16 = arith.constant 0 : index
    %31 = vector.load %arg7[%c0_15, %c0_16] : memref<128x128xbf16, #tpu.memory_space<vmem>>, vector<64x128xbf16>
    %cst_17 = arith.constant dense<0.000000e+00> : vector<2x128xf32>
    %32 = tpu.matmul %30, %31, %cst_17 {dimension_numbers = #tpu.dot_dimension_numbers<[1], [0], [0], [1], [0, 0, 1, 1], [], []>} : vector<2x64xbf16>, vector<64x128xbf16>, vector<2x128xf32> -> vector<2x128xf32>
    %c0_18 = arith.constant 0 : index
    %c0_19 = arith.constant 0 : index
    %c0_20 = arith.constant 0 : index
    %33 = vector.load %arg1[%c0_18, %c0_19, %c0_20] : memref<2x4x32xf32, #tpu.memory_space<vmem>>, vector<2x4x32xf32>
    %34 = vector.extract_strided_slice %12 {offsets = [0, 64], sizes = [1, 32], strides = [1, 1]} : vector<1x128xf32> to vector<1x32xf32>
    %35 = vector.shape_cast %34 : vector<1x32xf32> to vector<1x1x32xf32>
    %36 = vector.broadcast %35 : vector<1x1x32xf32> to vector<2x4x32xf32>
    %37 = arith.mulf %33, %36 : vector<2x4x32xf32>
    %38 = vector.extract_strided_slice %15 {offsets = [0, 64], sizes = [1, 32], strides = [1, 1]} : vector<1x128xf32> to vector<1x32xf32>
    %39 = vector.shape_cast %38 : vector<1x32xf32> to vector<1x1x32xf32>
    %40 = vector.broadcast %39 : vector<1x1x32xf32> to vector<2x4x32xf32>
    %41 = arith.addf %37, %40 : vector<2x4x32xf32>
    %cst_21 = arith.constant 0.000000e+00 : f32
    %42 = vector.broadcast %cst_21 : f32 to vector<2x4x32xf32>
    %43 = arith.maximumf %41, %42 : vector<2x4x32xf32>
    %cst_22 = arith.constant dense<0.000000e+00> : vector<2x32xf32>
    %44 = vector.multi_reduction <add>, %43, %cst_22 [1] : vector<2x4x32xf32> to vector<2x32xf32>
    %cst_23 = arith.constant 4.000000e+00 : f32
    %45 = vector.broadcast %cst_23 : f32 to vector<2x32xf32>
    %46 = arith.divf %44, %45 : vector<2x32xf32>
    %47 = arith.truncf %46 : vector<2x32xf32> to vector<2x32xbf16>
    %c64 = arith.constant 64 : index
    %c0_24 = arith.constant 0 : index
    %48 = vector.load %arg7[%c64, %c0_24] : memref<128x128xbf16, #tpu.memory_space<vmem>>, vector<32x128xbf16>
    %cst_25 = arith.constant dense<0.000000e+00> : vector<2x128xf32>
    %49 = tpu.matmul %47, %48, %cst_25 {dimension_numbers = #tpu.dot_dimension_numbers<[1], [0], [0], [1], [0, 0, 1, 1], [], []>} : vector<2x32xbf16>, vector<32x128xbf16>, vector<2x128xf32> -> vector<2x128xf32>
    %50 = arith.addf %32, %49 : vector<2x128xf32>
    %c0_26 = arith.constant 0 : index
    %c0_27 = arith.constant 0 : index
    %c0_28 = arith.constant 0 : index
    %51 = vector.load %arg2[%c0_26, %c0_27, %c0_28] : memref<2x4x32xf32, #tpu.memory_space<vmem>>, vector<2x4x32xf32>
    %52 = vector.extract_strided_slice %12 {offsets = [0, 96], sizes = [1, 32], strides = [1, 1]} : vector<1x128xf32> to vector<1x32xf32>
    %53 = vector.shape_cast %52 : vector<1x32xf32> to vector<1x1x32xf32>
    %54 = vector.broadcast %53 : vector<1x1x32xf32> to vector<2x4x32xf32>
    %55 = arith.mulf %51, %54 : vector<2x4x32xf32>
    %56 = vector.extract_strided_slice %15 {offsets = [0, 96], sizes = [1, 32], strides = [1, 1]} : vector<1x128xf32> to vector<1x32xf32>
    %57 = vector.shape_cast %56 : vector<1x32xf32> to vector<1x1x32xf32>
    %58 = vector.broadcast %57 : vector<1x1x32xf32> to vector<2x4x32xf32>
    %59 = arith.addf %55, %58 : vector<2x4x32xf32>
    %cst_29 = arith.constant 0.000000e+00 : f32
    %60 = vector.broadcast %cst_29 : f32 to vector<2x4x32xf32>
    %61 = arith.maximumf %59, %60 : vector<2x4x32xf32>
    %cst_30 = arith.constant dense<0.000000e+00> : vector<2x32xf32>
    %62 = vector.multi_reduction <add>, %61, %cst_30 [1] : vector<2x4x32xf32> to vector<2x32xf32>
    %cst_31 = arith.constant 4.000000e+00 : f32
    %63 = vector.broadcast %cst_31 : f32 to vector<2x32xf32>
    %64 = arith.divf %62, %63 : vector<2x32xf32>
    %65 = arith.truncf %64 : vector<2x32xf32> to vector<2x32xbf16>
    %c96 = arith.constant 96 : index
    %c0_32 = arith.constant 0 : index
    %66 = vector.load %arg7[%c96, %c0_32] : memref<128x128xbf16, #tpu.memory_space<vmem>>, vector<32x128xbf16>
    %cst_33 = arith.constant dense<0.000000e+00> : vector<2x128xf32>
    %67 = tpu.matmul %65, %66, %cst_33 {dimension_numbers = #tpu.dot_dimension_numbers<[1], [0], [0], [1], [0, 0, 1, 1], [], []>} : vector<2x32xbf16>, vector<32x128xbf16>, vector<2x128xf32> -> vector<2x128xf32>
    %68 = arith.addf %50, %67 : vector<2x128xf32>
    %c0_34 = arith.constant 0 : index
    %c0_35 = arith.constant 0 : index
    %69 = vector.load %arg8[%c0_34, %c0_35] : memref<1x128xf32, #tpu.memory_space<vmem>>, vector<1x128xf32>
    %70 = vector.broadcast %69 : vector<1x128xf32> to vector<2x128xf32>
    %71 = arith.addf %68, %70 : vector<2x128xf32>
    %c0_36 = arith.constant 0 : index
    %c0_37 = arith.constant 0 : index
    %72 = vector.load %arg9[%c0_36, %c0_37] : memref<2x128xf32, #tpu.memory_space<vmem>>, vector<2x128xf32>
    tpu.vector_store %arg9[%c0_36, %c0_37], %71 {strides = array<i32>} : memref<2x128xf32, #tpu.memory_space<vmem>>, vector<2x128xf32>,
    return
  }
}

</mosaic_0001>

<bundles_post_ra>
// kernel: _lambda_.24
= control target key start
LH: loop header
LB: loop body
LE: loop exit
PB: predicated region body
PF: predicated region fallthrough
CT: control target
= control target key end

     0   :  { %s242_s16 = smov 64   ;;  %vm128_vm0 = vcmask 516096   ;;  %v243_v14 = vmov 0.0   ;;  %vm107_vm1 = vcmask 523264   ;;  %s486_s0 = inlined_call_operand.vmem [shape: f32[128,128], index: 0, kind: input, shape index: {}]   ;;  %s487_s2 = inlined_call_operand.vmem [shape: f32[1,64], index: 2, kind: output, shape index: {1}]   ;;  %s488_s3 = inlined_call_operand.vmem [shape: f32[1,64], index: 3, kind: output, shape index: {2}]   ;;  %s489_s1 = inlined_call_operand.vmem [shape: f32[128,64], index: 1, kind: output, shape index: {0}]  }
   0x1   :  { %v11_v0 = vld [vmem:[%s486_s0] sm:$0xff]  ;;  %v13_v1 = vld [vmem:[%s486_s0 + $0x10] sm:$0xff]  ;;  %v12_v2 = vld [vmem:[%s486_s0 + $0x8] sm:$0xff]  ;;  %129 = vst.msk [vmem:[%s487_s2] sm:$0x1] %vm128_vm0, %v243_v14 }
   0x2   :  { %43 = vrot.lane.b32.xlu0 %v11_v0, %s242_s16  ;;  %47 = vrot.lane.b32.xlu1 %v13_v1, %s242_s16  ;;  %v14_v3 = vld [vmem:[%s486_s0 + $0x18] sm:$0xff]  ;;  %v15_v4 = vld [vmem:[%s486_s0 + $0x20] sm:$0xff] }
   0x3   :  { %v16_v5 = vld [vmem:[%s486_s0 + $0x28] sm:$0xff]  ;;  %v291_v6 = vld [vmem:[%s486_s0 + $0x30] sm:$0xff]  ;;  %v296_v7 = vld [vmem:[%s486_s0 + $0x38] sm:$0xff]  ;;  %130 = vst.msk [vmem:[%s488_s3] sm:$0x1] %vm128_vm0, %v243_v14 }
   0x4   :  { %v305_v8 = vld [vmem:[%s486_s0 + $0x40] sm:$0xff]  ;;  %v310_v9 = vld [vmem:[%s486_s0 + $0x48] sm:$0xff]  ;;  %v319_v10 = vld [vmem:[%s486_s0 + $0x50] sm:$0xff] }
   0x5   :  { %v324_v11 = vld [vmem:[%s486_s0 + $0x58] sm:$0xff]  ;;  %v333_v12 = vld [vmem:[%s486_s0 + $0x60] sm:$0xff]  ;;  %v338_v13 = vld [vmem:[%s486_s0 + $0x68] sm:$0xff] }
   0x6   :  { %45 = vrot.lane.b32.xlu0 %v12_v2, %s242_s16  ;;  %49 = vrot.lane.b32.xlu1 %v14_v3, %s242_s16  ;;  %v355_v15 = vld [vmem:[%s486_s0 + $0x70] sm:$0xff]  ;;  %v360_v16 = vld [vmem:[%s486_s0 + $0x78] sm:$0xff] }
   0xa   :  { %51 = vrot.lane.b32.xlu0 %v15_v4, %s242_s16  ;;  %53 = vrot.lane.b32.xlu1 %v16_v5, %s242_s16 }
   0xe   :  { %55 = vrot.lane.b32.xlu0 %v291_v6, %s242_s16  ;;  %57 = vrot.lane.b32.xlu1 %v296_v7, %s242_s16 }
  0x12   :  { %59 = vrot.lane.b32.xlu0 %v305_v8, %s242_s16  ;;  %61 = vrot.lane.b32.xlu1 %v310_v9, %s242_s16 }
  0x16   :  { %63 = vrot.lane.b32.xlu0 %v319_v10, %s242_s16  ;;  %65 = vrot.lane.b32.xlu1 %v324_v11, %s242_s16 }
  0x1a   :  { %67 = vrot.lane.b32.xlu0 %v333_v12, %s242_s16  ;;  %69 = vrot.lane.b32.xlu1 %v338_v13, %s242_s16 }
  0x1e   :  { %71 = vrot.lane.b32.xlu0 %v355_v15, %s242_s16  ;;  %73 = vrot.lane.b32.xlu1 %v360_v16, %s242_s16 }
  0x74   :  { %v44_v17 = vpop.permute.xlu0 %43  ;;  %v48_v18 = vpop.permute.xlu1 %47 }
  0x75   :  { %v91_v19 = vmax.f32 %v11_v0, %v44_v17  ;;  %v93_v20 = vmax.f32 %v13_v1, %v48_v18 }
  0x77   :  { %108 = vst.msk [vmem:[%s489_s1] sm:$0xff] %vm107_vm1, %v91_v19  ;;  %110 = vst.msk [vmem:[%s489_s1 + $0x10] sm:$0xff] %vm107_vm1, %v93_v20  ;;  %v173_v21 = vmul.f32 %v91_v19, %v91_v19  ;;  %v175_v26 = vmul.f32 %v93_v20, %v93_v20  ;;  %v132_v27 = vsel %vm107_vm1, %v91_v19, 0.0  ;;  %v135_v32 = vsel %vm107_vm1, %v93_v20, 0.0 }
  0x78   :  { %v46_v22 = vpop.permute.xlu0 %45  ;;  %v50_v23 = vpop.permute.xlu1 %49 }
  0x79   :  { %v92_v24 = vmax.f32 %v12_v2, %v46_v22  ;;  %v94_v25 = vmax.f32 %v14_v3, %v50_v23  ;;  %v189_v31 = vsel %vm107_vm1, %v173_v21, 0.0  ;;  %v192_v40 = vsel %vm107_vm1, %v175_v26, 0.0 }
  0x7b   :  { %109 = vst.msk [vmem:[%s489_s1 + $0x8] sm:$0xff] %vm107_vm1, %v92_v24  ;;  %v133_v28 = vsel %vm107_vm1, %v92_v24, 0.0  ;;  %v174_v29 = vmul.f32 %v92_v24, %v92_v24  ;;  %111 = vst.msk [vmem:[%s489_s1 + $0x18] sm:$0xff] %vm107_vm1, %v94_v25  ;;  %v176_v30 = vmul.f32 %v94_v25, %v94_v25  ;;  %v137_v37 = vsel %vm107_vm1, %v94_v25, 0.0 }
  0x7c   :  { %v134_v33 = vadd.f32 %v133_v28, %v132_v27  ;;  %v52_v34 = vpop.permute.xlu0 %51  ;;  %v54_v35 = vpop.permute.xlu1 %53 }
  0x7d   :  { %v190_v36 = vsel %vm107_vm1, %v174_v29, 0.0  ;;  %v95_v38 = vmax.f32 %v15_v4, %v52_v34  ;;  %v96_v39 = vmax.f32 %v16_v5, %v54_v35  ;;  %v194_v43 = vsel %vm107_vm1, %v176_v30, 0.0 }
  0x7e   :  { %v191_v41 = vadd.f32 %v190_v36, %v189_v31  ;;  %v136_v42 = vadd.f32 %v135_v32, %v134_v33 }
  0x7f   :  { %112 = vst.msk [vmem:[%s489_s1 + $0x20] sm:$0xff] %vm107_vm1, %v95_v38  ;;  %v139_v44 = vsel %vm107_vm1, %v95_v38, 0.0  ;;  %v177_v45 = vmul.f32 %v95_v38, %v95_v38  ;;  %113 = vst.msk [vmem:[%s489_s1 + $0x28] sm:$0xff] %vm107_vm1, %v96_v39  ;;  %v178_v46 = vmul.f32 %v96_v39, %v96_v39  ;;  %v141_v52 = vsel %vm107_vm1, %v96_v39, 0.0 }
  0x80   :  { %v138_v47 = vadd.f32 %v137_v37, %v136_v42  ;;  %v193_v48 = vadd.f32 %v192_v40, %v191_v41  ;;  %v56_v49 = vpop.permute.xlu0 %55  ;;  %v58_v50 = vpop.permute.xlu1 %57 }
  0x81   :  { %v196_v51 = vsel %vm107_vm1, %v177_v45, 0.0  ;;  %v97_v53 = vmax.f32 %v291_v6, %v56_v49  ;;  %v98_v54 = vmax.f32 %v296_v7, %v58_v50  ;;  %v198_v57 = vsel %vm107_vm1, %v178_v46, 0.0 }
  0x82   :  { %v195_v55 = vadd.f32 %v194_v43, %v193_v48  ;;  %v140_v56 = vadd.f32 %v139_v44, %v138_v47 }
  0x83   :  { %114 = vst.msk [vmem:[%s489_s1 + $0x30] sm:$0xff] %vm107_vm1, %v97_v53  ;;  %v143_v58 = vsel %vm107_vm1, %v97_v53, 0.0  ;;  %v179_v59 = vmul.f32 %v97_v53, %v97_v53  ;;  %115 = vst.msk [vmem:[%s489_s1 + $0x38] sm:$0xff] %vm107_vm1, %v98_v54  ;;  %v180_v60 = vmul.f32 %v98_v54, %v98_v54  ;;  %v145_v2 = vsel %vm107_vm1, %v98_v54, 0.0 }
  0x84   :  { %v197_v61 = vadd.f32 %v196_v51, %v195_v55  ;;  %v142_v62 = vadd.f32 %v141_v52, %v140_v56  ;;  %v60_v63 = vpop.permute.xlu0 %59  ;;  %v62_v0 = vpop.permute.xlu1 %61 }
  0x85   :  { %v200_v1 = vsel %vm107_vm1, %v179_v59, 0.0  ;;  %v99_v3 = vmax.f32 %v305_v8, %v60_v63  ;;  %v100_v4 = vmax.f32 %v310_v9, %v62_v0  ;;  %v202_v7 = vsel %vm107_vm1, %v180_v60, 0.0 }
  0x86   :  { %v199_v5 = vadd.f32 %v198_v57, %v197_v61  ;;  %v144_v6 = vadd.f32 %v143_v58, %v142_v62 }
  0x87   :  { %116 = vst.msk [vmem:[%s489_s1 + $0x40] sm:$0xff] %vm107_vm1, %v99_v3  ;;  %v147_v14 = vsel %vm107_vm1, %v99_v3, 0.0  ;;  %v181_v17 = vmul.f32 %v99_v3, %v99_v3  ;;  %117 = vst.msk [vmem:[%s489_s1 + $0x48] sm:$0xff] %vm107_vm1, %v100_v4  ;;  %v182_v8 = vmul.f32 %v100_v4, %v100_v4  ;;  %v149_v22 = vsel %vm107_vm1, %v100_v4, 0.0 }
  0x88   :  { %v201_v18 = vadd.f32 %v200_v1, %v199_v5  ;;  %v146_v9 = vadd.f32 %v145_v2, %v144_v6  ;;  %v64_v19 = vpop.permute.xlu0 %63  ;;  %v66_v20 = vpop.permute.xlu1 %65 }
  0x89   :  { %v204_v21 = vsel %vm107_vm1, %v181_v17, 0.0  ;;  %v101_v23 = vmax.f32 %v319_v10, %v64_v19  ;;  %v102_v24 = vmax.f32 %v324_v11, %v66_v20  ;;  %v206_v27 = vsel %vm107_vm1, %v182_v8, 0.0 }
  0x8a   :  { %v203_v25 = vadd.f32 %v202_v7, %v201_v18  ;;  %v148_v26 = vadd.f32 %v147_v14, %v146_v9  ;;  %v131_v14 = vld [vmem:[%s487_s2] sm:$0x1] }
  0x8b   :  { %118 = vst.msk [vmem:[%s489_s1 + $0x50] sm:$0xff] %vm107_vm1, %v101_v23  ;;  %v151_v28 = vsel %vm107_vm1, %v101_v23, 0.0  ;;  %v183_v29 = vmul.f32 %v101_v23, %v101_v23  ;;  %119 = vst.msk [vmem:[%s489_s1 + $0x58] sm:$0xff] %vm107_vm1, %v102_v24  ;;  %v184_v10 = vmul.f32 %v102_v24, %v102_v24  ;;  %v153_v34 = vsel %vm107_vm1, %v102_v24, 0.0  ;;  %v172_v18 = vld [vmem:[%s488_s3] sm:$0x1] }
  0x8c   :  { %v205_v30 = vadd.f32 %v204_v21, %v203_v25  ;;  %v150_v11 = vadd.f32 %v149_v22, %v148_v26  ;;  %v68_v31 = vpop.permute.xlu0 %67  ;;  %v70_v32 = vpop.permute.xlu1 %69 }
  0x8d   :  { %v208_v33 = vsel %vm107_vm1, %v183_v29, 0.0  ;;  %v103_v35 = vmax.f32 %v333_v12, %v68_v31  ;;  %v104_v36 = vmax.f32 %v338_v13, %v70_v32  ;;  %v210_v39 = vsel %vm107_vm1, %v184_v10, 0.0 }
  0x8e   :  { %v207_v37 = vadd.f32 %v206_v27, %v205_v30  ;;  %v152_v38 = vadd.f32 %v151_v28, %v150_v11 }
  0x8f   :  { %120 = vst.msk [vmem:[%s489_s1 + $0x60] sm:$0xff] %vm107_vm1, %v103_v35  ;;  %v155_v40 = vsel %vm107_vm1, %v103_v35, 0.0  ;;  %v185_v41 = vmul.f32 %v103_v35, %v103_v35  ;;  %121 = vst.msk [vmem:[%s489_s1 + $0x68] sm:$0xff] %vm107_vm1, %v104_v36  ;;  %v186_v12 = vmul.f32 %v104_v36, %v104_v36  ;;  %v157_v46 = vsel %vm107_vm1, %v104_v36, 0.0 }
  0x90   :  { %v209_v42 = vadd.f32 %v208_v33, %v207_v37  ;;  %v154_v13 = vadd.f32 %v153_v34, %v152_v38  ;;  %v72_v43 = vpop.permute.xlu0 %71  ;;  %v74_v44 = vpop.permute.xlu1 %73 }
  0x91   :  { %v212_v45 = vsel %vm107_vm1, %v185_v41, 0.0  ;;  %v105_v47 = vmax.f32 %v355_v15, %v72_v43  ;;  %v106_v48 = vmax.f32 %v360_v16, %v74_v44  ;;  %v214_v51 = vsel %vm107_vm1, %v186_v12, 0.0 }
  0x92   :  { %v211_v49 = vadd.f32 %v210_v39, %v209_v42  ;;  %v156_v50 = vadd.f32 %v155_v40, %v154_v13 }
  0x93   :  { %122 = vst.msk [vmem:[%s489_s1 + $0x70] sm:$0xff] %vm107_vm1, %v105_v47  ;;  %v159_v52 = vsel %vm107_vm1, %v105_v47, 0.0  ;;  %v187_v53 = vmul.f32 %v105_v47, %v105_v47  ;;  %123 = vst.msk [vmem:[%s489_s1 + $0x78] sm:$0xff] %vm107_vm1, %v106_v48  ;;  %v188_v15 = vmul.f32 %v106_v48, %v106_v48  ;;  %v161_v56 = vsel %vm107_vm1, %v106_v48, 0.0 }
  0x94   :  { %v213_v54 = vadd.f32 %v212_v45, %v211_v49  ;;  %v158_v16 = vadd.f32 %v157_v46, %v156_v50 }
  0x95   :  { %v216_v55 = vsel %vm107_vm1, %v187_v53, 0.0  ;;  %v218_v59 = vsel %vm107_vm1, %v188_v15, 0.0 }
  0x96   :  { %v215_v57 = vadd.f32 %v214_v51, %v213_v54  ;;  %v160_v58 = vadd.f32 %v159_v52, %v158_v16 }
  0x98   :  { %v217_v60 = vadd.f32 %v216_v55, %v215_v57  ;;  %v162_v61 = vadd.f32 %v161_v56, %v160_v58 }
  0x9a   :  { %v163_v62 = vrot.slane %v162_v61, 4  ;;  %v219_v63 = vadd.f32 %v218_v59, %v217_v60 }
  0x9c   :  { %v164_v0 = vadd.f32 %v163_v62, %v162_v61  ;;  %v220_v1 = vrot.slane %v219_v63, 4 }
  0x9e   :  { %v165_v2 = vrot.slane %v164_v0, 2  ;;  %v221_v3 = vadd.f32 %v220_v1, %v219_v63 }
  0xa0   :  { %v166_v4 = vadd.f32 %v165_v2, %v164_v0  ;;  %v222_v5 = vrot.slane %v221_v3, 2 }
  0xa2   :  { %v167_v6 = vrot.slane %v166_v4, 1  ;;  %v223_v7 = vadd.f32 %v222_v5, %v221_v3 }
  0xa4   :  { %v168_v17 = vadd.f32 %v167_v6, %v166_v4  ;;  %v224_v8 = vrot.slane %v223_v7, 1 }
  0xa6   :  { %v169_v9 = vadd.f32 %v168_v17, %v131_v14  ;;  %v225_v19 = vadd.f32 %v224_v8, %v223_v7 }
  0xa8   :  { %171 = vst.msk [vmem:[%s487_s2] sm:$0x1] %vm128_vm0, %v169_v9  ;;  %v226_v20 = vadd.f32 %v225_v19, %v172_v18 }
  0xaa   :  { %227 = vst.msk [vmem:[%s488_s3] sm:$0x1] %vm128_vm0, %v226_v20 }

// kernel: _lambda_.23
= control target key start
LH: loop header
LB: loop body
LE: loop exit
PB: predicated region body
PF: predicated region fallthrough
CT: control target
= control target key end

     0   :  { %v48_v0 = vlaneseq  ;;  %s558_s1 = inlined_call_operand.vmem [shape: f32[1,1024], index: 1, kind: input, shape index: {}]   ;;  %s559_s2 = inlined_call_operand.vmem [shape: f32[1,1024], index: 2, kind: input, shape index: {}]   ;;  %s560_s0 = inlined_call_operand.vmem [shape: f32[16,2048], index: 0, kind: input, shape index: {}]   ;;  %s561_s3 = inlined_call_operand.vmem [shape: f32[16,1024], index: 3, kind: output, shape index: {}]  }
   0x1   :  { %v287_v2 = vld [vmem:[%s558_s1] sm:$0xff]  ;;  %v15_v10 = vld [vmem:[%s560_s0 + $0x8] sm:$0xff]  ;;  %v16_v12 = vld [vmem:[%s560_s0 + $0x10] sm:$0xff] }
   0x2   :  { %v282_v1 = vshrl.u32 %v48_v0, 7  ;;  %v292_v3 = vld [vmem:[%s559_s2] sm:$0xff]  ;;  %v23_v11 = vld [vmem:[%s560_s0 + $0x48] sm:$0xff]  ;;  %v24_v20 = vld [vmem:[%s560_s0 + $0x50] sm:$0xff] }
   0x3   :  { %v14_v4 = vld [vmem:[%s560_s0] sm:$0xff]  ;;  %v17_v21 = vld [vmem:[%s560_s0 + $0x18] sm:$0xff]  ;;  %v19_v57 = vld [vmem:[%s560_s0 + $0x28] sm:$0xff] }
   0x4   :  { %v22_v5 = vld [vmem:[%s560_s0 + $0x40] sm:$0xff]  ;;  %v50_v6 = vsub.s32 0, %v282_v1  ;;  %v54_v7 = vsub.s32 1, %v282_v1  ;;  %v58_v8 = vsub.s32 2, %v282_v1  ;;  %v62_v9 = vsub.s32 3, %v282_v1  ;;  %v25_v22 = vld [vmem:[%s560_s0 + $0x58] sm:$0xff] }
   0x5   :  { %v66_v13 = vsub.s32 4, %v282_v1  ;;  %v70_v14 = vsub.s32 5, %v282_v1  ;;  %v74_v15 = vsub.s32 6, %v282_v1  ;;  %v18_v51 = vld [vmem:[%s560_s0 + $0x20] sm:$0xff]  ;;  %v27_v58 = vld [vmem:[%s560_s0 + $0x68] sm:$0xff]  ;;  %v20_v0 = vld [vmem:[%s560_s0 + $0x30] sm:$0xff] }
   0x6   :  { %v317_v16 = vrot.slane %v287_v2, %v50_v6  ;;  %v320_v17 = vrot.slane %v292_v3, %v50_v6  ;;  %v323_v18 = vrot.slane %v287_v2, %v54_v7  ;;  %v326_v19 = vrot.slane %v292_v3, %v54_v7  ;;  %v26_v52 = vld [vmem:[%s560_s0 + $0x60] sm:$0xff] }
   0x7   :  { %v338_v23 = vrot.slane %v287_v2, %v58_v8  ;;  %v341_v24 = vrot.slane %v292_v3, %v58_v8  ;;  %v344_v25 = vrot.slane %v287_v2, %v62_v9  ;;  %v347_v26 = vrot.slane %v292_v3, %v62_v9  ;;  %v30_v59 = vld [vmem:[%s560_s0 + $0x80] sm:$0xff] }
   0x8   :  { %v88_v27 = vmul.f32 %v317_v16, %v14_v4  ;;  %v178_v28 = vmul.f32 %v317_v16, %v22_v5  ;;  %v89_v29 = vmul.f32 %v323_v18, %v15_v10  ;;  %v179_v30 = vmul.f32 %v323_v18, %v23_v11  ;;  %v28_v4 = vld [vmem:[%s560_s0 + $0x70] sm:$0xff] }
   0x9   :  { %v90_v31 = vmul.f32 %v338_v23, %v16_v12  ;;  %v180_v32 = vmul.f32 %v338_v23, %v24_v20  ;;  %v91_v33 = vmul.f32 %v344_v25, %v17_v21  ;;  %v181_v34 = vmul.f32 %v344_v25, %v25_v22  ;;  %v21_v21 = vld [vmem:[%s560_s0 + $0x38] sm:$0xff] }
   0xa   :  { %v146_v35 = vadd.f32 %v320_v17, %v88_v27  ;;  %v194_v36 = vadd.f32 %v178_v28, %v320_v17  ;;  %v147_v37 = vadd.f32 %v326_v19, %v89_v29  ;;  %v195_v38 = vadd.f32 %v179_v30, %v326_v19  ;;  %v29_v22 = vld [vmem:[%s560_s0 + $0x78] sm:$0xff] }
   0xb   :  { %v148_v39 = vadd.f32 %v341_v24, %v90_v31  ;;  %v196_v40 = vadd.f32 %v180_v32, %v341_v24  ;;  %v149_v41 = vadd.f32 %v347_v26, %v91_v33  ;;  %v197_v42 = vadd.f32 %v181_v34, %v347_v26  ;;  %v38_v34 = vld [vmem:[%s560_s0 + $0xc0] sm:$0xff] }
   0xc   :  { %v162_v43 = vmax.f32 %v146_v35, 0.0  ;;  %v210_v44 = vmax.f32 %v194_v36, 0.0  ;;  %v163_v45 = vmax.f32 %v147_v37, 0.0  ;;  %v211_v46 = vmax.f32 %v195_v38, 0.0  ;;  %v39_v38 = vld [vmem:[%s560_s0 + $0xc8] sm:$0xff] }
   0xd   :  { %v164_v47 = vmax.f32 %v148_v39, 0.0  ;;  %v212_v48 = vmax.f32 %v196_v40, 0.0  ;;  %v165_v49 = vmax.f32 %v149_v41, 0.0  ;;  %v213_v50 = vmax.f32 %v197_v42, 0.0 }
   0xe   :  { %v226_v53 = vmax.f32 %v162_v43, %v210_v44  ;;  %v227_v54 = vmax.f32 %v163_v45, %v211_v46  ;;  %v372_v55 = vrot.slane %v287_v2, %v66_v13  ;;  %v375_v56 = vrot.slane %v292_v3, %v66_v13  ;;  %v32_v43 = vld [vmem:[%s560_s0 + $0x90] sm:$0xff] }
   0xf   :  { %v228_v60 = vmax.f32 %v164_v47, %v212_v48  ;;  %v229_v61 = vmax.f32 %v165_v49, %v213_v50  ;;  %v387_v62 = vrot.slane %v287_v2, %v70_v14  ;;  %v390_v63 = vrot.slane %v292_v3, %v70_v14  ;;  %v40_v48 = vld [vmem:[%s560_s0 + $0xd0] sm:$0xff]  ;;  %v33_v49 = vld [vmem:[%s560_s0 + $0x98] sm:$0xff] }
  0x10   :  { %242 = vst [vmem:[%s561_s3] sm:$0xff] %v226_v53  ;;  %243 = vst [vmem:[%s561_s3 + $0x8] sm:$0xff] %v227_v54  ;;  %v92_v5 = vmul.f32 %v372_v55, %v18_v51  ;;  %v182_v6 = vmul.f32 %v372_v55, %v26_v52  ;;  %v407_v7 = vrot.slane %v287_v2, %v74_v15  ;;  %v78_v11 = vsub.s32 7, %v282_v1 }
  0x11   :  { %v410_v8 = vrot.slane %v292_v3, %v74_v15  ;;  %244 = vst [vmem:[%s561_s3 + $0x10] sm:$0xff] %v228_v60  ;;  %245 = vst [vmem:[%s561_s3 + $0x18] sm:$0xff] %v229_v61  ;;  %v93_v9 = vmul.f32 %v387_v62, %v19_v57  ;;  %v183_v10 = vmul.f32 %v387_v62, %v27_v58 }
  0x12   :  { %v96_v12 = vmul.f32 %v317_v16, %v30_v59  ;;  %v150_v13 = vadd.f32 %v375_v56, %v92_v5  ;;  %v198_v14 = vadd.f32 %v182_v6, %v375_v56  ;;  %v94_v15 = vmul.f32 %v407_v7, %v20_v0 }
  0x13   :  { %v184_v20 = vmul.f32 %v407_v7, %v28_v4  ;;  %v151_v1 = vadd.f32 %v390_v63, %v93_v9  ;;  %v199_v27 = vadd.f32 %v183_v10, %v390_v63  ;;  %v435_v28 = vrot.slane %v287_v2, %v78_v11  ;;  %v34_v4 = vld [vmem:[%s560_s0 + $0xa0] sm:$0xff] }
  0x14   :  { %v438_v29 = vrot.slane %v292_v3, %v78_v11  ;;  %v166_v30 = vmax.f32 %v150_v13, 0.0  ;;  %v214_v31 = vmax.f32 %v198_v14, 0.0  ;;  %v152_v32 = vadd.f32 %v410_v8, %v94_v15  ;;  %v31_v3 = vld [vmem:[%s560_s0 + $0x88] sm:$0xff]  ;;  %v42_v10 = vld [vmem:[%s560_s0 + $0xe0] sm:$0xff] }
  0x15   :  { %v200_v33 = vadd.f32 %v184_v20, %v410_v8  ;;  %v167_v35 = vmax.f32 %v151_v1, 0.0  ;;  %v215_v36 = vmax.f32 %v199_v27, 0.0  ;;  %v95_v37 = vmul.f32 %v435_v28, %v21_v21  ;;  %v35_v13 = vld [vmem:[%s560_s0 + $0xa8] sm:$0xff]  ;;  %v36_v21 = vld [vmem:[%s560_s0 + $0xb0] sm:$0xff] }
  0x16   :  { %v185_v2 = vmul.f32 %v435_v28, %v29_v22  ;;  %v230_v39 = vmax.f32 %v166_v30, %v214_v31  ;;  %v168_v40 = vmax.f32 %v152_v32, 0.0  ;;  %v154_v42 = vadd.f32 %v320_v17, %v96_v12  ;;  %v43_v14 = vld [vmem:[%s560_s0 + $0xe8] sm:$0xff]  ;;  %v44_v22 = vld [vmem:[%s560_s0 + $0xf0] sm:$0xff] }
  0x17   :  { %v216_v41 = vmax.f32 %v200_v33, 0.0  ;;  %v231_v44 = vmax.f32 %v167_v35, %v215_v36  ;;  %v153_v45 = vadd.f32 %v438_v29, %v95_v37  ;;  %v186_v47 = vmul.f32 %v317_v16, %v38_v34  ;;  %v41_v16 = vld [vmem:[%s560_s0 + $0xd8] sm:$0xff] }
  0x18   :  { %v201_v46 = vadd.f32 %v185_v2, %v438_v29  ;;  %246 = vst [vmem:[%s561_s3 + $0x20] sm:$0xff] %v230_v39  ;;  %v170_v51 = vmax.f32 %v154_v42, 0.0  ;;  %v97_v52 = vmul.f32 %v323_v18, %v31_v3  ;;  %v187_v53 = vmul.f32 %v323_v18, %v39_v38  ;;  %v37_v35 = vld [vmem:[%s560_s0 + $0xb8] sm:$0xff] }
  0x19   :  { %v232_v50 = vmax.f32 %v168_v40, %v216_v41  ;;  %247 = vst [vmem:[%s561_s3 + $0x28] sm:$0xff] %v231_v44  ;;  %v169_v54 = vmax.f32 %v153_v45, 0.0  ;;  %v202_v58 = vadd.f32 %v186_v47, %v320_v17  ;;  %v98_v59 = vmul.f32 %v338_v23, %v32_v43  ;;  %v45_v3 = vld [vmem:[%s560_s0 + $0xf8] sm:$0xff] }
  0x1a   :  { %v217_v57 = vmax.f32 %v201_v46, 0.0  ;;  %v155_v18 = vadd.f32 %v326_v19, %v97_v52  ;;  %v203_v60 = vadd.f32 %v187_v53, %v326_v19  ;;  %v188_v61 = vmul.f32 %v338_v23, %v40_v48 }
  0x1b   :  { %248 = vst [vmem:[%s561_s3 + $0x30] sm:$0xff] %v232_v50  ;;  %v99_v0 = vmul.f32 %v344_v25, %v33_v49  ;;  %v218_v17 = vmax.f32 %v202_v58, 0.0  ;;  %v156_v6 = vadd.f32 %v341_v24, %v98_v59  ;;  %v189_v9 = vmul.f32 %v344_v25, %v41_v16 }
  0x1c   :  { %v233_v5 = vmax.f32 %v169_v54, %v217_v57  ;;  %v171_v11 = vmax.f32 %v155_v18, 0.0  ;;  %v219_v19 = vmax.f32 %v203_v60, 0.0  ;;  %v204_v23 = vadd.f32 %v188_v61, %v341_v24 }
  0x1d   :  { %v157_v12 = vadd.f32 %v347_v26, %v99_v0  ;;  %v234_v25 = vmax.f32 %v170_v51, %v218_v17  ;;  %v172_v15 = vmax.f32 %v156_v6, 0.0  ;;  %v205_v20 = vadd.f32 %v189_v9, %v347_v26 }
  0x1e   :  { %249 = vst [vmem:[%s561_s3 + $0x38] sm:$0xff] %v233_v5  ;;  %v100_v24 = vmul.f32 %v372_v55, %v34_v4  ;;  %v235_v1 = vmax.f32 %v171_v11, %v219_v19  ;;  %v220_v27 = vmax.f32 %v204_v23, 0.0  ;;  %v190_v31 = vmul.f32 %v372_v55, %v42_v10 }
  0x1f   :  { %v173_v30 = vmax.f32 %v157_v12, 0.0  ;;  %250 = vst [vmem:[%s561_s3 + $0x40] sm:$0xff] %v234_v25  ;;  %v221_v26 = vmax.f32 %v205_v20, 0.0  ;;  %v101_v33 = vmul.f32 %v387_v62, %v35_v13  ;;  %v191_v34 = vmul.f32 %v387_v62, %v43_v14 }
  0x20   :  { %v158_v32 = vadd.f32 %v375_v56, %v100_v24  ;;  %251 = vst [vmem:[%s561_s3 + $0x48] sm:$0xff] %v235_v1  ;;  %v236_v55 = vmax.f32 %v172_v15, %v220_v27  ;;  %v206_v36 = vadd.f32 %v190_v31, %v375_v56  ;;  %v102_v37 = vmul.f32 %v407_v7, %v36_v21 }
  0x21   :  { %v192_v2 = vmul.f32 %v407_v7, %v44_v22  ;;  %v237_v62 = vmax.f32 %v173_v30, %v221_v26  ;;  %v159_v39 = vadd.f32 %v390_v63, %v101_v33  ;;  %v207_v40 = vadd.f32 %v191_v34, %v390_v63 }
  0x22   :  { %v174_v38 = vmax.f32 %v158_v32, 0.0  ;;  %252 = vst [vmem:[%s561_s3 + $0x50] sm:$0xff] %v236_v55  ;;  %v222_v41 = vmax.f32 %v206_v36, 0.0  ;;  %v160_v56 = vadd.f32 %v410_v8, %v102_v37  ;;  %v103_v7 = vmul.f32 %v435_v28, %v37_v35 }
  0x23   :  { %v208_v42 = vadd.f32 %v192_v2, %v410_v8  ;;  %253 = vst [vmem:[%s561_s3 + $0x58] sm:$0xff] %v237_v62  ;;  %v175_v43 = vmax.f32 %v159_v39, 0.0  ;;  %v223_v44 = vmax.f32 %v207_v40, 0.0  ;;  %v193_v45 = vmul.f32 %v435_v28, %v45_v3 }
  0x24   :  { %v238_v63 = vmax.f32 %v174_v38, %v222_v41  ;;  %v176_v46 = vmax.f32 %v160_v56, 0.0  ;;  %v161_v48 = vadd.f32 %v438_v29, %v103_v7 }
  0x25   :  { %v224_v47 = vmax.f32 %v208_v42, 0.0  ;;  %v239_v49 = vmax.f32 %v175_v43, %v223_v44  ;;  %v209_v50 = vadd.f32 %v193_v45, %v438_v29 }
  0x26   :  { %254 = vst [vmem:[%s561_s3 + $0x60] sm:$0xff] %v238_v63  ;;  %v177_v51 = vmax.f32 %v161_v48, 0.0 }
  0x27   :  { %v240_v8 = vmax.f32 %v176_v46, %v224_v47  ;;  %255 = vst [vmem:[%s561_s3 + $0x68] sm:$0xff] %v239_v49  ;;  %v225_v52 = vmax.f32 %v209_v50, 0.0 }
  0x29   :  { %256 = vst [vmem:[%s561_s3 + $0x70] sm:$0xff] %v240_v8  ;;  %v241_v28 = vmax.f32 %v177_v51, %v225_v52 }
  0x2b   :  { %257 = vst [vmem:[%s561_s3 + $0x78] sm:$0xff] %v241_v28 }

// kernel: _lambda_.22
= control target key start
LH: loop header
LB: loop body
LE: loop exit
PB: predicated region body
PF: predicated region fallthrough
CT: control target
= control target key end

     0   :  { %v1172_v0 = vmov 0   ;;  %vm283_vm0 = vcmask 154624   ;;  %vm380_vm1 = vcmask 1040384   ;;  %vm381_vm2 = vcmask 1041408   ;;  %s2264_s1 = inlined_call_operand.vmem [shape: bf16[147,64], index: 1, kind: input, shape index: {}]   ;;  %s2265_s0 = inlined_call_operand.vmem [shape: f32[512,147], index: 0, kind: input, shape index: {}]   ;;  %s2266_s2 = inlined_call_operand.vmem [shape: f32[512,64], index: 2, kind: output, shape index: {0}]   ;;  %s2267_s3 = inlined_call_operand.vmem [shape: f32[1,64], index: 3, kind: output, shape index: {1}]   ;;  %s2268_s4 = inlined_call_operand.vmem [shape: f32[1,64], index: 4, kind: output, shape index: {2}]  }
   0x1   :  { %387 = vmatprep.subr.bf16.mxu0 %v1172_v0  ;;  %v1162_v1 = vld [vmem:[%s2264_s1] sm:$0xff]   ;;  %1139 = vmatprep.subr.bf16.mxu1 %v1172_v0  ;;  %v1163_v2 = vld [vmem:[%s2264_s1 + $0x8] sm:$0xff]   ;;  %v1164_v3 = vld [vmem:[%s2264_s1 + $0x10] sm:$0xff]   ;;  %v1173_v15 = vmov 65535   ;;  %vm676_vm3 = vcmask 523264   ;;  %vm745_vm4 = vcmask 516096  }
   0x2   :  { %388 = vmatpush1.bf16.msra.mxu0 %v1162_v1  ;;  %1149 = vmatpush1.bf16.msra.mxu1 %v1162_v1  ;;  %v16_v4 = vld [vmem:[%s2265_s0 + $0x8] sm:$0xff]  ;;  %v1165_v5 = vld [vmem:[%s2264_s1 + $0x18] sm:$0xff]   ;;  %v1166_v8 = vld [vmem:[%s2264_s1 + $0x20] sm:$0xff]   ;;  %v382_v16 = vsel %vm380_vm1, 4294967295, %v1173_v15 }
   0x3   :  { %389 = vmatprep.subr.bf16.mxu0 %v1172_v0  ;;  %1140 = vmatprep.subr.bf16.mxu1 %v1172_v0  ;;  %v18_v6 = vld [vmem:[%s2265_s0 + $0x18] sm:$0xff]  ;;  %v1167_v9 = vld [vmem:[%s2264_s1 + $0x28] sm:$0xff]   ;;  %v1168_v13 = vld [vmem:[%s2264_s1 + $0x30] sm:$0xff]   ;;  %v383_v19 = vsel %vm381_vm2, %v382_v16, 0 }
   0x4   :  { %v144_v7 = vpack.c.bf16 %v18_v6, %v16_v4  ;;  %v80_v10 = vld [vmem:[%s2265_s0 + $0x208] sm:$0xff]  ;;  %v82_v11 = vld [vmem:[%s2265_s0 + $0x218] sm:$0xff]  ;;  %v1170_v17 = vld [vmem:[%s2264_s1 + $0x40] sm:$0xff]  }
   0x5   :  { %v176_v12 = vpack.c.bf16 %v82_v11, %v80_v10  ;;  %v1169_v14 = vld [vmem:[%s2264_s1 + $0x38] sm:$0xff]   ;;  %v1171_v18 = vld [vmem:[%s2264_s1 + $0x48] ss:$0 sps:$4 sm:$0x33]   ;;  %v15_v20 = vld [vmem:[%s2265_s0] sm:$0xff] }
   0x6   :  { %390 = vmatpush1.bf16.msra.mxu0 %v1163_v2  ;;  %1150 = vmatpush1.bf16.msra.mxu1 %v1163_v2  ;;  %v17_v21 = vld [vmem:[%s2265_s0 + $0x10] sm:$0xff]  ;;  %v385_v22 = vand.u32 %v1171_v18, %v383_v19  ;;  %v20_v23 = vld [vmem:[%s2265_s0 + $0x28] sm:$0xff]  ;;  %v79_v24 = vld [vmem:[%s2265_s0 + $0x200] sm:$0xff] }
   0x7   :  { %391 = vmatprep.subr.bf16.mxu0 %v1172_v0  ;;  %1141 = vmatprep.subr.bf16.mxu1 %v1172_v0  ;;  %v81_v25 = vld [vmem:[%s2265_s0 + $0x210] sm:$0xff]  ;;  %v22_v26 = vld [vmem:[%s2265_s0 + $0x38] sm:$0xff]  ;;  %v84_v27 = vld [vmem:[%s2265_s0 + $0x228] sm:$0xff]  ;;  %v143_v29 = vpack.c.bf16 %v17_v21, %v15_v20 }
   0x8   :  { %1107 = vmatprep.mubr.msk.bf16.mxu0 %vm283_vm0, %v144_v7  ;;  %1123 = vmatprep.mubr.msk.bf16.mxu1 %vm283_vm0, %v176_v12  ;;  %v86_v28 = vld [vmem:[%s2265_s0 + $0x238] sm:$0xff]  ;;  %v175_v30 = vpack.c.bf16 %v81_v25, %v79_v24  ;;  %v146_v31 = vpack.c.bf16 %v22_v26, %v20_v23  ;;  %v19_v33 = vld [vmem:[%s2265_s0 + $0x20] sm:$0xff]  ;;  %v21_v34 = vld [vmem:[%s2265_s0 + $0x30] sm:$0xff] }
   0x9   :  { %v178_v32 = vpack.c.bf16 %v86_v28, %v84_v27  ;;  %v24_v35 = vld [vmem:[%s2265_s0 + $0x48] sm:$0xff]  ;;  %v83_v36 = vld [vmem:[%s2265_s0 + $0x220] sm:$0xff]  ;;  %v85_v37 = vld [vmem:[%s2265_s0 + $0x230] sm:$0xff]  ;;  %v145_v41 = vpack.c.bf16 %v21_v34, %v19_v33 }
   0xa   :  { %392 = vmatpush1.bf16.msra.mxu0 %v1164_v3  ;;  %1151 = vmatpush1.bf16.msra.mxu1 %v1164_v3  ;;  %v26_v38 = vld [vmem:[%s2265_s0 + $0x58] sm:$0xff]  ;;  %v88_v39 = vld [vmem:[%s2265_s0 + $0x248] sm:$0xff]  ;;  %v177_v42 = vpack.c.bf16 %v85_v37, %v83_v36  ;;  %v23_v45 = vld [vmem:[%s2265_s0 + $0x40] sm:$0xff] }
   0xb   :  { %393 = vmatprep.subr.bf16.mxu0 %v1172_v0  ;;  %1142 = vmatprep.subr.bf16.mxu1 %v1172_v0  ;;  %v90_v40 = vld [vmem:[%s2265_s0 + $0x258] sm:$0xff]  ;;  %v148_v43 = vpack.c.bf16 %v26_v38, %v24_v35  ;;  %v25_v46 = vld [vmem:[%s2265_s0 + $0x50] sm:$0xff]  ;;  %v28_v47 = vld [vmem:[%s2265_s0 + $0x68] sm:$0xff] }
   0xc   :  { %v180_v44 = vpack.c.bf16 %v90_v40, %v88_v39  ;;  %v87_v48 = vld [vmem:[%s2265_s0 + $0x240] sm:$0xff]  ;;  %v89_v49 = vld [vmem:[%s2265_s0 + $0x250] sm:$0xff]  ;;  %v30_v50 = vld [vmem:[%s2265_s0 + $0x78] sm:$0xff]  ;;  %v147_v53 = vpack.c.bf16 %v25_v46, %v23_v45 }
   0xd   :  { %v92_v51 = vld [vmem:[%s2265_s0 + $0x268] sm:$0xff]  ;;  %v94_v52 = vld [vmem:[%s2265_s0 + $0x278] sm:$0xff]  ;;  %v179_v54 = vpack.c.bf16 %v89_v49, %v87_v48  ;;  %v150_v55 = vpack.c.bf16 %v30_v50, %v28_v47  ;;  %v27_v57 = vld [vmem:[%s2265_s0 + $0x60] sm:$0xff] }
   0xe   :  { %394 = vmatpush1.bf16.msra.mxu0 %v1165_v5  ;;  %1152 = vmatpush1.bf16.msra.mxu1 %v1165_v5  ;;  %v182_v56 = vpack.c.bf16 %v94_v52, %v92_v51  ;;  %v29_v58 = vld [vmem:[%s2265_s0 + $0x70] sm:$0xff]  ;;  %v32_v59 = vld [vmem:[%s2265_s0 + $0x88] sm:$0xff]  ;;  %v91_v60 = vld [vmem:[%s2265_s0 + $0x260] sm:$0xff] }
   0xf   :  { %395 = vmatprep.subr.bf16.mxu0 %v1172_v0  ;;  %1143 = vmatprep.subr.bf16.mxu1 %v1172_v0  ;;  %v93_v61 = vld [vmem:[%s2265_s0 + $0x270] sm:$0xff]  ;;  %v34_v62 = vld [vmem:[%s2265_s0 + $0x98] sm:$0xff]  ;;  %v96_v63 = vld [vmem:[%s2265_s0 + $0x288] sm:$0xff]  ;;  %v149_v1 = vpack.c.bf16 %v29_v58, %v27_v57 }
  0x10   :  { %v181_v2 = vpack.c.bf16 %v93_v61, %v91_v60  ;;  %v152_v3 = vpack.c.bf16 %v34_v62, %v32_v59  ;;  %v31_v5 = vld [vmem:[%s2265_s0 + $0x80] sm:$0xff]  ;;  %v33_v6 = vld [vmem:[%s2265_s0 + $0x90] sm:$0xff]  ;;  %v36_v7 = vld [vmem:[%s2265_s0 + $0xa8] sm:$0xff] }
  0x11   :  { %v38_v10 = vld [vmem:[%s2265_s0 + $0xb8] sm:$0xff]  ;;  %v100_v11 = vld [vmem:[%s2265_s0 + $0x2a8] sm:$0xff]  ;;  %v37_v18 = vld [vmem:[%s2265_s0 + $0xb0] sm:$0xff] }
  0x12   :  { %396 = vmatpush1.bf16.msra.mxu0 %v1166_v8  ;;  %1153 = vmatpush1.bf16.msra.mxu1 %v1166_v8  ;;  %v95_v8 = vld [vmem:[%s2265_s0 + $0x280] sm:$0xff]  ;;  %v102_v12 = vld [vmem:[%s2265_s0 + $0x2b8] sm:$0xff]  ;;  %v154_v15 = vpack.c.bf16 %v38_v10, %v36_v7  ;;  %v40_v19 = vld [vmem:[%s2265_s0 + $0xc8] sm:$0xff] }
  0x13   :  { %397 = vmatprep.subr.bf16.mxu0 %v1172_v0  ;;  %1144 = vmatprep.subr.bf16.mxu1 %v1172_v0  ;;  %v186_v16 = vpack.c.bf16 %v102_v12, %v100_v11  ;;  %v99_v20 = vld [vmem:[%s2265_s0 + $0x2a0] sm:$0xff]  ;;  %v101_v21 = vld [vmem:[%s2265_s0 + $0x2b0] sm:$0xff]  ;;  %v104_v23 = vld [vmem:[%s2265_s0 + $0x2c8] sm:$0xff] }
  0x14   :  { %v106_v24 = vld [vmem:[%s2265_s0 + $0x2d8] sm:$0xff]  ;;  %v185_v26 = vpack.c.bf16 %v101_v21, %v99_v20  ;;  %v105_v33 = vld [vmem:[%s2265_s0 + $0x2d0] sm:$0xff]  ;;  %v108_v35 = vld [vmem:[%s2265_s0 + $0x2e8] sm:$0xff] }
  0x15   :  { %v188_v28 = vpack.c.bf16 %v106_v24, %v104_v23  ;;  %v46_v34 = vld [vmem:[%s2265_s0 + $0xf8] sm:$0xff]  ;;  %v109_v45 = vld [vmem:[%s2265_s0 + $0x2f0] sm:$0xff]  ;;  %v112_v47 = vld [vmem:[%s2265_s0 + $0x308] sm:$0xff] }
  0x16   :  { %398 = vmatpush1.bf16.msra.mxu0 %v1167_v9  ;;  %1154 = vmatpush1.bf16.msra.mxu1 %v1167_v9  ;;  %v97_v9 = vld [vmem:[%s2265_s0 + $0x290] sm:$0xff]  ;;  %v110_v36 = vld [vmem:[%s2265_s0 + $0x2f8] sm:$0xff]  ;;  %v116_v59 = vld [vmem:[%s2265_s0 + $0x328] sm:$0xff] }
  0x17   :  { %399 = vmatprep.subr.bf16.mxu0 %v1172_v0  ;;  %1145 = vmatprep.subr.bf16.mxu1 %v1172_v0  ;;  %v190_v40 = vpack.c.bf16 %v110_v36, %v108_v35  ;;  %v50_v46 = vld [vmem:[%s2265_s0 + $0x118] sm:$0xff]  ;;  %v113_v57 = vld [vmem:[%s2265_s0 + $0x310] sm:$0xff]  ;;  %v120_v7 = vld [vmem:[%s2265_s0 + $0x348] sm:$0xff] }
  0x18   :  { %v114_v48 = vld [vmem:[%s2265_s0 + $0x318] sm:$0xff] }
  0x19   :  { %v192_v52 = vpack.c.bf16 %v114_v48, %v112_v47  ;;  %v54_v58 = vld [vmem:[%s2265_s0 + $0x138] sm:$0xff] }
  0x1a   :  { %400 = vmatpush1.bf16.msra.mxu0 %v1168_v13  ;;  %1155 = vmatpush1.bf16.msra.mxu1 %v1168_v13  ;;  %v151_v13 = vpack.c.bf16 %v33_v6, %v31_v5  ;;  %v118_v60 = vld [vmem:[%s2265_s0 + $0x338] sm:$0xff]  ;;  %v117_v5 = vld [vmem:[%s2265_s0 + $0x330] sm:$0xff] }
  0x1b   :  { %401 = vmatprep.subr.bf16.mxu0 %v1172_v0  ;;  %1146 = vmatprep.subr.bf16.mxu1 %v1172_v0  ;;  %v58_v6 = vld [vmem:[%s2265_s0 + $0x158] sm:$0xff] }
  0x1c   :  { %v126_v20 = vld [vmem:[%s2265_s0 + $0x378] sm:$0xff] }
  0x1e   :  { %402 = vmatpush1.bf16.msra.mxu0 %v1169_v14  ;;  %1156 = vmatpush1.bf16.msra.mxu1 %v1169_v14  ;;  %v183_v14 = vpack.c.bf16 %v97_v9, %v95_v8  ;;  %v122_v8 = vld [vmem:[%s2265_s0 + $0x358] sm:$0xff] }
  0x1f   :  { %403 = vmatprep.subr.bf16.mxu0 %v1172_v0  ;;  %1147 = vmatprep.subr.bf16.mxu1 %v1172_v0  ;;  %v196_v12 = vpack.c.bf16 %v122_v8, %v120_v7 }
  0x22   :  { %404 = vmatpush1.bf16.msra.mxu0 %v1170_v17  ;;  %1157 = vmatpush1.bf16.msra.mxu1 %v1170_v17  ;;  %v35_v17 = vld [vmem:[%s2265_s0 + $0xa0] sm:$0xff] }
  0x23   :  { %405 = vmatprep.subr.bf16.mxu0 %v1172_v0  ;;  %1148 = vmatprep.subr.bf16.mxu1 %v1172_v0  ;;  %v98_v0 = vld [vmem:[%s2265_s0 + $0x298] sm:$0xff]  ;;  %v153_v25 = vpack.c.bf16 %v37_v18, %v35_v17  ;;  %v121_v17 = vld [vmem:[%s2265_s0 + $0x350] sm:$0xff] }
  0x24   :  { %v184_v4 = vpack.c.bf16 %v98_v0, %v96_v63  ;;  %v194_v0 = vpack.c.bf16 %v118_v60, %v116_v59  ;;  %v62_v18 = vld [vmem:[%s2265_s0 + $0x178] sm:$0xff] }
  0x26   :  { %406 = vmatpush1.bf16.msra.mxu0 %v385_v22  ;;  %1158 = vmatpush1.bf16.msra.mxu1 %v385_v22  ;;  %v42_v22 = vld [vmem:[%s2265_s0 + $0xd8] sm:$0xff] }
  0x27   :  { %v156_v27 = vpack.c.bf16 %v42_v22, %v40_v19  ;;  %v124_v19 = vld [vmem:[%s2265_s0 + $0x368] sm:$0xff] }
  0x28   :  { %v198_v24 = vpack.c.bf16 %v126_v20, %v124_v19 }
  0x29   :  { %420 = vmatmul.mubr.bf16.vlgmr.msra.gmra.mrb[0].mxu0 %v143_v29  ;;  %548 = vmatmul.mubr.bf16.vlgmr.msra.gmra.mrb[0].mxu1 %v175_v30  ;;  %v39_v29 = vld [vmem:[%s2265_s0 + $0xc0] sm:$0xff]  ;;  %v41_v30 = vld [vmem:[%s2265_s0 + $0xd0] sm:$0xff] }
  0x2a   :  { %1108 = vmatprep.mubr.msk.bf16.mxu0 %vm283_vm0, %v146_v31  ;;  %1124 = vmatprep.mubr.msk.bf16.mxu1 %vm283_vm0, %v178_v32  ;;  %v44_v31 = vld [vmem:[%s2265_s0 + $0xe8] sm:$0xff]  ;;  %v103_v32 = vld [vmem:[%s2265_s0 + $0x2c0] sm:$0xff]  ;;  %v155_v37 = vpack.c.bf16 %v41_v30, %v39_v29  ;;  %v125_v29 = vld [vmem:[%s2265_s0 + $0x370] sm:$0xff] }
  0x2b   :  { %v187_v38 = vpack.c.bf16 %v105_v33, %v103_v32  ;;  %v158_v39 = vpack.c.bf16 %v46_v34, %v44_v31  ;;  %v66_v30 = vld [vmem:[%s2265_s0 + $0x198] sm:$0xff]  ;;  %v128_v31 = vld [vmem:[%s2265_s0 + $0x388] sm:$0xff] }
  0x2c   :  { %v130_v32 = vld [vmem:[%s2265_s0 + $0x398] sm:$0xff] }
  0x2d   :  { %v200_v36 = vpack.c.bf16 %v130_v32, %v128_v31 }
  0x31   :  { %428 = vmatmul.mubr.bf16.gmra.mrb[4].mxu0 %v145_v41  ;;  %556 = vmatmul.mubr.bf16.gmra.mrb[4].mxu1 %v177_v42  ;;  %v43_v41 = vld [vmem:[%s2265_s0 + $0xe0] sm:$0xff]  ;;  %v45_v42 = vld [vmem:[%s2265_s0 + $0xf0] sm:$0xff] }
  0x32   :  { %1109 = vmatprep.mubr.msk.bf16.mxu0 %vm283_vm0, %v148_v43  ;;  %1125 = vmatprep.mubr.msk.bf16.mxu1 %vm283_vm0, %v180_v44  ;;  %v48_v43 = vld [vmem:[%s2265_s0 + $0x108] sm:$0xff]  ;;  %v107_v44 = vld [vmem:[%s2265_s0 + $0x2e0] sm:$0xff]  ;;  %v157_v49 = vpack.c.bf16 %v45_v42, %v43_v41  ;;  %v129_v41 = vld [vmem:[%s2265_s0 + $0x390] sm:$0xff] }
  0x33   :  { %v189_v50 = vpack.c.bf16 %v109_v45, %v107_v44  ;;  %v160_v51 = vpack.c.bf16 %v50_v46, %v48_v43  ;;  %v70_v42 = vld [vmem:[%s2265_s0 + $0x1b8] sm:$0xff]  ;;  %v132_v43 = vld [vmem:[%s2265_s0 + $0x3a8] sm:$0xff] }
  0x34   :  { %v134_v44 = vld [vmem:[%s2265_s0 + $0x3b8] sm:$0xff] }
  0x35   :  { %v202_v48 = vpack.c.bf16 %v134_v44, %v132_v43 }
  0x39   :  { %436 = vmatmul.mubr.bf16.gmra.mrb[8].mxu0 %v147_v53  ;;  %564 = vmatmul.mubr.bf16.gmra.mrb[8].mxu1 %v179_v54  ;;  %v47_v53 = vld [vmem:[%s2265_s0 + $0x100] sm:$0xff]  ;;  %v49_v54 = vld [vmem:[%s2265_s0 + $0x110] sm:$0xff] }
  0x3a   :  { %1110 = vmatprep.mubr.msk.bf16.mxu0 %vm283_vm0, %v150_v55  ;;  %1126 = vmatprep.mubr.msk.bf16.mxu1 %vm283_vm0, %v182_v56  ;;  %v52_v55 = vld [vmem:[%s2265_s0 + $0x128] sm:$0xff]  ;;  %v111_v56 = vld [vmem:[%s2265_s0 + $0x300] sm:$0xff]  ;;  %v159_v61 = vpack.c.bf16 %v49_v54, %v47_v53  ;;  %v133_v53 = vld [vmem:[%s2265_s0 + $0x3b0] sm:$0xff] }
  0x3b   :  { %v191_v62 = vpack.c.bf16 %v113_v57, %v111_v56  ;;  %v162_v63 = vpack.c.bf16 %v54_v58, %v52_v55  ;;  %v74_v54 = vld [vmem:[%s2265_s0 + $0x1d8] sm:$0xff]  ;;  %v136_v55 = vld [vmem:[%s2265_s0 + $0x3c8] sm:$0xff] }
  0x3c   :  { %v138_v56 = vld [vmem:[%s2265_s0 + $0x3d8] sm:$0xff] }
  0x3d   :  { %v204_v60 = vpack.c.bf16 %v138_v56, %v136_v55 }
  0x41   :  { %444 = vmatmul.mubr.bf16.gmra.mrb[12].mxu0 %v149_v1  ;;  %572 = vmatmul.mubr.bf16.gmra.mrb[12].mxu1 %v181_v2  ;;  %v51_v1 = vld [vmem:[%s2265_s0 + $0x120] sm:$0xff]  ;;  %v53_v2 = vld [vmem:[%s2265_s0 + $0x130] sm:$0xff] }
  0x42   :  { %1111 = vmatprep.mubr.msk.bf16.mxu0 %vm283_vm0, %v152_v3  ;;  %1127 = vmatprep.mubr.msk.bf16.mxu1 %vm283_vm0, %v184_v4  ;;  %v56_v3 = vld [vmem:[%s2265_s0 + $0x148] sm:$0xff]  ;;  %v115_v4 = vld [vmem:[%s2265_s0 + $0x320] sm:$0xff]  ;;  %v161_v9 = vpack.c.bf16 %v53_v2, %v51_v1  ;;  %v137_v1 = vld [vmem:[%s2265_s0 + $0x3d0] sm:$0xff] }
  0x43   :  { %v193_v10 = vpack.c.bf16 %v117_v5, %v115_v4  ;;  %v164_v11 = vpack.c.bf16 %v58_v6, %v56_v3  ;;  %v78_v2 = vld [vmem:[%s2265_s0 + $0x1f8] sm:$0xff]  ;;  %v140_v3 = vld [vmem:[%s2265_s0 + $0x3e8] sm:$0xff] }
  0x44   :  { %v142_v4 = vld [vmem:[%s2265_s0 + $0x3f8] sm:$0xff] }
  0x45   :  { %v206_v8 = vpack.c.bf16 %v142_v4, %v140_v3 }
  0x49   :  { %452 = vmatmul.mubr.bf16.gmra.mrb[16].mxu0 %v151_v13  ;;  %580 = vmatmul.mubr.bf16.gmra.mrb[16].mxu1 %v183_v14  ;;  %v55_v13 = vld [vmem:[%s2265_s0 + $0x140] sm:$0xff]  ;;  %v57_v14 = vld [vmem:[%s2265_s0 + $0x150] sm:$0xff] }
  0x4a   :  { %1112 = vmatprep.mubr.msk.bf16.mxu0 %vm283_vm0, %v154_v15  ;;  %1128 = vmatprep.mubr.msk.bf16.mxu1 %vm283_vm0, %v186_v16  ;;  %v60_v15 = vld [vmem:[%s2265_s0 + $0x168] sm:$0xff]  ;;  %v119_v16 = vld [vmem:[%s2265_s0 + $0x340] sm:$0xff]  ;;  %v163_v21 = vpack.c.bf16 %v57_v14, %v55_v13 }
  0x4b   :  { %v195_v22 = vpack.c.bf16 %v121_v17, %v119_v16  ;;  %v166_v23 = vpack.c.bf16 %v62_v18, %v60_v15 }
  0x51   :  { %460 = vmatmul.mubr.bf16.gmra.mrb[20].mxu0 %v153_v25  ;;  %588 = vmatmul.mubr.bf16.gmra.mrb[20].mxu1 %v185_v26  ;;  %v59_v25 = vld [vmem:[%s2265_s0 + $0x160] sm:$0xff]  ;;  %v61_v26 = vld [vmem:[%s2265_s0 + $0x170] sm:$0xff] }
  0x52   :  { %1113 = vmatprep.mubr.msk.bf16.mxu0 %vm283_vm0, %v156_v27  ;;  %1129 = vmatprep.mubr.msk.bf16.mxu1 %vm283_vm0, %v188_v28  ;;  %v64_v27 = vld [vmem:[%s2265_s0 + $0x188] sm:$0xff]  ;;  %v123_v28 = vld [vmem:[%s2265_s0 + $0x360] sm:$0xff]  ;;  %v165_v33 = vpack.c.bf16 %v61_v26, %v59_v25 }
  0x53   :  { %v197_v34 = vpack.c.bf16 %v125_v29, %v123_v28  ;;  %v168_v35 = vpack.c.bf16 %v66_v30, %v64_v27 }
  0x59   :  { %468 = vmatmul.mubr.bf16.gmra.mrb[24].mxu0 %v155_v37  ;;  %596 = vmatmul.mubr.bf16.gmra.mrb[24].mxu1 %v187_v38  ;;  %v63_v37 = vld [vmem:[%s2265_s0 + $0x180] sm:$0xff]  ;;  %v65_v38 = vld [vmem:[%s2265_s0 + $0x190] sm:$0xff] }
  0x5a   :  { %1114 = vmatprep.mubr.msk.bf16.mxu0 %vm283_vm0, %v158_v39  ;;  %1130 = vmatprep.mubr.msk.bf16.mxu1 %vm283_vm0, %v190_v40  ;;  %v68_v39 = vld [vmem:[%s2265_s0 + $0x1a8] sm:$0xff]  ;;  %v127_v40 = vld [vmem:[%s2265_s0 + $0x380] sm:$0xff]  ;;  %v167_v45 = vpack.c.bf16 %v65_v38, %v63_v37 }
  0x5b   :  { %v199_v46 = vpack.c.bf16 %v129_v41, %v127_v40  ;;  %v170_v47 = vpack.c.bf16 %v70_v42, %v68_v39 }
  0x61   :  { %476 = vmatmul.mubr.bf16.gmra.mrb[28].mxu0 %v157_v49  ;;  %604 = vmatmul.mubr.bf16.gmra.mrb[28].mxu1 %v189_v50  ;;  %v67_v49 = vld [vmem:[%s2265_s0 + $0x1a0] sm:$0xff]  ;;  %v69_v50 = vld [vmem:[%s2265_s0 + $0x1b0] sm:$0xff] }
  0x62   :  { %1115 = vmatprep.mubr.msk.bf16.mxu0 %vm283_vm0, %v160_v51  ;;  %1131 = vmatprep.mubr.msk.bf16.mxu1 %vm283_vm0, %v192_v52  ;;  %v72_v51 = vld [vmem:[%s2265_s0 + $0x1c8] sm:$0xff]  ;;  %v131_v52 = vld [vmem:[%s2265_s0 + $0x3a0] sm:$0xff]  ;;  %v169_v57 = vpack.c.bf16 %v69_v50, %v67_v49 }
  0x63   :  { %v201_v58 = vpack.c.bf16 %v133_v53, %v131_v52  ;;  %v172_v59 = vpack.c.bf16 %v74_v54, %v72_v51 }
  0x69   :  { %484 = vmatmul.mubr.bf16.gmra.mrb[32].mxu0 %v159_v61  ;;  %612 = vmatmul.mubr.bf16.gmra.mrb[32].mxu1 %v191_v62  ;;  %v71_v61 = vld [vmem:[%s2265_s0 + $0x1c0] sm:$0xff]  ;;  %v73_v62 = vld [vmem:[%s2265_s0 + $0x1d0] sm:$0xff] }
  0x6a   :  { %1116 = vmatprep.mubr.msk.bf16.mxu0 %vm283_vm0, %v162_v63  ;;  %1132 = vmatprep.mubr.msk.bf16.mxu1 %vm283_vm0, %v194_v0  ;;  %v76_v63 = vld [vmem:[%s2265_s0 + $0x1e8] sm:$0xff]  ;;  %v135_v0 = vld [vmem:[%s2265_s0 + $0x3c0] sm:$0xff]  ;;  %v171_v5 = vpack.c.bf16 %v73_v62, %v71_v61 }
  0x6b   :  { %v203_v6 = vpack.c.bf16 %v137_v1, %v135_v0  ;;  %v174_v7 = vpack.c.bf16 %v78_v2, %v76_v63 }
  0x71   :  { %492 = vmatmul.mubr.bf16.gmra.mrb[36].mxu0 %v161_v9  ;;  %620 = vmatmul.mubr.bf16.gmra.mrb[36].mxu1 %v193_v10  ;;  %v75_v9 = vld [vmem:[%s2265_s0 + $0x1e0] sm:$0xff]  ;;  %v77_v10 = vld [vmem:[%s2265_s0 + $0x1f0] sm:$0xff] }
  0x72   :  { %1117 = vmatprep.mubr.msk.bf16.mxu0 %vm283_vm0, %v164_v11  ;;  %1133 = vmatprep.mubr.msk.bf16.mxu1 %vm283_vm0, %v196_v12  ;;  %v139_v11 = vld [vmem:[%s2265_s0 + $0x3e0] sm:$0xff]  ;;  %v141_v12 = vld [vmem:[%s2265_s0 + $0x3f0] sm:$0xff]  ;;  %v173_v13 = vpack.c.bf16 %v77_v10, %v75_v9 }
  0x73   :  { %v205_v14 = vpack.c.bf16 %v141_v12, %v139_v11 }
  0x79   :  { %500 = vmatmul.mubr.bf16.gmra.mrb[40].mxu0 %v163_v21  ;;  %628 = vmatmul.mubr.bf16.gmra.mrb[40].mxu1 %v195_v22 }
  0x7a   :  { %1118 = vmatprep.mubr.msk.bf16.mxu0 %vm283_vm0, %v166_v23  ;;  %1134 = vmatprep.mubr.msk.bf16.mxu1 %vm283_vm0, %v198_v24 }
  0x81   :  { %508 = vmatmul.mubr.bf16.gmra.mrb[44].mxu0 %v165_v33  ;;  %636 = vmatmul.mubr.bf16.gmra.mrb[44].mxu1 %v197_v34 }
  0x82   :  { %1119 = vmatprep.mubr.msk.bf16.mxu0 %vm283_vm0, %v168_v35  ;;  %1135 = vmatprep.mubr.msk.bf16.mxu1 %vm283_vm0, %v200_v36 }
  0x89   :  { %516 = vmatmul.mubr.bf16.gmra.mrb[48].mxu0 %v167_v45  ;;  %644 = vmatmul.mubr.bf16.gmra.mrb[48].mxu1 %v199_v46 }
  0x8a   :  { %1120 = vmatprep.mubr.msk.bf16.mxu0 %vm283_vm0, %v170_v47  ;;  %1136 = vmatprep.mubr.msk.bf16.mxu1 %vm283_vm0, %v202_v48 }
  0x91   :  { %524 = vmatmul.mubr.bf16.gmra.mrb[52].mxu0 %v169_v57  ;;  %652 = vmatmul.mubr.bf16.gmra.mrb[52].mxu1 %v201_v58 }
  0x92   :  { %1121 = vmatprep.mubr.msk.bf16.mxu0 %vm283_vm0, %v172_v59  ;;  %1137 = vmatprep.mubr.msk.bf16.mxu1 %vm283_vm0, %v204_v60 }
  0x99   :  { %532 = vmatmul.mubr.bf16.gmra.mrb[56].mxu0 %v171_v5  ;;  %660 = vmatmul.mubr.bf16.gmra.mrb[56].mxu1 %v203_v6 }
  0x9a   :  { %1122 = vmatprep.mubr.msk.bf16.mxu0 %vm283_vm0, %v174_v7  ;;  %1138 = vmatprep.mubr.msk.bf16.mxu1 %vm283_vm0, %v206_v8 }
  0xa1   :  { %540 = vmatmul.mubr.bf16.gmra.mrb[60].mxu0 %v173_v13  ;;  %668 = vmatmul.mubr.bf16.gmra.mrb[60].mxu1 %v205_v14 }
  0xfc   :  { %v421_v15 = vpop.f32.mrb[0].mxu0  ;;  %v1666_v16 = vpop.f32.mrb[0].mxu1 }
  0xfd   :  { %677 = vst.msk [vmem:[%s2266_s2] sm:$0xff] %vm676_vm3, %v421_v15  ;;  %v886_v17 = vmul.f32 %v421_v15, %v421_v15  ;;  %v423_v18 = vpop.f32.mrb[1].mxu0  ;;  %709 = vst.msk [vmem:[%s2266_s2 + $0x100] sm:$0xff] %vm676_vm3, %v1666_v16  ;;  %v551_v19 = vpop.f32.mrb[1].mxu1  ;;  %v749_v22 = vsel %vm676_vm3, %v421_v15, 0.0 }
  0xfe   :  { %v424_v20 = vpop.f32.mrb[2].mxu0  ;;  %v1677_v21 = vpop.f32.mrb[2].mxu1 }
  0xff   :  { %678 = vst.msk [vmem:[%s2266_s2 + $0x8] sm:$0xff] %vm676_vm3, %v424_v20  ;;  %v750_v23 = vsel %vm676_vm3, %v424_v20, 0.0  ;;  %v887_v24 = vmul.f32 %v424_v20, %v424_v20  ;;  %v426_v25 = vpop.f32.mrb[3].mxu0  ;;  %710 = vst.msk [vmem:[%s2266_s2 + $0x108] sm:$0xff] %vm676_vm3, %v1677_v21  ;;  %v554_v26 = vpop.f32.mrb[3].mxu1  ;;  %v950_v28 = vsel %vm676_vm3, %v886_v17, 0.0 }
 0x100   :  { %v751_v27 = vadd.f32 %v750_v23, %v749_v22 }
 0x101   :  { %v951_v29 = vsel %vm676_vm3, %v887_v24, 0.0 }
 0x102   :  { %v952_v30 = vadd.f32 %v951_v29, %v950_v28 }
 0x104   :  { %v429_v31 = vpop.f32.mrb[4].mxu0  ;;  %v1692_v32 = vpop.f32.mrb[4].mxu1 }
 0x105   :  { %679 = vst.msk [vmem:[%s2266_s2 + $0x10] sm:$0xff] %vm676_vm3, %v429_v31  ;;  %v752_v33 = vsel %vm676_vm3, %v429_v31, 0.0  ;;  %v888_v34 = vmul.f32 %v429_v31, %v429_v31  ;;  %v431_v35 = vpop.f32.mrb[5].mxu0  ;;  %711 = vst.msk [vmem:[%s2266_s2 + $0x110] sm:$0xff] %vm676_vm3, %v1692_v32  ;;  %v559_v36 = vpop.f32.mrb[5].mxu1 }
 0x106   :  { %v753_v37 = vadd.f32 %v752_v33, %v751_v27  ;;  %v432_v38 = vpop.f32.mrb[6].mxu0  ;;  %v1704_v39 = vpop.f32.mrb[6].mxu1 }
 0x107   :  { %v953_v40 = vsel %vm676_vm3, %v888_v34, 0.0  ;;  %680 = vst.msk [vmem:[%s2266_s2 + $0x18] sm:$0xff] %vm676_vm3, %v432_v38  ;;  %v754_v41 = vsel %vm676_vm3, %v432_v38, 0.0  ;;  %v889_v42 = vmul.f32 %v432_v38, %v432_v38  ;;  %v434_v43 = vpop.f32.mrb[7].mxu0  ;;  %712 = vst.msk [vmem:[%s2266_s2 + $0x118] sm:$0xff] %vm676_vm3, %v1704_v39  ;;  %v562_v44 = vpop.f32.mrb[7].mxu1 }
 0x108   :  { %v954_v45 = vadd.f32 %v953_v40, %v952_v30  ;;  %v755_v46 = vadd.f32 %v754_v41, %v753_v37 }
 0x109   :  { %v955_v47 = vsel %vm676_vm3, %v889_v42, 0.0 }
 0x10a   :  { %v956_v48 = vadd.f32 %v955_v47, %v954_v45 }
 0x10c   :  { %v437_v49 = vpop.f32.mrb[8].mxu0  ;;  %v1718_v50 = vpop.f32.mrb[8].mxu1 }
 0x10d   :  { %681 = vst.msk [vmem:[%s2266_s2 + $0x20] sm:$0xff] %vm676_vm3, %v437_v49  ;;  %v756_v51 = vsel %vm676_vm3, %v437_v49, 0.0  ;;  %v890_v52 = vmul.f32 %v437_v49, %v437_v49  ;;  %v439_v53 = vpop.f32.mrb[9].mxu0  ;;  %713 = vst.msk [vmem:[%s2266_s2 + $0x120] sm:$0xff] %vm676_vm3, %v1718_v50  ;;  %v567_v54 = vpop.f32.mrb[9].mxu1 }
 0x10e   :  { %v757_v55 = vadd.f32 %v756_v51, %v755_v46  ;;  %v440_v56 = vpop.f32.mrb[10].mxu0  ;;  %v1730_v57 = vpop.f32.mrb[10].mxu1 }
 0x10f   :  { %v957_v58 = vsel %vm676_vm3, %v890_v52, 0.0  ;;  %682 = vst.msk [vmem:[%s2266_s2 + $0x28] sm:$0xff] %vm676_vm3, %v440_v56  ;;  %v758_v59 = vsel %vm676_vm3, %v440_v56, 0.0  ;;  %v891_v60 = vmul.f32 %v440_v56, %v440_v56  ;;  %v442_v61 = vpop.f32.mrb[11].mxu0  ;;  %714 = vst.msk [vmem:[%s2266_s2 + $0x128] sm:$0xff] %vm676_vm3, %v1730_v57  ;;  %v570_v62 = vpop.f32.mrb[11].mxu1 }
 0x110   :  { %v958_v63 = vadd.f32 %v957_v58, %v956_v48  ;;  %v759_v0 = vadd.f32 %v758_v59, %v757_v55 }
 0x111   :  { %v959_v1 = vsel %vm676_vm3, %v891_v60, 0.0 }
 0x112   :  { %v960_v2 = vadd.f32 %v959_v1, %v958_v63 }
 0x114   :  { %v445_v3 = vpop.f32.mrb[12].mxu0  ;;  %v1744_v4 = vpop.f32.mrb[12].mxu1 }
 0x115   :  { %683 = vst.msk [vmem:[%s2266_s2 + $0x30] sm:$0xff] %vm676_vm3, %v445_v3  ;;  %v760_v5 = vsel %vm676_vm3, %v445_v3, 0.0  ;;  %v892_v6 = vmul.f32 %v445_v3, %v445_v3  ;;  %v447_v7 = vpop.f32.mrb[13].mxu0  ;;  %715 = vst.msk [vmem:[%s2266_s2 + $0x130] sm:$0xff] %vm676_vm3, %v1744_v4  ;;  %v575_v8 = vpop.f32.mrb[13].mxu1 }
 0x116   :  { %v761_v9 = vadd.f32 %v760_v5, %v759_v0  ;;  %v448_v10 = vpop.f32.mrb[14].mxu0  ;;  %v1756_v11 = vpop.f32.mrb[14].mxu1 }
 0x117   :  { %v961_v12 = vsel %vm676_vm3, %v892_v6, 0.0  ;;  %684 = vst.msk [vmem:[%s2266_s2 + $0x38] sm:$0xff] %vm676_vm3, %v448_v10  ;;  %v762_v13 = vsel %vm676_vm3, %v448_v10, 0.0  ;;  %v893_v14 = vmul.f32 %v448_v10, %v448_v10  ;;  %v450_v15 = vpop.f32.mrb[15].mxu0  ;;  %716 = vst.msk [vmem:[%s2266_s2 + $0x138] sm:$0xff] %vm676_vm3, %v1756_v11  ;;  %v578_v17 = vpop.f32.mrb[15].mxu1 }
 0x118   :  { %v962_v18 = vadd.f32 %v961_v12, %v960_v2  ;;  %v763_v19 = vadd.f32 %v762_v13, %v761_v9 }
 0x119   :  { %v963_v20 = vsel %vm676_vm3, %v893_v14, 0.0 }
 0x11a   :  { %v964_v22 = vadd.f32 %v963_v20, %v962_v18 }
 0x11c   :  { %v453_v23 = vpop.f32.mrb[16].mxu0  ;;  %v1770_v24 = vpop.f32.mrb[16].mxu1 }
 0x11d   :  { %685 = vst.msk [vmem:[%s2266_s2 + $0x40] sm:$0xff] %vm676_vm3, %v453_v23  ;;  %v764_v25 = vsel %vm676_vm3, %v453_v23, 0.0  ;;  %v894_v26 = vmul.f32 %v453_v23, %v453_v23  ;;  %v455_v27 = vpop.f32.mrb[17].mxu0  ;;  %717 = vst.msk [vmem:[%s2266_s2 + $0x140] sm:$0xff] %vm676_vm3, %v1770_v24  ;;  %v583_v28 = vpop.f32.mrb[17].mxu1 }
 0x11e   :  { %v765_v29 = vadd.f32 %v764_v25, %v763_v19  ;;  %v456_v30 = vpop.f32.mrb[18].mxu0  ;;  %v1782_v31 = vpop.f32.mrb[18].mxu1 }
 0x11f   :  { %v965_v33 = vsel %vm676_vm3, %v894_v26, 0.0  ;;  %686 = vst.msk [vmem:[%s2266_s2 + $0x48] sm:$0xff] %vm676_vm3, %v456_v30  ;;  %v766_v34 = vsel %vm676_vm3, %v456_v30, 0.0  ;;  %v895_v35 = vmul.f32 %v456_v30, %v456_v30  ;;  %v458_v36 = vpop.f32.mrb[19].mxu0  ;;  %718 = vst.msk [vmem:[%s2266_s2 + $0x148] sm:$0xff] %vm676_vm3, %v1782_v31  ;;  %v586_v37 = vpop.f32.mrb[19].mxu1 }
 0x120   :  { %v966_v38 = vadd.f32 %v965_v33, %v964_v22  ;;  %v767_v40 = vadd.f32 %v766_v34, %v765_v29 }
 0x121   :  { %v967_v41 = vsel %vm676_vm3, %v895_v35, 0.0 }
 0x122   :  { %v968_v42 = vadd.f32 %v967_v41, %v966_v38 }
 0x124   :  { %v461_v43 = vpop.f32.mrb[20].mxu0  ;;  %v1796_v44 = vpop.f32.mrb[20].mxu1 }
 0x125   :  { %687 = vst.msk [vmem:[%s2266_s2 + $0x50] sm:$0xff] %vm676_vm3, %v461_v43  ;;  %v768_v45 = vsel %vm676_vm3, %v461_v43, 0.0  ;;  %v896_v46 = vmul.f32 %v461_v43, %v461_v43  ;;  %v463_v47 = vpop.f32.mrb[21].mxu0  ;;  %719 = vst.msk [vmem:[%s2266_s2 + $0x150] sm:$0xff] %vm676_vm3, %v1796_v44  ;;  %v591_v48 = vpop.f32.mrb[21].mxu1  ;;  %v1174_v43 = vmov 0.0  }
 0x126   :  { %v769_v49 = vadd.f32 %v768_v45, %v767_v40  ;;  %v464_v51 = vpop.f32.mrb[22].mxu0  ;;  %v1808_v52 = vpop.f32.mrb[22].mxu1  ;;  %746 = vst.msk [vmem:[%s2267_s3] sm:$0x1] %vm745_vm4, %v1174_v43  ;;  %747 = vst.msk [vmem:[%s2268_s4] sm:$0x1] %vm745_vm4, %v1174_v43 }
 0x127   :  { %v969_v53 = vsel %vm676_vm3, %v896_v46, 0.0  ;;  %688 = vst.msk [vmem:[%s2266_s2 + $0x58] sm:$0xff] %vm676_vm3, %v464_v51  ;;  %v770_v54 = vsel %vm676_vm3, %v464_v51, 0.0  ;;  %v897_v55 = vmul.f32 %v464_v51, %v464_v51  ;;  %v466_v56 = vpop.f32.mrb[23].mxu0  ;;  %720 = vst.msk [vmem:[%s2266_s2 + $0x158] sm:$0xff] %vm676_vm3, %v1808_v52  ;;  %v594_v58 = vpop.f32.mrb[23].mxu1 }
 0x128   :  { %v970_v59 = vadd.f32 %v969_v53, %v968_v42  ;;  %v771_v60 = vadd.f32 %v770_v54, %v769_v49 }
 0x129   :  { %v971_v61 = vsel %vm676_vm3, %v897_v55, 0.0 }
 0x12a   :  { %v972_v62 = vadd.f32 %v971_v61, %v970_v59 }
 0x12c   :  { %v469_v63 = vpop.f32.mrb[24].mxu0  ;;  %v1822_v0 = vpop.f32.mrb[24].mxu1 }
 0x12d   :  { %689 = vst.msk [vmem:[%s2266_s2 + $0x60] sm:$0xff] %vm676_vm3, %v469_v63  ;;  %v772_v1 = vsel %vm676_vm3, %v469_v63, 0.0  ;;  %v898_v2 = vmul.f32 %v469_v63, %v469_v63  ;;  %v471_v3 = vpop.f32.mrb[25].mxu0  ;;  %721 = vst.msk [vmem:[%s2266_s2 + $0x160] sm:$0xff] %vm676_vm3, %v1822_v0  ;;  %v599_v5 = vpop.f32.mrb[25].mxu1 }
 0x12e   :  { %v773_v6 = vadd.f32 %v772_v1, %v771_v60  ;;  %v472_v7 = vpop.f32.mrb[26].mxu0  ;;  %v1834_v8 = vpop.f32.mrb[26].mxu1 }
 0x12f   :  { %v973_v9 = vsel %vm676_vm3, %v898_v2, 0.0  ;;  %690 = vst.msk [vmem:[%s2266_s2 + $0x68] sm:$0xff] %vm676_vm3, %v472_v7  ;;  %v774_v10 = vsel %vm676_vm3, %v472_v7, 0.0  ;;  %v899_v12 = vmul.f32 %v472_v7, %v472_v7  ;;  %v474_v13 = vpop.f32.mrb[27].mxu0  ;;  %722 = vst.msk [vmem:[%s2266_s2 + $0x168] sm:$0xff] %vm676_vm3, %v1834_v8  ;;  %v602_v14 = vpop.f32.mrb[27].mxu1 }
 0x130   :  { %v974_v15 = vadd.f32 %v973_v9, %v972_v62  ;;  %v775_v17 = vadd.f32 %v774_v10, %v773_v6 }
 0x131   :  { %v975_v18 = vsel %vm676_vm3, %v899_v12, 0.0 }
 0x132   :  { %v976_v19 = vadd.f32 %v975_v18, %v974_v15 }
 0x134   :  { %v477_v20 = vpop.f32.mrb[28].mxu0  ;;  %v1848_v22 = vpop.f32.mrb[28].mxu1 }
 0x135   :  { %691 = vst.msk [vmem:[%s2266_s2 + $0x70] sm:$0xff] %vm676_vm3, %v477_v20  ;;  %v776_v23 = vsel %vm676_vm3, %v477_v20, 0.0  ;;  %v900_v25 = vmul.f32 %v477_v20, %v477_v20  ;;  %v479_v26 = vpop.f32.mrb[29].mxu0  ;;  %723 = vst.msk [vmem:[%s2266_s2 + $0x170] sm:$0xff] %vm676_vm3, %v1848_v22  ;;  %v607_v27 = vpop.f32.mrb[29].mxu1 }
 0x136   :  { %v777_v28 = vadd.f32 %v776_v23, %v775_v17  ;;  %v480_v29 = vpop.f32.mrb[30].mxu0  ;;  %v1860_v30 = vpop.f32.mrb[30].mxu1 }
 0x137   :  { %v977_v33 = vsel %vm676_vm3, %v900_v25, 0.0  ;;  %692 = vst.msk [vmem:[%s2266_s2 + $0x78] sm:$0xff] %vm676_vm3, %v480_v29  ;;  %v778_v34 = vsel %vm676_vm3, %v480_v29, 0.0  ;;  %v901_v35 = vmul.f32 %v480_v29, %v480_v29  ;;  %v482_v36 = vpop.f32.mrb[31].mxu0  ;;  %724 = vst.msk [vmem:[%s2266_s2 + $0x178] sm:$0xff] %vm676_vm3, %v1860_v30  ;;  %v610_v37 = vpop.f32.mrb[31].mxu1 }
 0x138   :  { %v978_v38 = vadd.f32 %v977_v33, %v976_v19  ;;  %v779_v40 = vadd.f32 %v778_v34, %v777_v28 }
 0x139   :  { %v979_v41 = vsel %vm676_vm3, %v901_v35, 0.0 }
 0x13a   :  { %v980_v42 = vadd.f32 %v979_v41, %v978_v38 }
 0x13c   :  { %v485_v45 = vpop.f32.mrb[32].mxu0  ;;  %v1882_v46 = vpop.f32.mrb[32].mxu1 }
 0x13d   :  { %693 = vst.msk [vmem:[%s2266_s2 + $0x80] sm:$0xff] %vm676_vm3, %v485_v45  ;;  %v780_v47 = vsel %vm676_vm3, %v485_v45, 0.0  ;;  %v902_v48 = vmul.f32 %v485_v45, %v485_v45  ;;  %v487_v49 = vpop.f32.mrb[33].mxu0  ;;  %725 = vst.msk [vmem:[%s2266_s2 + $0x180] sm:$0xff] %vm676_vm3, %v1882_v46  ;;  %v615_v51 = vpop.f32.mrb[33].mxu1 }
 0x13e   :  { %v781_v53 = vadd.f32 %v780_v47, %v779_v40  ;;  %v488_v54 = vpop.f32.mrb[34].mxu0  ;;  %v1894_v55 = vpop.f32.mrb[34].mxu1 }
 0x13f   :  { %v981_v56 = vsel %vm676_vm3, %v902_v48, 0.0  ;;  %694 = vst.msk [vmem:[%s2266_s2 + $0x88] sm:$0xff] %vm676_vm3, %v488_v54  ;;  %v782_v58 = vsel %vm676_vm3, %v488_v54, 0.0  ;;  %v903_v59 = vmul.f32 %v488_v54, %v488_v54  ;;  %v490_v60 = vpop.f32.mrb[35].mxu0  ;;  %726 = vst.msk [vmem:[%s2266_s2 + $0x188] sm:$0xff] %vm676_vm3, %v1894_v55  ;;  %v618_v61 = vpop.f32.mrb[35].mxu1 }
 0x140   :  { %v982_v62 = vadd.f32 %v981_v56, %v980_v42  ;;  %v783_v63 = vadd.f32 %v782_v58, %v781_v53 }
 0x141   :  { %v983_v1 = vsel %vm676_vm3, %v903_v59, 0.0 }
 0x142   :  { %v984_v2 = vadd.f32 %v983_v1, %v982_v62 }
 0x144   :  { %v493_v3 = vpop.f32.mrb[36].mxu0  ;;  %v1908_v5 = vpop.f32.mrb[36].mxu1 }
 0x145   :  { %695 = vst.msk [vmem:[%s2266_s2 + $0x90] sm:$0xff] %vm676_vm3, %v493_v3  ;;  %v784_v6 = vsel %vm676_vm3, %v493_v3, 0.0  ;;  %v904_v7 = vmul.f32 %v493_v3, %v493_v3  ;;  %v495_v9 = vpop.f32.mrb[37].mxu0  ;;  %727 = vst.msk [vmem:[%s2266_s2 + $0x190] sm:$0xff] %vm676_vm3, %v1908_v5  ;;  %v623_v10 = vpop.f32.mrb[37].mxu1 }
 0x146   :  { %v785_v12 = vadd.f32 %v784_v6, %v783_v63  ;;  %v496_v13 = vpop.f32.mrb[38].mxu0  ;;  %v1920_v14 = vpop.f32.mrb[38].mxu1 }
 0x147   :  { %v985_v15 = vsel %vm676_vm3, %v904_v7, 0.0  ;;  %696 = vst.msk [vmem:[%s2266_s2 + $0x98] sm:$0xff] %vm676_vm3, %v496_v13  ;;  %v786_v17 = vsel %vm676_vm3, %v496_v13, 0.0  ;;  %v905_v18 = vmul.f32 %v496_v13, %v496_v13  ;;  %v498_v19 = vpop.f32.mrb[39].mxu0  ;;  %728 = vst.msk [vmem:[%s2266_s2 + $0x198] sm:$0xff] %vm676_vm3, %v1920_v14  ;;  %v626_v20 = vpop.f32.mrb[39].mxu1 }
 0x148   :  { %v986_v23 = vadd.f32 %v985_v15, %v984_v2  ;;  %v787_v25 = vadd.f32 %v786_v17, %v785_v12 }
 0x149   :  { %v987_v26 = vsel %vm676_vm3, %v905_v18, 0.0 }
 0x14a   :  { %v988_v27 = vadd.f32 %v987_v26, %v986_v23 }
 0x14c   :  { %v501_v28 = vpop.f32.mrb[40].mxu0  ;;  %v1934_v29 = vpop.f32.mrb[40].mxu1 }
 0x14d   :  { %697 = vst.msk [vmem:[%s2266_s2 + $0xa0] sm:$0xff] %vm676_vm3, %v501_v28  ;;  %v788_v33 = vsel %vm676_vm3, %v501_v28, 0.0  ;;  %v906_v34 = vmul.f32 %v501_v28, %v501_v28  ;;  %v503_v35 = vpop.f32.mrb[41].mxu0  ;;  %729 = vst.msk [vmem:[%s2266_s2 + $0x1a0] sm:$0xff] %vm676_vm3, %v1934_v29  ;;  %v631_v36 = vpop.f32.mrb[41].mxu1 }
 0x14e   :  { %v789_v37 = vadd.f32 %v788_v33, %v787_v25  ;;  %v504_v38 = vpop.f32.mrb[42].mxu0  ;;  %v1946_v40 = vpop.f32.mrb[42].mxu1 }
 0x14f   :  { %v989_v41 = vsel %vm676_vm3, %v906_v34, 0.0  ;;  %698 = vst.msk [vmem:[%s2266_s2 + $0xa8] sm:$0xff] %vm676_vm3, %v504_v38  ;;  %v790_v42 = vsel %vm676_vm3, %v504_v38, 0.0  ;;  %v907_v43 = vmul.f32 %v504_v38, %v504_v38  ;;  %v506_v45 = vpop.f32.mrb[43].mxu0  ;;  %730 = vst.msk [vmem:[%s2266_s2 + $0x1a8] sm:$0xff] %vm676_vm3, %v1946_v40  ;;  %v634_v47 = vpop.f32.mrb[43].mxu1 }
 0x150   :  { %v990_v48 = vadd.f32 %v989_v41, %v988_v27  ;;  %v791_v49 = vadd.f32 %v790_v42, %v789_v37 }
 0x151   :  { %v991_v51 = vsel %vm676_vm3, %v907_v43, 0.0 }
 0x152   :  { %v992_v53 = vadd.f32 %v991_v51, %v990_v48 }
 0x154   :  { %v509_v54 = vpop.f32.mrb[44].mxu0  ;;  %v1960_v56 = vpop.f32.mrb[44].mxu1 }
 0x155   :  { %699 = vst.msk [vmem:[%s2266_s2 + $0xb0] sm:$0xff] %vm676_vm3, %v509_v54  ;;  %v792_v58 = vsel %vm676_vm3, %v509_v54, 0.0  ;;  %v908_v59 = vmul.f32 %v509_v54, %v509_v54  ;;  %v511_v60 = vpop.f32.mrb[45].mxu0  ;;  %731 = vst.msk [vmem:[%s2266_s2 + $0x1b0] sm:$0xff] %vm676_vm3, %v1960_v56  ;;  %v639_v61 = vpop.f32.mrb[45].mxu1 }
 0x156   :  { %v793_v62 = vadd.f32 %v792_v58, %v791_v49  ;;  %v512_v63 = vpop.f32.mrb[46].mxu0  ;;  %v1972_v1 = vpop.f32.mrb[46].mxu1 }
 0x157   :  { %v993_v2 = vsel %vm676_vm3, %v908_v59, 0.0  ;;  %700 = vst.msk [vmem:[%s2266_s2 + $0xb8] sm:$0xff] %vm676_vm3, %v512_v63  ;;  %v794_v3 = vsel %vm676_vm3, %v512_v63, 0.0  ;;  %v909_v6 = vmul.f32 %v512_v63, %v512_v63  ;;  %v514_v7 = vpop.f32.mrb[47].mxu0  ;;  %732 = vst.msk [vmem:[%s2266_s2 + $0x1b8] sm:$0xff] %vm676_vm3, %v1972_v1  ;;  %v642_v9 = vpop.f32.mrb[47].mxu1 }
 0x158   :  { %v994_v10 = vadd.f32 %v993_v2, %v992_v53  ;;  %v795_v12 = vadd.f32 %v794_v3, %v793_v62 }
 0x159   :  { %v995_v13 = vsel %vm676_vm3, %v909_v6, 0.0 }
 0x15a   :  { %v996_v15 = vadd.f32 %v995_v13, %v994_v10 }
 0x15c   :  { %v517_v17 = vpop.f32.mrb[48].mxu0  ;;  %v1986_v18 = vpop.f32.mrb[48].mxu1 }
 0x15d   :  { %701 = vst.msk [vmem:[%s2266_s2 + $0xc0] sm:$0xff] %vm676_vm3, %v517_v17  ;;  %v796_v19 = vsel %vm676_vm3, %v517_v17, 0.0  ;;  %v910_v20 = vmul.f32 %v517_v17, %v517_v17  ;;  %v519_v23 = vpop.f32.mrb[49].mxu0  ;;  %733 = vst.msk [vmem:[%s2266_s2 + $0x1c0] sm:$0xff] %vm676_vm3, %v1986_v18  ;;  %v647_v25 = vpop.f32.mrb[49].mxu1 }
 0x15e   :  { %v797_v26 = vadd.f32 %v796_v19, %v795_v12  ;;  %v520_v27 = vpop.f32.mrb[50].mxu0  ;;  %v1998_v28 = vpop.f32.mrb[50].mxu1 }
 0x15f   :  { %v997_v33 = vsel %vm676_vm3, %v910_v20, 0.0  ;;  %702 = vst.msk [vmem:[%s2266_s2 + $0xc8] sm:$0xff] %vm676_vm3, %v520_v27  ;;  %v798_v34 = vsel %vm676_vm3, %v520_v27, 0.0  ;;  %v911_v35 = vmul.f32 %v520_v27, %v520_v27  ;;  %v522_v36 = vpop.f32.mrb[51].mxu0  ;;  %734 = vst.msk [vmem:[%s2266_s2 + $0x1c8] sm:$0xff] %vm676_vm3, %v1998_v28  ;;  %v650_v37 = vpop.f32.mrb[51].mxu1 }
 0x160   :  { %v998_v38 = vadd.f32 %v997_v33, %v996_v15  ;;  %v799_v41 = vadd.f32 %v798_v34, %v797_v26 }
 0x161   :  { %v999_v42 = vsel %vm676_vm3, %v911_v35, 0.0 }
 0x162   :  { %v1000_v43 = vadd.f32 %v999_v42, %v998_v38 }
 0x164   :  { %v525_v45 = vpop.f32.mrb[52].mxu0  ;;  %v2012_v47 = vpop.f32.mrb[52].mxu1 }
 0x165   :  { %703 = vst.msk [vmem:[%s2266_s2 + $0xd0] sm:$0xff] %vm676_vm3, %v525_v45  ;;  %v800_v48 = vsel %vm676_vm3, %v525_v45, 0.0  ;;  %v912_v49 = vmul.f32 %v525_v45, %v525_v45  ;;  %v527_v51 = vpop.f32.mrb[53].mxu0  ;;  %735 = vst.msk [vmem:[%s2266_s2 + $0x1d0] sm:$0xff] %vm676_vm3, %v2012_v47  ;;  %v655_v53 = vpop.f32.mrb[53].mxu1 }
 0x166   :  { %v801_v54 = vadd.f32 %v800_v48, %v799_v41  ;;  %v528_v58 = vpop.f32.mrb[54].mxu0  ;;  %v2024_v59 = vpop.f32.mrb[54].mxu1 }
 0x167   :  { %v1001_v60 = vsel %vm676_vm3, %v912_v49, 0.0  ;;  %704 = vst.msk [vmem:[%s2266_s2 + $0xd8] sm:$0xff] %vm676_vm3, %v528_v58  ;;  %v802_v61 = vsel %vm676_vm3, %v528_v58, 0.0  ;;  %v913_v62 = vmul.f32 %v528_v58, %v528_v58  ;;  %v530_v63 = vpop.f32.mrb[55].mxu0  ;;  %736 = vst.msk [vmem:[%s2266_s2 + $0x1d8] sm:$0xff] %vm676_vm3, %v2024_v59  ;;  %v658_v2 = vpop.f32.mrb[55].mxu1 }
 0x168   :  { %v1002_v3 = vadd.f32 %v1001_v60, %v1000_v43  ;;  %v803_v6 = vadd.f32 %v802_v61, %v801_v54  ;;  %v918_v60 = vmul.f32 %v1666_v16, %v1666_v16 }
 0x169   :  { %v1003_v7 = vsel %vm676_vm3, %v913_v62, 0.0 }
 0x16a   :  { %v1004_v9 = vadd.f32 %v1003_v7, %v1002_v3 }
 0x16c   :  { %v533_v10 = vpop.f32.mrb[56].mxu0  ;;  %v2038_v12 = vpop.f32.mrb[56].mxu1 }
 0x16d   :  { %705 = vst.msk [vmem:[%s2266_s2 + $0xe0] sm:$0xff] %vm676_vm3, %v533_v10  ;;  %v804_v13 = vsel %vm676_vm3, %v533_v10, 0.0  ;;  %v914_v15 = vmul.f32 %v533_v10, %v533_v10  ;;  %v535_v17 = vpop.f32.mrb[57].mxu0  ;;  %737 = vst.msk [vmem:[%s2266_s2 + $0x1e0] sm:$0xff] %vm676_vm3, %v2038_v12  ;;  %v663_v19 = vpop.f32.mrb[57].mxu1  ;;  %v919_v10 = vmul.f32 %v1677_v21, %v1677_v21 }
 0x16e   :  { %v805_v20 = vadd.f32 %v804_v13, %v803_v6  ;;  %v536_v23 = vpop.f32.mrb[58].mxu0  ;;  %v2050_v25 = vpop.f32.mrb[58].mxu1  ;;  %v1013_v19 = vsel %vm676_vm3, %v918_v60, 0.0 }
 0x16f   :  { %v1005_v26 = vsel %vm676_vm3, %v914_v15, 0.0  ;;  %706 = vst.msk [vmem:[%s2266_s2 + $0xe8] sm:$0xff] %vm676_vm3, %v536_v23  ;;  %v806_v27 = vsel %vm676_vm3, %v536_v23, 0.0  ;;  %v915_v33 = vmul.f32 %v536_v23, %v536_v23  ;;  %v538_v34 = vpop.f32.mrb[59].mxu0  ;;  %738 = vst.msk [vmem:[%s2266_s2 + $0x1e8] sm:$0xff] %vm676_vm3, %v2050_v25  ;;  %v666_v35 = vpop.f32.mrb[59].mxu1  ;;  %v920_v23 = vmul.f32 %v1692_v32, %v1692_v32 }
 0x170   :  { %v1006_v36 = vadd.f32 %v1005_v26, %v1004_v9  ;;  %v807_v37 = vadd.f32 %v806_v27, %v805_v20  ;;  %v812_v9 = vsel %vm676_vm3, %v1666_v16, 0.0  ;;  %v814_v20 = vsel %vm676_vm3, %v1677_v21, 0.0 }
 0x171   :  { %v1007_v38 = vsel %vm676_vm3, %v915_v33, 0.0  ;;  %v1015_v33 = vsel %vm676_vm3, %v919_v10, 0.0  ;;  %v816_v16 = vsel %vm676_vm3, %v1692_v32, 0.0  ;;  %v921_v34 = vmul.f32 %v1704_v39, %v1704_v39 }
 0x172   :  { %v1008_v41 = vadd.f32 %v1007_v38, %v1006_v36  ;;  %v818_v21 = vsel %vm676_vm3, %v1704_v39, 0.0  ;;  %v922_v38 = vmul.f32 %v1718_v50, %v1718_v50  ;;  %v820_v32 = vsel %vm676_vm3, %v1718_v50, 0.0 }
 0x173   :  { %v822_v39 = vsel %vm676_vm3, %v1730_v57, 0.0  ;;  %v824_v50 = vsel %vm676_vm3, %v1744_v4, 0.0 }
 0x174   :  { %v541_v42 = vpop.f32.mrb[60].mxu0  ;;  %v2064_v43 = vpop.f32.mrb[60].mxu1 }
 0x175   :  { %707 = vst.msk [vmem:[%s2266_s2 + $0xf0] sm:$0xff] %vm676_vm3, %v541_v42  ;;  %v808_v45 = vsel %vm676_vm3, %v541_v42, 0.0  ;;  %v916_v48 = vmul.f32 %v541_v42, %v541_v42  ;;  %v543_v49 = vpop.f32.mrb[61].mxu0  ;;  %739 = vst.msk [vmem:[%s2266_s2 + $0x1f0] sm:$0xff] %vm676_vm3, %v2064_v43  ;;  %v671_v51 = vpop.f32.mrb[61].mxu1 }
 0x176   :  { %v809_v53 = vadd.f32 %v808_v45, %v807_v37  ;;  %v544_v54 = vpop.f32.mrb[62].mxu0  ;;  %v2076_v58 = vpop.f32.mrb[62].mxu1  ;;  %v1017_v37 = vsel %vm676_vm3, %v920_v23, 0.0  ;;  %v1019_v45 = vsel %vm676_vm3, %v921_v34, 0.0  ;;  %v928_v23 = vmul.f32 %v1796_v44, %v1796_v44 }
 0x177   :  { %v1009_v61 = vsel %vm676_vm3, %v916_v48, 0.0  ;;  %708 = vst.msk [vmem:[%s2266_s2 + $0xf8] sm:$0xff] %vm676_vm3, %v544_v54  ;;  %v810_v62 = vsel %vm676_vm3, %v544_v54, 0.0  ;;  %v917_v63 = vmul.f32 %v544_v54, %v544_v54  ;;  %v546_v2 = vpop.f32.mrb[63].mxu0  ;;  %740 = vst.msk [vmem:[%s2266_s2 + $0x1f8] sm:$0xff] %vm676_vm3, %v2076_v58  ;;  %v674_v3 = vpop.f32.mrb[63].mxu1  ;;  %v923_v48 = vmul.f32 %v1730_v57, %v1730_v57 }
 0x178   :  { %v1010_v6 = vadd.f32 %v1009_v61, %v1008_v41  ;;  %v811_v7 = vadd.f32 %v810_v62, %v809_v53  ;;  %v1021_v53 = vsel %vm676_vm3, %v922_v38, 0.0  ;;  %v924_v54 = vmul.f32 %v1744_v4, %v1744_v4 }
 0x179   :  { %v1011_v13 = vsel %vm676_vm3, %v917_v63, 0.0  ;;  %v1023_v62 = vsel %vm676_vm3, %v923_v48, 0.0  ;;  %v925_v63 = vmul.f32 %v1756_v11, %v1756_v11  ;;  %v826_v57 = vsel %vm676_vm3, %v1756_v11, 0.0 }
 0x17a   :  { %v813_v15 = vadd.f32 %v812_v9, %v811_v7  ;;  %v1012_v17 = vadd.f32 %v1011_v13, %v1010_v6  ;;  %v1025_v6 = vsel %vm676_vm3, %v924_v54, 0.0  ;;  %v926_v7 = vmul.f32 %v1770_v24, %v1770_v24 }
 0x17b   :  { %v1027_v13 = vsel %vm676_vm3, %v925_v63, 0.0  ;;  %v828_v4 = vsel %vm676_vm3, %v1770_v24, 0.0  ;;  %v830_v11 = vsel %vm676_vm3, %v1782_v31, 0.0  ;;  %v832_v24 = vsel %vm676_vm3, %v1796_v44, 0.0 }
 0x17c   :  { %v815_v26 = vadd.f32 %v814_v20, %v813_v15  ;;  %v1014_v27 = vadd.f32 %v1013_v19, %v1012_v17  ;;  %v927_v15 = vmul.f32 %v1782_v31, %v1782_v31  ;;  %v1029_v20 = vsel %vm676_vm3, %v926_v7, 0.0 }
 0x17d   :  { %v834_v31 = vsel %vm676_vm3, %v1808_v52, 0.0  ;;  %v836_v44 = vsel %vm676_vm3, %v1822_v0, 0.0  ;;  %v933_v54 = vmul.f32 %v1860_v30, %v1860_v30 }
 0x17e   :  { %v817_v35 = vadd.f32 %v816_v16, %v815_v26  ;;  %v1016_v36 = vadd.f32 %v1015_v33, %v1014_v27  ;;  %v1031_v33 = vsel %vm676_vm3, %v927_v15, 0.0  ;;  %v929_v16 = vmul.f32 %v1808_v52, %v1808_v52 }
 0x17f   :  { %v838_v52 = vsel %vm676_vm3, %v1834_v8, 0.0 }
 0x180   :  { %v819_v41 = vadd.f32 %v818_v21, %v817_v35  ;;  %v1018_v42 = vadd.f32 %v1017_v37, %v1016_v36  ;;  %v1033_v36 = vsel %vm676_vm3, %v928_v23, 0.0  ;;  %v930_v37 = vmul.f32 %v1822_v0, %v1822_v0 }
 0x181   :  { %v840_v0 = vsel %vm676_vm3, %v1848_v22, 0.0  ;;  %v938_v23 = vmul.f32 %v1934_v29, %v1934_v29 }
 0x182   :  { %v821_v49 = vadd.f32 %v820_v32, %v819_v41  ;;  %v1020_v51 = vadd.f32 %v1019_v45, %v1018_v42  ;;  %v1035_v41 = vsel %vm676_vm3, %v929_v16, 0.0  ;;  %v931_v42 = vmul.f32 %v1834_v8, %v1834_v8 }
 0x183   :  { %v1037_v48 = vsel %vm676_vm3, %v930_v37, 0.0  ;;  %v842_v8 = vsel %vm676_vm3, %v1860_v30, 0.0  ;;  %v846_v30 = vsel %vm676_vm3, %v1894_v55, 0.0 }
 0x184   :  { %v823_v60 = vadd.f32 %v822_v39, %v821_v49  ;;  %v1022_v61 = vadd.f32 %v1021_v53, %v1020_v51  ;;  %v932_v49 = vmul.f32 %v1848_v22, %v1848_v22  ;;  %v1039_v39 = vsel %vm676_vm3, %v931_v42, 0.0 }
 0x185   :  { %v844_v22 = vsel %vm676_vm3, %v1882_v46, 0.0 }
 0x186   :  { %v825_v2 = vadd.f32 %v824_v50, %v823_v60  ;;  %v1024_v3 = vadd.f32 %v1023_v62, %v1022_v61  ;;  %v1041_v62 = vsel %vm676_vm3, %v932_v49, 0.0  ;;  %v934_v50 = vmul.f32 %v1882_v46, %v1882_v46 }
 0x187   :  { %v848_v46 = vsel %vm676_vm3, %v1908_v5, 0.0  ;;  %v943_v49 = vmul.f32 %v1998_v28, %v1998_v28 }
 0x188   :  { %v827_v9 = vadd.f32 %v826_v57, %v825_v2  ;;  %v1026_v10 = vadd.f32 %v1025_v6, %v1024_v3  ;;  %v1043_v3 = vsel %vm676_vm3, %v933_v54, 0.0  ;;  %v935_v6 = vmul.f32 %v1894_v55, %v1894_v55 }
 0x189   :  { %v850_v55 = vsel %vm676_vm3, %v1920_v14, 0.0 }
 0x18a   :  { %v1028_v17 = vadd.f32 %v1027_v13, %v1026_v10  ;;  %v829_v19 = vadd.f32 %v828_v4, %v827_v9  ;;  %v1045_v9 = vsel %vm676_vm3, %v934_v50, 0.0  ;;  %v936_v10 = vmul.f32 %v1908_v5, %v1908_v5 }
 0x18b   :  { %v1047_v15 = vsel %vm676_vm3, %v935_v6, 0.0  ;;  %v852_v5 = vsel %vm676_vm3, %v1934_v29, 0.0  ;;  %v856_v29 = vsel %vm676_vm3, %v1960_v56, 0.0 }
 0x18c   :  { %v831_v26 = vadd.f32 %v830_v11, %v829_v19  ;;  %v1030_v27 = vadd.f32 %v1029_v20, %v1028_v17  ;;  %v937_v17 = vmul.f32 %v1920_v14, %v1920_v14  ;;  %v1049_v11 = vsel %vm676_vm3, %v936_v10, 0.0 }
 0x18d   :  { %v854_v14 = vsel %vm676_vm3, %v1946_v40, 0.0  ;;  %v870_v10 = vsel %vm676_vm3, %v2050_v25, 0.0 }
 0x18e   :  { %v833_v34 = vadd.f32 %v832_v24, %v831_v26  ;;  %v1032_v35 = vadd.f32 %v1031_v33, %v1030_v27  ;;  %v1051_v33 = vsel %vm676_vm3, %v937_v17, 0.0  ;;  %v939_v24 = vmul.f32 %v1946_v40, %v1946_v40 }
 0x18f   :  { %v858_v40 = vsel %vm676_vm3, %v1972_v1, 0.0  ;;  %v949_v17 = vmul.f32 %v2076_v58, %v2076_v58 }
 0x190   :  { %v835_v21 = vadd.f32 %v834_v31, %v833_v34  ;;  %v1034_v38 = vadd.f32 %v1033_v36, %v1032_v35  ;;  %v1053_v35 = vsel %vm676_vm3, %v938_v23, 0.0  ;;  %v940_v36 = vmul.f32 %v1960_v56, %v1960_v56 }
 0x191   :  { %v860_v56 = vsel %vm676_vm3, %v1986_v18, 0.0 }
 0x192   :  { %v837_v45 = vadd.f32 %v836_v44, %v835_v21  ;;  %v1036_v32 = vadd.f32 %v1035_v41, %v1034_v38  ;;  %v1055_v21 = vsel %vm676_vm3, %v939_v24, 0.0  ;;  %v941_v38 = vmul.f32 %v1972_v1, %v1972_v1 }
 0x193   :  { %v1057_v42 = vsel %vm676_vm3, %v940_v36, 0.0  ;;  %v862_v1 = vsel %vm676_vm3, %v1998_v28, 0.0  ;;  %v866_v28 = vsel %vm676_vm3, %v2024_v59, 0.0  ;;  %v748_v36 = vld [vmem:[%s2267_s3] sm:$0x1] }
 0x194   :  { %v839_v51 = vadd.f32 %v838_v52, %v837_v45  ;;  %v1038_v53 = vadd.f32 %v1037_v48, %v1036_v32  ;;  %v942_v45 = vmul.f32 %v1986_v18, %v1986_v18  ;;  %v1059_v52 = vsel %vm676_vm3, %v941_v38, 0.0 }
 0x195   :  { %v864_v18 = vsel %vm676_vm3, %v2012_v47, 0.0 }
 0x196   :  { %v841_v60 = vadd.f32 %v840_v0, %v839_v51  ;;  %v1040_v61 = vadd.f32 %v1039_v39, %v1038_v53  ;;  %v1061_v39 = vsel %vm676_vm3, %v942_v45, 0.0  ;;  %v944_v0 = vmul.f32 %v2012_v47, %v2012_v47 }
 0x197   :  { %v868_v47 = vsel %vm676_vm3, %v2038_v12, 0.0 }
 0x198   :  { %v843_v63 = vadd.f32 %v842_v8, %v841_v60  ;;  %v1042_v2 = vadd.f32 %v1041_v62, %v1040_v61  ;;  %v1063_v61 = vsel %vm676_vm3, %v943_v49, 0.0  ;;  %v945_v62 = vmul.f32 %v2024_v59, %v2024_v59 }
 0x19a   :  { %v845_v57 = vadd.f32 %v844_v22, %v843_v63  ;;  %v1044_v7 = vadd.f32 %v1043_v3, %v1042_v2  ;;  %v1065_v63 = vsel %vm676_vm3, %v944_v0, 0.0  ;;  %v946_v2 = vmul.f32 %v2038_v12, %v2038_v12 }
 0x19b   :  { %v1067_v6 = vsel %vm676_vm3, %v945_v62, 0.0 }
 0x19c   :  { %v1046_v13 = vadd.f32 %v1045_v9, %v1044_v7  ;;  %v847_v4 = vadd.f32 %v846_v30, %v845_v57  ;;  %v947_v57 = vmul.f32 %v2050_v25, %v2050_v25  ;;  %v948_v7 = vmul.f32 %v2064_v43, %v2064_v43 }
 0x19d   :  { %v1069_v59 = vsel %vm676_vm3, %v946_v2, 0.0  ;;  %v1075_v25 = vsel %vm676_vm3, %v949_v17, 0.0 }
 0x19e   :  { %v1048_v19 = vadd.f32 %v1047_v15, %v1046_v13  ;;  %v849_v20 = vadd.f32 %v848_v46, %v847_v4  ;;  %v872_v13 = vsel %vm676_vm3, %v2064_v43, 0.0  ;;  %v1071_v12 = vsel %vm676_vm3, %v947_v57, 0.0 }
 0x19f   :  { %v1073_v46 = vsel %vm676_vm3, %v948_v7, 0.0 }
 0x1a0   :  { %v1050_v26 = vadd.f32 %v1049_v11, %v1048_v19  ;;  %v851_v27 = vadd.f32 %v850_v55, %v849_v20  ;;  %v874_v11 = vsel %vm676_vm3, %v2076_v58, 0.0 }
 0x1a2   :  { %v1052_v16 = vadd.f32 %v1051_v33, %v1050_v26  ;;  %v853_v34 = vadd.f32 %v852_v5, %v851_v27 }
 0x1a4   :  { %v1054_v31 = vadd.f32 %v1053_v35, %v1052_v16  ;;  %v855_v37 = vadd.f32 %v854_v14, %v853_v34 }
 0x1a6   :  { %v1056_v41 = vadd.f32 %v1055_v21, %v1054_v31  ;;  %v857_v44 = vadd.f32 %v856_v29, %v855_v37  ;;  %v885_v37 = vld [vmem:[%s2268_s4] sm:$0x1] }
 0x1a8   :  { %v1058_v32 = vadd.f32 %v1057_v42, %v1056_v41  ;;  %v859_v48 = vadd.f32 %v858_v40, %v857_v44 }
 0x1aa   :  { %v1060_v51 = vadd.f32 %v1059_v52, %v1058_v32  ;;  %v861_v53 = vadd.f32 %v860_v56, %v859_v48 }
 0x1ac   :  { %v1062_v54 = vadd.f32 %v1061_v39, %v1060_v51  ;;  %v863_v60 = vadd.f32 %v862_v1, %v861_v53 }
 0x1ae   :  { %v1064_v8 = vadd.f32 %v1063_v61, %v1062_v54  ;;  %v865_v50 = vadd.f32 %v864_v18, %v863_v60 }
 0x1b0   :  { %v1066_v3 = vadd.f32 %v1065_v63, %v1064_v8  ;;  %v867_v22 = vadd.f32 %v866_v28, %v865_v50 }
 0x1b2   :  { %v1068_v9 = vadd.f32 %v1067_v6, %v1066_v3  ;;  %v869_v30 = vadd.f32 %v868_v47, %v867_v22 }
 0x1b4   :  { %v1070_v4 = vadd.f32 %v1069_v59, %v1068_v9  ;;  %v871_v15 = vadd.f32 %v870_v10, %v869_v30 }
 0x1b6   :  { %v1072_v19 = vadd.f32 %v1071_v12, %v1070_v4  ;;  %v873_v20 = vadd.f32 %v872_v13, %v871_v15 }
 0x1b8   :  { %v1074_v55 = vadd.f32 %v1073_v46, %v1072_v19  ;;  %v875_v23 = vadd.f32 %v874_v11, %v873_v20 }
 0x1ba   :  { %v876_v26 = vrot.slane %v875_v23, 4  ;;  %v1076_v43 = vadd.f32 %v1075_v25, %v1074_v55 }
 0x1bc   :  { %v877_v27 = vadd.f32 %v876_v26, %v875_v23  ;;  %v1077_v33 = vrot.slane %v1076_v43, 4 }
 0x1be   :  { %v878_v5 = vrot.slane %v877_v27, 2  ;;  %v1078_v24 = vadd.f32 %v1077_v33, %v1076_v43 }
 0x1c0   :  { %v879_v16 = vadd.f32 %v878_v5, %v877_v27  ;;  %v1079_v34 = vrot.slane %v1078_v24, 2 }
 0x1c2   :  { %v880_v35 = vrot.slane %v879_v16, 1  ;;  %v1080_v14 = vadd.f32 %v1079_v34, %v1078_v24 }
 0x1c4   :  { %v881_v31 = vadd.f32 %v880_v35, %v879_v16  ;;  %v1081_v58 = vrot.slane %v1080_v14, 1 }
 0x1c6   :  { %v882_v21 = vadd.f32 %v881_v31, %v748_v36  ;;  %v1082_v29 = vadd.f32 %v1081_v58, %v1080_v14 }
 0x1c8   :  { %884 = vst.msk [vmem:[%s2267_s3] sm:$0x1] %vm745_vm4, %v882_v21  ;;  %v1083_v38 = vadd.f32 %v1082_v29, %v885_v37 }
 0x1ca   :  { %1084 = vst.msk [vmem:[%s2268_s4] sm:$0x1] %vm745_vm4, %v1083_v38 }

// kernel: _lambda_.25
= control target key start
LH: loop header
LB: loop body
LE: loop exit
PB: predicated region body
PF: predicated region fallthrough
CT: control target
= control target key end

     0   :  { %v57_v11 = vlaneseq  ;;  %vm156_vm0 = vcmask 523264   ;;  %s631_s5 = inlined_call_operand.vmem [shape: bf16[64,128], index: 5, kind: input, shape index: {}]   ;;  %s632_s3 = inlined_call_operand.vmem [shape: f32[1,64], index: 3, kind: input, shape index: {}]   ;;  %s633_s4 = inlined_call_operand.vmem [shape: f32[1,64], index: 4, kind: input, shape index: {}]   ;;  %s634_s1 = inlined_call_operand.vmem [shape: f32[1,64], index: 1, kind: input, shape index: {}]   ;;  %s635_s0 = inlined_call_operand.vmem [shape: f32[128,64], index: 0, kind: input, shape index: {}]   ;;  %s636_s2 = inlined_call_operand.vmem [shape: f32[1,64], index: 2, kind: input, shape index: {}]   ;;  %s637_s7 = inlined_call_operand.vmem [shape: f32[1,128], index: 7, kind: output, shape index: {1}]   ;;  %s638_s8 = inlined_call_operand.vmem [shape: f32[1,128], index: 8, kind: output, shape index: {2}]   ;;  %s639_s6 = inlined_call_operand.vmem [shape: f32[128,128], index: 6, kind: output, shape index: {0}]  }
   0x1   :  { %v433_v0 = vld [vmem:[%s631_s5] sm:$0xff]   ;;  %v434_v1 = vld [vmem:[%s631_s5 + $0x8] sm:$0xff]   ;;  %v435_v2 = vld [vmem:[%s631_s5 + $0x10] sm:$0xff]  }
   0x2   :  { %400 = vmatprep.subr.bf16.mxu0 %v433_v0  ;;  %424 = vmatprep.subr.bf16.mxu1 %v433_v0  ;;  %v27_v3 = vld [vmem:[%s632_s3] sm:$0x1]  ;;  %v436_v8 = vld [vmem:[%s631_s5 + $0x18] sm:$0xff]   ;;  %v58_v12 = vshrl.u32 %v57_v11, 7  ;;  %v41_v19 = vld [vmem:[%s635_s0 + $0x8] sm:$0xff] }
   0x3   :  { %401 = vmatpush3.bf16.msra.mxu0 %v433_v0  ;;  %428 = vmatpush3.bf16.msra.mxu1 %v433_v0  ;;  %v29_v4 = vld [vmem:[%s633_s4] sm:$0x1]  ;;  %v28_v5 = vmul.f32 0.0078125, %v27_v3  ;;  %v42_v20 = vld [vmem:[%s635_s0 + $0x10] sm:$0xff]  ;;  %v43_v21 = vld [vmem:[%s635_s0 + $0x18] sm:$0xff] }
   0x4   :  { %402 = vmatprep.subr.bf16.mxu0 %v434_v1  ;;  %425 = vmatprep.subr.bf16.mxu1 %v434_v1  ;;  %v30_v6 = vmul.f32 0.0078125, %v29_v4  ;;  %v33_v13 = vld [vmem:[%s634_s1] sm:$0x1]  ;;  %v59_v14 = vsub.s32 0, %v58_v12  ;;  %v45_v25 = vld [vmem:[%s635_s0 + $0x28] sm:$0xff]  ;;  %v46_v26 = vld [vmem:[%s635_s0 + $0x30] sm:$0xff] }
   0x5   :  { %v31_v7 = vmul.f32 %v28_v5, %v28_v5  ;;  %v37_v17 = vld [vmem:[%s636_s2] sm:$0x1]  ;;  %v47_v27 = vld [vmem:[%s635_s0 + $0x38] sm:$0xff]  ;;  %v49_v29 = vld [vmem:[%s635_s0 + $0x48] sm:$0xff] }
   0x6   :  { %v40_v18 = vld [vmem:[%s635_s0] sm:$0xff]  ;;  %v50_v30 = vld [vmem:[%s635_s0 + $0x50] sm:$0xff]  ;;  %v51_v35 = vld [vmem:[%s635_s0 + $0x58] sm:$0xff] }
   0x7   :  { %403 = vmatpush3.bf16.msra.mxu0 %v434_v1  ;;  %429 = vmatpush3.bf16.msra.mxu1 %v434_v1  ;;  %v32_v9 = vsub.f32 %v30_v6, %v31_v7  ;;  %v44_v22 = vld [vmem:[%s635_s0 + $0x20] sm:$0xff]  ;;  %v53_v37 = vld [vmem:[%s635_s0 + $0x68] sm:$0xff]  ;;  %v55_v6 = vld [vmem:[%s635_s0 + $0x78] sm:$0xff] }
   0x8   :  { %404 = vmatprep.subr.bf16.mxu0 %v435_v2  ;;  %426 = vmatprep.subr.bf16.mxu1 %v435_v2  ;;  %v48_v28 = vld [vmem:[%s635_s0 + $0x40] sm:$0xff] }
   0x9   :  { %v34_v10 = vadd.f32 1e-05, %v32_v9  ;;  %v52_v36 = vld [vmem:[%s635_s0 + $0x60] sm:$0xff] }
   0xb   :  { %405 = vmatpush3.bf16.msra.mxu0 %v435_v2  ;;  %430 = vmatpush3.bf16.msra.mxu1 %v435_v2  ;;  %437 = vrsqrt.f32 %v34_v10 }
   0xc   :  { %406 = vmatprep.subr.bf16.mxu0 %v436_v8  ;;  %427 = vmatprep.subr.bf16.mxu1 %v436_v8 }
   0xf   :  { %407 = vmatpush3.bf16.msra.mxu0 %v436_v8  ;;  %431 = vmatpush3.bf16.msra.mxu1 %v436_v8 }
  0x15   :  { %v438_v15 = vpop.eup %437 }
  0x16   :  { %v36_v16 = vmul.f32 %v438_v15, %v33_v13 }
  0x18   :  { %v38_v23 = vmul.f32 %v36_v16, %v28_v5  ;;  %v60_v24 = vrot.slane %v36_v16, %v59_v14  ;;  %v54_v5 = vld [vmem:[%s635_s0 + $0x70] sm:$0xff] }
  0x1a   :  { %v39_v31 = vsub.f32 %v37_v17, %v38_v23  ;;  %v62_v32 = vmul.f32 %v60_v24, %v40_v18  ;;  %v63_v33 = vmul.f32 %v60_v24, %v41_v19  ;;  %v64_v34 = vmul.f32 %v60_v24, %v42_v20 }
  0x1b   :  { %v65_v38 = vmul.f32 %v60_v24, %v43_v21  ;;  %v66_v39 = vmul.f32 %v60_v24, %v44_v22  ;;  %v67_v40 = vmul.f32 %v60_v24, %v45_v25  ;;  %v68_v41 = vmul.f32 %v60_v24, %v46_v26 }
  0x1c   :  { %v82_v42 = vrot.slane %v39_v31, %v59_v14  ;;  %v69_v43 = vmul.f32 %v60_v24, %v47_v27  ;;  %v70_v44 = vmul.f32 %v60_v24, %v48_v28  ;;  %v71_v45 = vmul.f32 %v60_v24, %v49_v29 }
  0x1d   :  { %v72_v46 = vmul.f32 %v60_v24, %v50_v30  ;;  %v73_v47 = vmul.f32 %v60_v24, %v51_v35  ;;  %v74_v48 = vmul.f32 %v60_v24, %v52_v36  ;;  %v75_v49 = vmul.f32 %v60_v24, %v53_v37 }
  0x1e   :  { %v84_v50 = vadd.f32 %v82_v42, %v62_v32  ;;  %v85_v51 = vadd.f32 %v82_v42, %v63_v33  ;;  %v86_v52 = vadd.f32 %v82_v42, %v64_v34  ;;  %v87_v53 = vadd.f32 %v82_v42, %v65_v38 }
  0x1f   :  { %v88_v54 = vadd.f32 %v82_v42, %v66_v39  ;;  %v89_v55 = vadd.f32 %v82_v42, %v67_v40  ;;  %v90_v56 = vadd.f32 %v82_v42, %v68_v41  ;;  %v91_v57 = vadd.f32 %v82_v42, %v69_v43 }
  0x20   :  { %v100_v58 = vmax.f32 %v84_v50, 0.0  ;;  %v101_v59 = vmax.f32 %v85_v51, 0.0  ;;  %v102_v60 = vmax.f32 %v86_v52, 0.0  ;;  %v103_v61 = vmax.f32 %v87_v53, 0.0 }
  0x21   :  { %v104_v62 = vmax.f32 %v88_v54, 0.0  ;;  %v105_v63 = vmax.f32 %v89_v55, 0.0  ;;  %v106_v0 = vmax.f32 %v90_v56, 0.0  ;;  %v92_v3 = vadd.f32 %v82_v42, %v70_v44 }
  0x22   :  { %v116_v1 = vpack.c.bf16 %v101_v59, %v100_v58  ;;  %v117_v2 = vpack.c.bf16 %v103_v61, %v102_v60  ;;  %v93_v4 = vadd.f32 %v82_v42, %v71_v45  ;;  %v107_v8 = vmax.f32 %v91_v57, 0.0 }
  0x23   :  { %v118_v7 = vpack.c.bf16 %v105_v63, %v104_v62  ;;  %v94_v9 = vadd.f32 %v82_v42, %v72_v46  ;;  %v95_v10 = vadd.f32 %v82_v42, %v73_v47  ;;  %v108_v11 = vmax.f32 %v92_v3, 0.0 }
  0x24   :  { %408 = vmatprep.mubr.msk.bf16.mxu0 %vm156_vm0, %v116_v1  ;;  %v109_v12 = vmax.f32 %v93_v4, 0.0  ;;  %v96_v13 = vadd.f32 %v82_v42, %v74_v48  ;;  %v97_v14 = vadd.f32 %v82_v42, %v75_v49  ;;  %v76_v17 = vmul.f32 %v60_v24, %v54_v5 }
  0x25   :  { %409 = vmatmul.mubr.msk.bf16.vlgmr.msra.gmra.mrb[0].mxu0 %vm156_vm0, %v117_v2  ;;  %v110_v15 = vmax.f32 %v94_v9, 0.0  ;;  %v111_v16 = vmax.f32 %v95_v10, 0.0  ;;  %v77_v18 = vmul.f32 %v60_v24, %v55_v6  ;;  %v119_v27 = vpack.c.bf16 %v107_v8, %v106_v0 }
  0x26   :  { %412 = vmatprep.mubr.msk.bf16.mxu0 %vm156_vm0, %v118_v7  ;;  %v120_v19 = vpack.c.bf16 %v109_v12, %v108_v11  ;;  %v112_v20 = vmax.f32 %v96_v13, 0.0  ;;  %v113_v21 = vmax.f32 %v97_v14, 0.0  ;;  %v98_v23 = vadd.f32 %v82_v42, %v76_v17 }
  0x27   :  { %v121_v22 = vpack.c.bf16 %v111_v16, %v110_v15  ;;  %v99_v25 = vadd.f32 %v82_v42, %v77_v18  ;;  %v439_v30 = vmov 0.0  }
  0x28   :  { %416 = vmatprep.mubr.msk.bf16.mxu1 %vm156_vm0, %v120_v19  ;;  %v122_v26 = vpack.c.bf16 %v113_v21, %v112_v20  ;;  %v114_v28 = vmax.f32 %v98_v23, 0.0  ;;  %298 = vst [vmem:[%s637_s7] sm:$0x1] %v439_v30  ;;  %299 = vst [vmem:[%s638_s8] sm:$0x1] %v439_v30 }
  0x29   :  { %417 = vmatmul.mubr.msk.bf16.vlgmr.msra.gmra.mrb[0].mxu1 %vm156_vm0, %v121_v22  ;;  %v115_v29 = vmax.f32 %v99_v25, 0.0 }
  0x2a   :  { %420 = vmatprep.mubr.msk.bf16.mxu1 %vm156_vm0, %v122_v26 }
  0x2b   :  { %v123_v24 = vpack.c.bf16 %v115_v29, %v114_v28 }
  0x2d   :  { %413 = vmatmul.mubr.msk.bf16.gmra.mrb[4].mxu0 %vm156_vm0, %v119_v27 }
  0x31   :  { %421 = vmatmul.mubr.msk.bf16.gmra.mrb[4].mxu1 %vm156_vm0, %v123_v24 }
  0xf8   :  { %v410_v31 = vpop.f32.mrb[0].mxu0 }
  0xf9   :  { %280 = vst [vmem:[%s639_s6 + $0x10] sm:$0xff] %v410_v31  ;;  %v215_v32 = vpop.f32.mrb[1].mxu0  ;;  %v327_v40 = vmul.f32 %v410_v31, %v410_v31 }
  0xfa   :  { %278 = vst [vmem:[%s639_s6] sm:$0xff] %v215_v32  ;;  %v411_v33 = vpop.f32.mrb[2].mxu0  ;;  %v325_v35 = vmul.f32 %v215_v32, %v215_v32 }
  0xfb   :  { %281 = vst [vmem:[%s639_s6 + $0x18] sm:$0xff] %v411_v33  ;;  %v218_v34 = vpop.f32.mrb[3].mxu0  ;;  %v328_v45 = vmul.f32 %v411_v33, %v411_v33 }
  0xfc   :  { %279 = vst [vmem:[%s639_s6 + $0x8] sm:$0xff] %v218_v34  ;;  %v301_v36 = vadd.f32 %v218_v34, %v215_v32  ;;  %v326_v37 = vmul.f32 %v218_v34, %v218_v34  ;;  %v418_v38 = vpop.f32.mrb[0].mxu1 }
  0xfd   :  { %288 = vst [vmem:[%s639_s6 + $0x50] sm:$0xff] %v418_v38  ;;  %v247_v39 = vpop.f32.mrb[1].mxu1  ;;  %v335_v10 = vmul.f32 %v418_v38, %v418_v38 }
  0xfe   :  { %v302_v41 = vadd.f32 %v410_v31, %v301_v36  ;;  %v341_v42 = vadd.f32 %v326_v37, %v325_v35  ;;  %286 = vst [vmem:[%s639_s6 + $0x40] sm:$0xff] %v247_v39  ;;  %v419_v43 = vpop.f32.mrb[2].mxu1  ;;  %v333_v4 = vmul.f32 %v247_v39, %v247_v39 }
  0xff   :  { %289 = vst [vmem:[%s639_s6 + $0x58] sm:$0xff] %v419_v43  ;;  %v250_v44 = vpop.f32.mrb[3].mxu1  ;;  %v336_v13 = vmul.f32 %v419_v43, %v419_v43 }
 0x100   :  { %v342_v46 = vadd.f32 %v341_v42, %v327_v40  ;;  %v414_v47 = vpop.f32.mrb[4].mxu0  ;;  %v303_v48 = vadd.f32 %v411_v33, %v302_v41  ;;  %287 = vst [vmem:[%s639_s6 + $0x48] sm:$0xff] %v250_v44  ;;  %v334_v9 = vmul.f32 %v250_v44, %v250_v44  ;;  %v324_v41 = vld [vmem:[%s638_s8] sm:$0x1] }
 0x101   :  { %284 = vst [vmem:[%s639_s6 + $0x30] sm:$0xff] %v414_v47  ;;  %v231_v49 = vpop.f32.mrb[5].mxu0  ;;  %v331_v60 = vmul.f32 %v414_v47, %v414_v47 }
 0x102   :  { %282 = vst [vmem:[%s639_s6 + $0x20] sm:$0xff] %v231_v49  ;;  %v304_v50 = vadd.f32 %v303_v48, %v231_v49  ;;  %v329_v51 = vmul.f32 %v231_v49, %v231_v49  ;;  %v343_v52 = vadd.f32 %v342_v46, %v328_v45  ;;  %v415_v53 = vpop.f32.mrb[6].mxu0 }
 0x103   :  { %285 = vst [vmem:[%s639_s6 + $0x38] sm:$0xff] %v415_v53  ;;  %v234_v54 = vpop.f32.mrb[7].mxu0  ;;  %v332_v1 = vmul.f32 %v415_v53, %v415_v53 }
 0x104   :  { %v344_v55 = vadd.f32 %v343_v52, %v329_v51  ;;  %283 = vst [vmem:[%s639_s6 + $0x28] sm:$0xff] %v234_v54  ;;  %v305_v56 = vadd.f32 %v304_v50, %v234_v54  ;;  %v330_v57 = vmul.f32 %v234_v54, %v234_v54  ;;  %v422_v58 = vpop.f32.mrb[4].mxu1 }
 0x105   :  { %292 = vst [vmem:[%s639_s6 + $0x70] sm:$0xff] %v422_v58  ;;  %v263_v59 = vpop.f32.mrb[5].mxu1  ;;  %v339_v22 = vmul.f32 %v422_v58, %v422_v58 }
 0x106   :  { %v306_v61 = vadd.f32 %v414_v47, %v305_v56  ;;  %v345_v62 = vadd.f32 %v344_v55, %v330_v57  ;;  %290 = vst [vmem:[%s639_s6 + $0x60] sm:$0xff] %v263_v59  ;;  %v423_v63 = vpop.f32.mrb[6].mxu1  ;;  %v337_v16 = vmul.f32 %v263_v59, %v263_v59 }
 0x107   :  { %293 = vst [vmem:[%s639_s6 + $0x78] sm:$0xff] %v423_v63  ;;  %v266_v0 = vpop.f32.mrb[7].mxu1  ;;  %v340_v26 = vmul.f32 %v423_v63, %v423_v63 }
 0x108   :  { %v346_v2 = vadd.f32 %v345_v62, %v331_v60  ;;  %v307_v3 = vadd.f32 %v415_v53, %v306_v61  ;;  %291 = vst [vmem:[%s639_s6 + $0x68] sm:$0xff] %v266_v0  ;;  %v338_v21 = vmul.f32 %v266_v0, %v266_v0 }
 0x10a   :  { %v308_v5 = vadd.f32 %v307_v3, %v247_v39  ;;  %v347_v6 = vadd.f32 %v346_v2, %v332_v1 }
 0x10c   :  { %v348_v7 = vadd.f32 %v347_v6, %v333_v4  ;;  %v309_v8 = vadd.f32 %v308_v5, %v250_v44 }
 0x10e   :  { %v310_v11 = vadd.f32 %v418_v38, %v309_v8  ;;  %v349_v12 = vadd.f32 %v348_v7, %v334_v9  ;;  %v300_v38 = vld [vmem:[%s637_s7] sm:$0x1] }
 0x110   :  { %v350_v14 = vadd.f32 %v349_v12, %v335_v10  ;;  %v311_v15 = vadd.f32 %v419_v43, %v310_v11 }
 0x112   :  { %v312_v17 = vadd.f32 %v311_v15, %v263_v59  ;;  %v351_v18 = vadd.f32 %v350_v14, %v336_v13 }
 0x114   :  { %v352_v19 = vadd.f32 %v351_v18, %v337_v16  ;;  %v313_v20 = vadd.f32 %v312_v17, %v266_v0 }
 0x116   :  { %v314_v23 = vadd.f32 %v422_v58, %v313_v20  ;;  %v353_v25 = vadd.f32 %v352_v19, %v338_v21 }
 0x118   :  { %v315_v27 = vadd.f32 %v423_v63, %v314_v23  ;;  %v354_v28 = vadd.f32 %v353_v25, %v339_v22 }
 0x11a   :  { %v316_v29 = vrot.slane %v315_v27, 4  ;;  %v355_v24 = vadd.f32 %v354_v28, %v340_v26 }
 0x11c   :  { %v317_v30 = vadd.f32 %v316_v29, %v315_v27  ;;  %v356_v31 = vrot.slane %v355_v24, 4 }
 0x11e   :  { %v318_v32 = vrot.slane %v317_v30, 2  ;;  %v357_v33 = vadd.f32 %v356_v31, %v355_v24 }
 0x120   :  { %v319_v34 = vadd.f32 %v318_v32, %v317_v30  ;;  %v358_v35 = vrot.slane %v357_v33, 2 }
 0x122   :  { %v320_v36 = vrot.slane %v319_v34, 1  ;;  %v359_v37 = vadd.f32 %v358_v35, %v357_v33 }
 0x124   :  { %v321_v39 = vadd.f32 %v320_v36, %v319_v34  ;;  %v360_v40 = vrot.slane %v359_v37, 1 }
 0x126   :  { %v322_v42 = vadd.f32 %v321_v39, %v300_v38  ;;  %v361_v43 = vadd.f32 %v360_v40, %v359_v37 }
 0x128   :  { %323 = vst [vmem:[%s637_s7] sm:$0x1] %v322_v42  ;;  %v362_v44 = vadd.f32 %v361_v43, %v324_v41 }
 0x12a   :  { %363 = vst [vmem:[%s638_s8] sm:$0x1] %v362_v44 }

// kernel: _lambda_.27
= control target key start
LH: loop header
LB: loop body
LE: loop exit
PB: predicated region body
PF: predicated region fallthrough
CT: control target
= control target key end

     0   :  { %v60_v10 = vlaneseq  ;;  %s709_s15 = smov 64   ;;  %vm375_vm0 = vcmask 523264   ;;  %vm229_vm1 = vcmask 261120   ;;  %s1039_s4 = inlined_call_operand.vmem [shape: f32[1,96], index: 4, kind: input, shape index: {}]   ;;  %s1040_s5 = inlined_call_operand.vmem [shape: f32[1,96], index: 5, kind: input, shape index: {}]   ;;  %s1041_s6 = inlined_call_operand.vmem [shape: bf16[96,128], index: 6, kind: input, shape index: {}]   ;;  %s1042_s2 = inlined_call_operand.vmem [shape: f32[1,96], index: 2, kind: input, shape index: {}]   ;;  %s1043_s3 = inlined_call_operand.vmem [shape: f32[1,96], index: 3, kind: input, shape index: {}]   ;;  %s1044_s0 = inlined_call_operand.vmem [shape: f32[128,64], index: 0, kind: input, shape index: {}]   ;;  %s1045_s1 = inlined_call_operand.vmem [shape: f32[128,32], index: 1, kind: input, shape index: {}]   ;;  %s1046_s8 = inlined_call_operand.vmem [shape: f32[1,128], index: 8, kind: output, shape index: {1}]   ;;  %s1047_s9 = inlined_call_operand.vmem [shape: f32[1,128], index: 9, kind: output, shape index: {2}]   ;;  %s1048_s7 = inlined_call_operand.vmem [shape: f32[128,128], index: 7, kind: output, shape index: {0}]  }
   0x1   :  { %v30_v0 = vld [vmem:[%s1039_s4] sm:$0x1]  ;;  %v702_v6 = vld [vmem:[%s1041_s6 + $0x8] sm:$0xff]   ;;  %v703_v9 = vld [vmem:[%s1041_s6 + $0x10] sm:$0xff]  }
   0x2   :  { %v32_v1 = vld [vmem:[%s1040_s5] sm:$0x1]  ;;  %v31_v2 = vmul.f32 0.0078125, %v30_v0  ;;  %v705_v12 = vld [vmem:[%s1041_s6 + $0x18] sm:$0xff]   ;;  %v61_v13 = vshrl.u32 %v60_v10, 7  ;;  %v706_v14 = vld [vmem:[%s1041_s6 + $0x28] sm:$0xff]  }
   0x3   :  { %v33_v3 = vmul.f32 0.0078125, %v32_v1  ;;  %v701_v4 = vld [vmem:[%s1041_s6] sm:$0xff]   ;;  %v44_v21 = vld [vmem:[%s1044_s0 + $0x8] sm:$0xff]  ;;  %v45_v22 = vld [vmem:[%s1044_s0 + $0x10] sm:$0xff] }
   0x4   :  { %v34_v5 = vmul.f32 %v31_v2, %v31_v2  ;;  %659 = vmatprep.subr.bf16.mxu0 %v701_v4  ;;  %v704_v11 = vld [vmem:[%s1041_s6 + $0x20] sm:$0xff]   ;;  %v62_v16 = vsub.s32 0, %v61_v13  ;;  %v46_v25 = vld [vmem:[%s1044_s0 + $0x18] sm:$0xff]  ;;  %v48_v27 = vld [vmem:[%s1044_s0 + $0x28] sm:$0xff] }
   0x5   :  { %660 = vmatpush3.bf16.msra.mxu0 %v701_v4  ;;  %639 = vmatprep.subr.bf16.mxu1 %v704_v11  ;;  %v36_v15 = vld [vmem:[%s1042_s2] sm:$0x1]  ;;  %v49_v32 = vld [vmem:[%s1044_s0 + $0x30] sm:$0xff]  ;;  %v50_v33 = vld [vmem:[%s1044_s0 + $0x38] sm:$0xff] }
   0x6   :  { %v35_v7 = vsub.f32 %v33_v3, %v34_v5  ;;  %661 = vmatprep.subr.bf16.mxu0 %v702_v6  ;;  %640 = vmatpush3.bf16.msra.mxu1 %v704_v11  ;;  %v40_v19 = vld [vmem:[%s1043_s3] sm:$0x1]  ;;  %v52_v47 = vld [vmem:[%s1044_s0 + $0x48] sm:$0xff]  ;;  %v53_v60 = vld [vmem:[%s1044_s0 + $0x50] sm:$0xff] }
   0x7   :  { %641 = vmatprep.subr.bf16.mxu1 %v706_v14  ;;  %v43_v20 = vld [vmem:[%s1044_s0] sm:$0xff]  ;;  %v54_v61 = vld [vmem:[%s1044_s0 + $0x58] sm:$0xff]  ;;  %v56_v11 = vld [vmem:[%s1044_s0 + $0x68] sm:$0xff] }
   0x8   :  { %v37_v8 = vadd.f32 1e-05, %v35_v7  ;;  %v47_v26 = vld [vmem:[%s1044_s0 + $0x20] sm:$0xff] }
   0x9   :  { %662 = vmatpush3.bf16.msra.mxu0 %v702_v6  ;;  %v51_v46 = vld [vmem:[%s1044_s0 + $0x40] sm:$0xff] }
   0xa   :  { %707 = vrsqrt.f32 %v37_v8  ;;  %663 = vmatprep.subr.bf16.mxu0 %v703_v9  ;;  %642 = vmatpush3.bf16.msra.mxu1 %v706_v14  ;;  %v55_v10 = vld [vmem:[%s1044_s0 + $0x60] sm:$0xff] }
   0xd   :  { %664 = vmatpush3.bf16.msra.mxu0 %v703_v9 }
   0xe   :  { %665 = vmatprep.subr.bf16.mxu0 %v705_v12 }
  0x11   :  { %666 = vmatpush3.bf16.msra.mxu0 %v705_v12 }
  0x14   :  { %v708_v17 = vpop.eup %707 }
  0x15   :  { %v39_v18 = vmul.f32 %v708_v17, %v36_v15  ;;  %v57_v15 = vld [vmem:[%s1044_s0 + $0x70] sm:$0xff] }
  0x17   :  { %v800_v23 = vrot.slane %v39_v18, %v62_v16  ;;  %v41_v24 = vmul.f32 %v39_v18, %v31_v2 }
  0x19   :  { %151 = vrot.lane.b32.xlu0 %v800_v23, %s709_s15  ;;  %v42_v28 = vsub.f32 %v40_v19, %v41_v24  ;;  %v65_v29 = vmul.f32 %v800_v23, %v43_v20  ;;  %v66_v30 = vmul.f32 %v800_v23, %v44_v21  ;;  %v67_v31 = vmul.f32 %v800_v23, %v45_v22 }
  0x1a   :  { %v68_v34 = vmul.f32 %v800_v23, %v46_v25  ;;  %v69_v35 = vmul.f32 %v800_v23, %v47_v26  ;;  %v70_v36 = vmul.f32 %v800_v23, %v48_v27  ;;  %v71_v38 = vmul.f32 %v800_v23, %v49_v32 }
  0x1b   :  { %v85_v37 = vrot.slane %v42_v28, %v62_v16  ;;  %v72_v39 = vmul.f32 %v800_v23, %v50_v33  ;;  %v73_v58 = vmul.f32 %v800_v23, %v51_v46  ;;  %v74_v59 = vmul.f32 %v800_v23, %v52_v47  ;;  %v58_v16 = vld [vmem:[%s1044_s0 + $0x78] sm:$0xff] }
  0x1c   :  { %v75_v3 = vmul.f32 %v800_v23, %v53_v60  ;;  %v76_v4 = vmul.f32 %v800_v23, %v54_v61  ;;  %v77_v13 = vmul.f32 %v800_v23, %v55_v10  ;;  %v78_v14 = vmul.f32 %v800_v23, %v56_v11  ;;  %v146_v10 = vld [vmem:[%s1045_s1 + $0x58] sm:$0xff] }
  0x1d   :  { %170 = vrot.lane.b32.xlu0 %v85_v37, %s709_s15  ;;  %v87_v40 = vadd.f32 %v85_v37, %v65_v29  ;;  %v88_v41 = vadd.f32 %v85_v37, %v66_v30  ;;  %v89_v42 = vadd.f32 %v85_v37, %v67_v31  ;;  %v90_v43 = vadd.f32 %v85_v37, %v68_v34  ;;  %v136_v34 = vld [vmem:[%s1045_s1 + $0x8] sm:$0xff] }
  0x1e   :  { %v91_v44 = vadd.f32 %v85_v37, %v69_v35  ;;  %v92_v45 = vadd.f32 %v85_v37, %v70_v36  ;;  %v93_v54 = vadd.f32 %v85_v37, %v71_v38  ;;  %v94_v55 = vadd.f32 %v85_v37, %v72_v39  ;;  %v137_v35 = vld [vmem:[%s1045_s1 + $0x10] sm:$0xff]  ;;  %v138_v36 = vld [vmem:[%s1045_s1 + $0x18] sm:$0xff]  ;;  %v140_v38 = vld [vmem:[%s1045_s1 + $0x28] sm:$0xff] }
  0x1f   :  { %v103_v48 = vmax.f32 %v87_v40, 0.0  ;;  %v104_v49 = vmax.f32 %v88_v41, 0.0  ;;  %v105_v50 = vmax.f32 %v89_v42, 0.0  ;;  %v106_v51 = vmax.f32 %v90_v43, 0.0 }
  0x20   :  { %v107_v52 = vmax.f32 %v91_v44, 0.0  ;;  %v108_v53 = vmax.f32 %v92_v45, 0.0  ;;  %v95_v63 = vadd.f32 %v85_v37, %v73_v58  ;;  %v96_v0 = vadd.f32 %v85_v37, %v74_v59 }
  0x21   :  { %v119_v56 = vpack.c.bf16 %v104_v49, %v103_v48  ;;  %v120_v57 = vpack.c.bf16 %v106_v51, %v105_v50  ;;  %v109_v1 = vmax.f32 %v93_v54, 0.0  ;;  %v110_v2 = vmax.f32 %v94_v55, 0.0  ;;  %v141_v50 = vld [vmem:[%s1045_s1 + $0x30] sm:$0xff]  ;;  %v142_v51 = vld [vmem:[%s1045_s1 + $0x38] sm:$0xff]  ;;  %v143_v54 = vld [vmem:[%s1045_s1 + $0x40] sm:$0xff] }
  0x22   :  { %v121_v62 = vpack.c.bf16 %v108_v53, %v107_v52  ;;  %v111_v5 = vmax.f32 %v95_v63, 0.0  ;;  %v112_v6 = vmax.f32 %v96_v0, 0.0  ;;  %v97_v8 = vadd.f32 %v85_v37, %v75_v3  ;;  %v144_v55 = vld [vmem:[%s1045_s1 + $0x48] sm:$0xff] }
  0x23   :  { %667 = vmatprep.mubr.msk.bf16.mxu0 %vm375_vm0, %v119_v56  ;;  %v122_v7 = vpack.c.bf16 %v110_v2, %v109_v1  ;;  %v98_v9 = vadd.f32 %v85_v37, %v76_v4  ;;  %v99_v17 = vadd.f32 %v85_v37, %v77_v13  ;;  %v100_v18 = vadd.f32 %v85_v37, %v78_v14  ;;  %v147_v13 = vld [vmem:[%s1045_s1 + $0x60] sm:$0xff]  ;;  %v148_v14 = vld [vmem:[%s1045_s1 + $0x68] sm:$0xff] }
  0x24   :  { %668 = vmatmul.mubr.msk.bf16.vlgmr.msra.gmra.mrb[0].mxu0 %vm375_vm0, %v120_v57  ;;  %v123_v12 = vpack.c.bf16 %v112_v6, %v111_v5  ;;  %v113_v19 = vmax.f32 %v97_v8, 0.0  ;;  %v79_v21 = vmul.f32 %v800_v23, %v57_v15  ;;  %v80_v22 = vmul.f32 %v800_v23, %v58_v16  ;;  %v135_v23 = vld [vmem:[%s1045_s1] sm:$0xff] }
  0x25   :  { %671 = vmatprep.mubr.msk.bf16.mxu0 %vm375_vm0, %v121_v62  ;;  %v114_v20 = vmax.f32 %v98_v9, 0.0  ;;  %v115_v24 = vmax.f32 %v99_v17, 0.0  ;;  %v116_v25 = vmax.f32 %v100_v18, 0.0  ;;  %v145_v9 = vld [vmem:[%s1045_s1 + $0x50] sm:$0xff] }
  0x26   :  { %v101_v27 = vadd.f32 %v85_v37, %v79_v21  ;;  %v102_v28 = vadd.f32 %v85_v37, %v80_v22  ;;  %v139_v37 = vld [vmem:[%s1045_s1 + $0x20] sm:$0xff] }
  0x27   :  { %v124_v26 = vpack.c.bf16 %v114_v20, %v113_v19  ;;  %v125_v29 = vpack.c.bf16 %v116_v25, %v115_v24 }
  0x28   :  { %v117_v30 = vmax.f32 %v101_v27, 0.0  ;;  %v118_v31 = vmax.f32 %v102_v28, 0.0  ;;  %v149_v28 = vld [vmem:[%s1045_s1 + $0x70] sm:$0xff] }
  0x2a   :  { %v126_v32 = vpack.c.bf16 %v118_v31, %v117_v30 }
  0x2c   :  { %672 = vmatmul.mubr.msk.bf16.gmra.mrb[4].mxu0 %vm375_vm0, %v122_v7 }
  0x2d   :  { %675 = vmatprep.mubr.msk.bf16.mxu0 %vm375_vm0, %v123_v12 }
  0x34   :  { %676 = vmatmul.mubr.msk.bf16.gmra.mrb[8].mxu0 %vm375_vm0, %v124_v26 }
  0x35   :  { %679 = vmatprep.mubr.msk.bf16.mxu0 %vm375_vm0, %v125_v29  ;;  %v150_v29 = vld [vmem:[%s1045_s1 + $0x78] sm:$0xff] }
  0x3c   :  { %680 = vmatmul.mubr.msk.bf16.gmra.mrb[12].mxu0 %vm375_vm0, %v126_v32 }
  0x8b   :  { %v869_v33 = vpop.permute.xlu0 %151 }
  0x8c   :  { %v154_v39 = vmul.f32 %v869_v33, %v135_v23  ;;  %v155_v40 = vmul.f32 %v869_v33, %v136_v34  ;;  %v156_v41 = vmul.f32 %v869_v33, %v137_v35  ;;  %v157_v42 = vmul.f32 %v869_v33, %v138_v36 }
  0x8d   :  { %v158_v44 = vmul.f32 %v869_v33, %v139_v37  ;;  %v159_v45 = vmul.f32 %v869_v33, %v140_v38  ;;  %v160_v62 = vmul.f32 %v869_v33, %v141_v50  ;;  %v161_v63 = vmul.f32 %v869_v33, %v142_v51 }
  0x8e   :  { %v162_v2 = vmul.f32 %v869_v33, %v143_v54  ;;  %v163_v3 = vmul.f32 %v869_v33, %v144_v55  ;;  %v164_v17 = vmul.f32 %v869_v33, %v145_v9  ;;  %v165_v18 = vmul.f32 %v869_v33, %v146_v10 }
  0x8f   :  { %v890_v43 = vpop.permute.xlu0 %170  ;;  %v166_v19 = vmul.f32 %v869_v33, %v147_v13  ;;  %v167_v20 = vmul.f32 %v869_v33, %v148_v14  ;;  %v168_v34 = vmul.f32 %v869_v33, %v149_v28  ;;  %v169_v35 = vmul.f32 %v869_v33, %v150_v29 }
  0x90   :  { %v173_v46 = vadd.f32 %v890_v43, %v154_v39  ;;  %v174_v47 = vadd.f32 %v890_v43, %v155_v40  ;;  %v175_v48 = vadd.f32 %v890_v43, %v156_v41  ;;  %v176_v49 = vadd.f32 %v890_v43, %v157_v42 }
  0x91   :  { %v177_v52 = vadd.f32 %v890_v43, %v158_v44  ;;  %v178_v53 = vadd.f32 %v890_v43, %v159_v45  ;;  %v179_v4 = vadd.f32 %v890_v43, %v160_v62  ;;  %v180_v5 = vadd.f32 %v890_v43, %v161_v63 }
  0x92   :  { %v189_v56 = vmax.f32 %v173_v46, 0.0  ;;  %v190_v57 = vmax.f32 %v174_v47, 0.0  ;;  %v191_v58 = vmax.f32 %v175_v48, 0.0  ;;  %v192_v59 = vmax.f32 %v176_v49, 0.0 }
  0x93   :  { %v193_v60 = vmax.f32 %v177_v52, 0.0  ;;  %v194_v61 = vmax.f32 %v178_v53, 0.0  ;;  %v181_v7 = vadd.f32 %v890_v43, %v162_v2  ;;  %v182_v8 = vadd.f32 %v890_v43, %v163_v3 }
  0x94   :  { %v205_v0 = vpack.c.bf16 %v190_v57, %v189_v56  ;;  %v206_v1 = vpack.c.bf16 %v192_v59, %v191_v58  ;;  %v195_v11 = vmax.f32 %v179_v4, 0.0  ;;  %v196_v12 = vmax.f32 %v180_v5, 0.0 }
  0x95   :  { %v207_v6 = vpack.c.bf16 %v194_v61, %v193_v60  ;;  %v197_v15 = vmax.f32 %v181_v7, 0.0  ;;  %v198_v16 = vmax.f32 %v182_v8, 0.0  ;;  %v183_v22 = vadd.f32 %v890_v43, %v164_v17 }
  0x96   :  { %643 = vmatprep.mubr.msk.bf16.mxu1 %vm229_vm1, %v205_v0  ;;  %v208_v21 = vpack.c.bf16 %v196_v12, %v195_v11  ;;  %v184_v24 = vadd.f32 %v890_v43, %v165_v18  ;;  %v185_v26 = vadd.f32 %v890_v43, %v166_v19  ;;  %v186_v27 = vadd.f32 %v890_v43, %v167_v20 }
  0x97   :  { %644 = vmatmul.mubr.msk.bf16.vlgmr.msra.gmra.mrb[0].mxu1 %vm229_vm1, %v206_v1  ;;  %v209_v25 = vpack.c.bf16 %v198_v16, %v197_v15  ;;  %v199_v30 = vmax.f32 %v183_v22, 0.0  ;;  %v187_v37 = vadd.f32 %v890_v43, %v168_v34  ;;  %v188_v38 = vadd.f32 %v890_v43, %v169_v35 }
  0x98   :  { %647 = vmatprep.mubr.msk.bf16.mxu1 %vm229_vm1, %v207_v6  ;;  %v200_v31 = vmax.f32 %v184_v24, 0.0  ;;  %v201_v32 = vmax.f32 %v185_v26, 0.0  ;;  %v202_v23 = vmax.f32 %v186_v27, 0.0  ;;  %v710_v53 = vmov 0.0  }
  0x99   :  { %v203_v40 = vmax.f32 %v187_v37, 0.0  ;;  %v204_v41 = vmax.f32 %v188_v38, 0.0  ;;  %517 = vst [vmem:[%s1046_s8] sm:$0x1] %v710_v53  ;;  %518 = vst [vmem:[%s1047_s9] sm:$0x1] %v710_v53 }
  0x9a   :  { %v210_v36 = vpack.c.bf16 %v200_v31, %v199_v30  ;;  %v211_v39 = vpack.c.bf16 %v202_v23, %v201_v32 }
  0x9b   :  { %v212_v42 = vpack.c.bf16 %v204_v41, %v203_v40 }
  0x9f   :  { %648 = vmatmul.mubr.msk.bf16.gmra.mrb[4].mxu1 %vm229_vm1, %v208_v21 }
  0xa0   :  { %651 = vmatprep.mubr.msk.bf16.mxu1 %vm229_vm1, %v209_v25 }
  0xa7   :  { %652 = vmatmul.mubr.msk.bf16.gmra.mrb[8].mxu1 %vm229_vm1, %v210_v36 }
  0xa8   :  { %655 = vmatprep.mubr.msk.bf16.mxu1 %vm229_vm1, %v211_v39 }
  0xaf   :  { %656 = vmatmul.mubr.msk.bf16.gmra.mrb[12].mxu1 %vm229_vm1, %v212_v42 }
  0xf7   :  { %v669_v44 = vpop.f32.mrb[0].mxu0 }
  0xf8   :  { %v434_v45 = vpop.f32.mrb[1].mxu0 }
  0xf9   :  { %v670_v46 = vpop.f32.mrb[2].mxu0 }
  0xfa   :  { %v437_v47 = vpop.f32.mrb[3].mxu0 }
  0xff   :  { %v673_v33 = vpop.f32.mrb[4].mxu0 }
 0x100   :  { %v450_v48 = vpop.f32.mrb[5].mxu0 }
 0x101   :  { %v674_v49 = vpop.f32.mrb[6].mxu0 }
 0x102   :  { %v453_v50 = vpop.f32.mrb[7].mxu0 }
 0x107   :  { %v677_v51 = vpop.f32.mrb[8].mxu0 }
 0x108   :  { %v466_v43 = vpop.f32.mrb[9].mxu0 }
 0x109   :  { %v678_v52 = vpop.f32.mrb[10].mxu0 }
 0x10a   :  { %v964_v54 = vpop.f32.mrb[11].mxu0 }
 0x10f   :  { %v966_v55 = vpop.f32.mrb[12].mxu0 }
 0x110   :  { %v968_v56 = vpop.f32.mrb[13].mxu0 }
 0x111   :  { %v970_v57 = vpop.f32.mrb[14].mxu0 }
 0x112   :  { %v972_v58 = vpop.f32.mrb[15].mxu0 }
 0x16a   :  { %v645_v59 = vpop.f32.mrb[0].mxu1 }
 0x16b   :  { %v443_v60 = vadd.f32 %v669_v44, %v645_v59  ;;  %v288_v61 = vpop.f32.mrb[1].mxu1 }
 0x16c   :  { %v435_v62 = vadd.f32 %v434_v45, %v288_v61  ;;  %v646_v63 = vpop.f32.mrb[2].mxu1 }
 0x16d   :  { %499 = vst [vmem:[%s1048_s7 + $0x10] sm:$0xff] %v443_v60  ;;  %v446_v0 = vadd.f32 %v670_v46, %v646_v63  ;;  %v291_v1 = vpop.f32.mrb[3].mxu1  ;;  %v546_v6 = vmul.f32 %v443_v60, %v443_v60 }
 0x16e   :  { %497 = vst [vmem:[%s1048_s7] sm:$0xff] %v435_v62  ;;  %v438_v2 = vadd.f32 %v437_v47, %v291_v1  ;;  %v544_v3 = vmul.f32 %v435_v62, %v435_v62 }
 0x16f   :  { %500 = vst [vmem:[%s1048_s7 + $0x18] sm:$0xff] %v446_v0  ;;  %v547_v12 = vmul.f32 %v446_v0, %v446_v0 }
 0x170   :  { %498 = vst [vmem:[%s1048_s7 + $0x8] sm:$0xff] %v438_v2  ;;  %v520_v4 = vadd.f32 %v438_v2, %v435_v62  ;;  %v545_v5 = vmul.f32 %v438_v2, %v438_v2 }
 0x172   :  { %v521_v7 = vadd.f32 %v520_v4, %v443_v60  ;;  %v560_v8 = vadd.f32 %v545_v5, %v544_v3  ;;  %v649_v9 = vpop.f32.mrb[4].mxu1 }
 0x173   :  { %v459_v10 = vadd.f32 %v673_v33, %v649_v9  ;;  %v304_v11 = vpop.f32.mrb[5].mxu1 }
 0x174   :  { %v561_v13 = vadd.f32 %v560_v8, %v546_v6  ;;  %v451_v14 = vadd.f32 %v450_v48, %v304_v11  ;;  %v522_v15 = vadd.f32 %v521_v7, %v446_v0  ;;  %v650_v16 = vpop.f32.mrb[6].mxu1 }
 0x175   :  { %503 = vst [vmem:[%s1048_s7 + $0x30] sm:$0xff] %v459_v10  ;;  %v462_v17 = vadd.f32 %v674_v49, %v650_v16  ;;  %v307_v18 = vpop.f32.mrb[7].mxu1  ;;  %v550_v27 = vmul.f32 %v459_v10, %v459_v10 }
 0x176   :  { %501 = vst [vmem:[%s1048_s7 + $0x20] sm:$0xff] %v451_v14  ;;  %v523_v19 = vadd.f32 %v522_v15, %v451_v14  ;;  %v548_v20 = vmul.f32 %v451_v14, %v451_v14  ;;  %v562_v21 = vadd.f32 %v561_v13, %v547_v12  ;;  %v454_v22 = vadd.f32 %v453_v50, %v307_v18  ;;  %v519_v18 = vld [vmem:[%s1046_s8] sm:$0x1] }
 0x177   :  { %504 = vst [vmem:[%s1048_s7 + $0x38] sm:$0xff] %v462_v17  ;;  %v551_v23 = vmul.f32 %v462_v17, %v462_v17 }
 0x178   :  { %v563_v24 = vadd.f32 %v562_v21, %v548_v20  ;;  %502 = vst [vmem:[%s1048_s7 + $0x28] sm:$0xff] %v454_v22  ;;  %v524_v25 = vadd.f32 %v523_v19, %v454_v22  ;;  %v549_v26 = vmul.f32 %v454_v22, %v454_v22  ;;  %v543_v21 = vld [vmem:[%s1047_s9] sm:$0x1] }
 0x17a   :  { %v525_v28 = vadd.f32 %v524_v25, %v459_v10  ;;  %v564_v29 = vadd.f32 %v563_v24, %v549_v26  ;;  %v653_v30 = vpop.f32.mrb[8].mxu1 }
 0x17b   :  { %v475_v31 = vadd.f32 %v677_v51, %v653_v30  ;;  %v320_v32 = vpop.f32.mrb[9].mxu1 }
 0x17c   :  { %v565_v34 = vadd.f32 %v564_v29, %v550_v27  ;;  %v467_v35 = vadd.f32 %v466_v43, %v320_v32  ;;  %v526_v36 = vadd.f32 %v525_v28, %v462_v17  ;;  %v654_v37 = vpop.f32.mrb[10].mxu1 }
 0x17d   :  { %507 = vst [vmem:[%s1048_s7 + $0x50] sm:$0xff] %v475_v31  ;;  %v478_v38 = vadd.f32 %v678_v52, %v654_v37  ;;  %v323_v39 = vpop.f32.mrb[11].mxu1  ;;  %v554_v33 = vmul.f32 %v475_v31, %v475_v31 }
 0x17e   :  { %505 = vst [vmem:[%s1048_s7 + $0x40] sm:$0xff] %v467_v35  ;;  %v527_v40 = vadd.f32 %v526_v36, %v467_v35  ;;  %v552_v41 = vmul.f32 %v467_v35, %v467_v35  ;;  %v566_v42 = vadd.f32 %v565_v34, %v551_v23  ;;  %v470_v44 = vadd.f32 %v964_v54, %v323_v39 }
 0x17f   :  { %508 = vst [vmem:[%s1048_s7 + $0x58] sm:$0xff] %v478_v38  ;;  %v555_v52 = vmul.f32 %v478_v38, %v478_v38 }
 0x180   :  { %v567_v45 = vadd.f32 %v566_v42, %v552_v41  ;;  %506 = vst [vmem:[%s1048_s7 + $0x48] sm:$0xff] %v470_v44  ;;  %v528_v46 = vadd.f32 %v527_v40, %v470_v44  ;;  %v553_v47 = vmul.f32 %v470_v44, %v470_v44 }
 0x182   :  { %v529_v48 = vadd.f32 %v528_v46, %v475_v31  ;;  %v568_v49 = vadd.f32 %v567_v45, %v553_v47  ;;  %v657_v50 = vpop.f32.mrb[12].mxu1 }
 0x183   :  { %v491_v51 = vadd.f32 %v966_v55, %v657_v50  ;;  %v336_v43 = vpop.f32.mrb[13].mxu1 }
 0x184   :  { %v569_v53 = vadd.f32 %v568_v49, %v554_v33  ;;  %v483_v54 = vadd.f32 %v968_v56, %v336_v43  ;;  %v530_v59 = vadd.f32 %v529_v48, %v478_v38  ;;  %v658_v60 = vpop.f32.mrb[14].mxu1 }
 0x185   :  { %511 = vst [vmem:[%s1048_s7 + $0x70] sm:$0xff] %v491_v51  ;;  %v494_v61 = vadd.f32 %v970_v57, %v658_v60  ;;  %v339_v62 = vpop.f32.mrb[15].mxu1  ;;  %v558_v3 = vmul.f32 %v491_v51, %v491_v51 }
 0x186   :  { %509 = vst [vmem:[%s1048_s7 + $0x60] sm:$0xff] %v483_v54  ;;  %v531_v63 = vadd.f32 %v530_v59, %v483_v54  ;;  %v556_v55 = vmul.f32 %v483_v54, %v483_v54  ;;  %v570_v0 = vadd.f32 %v569_v53, %v555_v52  ;;  %v486_v1 = vadd.f32 %v972_v58, %v339_v62 }
 0x187   :  { %512 = vst [vmem:[%s1048_s7 + $0x78] sm:$0xff] %v494_v61  ;;  %v559_v6 = vmul.f32 %v494_v61, %v494_v61 }
 0x188   :  { %v571_v56 = vadd.f32 %v570_v0, %v556_v55  ;;  %510 = vst [vmem:[%s1048_s7 + $0x68] sm:$0xff] %v486_v1  ;;  %v532_v57 = vadd.f32 %v531_v63, %v486_v1  ;;  %v557_v2 = vmul.f32 %v486_v1, %v486_v1 }
 0x18a   :  { %v533_v4 = vadd.f32 %v532_v57, %v491_v51  ;;  %v572_v5 = vadd.f32 %v571_v56, %v557_v2 }
 0x18c   :  { %v534_v7 = vadd.f32 %v533_v4, %v494_v61  ;;  %v573_v8 = vadd.f32 %v572_v5, %v558_v3 }
 0x18e   :  { %v535_v9 = vrot.slane %v534_v7, 4  ;;  %v574_v10 = vadd.f32 %v573_v8, %v559_v6 }
 0x190   :  { %v536_v58 = vadd.f32 %v535_v9, %v534_v7  ;;  %v575_v11 = vrot.slane %v574_v10, 4 }
 0x192   :  { %v537_v12 = vrot.slane %v536_v58, 2  ;;  %v576_v13 = vadd.f32 %v575_v11, %v574_v10 }
 0x194   :  { %v538_v14 = vadd.f32 %v537_v12, %v536_v58  ;;  %v577_v15 = vrot.slane %v576_v13, 2 }
 0x196   :  { %v539_v16 = vrot.slane %v538_v14, 1  ;;  %v578_v17 = vadd.f32 %v577_v15, %v576_v13 }
 0x198   :  { %v540_v19 = vadd.f32 %v539_v16, %v538_v14  ;;  %v579_v20 = vrot.slane %v578_v17, 1 }
 0x19a   :  { %v541_v22 = vadd.f32 %v540_v19, %v519_v18  ;;  %v580_v24 = vadd.f32 %v579_v20, %v578_v17 }
 0x19c   :  { %542 = vst [vmem:[%s1046_s8] sm:$0x1] %v541_v22  ;;  %v581_v25 = vadd.f32 %v580_v24, %v543_v21 }
 0x19e   :  { %582 = vst [vmem:[%s1047_s9] sm:$0x1] %v581_v25 }

// kernel: _lambda_.26
= control target key start
LH: loop header
LB: loop body
LE: loop exit
PB: predicated region body
PF: predicated region fallthrough
CT: control target
= control target key end

     0   :  { %s2441_s27 = smov 0   ;;  %s2929_s0 = inlined_call_operand.vmem [shape: f32[2,8,8,128], index: 0, kind: input, shape index: {}]   ;;  %s2930_s1 = inlined_call_operand.vmem [shape: f32[1,128], index: 1, kind: input, shape index: {}]   ;;  %s2931_s2 = inlined_call_operand.vmem [shape: f32[1,128], index: 2, kind: input, shape index: {}]   ;;  %s2932_s3 = inlined_call_operand.vmem [shape: f32[1,128], index: 3, kind: input, shape index: {}]   ;;  %s2933_s4 = inlined_call_operand.vmem [shape: f32[1,128], index: 4, kind: input, shape index: {}]   ;;  %s2934_s5 = inlined_call_operand.vmem [shape: bf16[9,128,32], index: 5, kind: input, shape index: {}]   ;;  %s2935_s6 = inlined_call_operand.vmem [shape: f32[2,8,8,32], index: 6, kind: output, shape index: {0}]   ;;  %s2936_s7 = inlined_call_operand.vmem [shape: f32[1,32], index: 7, kind: output, shape index: {1}]   ;;  %s2937_s8 = inlined_call_operand.vmem [shape: f32[1,32], index: 8, kind: output, shape index: {2}]  }
   0x1 LB: > { %s1704_s28 = sadd.s32 4294967295, %s2378_s27   ;;  %p1708_p0 = scmp.ge.s32.totalorder %s2378_s27, 1  ;;  %s2378_s27 = sphi %s2441_s27, %s19_s27  }
   0x2   : > { %p257_p1 = scmp.lt.s32.totalorder %s2378_s27, 3 }
   0x4   : > { %p258_p2 = pnand %p1708_p0, %p257_p1 }
   0x5   : > { %p291_p3 = scmp.lt.s32.totalorder (!%p258_p2), %s1704_s28, 1  ;;  %p1713_p4 = scmp.ne.s32.totalorder (!%p258_p2), %s1704_s28, 0 }
   0x6   : > { %261 = sbr.rel (%p258_p2) target bundleno = 474 (0x1da), region = 44 }
   0xd   : > { %s292_s29 = scalar_select %p291_p3, %s1704_s28, 1 }
   0xe   : > { %305 = sbr.rel (%p1713_p4) target bundleno = 26 (0x1a), region = 48  ;;  %vm326_vm0 = vcmask (!%p1713_p4), 253952   ;;  %v2392_v0 = vmov (!%p1713_p4), 0   ;;  %v2393_v1 = vmov (!%p1713_p4), 0.0  }
   0xf   : > { %s1943_s30 = sshll.u32 %s292_s29, 6  ;;  %306 = vst [vmem:[#allocation2] sm:$0xf] (!%p1713_p4), %v2392_v0  ;;  %307 = vst [vmem:[#allocation2 + $0x4] sm:$0x1] (!%p1713_p4), %v2392_v0 }
  0x10   : > { %s2452_s11 = scalar_lea.vmem %s2929_s0, %s1943_s30  ;;  %s2457_s14 = scalar_lea.vmem %s2935_s6, %s1943_s30  ;;  %308 = vst [vmem:[#allocation2 + $0x8] sm:$0xf] (!%p1713_p4), %v2392_v0  ;;  %309 = vst [vmem:[#allocation2 + $0xc] sm:$0x1] (!%p1713_p4), %v2392_v0 }
  0x11   : > { %310 = vst [vmem:[#allocation2 + $0x10] sm:$0xf] (!%p1713_p4), %v2392_v0  ;;  %311 = vst [vmem:[#allocation2 + $0x14] sm:$0x1] (!%p1713_p4), %v2392_v0 }
  0x12   : > { %312 = vst [vmem:[#allocation2 + $0x18] sm:$0xf] (!%p1713_p4), %v2392_v0  ;;  %313 = vst [vmem:[#allocation2 + $0x1c] sm:$0x1] (!%p1713_p4), %v2392_v0 }
  0x13   : > { %314 = vst [vmem:[#allocation2 + $0x20] sm:$0xf] (!%p1713_p4), %v2392_v0  ;;  %315 = vst [vmem:[#allocation2 + $0x24] sm:$0x1] (!%p1713_p4), %v2392_v0 }
  0x14   : > { %316 = vst [vmem:[#allocation2 + $0x28] sm:$0xf] (!%p1713_p4), %v2392_v0  ;;  %317 = vst [vmem:[#allocation2 + $0x2c] sm:$0x1] (!%p1713_p4), %v2392_v0 }
  0x15   : > { %318 = vst [vmem:[#allocation2 + $0x30] sm:$0xf] %v2392_v0  ;;  %319 = vst [vmem:[#allocation2 + $0x34] sm:$0x1] %v2392_v0 }
  0x16   : > { %320 = vst [vmem:[#allocation2 + $0x38] sm:$0xf] %v2392_v0  ;;  %321 = vst [vmem:[#allocation2 + $0x3c] sm:$0x1] %v2392_v0 }
  0x17   : > { %322 = vst [vmem:[#allocation2 + $0x40] sm:$0xf] %v2392_v0  ;;  %323 = vst [vmem:[#allocation2 + $0x44] sm:$0x1] %v2392_v0 }
  0x18   : > { %324 = vst [vmem:[#allocation2 + $0x48] sm:$0xf] %v2392_v0  ;;  %325 = vst [vmem:[#allocation2 + $0x4c] sm:$0x1] %v2392_v0 }
  0x19   : > { %327 = vst.msk [vmem:[%s2936_s7] sm:$0x1] %vm326_vm0, %v2393_v1  ;;  %328 = vst.msk [vmem:[%s2937_s8] sm:$0x1] %vm326_vm0, %v2393_v1 }
  0x1a PF: > { %v329_v2 = vld [vmem:[%s2932_s3] sm:$0x1]  ;;  %v351_v9 = vlaneseq  ;;  %v343_v17 = vld [vmem:[%s2452_s11 + $0x8] sm:$0xff]  ;;  %v344_v18 = vld [vmem:[%s2452_s11 + $0x10] sm:$0xff]  ;;  %vm499_vm1 = vcmask 1043456   ;;  %vm505_vm3 = vcmask 1040384  }
  0x1b   : > { %v331_v3 = vld [vmem:[%s2933_s4] sm:$0x1]  ;;  %v330_v4 = vmul.f32 0.0078125, %v329_v2  ;;  %v345_v19 = vld [vmem:[%s2452_s11 + $0x18] sm:$0xff]  ;;  %v347_v23 = vld [vmem:[%s2452_s11 + $0x28] sm:$0xff]  ;;  %s2551_s28 = smov 0  }
  0x1c   : > { %v332_v5 = vmul.f32 0.0078125, %v331_v3  ;;  %v352_v10 = vshrl.u32 %v351_v9, 7  ;;  %v335_v11 = vld [vmem:[%s2930_s1] sm:$0x1]  ;;  %v348_v24 = vld [vmem:[%s2452_s11 + $0x30] sm:$0xff]  ;;  %v349_v25 = vld [vmem:[%s2452_s11 + $0x38] sm:$0xff] }
  0x1d   : > { %v333_v6 = vmul.f32 %v330_v4, %v330_v4  ;;  %v339_v15 = vld [vmem:[%s2931_s2] sm:$0x1]  ;;  %vm500_vm2 = vsmask.f32 7938  ;;  %vm506_vm4 = vsmask.f32 256 }
  0x1e   : > { %v353_v12 = vsub.s32 0, %v352_v10  ;;  %v342_v16 = vld [vmem:[%s2452_s11] sm:$0xff]  ;;  %v502_v0 = vld [vmem:[#allocation2 + $0x8] sm:$0xf]  ;;  %v508_v1 = vld [vmem:[#allocation2 + $0xc] sm:$0x1] }
  0x1f   : > { %v334_v7 = vsub.f32 %v332_v5, %v333_v6  ;;  %v346_v22 = vld [vmem:[%s2452_s11 + $0x20] sm:$0xff]  ;;  %v511_v2 = vld [vmem:[#allocation2 + $0x10] sm:$0xf]  ;;  %v514_v3 = vld [vmem:[#allocation2 + $0x14] sm:$0x1] }
  0x20   : > { %vm2497_vm5 = vmand %vm499_vm1, %vm500_vm2 }
  0x21   : > { %v336_v8 = vadd.f32 1e-05, %v334_v7  ;;  %vm2505_vm6 = vmand %vm505_vm3, %vm506_vm4 }
  0x23   : > { %2280 = vrsqrt.f32 %v336_v8 }
  0x2d   : > { %v2281_v13 = vpop.eup %2280 }
  0x2e   : > { %v338_v14 = vmul.f32 %v2281_v13, %v335_v11  ;;  %v517_v11 = vld [vmem:[#allocation2 + $0x18] sm:$0xf] }
  0x30   : > { %v340_v20 = vmul.f32 %v338_v14, %v330_v4  ;;  %v354_v21 = vrot.slane %v338_v14, %v353_v12 }
  0x32   : > { %v341_v26 = vsub.f32 %v339_v15, %v340_v20  ;;  %v356_v27 = vmul.f32 %v354_v21, %v342_v16  ;;  %v357_v28 = vmul.f32 %v354_v21, %v343_v17  ;;  %v358_v29 = vmul.f32 %v354_v21, %v344_v18  ;;  %v520_v16 = vld [vmem:[#allocation2 + $0x1c] sm:$0x1] }
  0x33   : > { %v359_v30 = vmul.f32 %v354_v21, %v345_v19  ;;  %v360_v31 = vmul.f32 %v354_v21, %v346_v22  ;;  %v361_v32 = vmul.f32 %v354_v21, %v347_v23  ;;  %v362_v33 = vmul.f32 %v354_v21, %v348_v24  ;;  %v523_v24 = vld [vmem:[#allocation2 + $0x20] sm:$0xf] }
  0x34   : > { %v368_v34 = vrot.slane %v341_v26, %v353_v12  ;;  %v363_v35 = vmul.f32 %v354_v21, %v349_v25  ;;  %v526_v25 = vld [vmem:[#allocation2 + $0x24] sm:$0x1] }
  0x36   : > { %v370_v36 = vadd.f32 %v368_v34, %v356_v27  ;;  %v371_v37 = vadd.f32 %v368_v34, %v357_v28  ;;  %v372_v38 = vadd.f32 %v368_v34, %v358_v29  ;;  %v373_v39 = vadd.f32 %v368_v34, %v359_v30 }
  0x37   : > { %v374_v40 = vadd.f32 %v368_v34, %v360_v31  ;;  %v375_v41 = vadd.f32 %v368_v34, %v361_v32  ;;  %v376_v42 = vadd.f32 %v368_v34, %v362_v33  ;;  %v377_v43 = vadd.f32 %v368_v34, %v363_v35 }
  0x38   : > { %v378_v44 = vmax.f32 %v370_v36, 0.0  ;;  %v379_v45 = vmax.f32 %v371_v37, 0.0  ;;  %v380_v46 = vmax.f32 %v372_v38, 0.0  ;;  %v381_v47 = vmax.f32 %v373_v39, 0.0  ;;  %v529_v38 = vld [vmem:[#allocation2 + $0x28] sm:$0xf] }
  0x39   : > { %v382_v48 = vmax.f32 %v374_v40, 0.0  ;;  %v383_v49 = vmax.f32 %v375_v41, 0.0  ;;  %v384_v50 = vmax.f32 %v376_v42, 0.0  ;;  %v385_v51 = vmax.f32 %v377_v43, 0.0  ;;  %v532_v39 = vld [vmem:[#allocation2 + $0x2c] sm:$0x1] }
  0x3a   : > { %v1945_v52 = vpack.c.bf16 %v378_v44, %v378_v44  ;;  %v1946_v53 = vpack.c.bf16 %v379_v45, %v379_v45  ;;  %v1947_v54 = vpack.c.bf16 %v380_v46, %v380_v46  ;;  %v1948_v55 = vpack.c.bf16 %v381_v47, %v381_v47  ;;  %v535_v42 = vld [vmem:[#allocation2 + $0x30] sm:$0xf]  ;;  %v538_v44 = vld [vmem:[#allocation2 + $0x34] sm:$0x1] }
  0x3b   : > { %v2487_v56 = vpack.c.bf16 %v382_v48, %v382_v48  ;;  %v2489_v57 = vpack.c.bf16 %v383_v49, %v383_v49  ;;  %v2491_v58 = vpack.c.bf16 %v384_v50, %v384_v50  ;;  %v2493_v59 = vpack.c.bf16 %v385_v51, %v385_v51 }
  0x3c   : > { %v419_v60 = vshrl.u32 %v1945_v52, 16  ;;  %v422_v61 = vshll.u32 %v1945_v52, 16  ;;  %v427_v62 = vshrl.u32 %v1946_v53, 16  ;;  %v430_v63 = vshll.u32 %v1946_v53, 16  ;;  %v541_v53 = vld [vmem:[#allocation2 + $0x38] sm:$0xf] }
  0x3d   : > { %v435_v4 = vshrl.u32 %v1947_v54, 16  ;;  %v438_v5 = vshll.u32 %v1947_v54, 16  ;;  %v443_v6 = vshrl.u32 %v1948_v55, 16  ;;  %v446_v7 = vshll.u32 %v1948_v55, 16 }
  0x3e   : > { %v421_v8 = vrot.slane %v419_v60, 7  ;;  %v429_v10 = vrot.slane %v427_v62, 7  ;;  %v451_v12 = vshrl.u32 %v2487_v56, 16  ;;  %v454_v13 = vshll.u32 %v2487_v56, 16  ;;  %v547_v60 = vld [vmem:[#allocation2 + $0x40] sm:$0xf] }
  0x3f   : > { %v437_v15 = vrot.slane %v435_v4, 7  ;;  %v445_v17 = vrot.slane %v443_v6, 7  ;;  %v459_v18 = vshrl.u32 %v2489_v57, 16  ;;  %v462_v19 = vshll.u32 %v2489_v57, 16 }
  0x40   : > { %v424_v20 = vor.u32 %v422_v61, %v421_v8  ;;  %v425_v21 = vrot.slane %v421_v8, 4  ;;  %v432_v22 = vor.u32 %v430_v63, %v429_v10  ;;  %v433_v23 = vrot.slane %v429_v10, 4  ;;  %v550_v61 = vld [vmem:[#allocation2 + $0x44] sm:$0x1] }
  0x41   : > { %v440_v26 = vor.u32 %v438_v5, %v437_v15  ;;  %v441_v27 = vrot.slane %v437_v15, 4  ;;  %v448_v28 = vor.u32 %v446_v7, %v445_v17  ;;  %v449_v29 = vrot.slane %v445_v17, 4 }
  0x42   : > { %v503_v30 = vsel %vm2497_vm5, %v424_v20, %v502_v0  ;;  %v509_v31 = vsel %vm2505_vm6, %v425_v21, %v508_v1  ;;  %v512_v32 = vsel %vm2497_vm5, %v432_v22, %v511_v2  ;;  %v515_v33 = vsel %vm2505_vm6, %v433_v23, %v514_v3 }
  0x43   : > { %504 = vst [vmem:[#allocation2 + $0x8] sm:$0xf] %v503_v30  ;;  %510 = vst [vmem:[#allocation2 + $0xc] sm:$0x1] %v509_v31  ;;  %v518_v34 = vsel %vm2497_vm5, %v440_v26, %v517_v11  ;;  %v521_v35 = vsel %vm2505_vm6, %v441_v27, %v520_v16  ;;  %v524_v36 = vsel %vm2497_vm5, %v448_v28, %v523_v24  ;;  %v453_v40 = vrot.slane %v451_v12, 7 }
  0x44   : > { %513 = vst [vmem:[#allocation2 + $0x10] sm:$0xf] %v512_v32  ;;  %516 = vst [vmem:[#allocation2 + $0x14] sm:$0x1] %v515_v33  ;;  %v527_v37 = vsel %vm2505_vm6, %v449_v29, %v526_v25  ;;  %v461_v41 = vrot.slane %v459_v18, 7  ;;  %v467_v43 = vshrl.u32 %v2491_v58, 16 }
  0x45   : > { %519 = vst [vmem:[#allocation2 + $0x18] sm:$0xf] %v518_v34  ;;  %522 = vst [vmem:[#allocation2 + $0x1c] sm:$0x1] %v521_v35  ;;  %v470_v45 = vshll.u32 %v2491_v58, 16  ;;  %v475_v46 = vshrl.u32 %v2493_v59, 16  ;;  %v456_v48 = vor.u32 %v454_v13, %v453_v40 }
  0x46   : > { %525 = vst [vmem:[#allocation2 + $0x20] sm:$0xf] %v524_v36  ;;  %528 = vst [vmem:[#allocation2 + $0x24] sm:$0x1] %v527_v37  ;;  %v478_v47 = vshll.u32 %v2493_v59, 16  ;;  %v457_v49 = vrot.slane %v453_v40, 4  ;;  %v464_v50 = vor.u32 %v462_v19, %v461_v41 }
  0x47   : > { %v465_v51 = vrot.slane %v461_v41, 4  ;;  %v469_v52 = vrot.slane %v467_v43, 7  ;;  %v477_v54 = vrot.slane %v475_v46, 7  ;;  %v530_v55 = vsel %vm2497_vm5, %v456_v48, %v529_v38  ;;  %v544_v59 = vld [vmem:[#allocation2 + $0x3c] sm:$0x1] }
  0x48   : > { %v533_v56 = vsel %vm2505_vm6, %v457_v49, %v532_v39  ;;  %v536_v57 = vsel %vm2497_vm5, %v464_v50, %v535_v42  ;;  %531 = vst [vmem:[#allocation2 + $0x28] sm:$0xf] %v530_v55  ;;  %v2547_v6 = vmov 0.0   ;;  %v2549_v7 = vmov 0.0  }
  0x49   : > { %v539_v58 = vsel %vm2505_vm6, %v465_v51, %v538_v44  ;;  %534 = vst [vmem:[#allocation2 + $0x2c] sm:$0x1] %v533_v56  ;;  %537 = vst [vmem:[#allocation2 + $0x30] sm:$0xf] %v536_v57  ;;  %v472_v62 = vor.u32 %v470_v45, %v469_v52  ;;  %v473_v63 = vrot.slane %v469_v52, 4  ;;  %v480_v0 = vor.u32 %v478_v47, %v477_v54 }
  0x4a   : > { %540 = vst [vmem:[#allocation2 + $0x34] sm:$0x1] %v539_v58  ;;  %v481_v1 = vrot.slane %v477_v54, 4 }
  0x4b   : > { %v542_v2 = vsel %vm2497_vm5, %v472_v62, %v541_v53  ;;  %v545_v3 = vsel %vm2505_vm6, %v473_v63, %v544_v59  ;;  %v548_v4 = vsel %vm2497_vm5, %v480_v0, %v547_v60 }
  0x4c   : > { %v551_v5 = vsel %vm2505_vm6, %v481_v1, %v550_v61  ;;  %543 = vst [vmem:[#allocation2 + $0x38] sm:$0xf] %v542_v2  ;;  %546 = vst [vmem:[#allocation2 + $0x3c] sm:$0x1] %v545_v3 }
  0x4d   : > { %549 = vst [vmem:[#allocation2 + $0x40] sm:$0xf] %v548_v4  ;;  %552 = vst [vmem:[#allocation2 + $0x44] sm:$0x1] %v551_v5 }
  0x4e LB: >> { %v2282_v8 = vld [vmem:[%s2934_s5 + $0x40] sm:$0xff]   ;;  %v2394_v9 = vmov 0.0   ;;  %v2284_v11 = vld [vmem:[%s2934_s5 + $0x48] sm:$0xff]   ;;  %vm2395_vm7 = vmmov 0   ;;  %v2286_v13 = vld [vmem:[%s2934_s5 + $0x50] sm:$0xff]   ;;  %s1953_s22 = sshll.u32 %s2390_s28, 3  ;;  %s2390_s28 = sphi %s2551_s28, %s558_s28   ;;  %v2386_v7 = vphi %v2549_v7, %v2943_v7   ;;  %v2382_v6 = vphi %v2547_v6, %v2942_v6  }
  0x4f   : >> { %2035 = vmatprep.subr.bf16.mxu1 %v2394_v9  ;;  %2115 = vmatprep.subr.bf16.mxu0 %v2394_v9  ;;  %v2283_v10 = vld [vmem:[%s2934_s5 + $0x100] sm:$0xff]   ;;  %v2285_v12 = vld [vmem:[%s2934_s5 + $0x108] sm:$0xff]   ;;  %v2287_v14 = vld [vmem:[%s2934_s5 + $0x110] sm:$0xff]   ;;  %s2609_s9 = scalar_lea.vmem [#allocation2], %s1953_s22  ;;  %vm1590_vm8 = vcmask 261120   ;;  %s558_s28 = sadd.s32 1, %s2390_s28  }
  0x50   : >> { %2036 = vmatpush3.bf16.msra.mxu1 %v2282_v8  ;;  %2051 = vmatprep.mubr.msk.bf16.mxu1 %vm2395_vm7, %v2394_v9  ;;  %v2288_v15 = vld [vmem:[%s2934_s5 + $0x58] sm:$0xff]   ;;  %v2290_v17 = vld [vmem:[%s2934_s5 + $0x60] sm:$0xff]   ;;  %v2292_v21 = vld [vmem:[%s2934_s5 + $0x68] sm:$0xff]   ;;  %p555_p5 = scmp.ge.s32.totalorder %s558_s28, 8  }
  0x51   : >> { %2116 = vmatpush3.bf16.msra.mxu0 %v2283_v10  ;;  %2037 = vmatprep.subr.bf16.mxu1 %v2394_v9  ;;  %v2289_v16 = vld [vmem:[%s2934_s5 + $0x118] sm:$0xff]   ;;  %v2291_v18 = vld [vmem:[%s2934_s5 + $0x120] sm:$0xff]   ;;  %v2293_v25 = vld [vmem:[%s2934_s5 + $0x128] sm:$0xff]   ;;  %vm1611_vm9 = vcmask (%p555_p5), 253952  }
  0x52   : >> { %2117 = vmatprep.subr.bf16.mxu0 %v2394_v9  ;;  %2131 = vmatprep.mubr.msk.bf16.mxu0 %vm2395_vm7, %v2394_v9  ;;  %v2294_v28 = vld [vmem:[%s2934_s5 + $0x70] sm:$0xff]   ;;  %v2296_v31 = vld [vmem:[%s2934_s5 + $0x78] sm:$0xff]   ;;  %v2299_v38 = vld [vmem:[%s2934_s5] sm:$0xff]  }
  0x53   : >> { %v2295_v30 = vld [vmem:[%s2934_s5 + $0x130] sm:$0xff]   ;;  %v2297_v36 = vld [vmem:[%s2934_s5 + $0x138] sm:$0xff]   ;;  %v2301_v40 = vld [vmem:[%s2934_s5 + $0x140] sm:$0xff]  }
  0x54   : >> { %2038 = vmatpush3.bf16.msra.mxu1 %v2284_v11  ;;  %v2612_v19 = vld [vmem:[%s2609_s9] sm:$0xf]  ;;  %v2615_v20 = vld [vmem:[%s2609_s9 + $0x4] sm:$0x1]  ;;  %v1808_v23 = vld [vmem:[%s2609_s9 + $0x8] sm:$0xf] }
  0x55   : >> { %2118 = vmatpush3.bf16.msra.mxu0 %v2285_v12  ;;  %2039 = vmatprep.subr.bf16.mxu1 %v2394_v9  ;;  %v1740_v22 = vcombine.low %v2612_v19, %v2615_v20  ;;  %v2624_v24 = vld [vmem:[%s2609_s9 + $0xc] sm:$0x1]  ;;  %v2304_v43 = vld [vmem:[%s2934_s5 + $0x10] sm:$0xff]   ;;  %v2306_v45 = vld [vmem:[%s2934_s5 + $0x18] sm:$0xff]  }
  0x56   : >> { %2119 = vmatprep.subr.bf16.mxu0 %v2394_v9  ;;  %v1826_v26 = vcombine.low %v1808_v23, %v2624_v24  ;;  %v2302_v41 = vld [vmem:[%s2934_s5 + $0x8] sm:$0xff]   ;;  %v2305_v44 = vld [vmem:[%s2934_s5 + $0x150] sm:$0xff]   ;;  %v2307_v46 = vld [vmem:[%s2934_s5 + $0x158] sm:$0xff]  }
  0x57   : >> { %v607_v27 = vshll.u32 %v1740_v22, 16  ;;  %v605_v32 = vshrl.u32 %v1740_v22, 16  ;;  %v2303_v42 = vld [vmem:[%s2934_s5 + $0x148] sm:$0xff]   ;;  %v2308_v47 = vld [vmem:[%s2934_s5 + $0x20] sm:$0xff]   ;;  %v2312_v53 = vld [vmem:[%s2934_s5 + $0x30] sm:$0xff]  }
  0x58   : >> { %2040 = vmatpush3.bf16.msra.mxu1 %v2286_v13  ;;  %v1038_v29 = vshll.u32 %v1826_v26, 16  ;;  %v1036_v34 = vshrl.u32 %v1826_v26, 16  ;;  %v2309_v48 = vld [vmem:[%s2934_s5 + $0x160] sm:$0xff]   ;;  %v2310_v49 = vld [vmem:[%s2934_s5 + $0x28] sm:$0xff]   ;;  %v2313_v54 = vld [vmem:[%s2934_s5 + $0x170] sm:$0xff]  }
  0x59   : >> { %2120 = vmatpush3.bf16.msra.mxu0 %v2287_v14  ;;  %2041 = vmatprep.subr.bf16.mxu1 %v2394_v9  ;;  %v609_v33 = vrot.slane %v607_v27, 1  ;;  %v2696_v50 = vld [vmem:[%s2609_s9] sm:$0xe]  ;;  %v2311_v51 = vld [vmem:[%s2934_s5 + $0x168] sm:$0xff]   ;;  %v2314_v56 = vld [vmem:[%s2934_s5 + $0x38] sm:$0xff]  }
  0x5a   : >> { %2121 = vmatprep.subr.bf16.mxu0 %v2394_v9  ;;  %v1040_v35 = vrot.slane %v1038_v29, 1  ;;  %v1773_v52 = vcombine.low %v2696_v50, %v2615_v20  ;;  %v1835_v55 = vld [vmem:[%s2609_s9 + $0x8] sm:$0xe]  ;;  %v2315_v58 = vld [vmem:[%s2934_s5 + $0x178] sm:$0xff]   ;;  %v2316_v59 = vld [vmem:[%s2934_s5 + $0x80] sm:$0xff]  }
  0x5b   : >> { %v610_v37 = vor.u32 %v609_v33, %v605_v32  ;;  %v1852_v57 = vcombine.low %v1835_v55, %v2624_v24  ;;  %v2318_v61 = vld [vmem:[%s2934_s5 + $0x180] sm:$0xff]   ;;  %v2319_v62 = vld [vmem:[%s2934_s5 + $0x88] sm:$0xff]   ;;  %v2321_v0 = vld [vmem:[%s2934_s5 + $0x90] sm:$0xff]  }
  0x5c   : >> { %2042 = vmatpush3.bf16.msra.mxu1 %v2288_v15  ;;  %v1041_v39 = vor.u32 %v1040_v35, %v1036_v34  ;;  %v2320_v63 = vld [vmem:[%s2934_s5 + $0x188] sm:$0xff]   ;;  %v2322_v1 = vld [vmem:[%s2934_s5 + $0x190] sm:$0xff]   ;;  %v2323_v2 = vld [vmem:[%s2934_s5 + $0x98] sm:$0xff]   ;;  %v809_v15 = vrot.slane %v1773_v52, 1 }
  0x5d   : >> { %2122 = vmatpush3.bf16.msra.mxu0 %v2289_v16  ;;  %2043 = vmatprep.subr.bf16.mxu1 %v2394_v9  ;;  %v1153_v60 = vrot.slane %v1852_v57, 1  ;;  %v2324_v3 = vld [vmem:[%s2934_s5 + $0x198] sm:$0xff]   ;;  %v2325_v4 = vld [vmem:[%s2934_s5 + $0xa0] sm:$0xff]   ;;  %v2327_v8 = vld [vmem:[%s2934_s5 + $0xa8] sm:$0xff]  }
  0x5e   : >> { %2123 = vmatprep.subr.bf16.mxu0 %v2394_v9  ;;  %v2326_v5 = vld [vmem:[%s2934_s5 + $0x1a0] sm:$0xff]   ;;  %v2328_v10 = vld [vmem:[%s2934_s5 + $0x1a8] sm:$0xff]   ;;  %v2329_v11 = vld [vmem:[%s2934_s5 + $0xb0] sm:$0xff]  }
  0x5f   : >> { %v2330_v12 = vld [vmem:[%s2934_s5 + $0x1b0] sm:$0xff]   ;;  %v2331_v13 = vld [vmem:[%s2934_s5 + $0xb8] sm:$0xff]   ;;  %v2334_v16 = vld [vmem:[%s2934_s5 + $0xc0] sm:$0xff]  }
  0x60   : >> { %2044 = vmatpush3.bf16.msra.mxu1 %v2290_v17  ;;  %v2332_v14 = vld [vmem:[%s2934_s5 + $0x1b8] sm:$0xff]   ;;  %v1862_v17 = vld [vmem:[%s2609_s9 + $0x10] sm:$0xf]  ;;  %v2337_v20 = vld [vmem:[%s2934_s5 + $0x1c8] sm:$0xff]  }
  0x61   : >> { %2124 = vmatpush3.bf16.msra.mxu0 %v2291_v18  ;;  %2045 = vmatprep.subr.bf16.mxu1 %v2394_v9  ;;  %v2335_v18 = vld [vmem:[%s2934_s5 + $0x1c0] sm:$0xff]   ;;  %v2339_v22 = vld [vmem:[%s2934_s5 + $0x1d0] sm:$0xff]   ;;  %v2340_v23 = vld [vmem:[%s2934_s5 + $0xd8] sm:$0xff]  }
  0x62   : >> { %2125 = vmatprep.subr.bf16.mxu0 %v2394_v9  ;;  %v2341_v24 = vld [vmem:[%s2934_s5 + $0x1d8] sm:$0xff]   ;;  %v2343_v26 = vld [vmem:[%s2934_s5 + $0x1e0] sm:$0xff]   ;;  %v1887_v27 = vld [vmem:[%s2609_s9 + $0x10] sm:$0xf] }
  0x63   : >> { %v2344_v29 = vld [vmem:[%s2934_s5 + $0xe8] sm:$0xff]   ;;  %v2346_v32 = vld [vmem:[%s2934_s5 + $0xf0] sm:$0xff]   ;;  %v2348_v35 = vld [vmem:[%s2934_s5 + $0xf8] sm:$0xff]  }
  0x64   : >> { %2046 = vmatpush3.bf16.msra.mxu1 %v2292_v21  ;;  %v2338_v21 = vld [vmem:[%s2934_s5 + $0xd0] sm:$0xff]   ;;  %v2358_v50 = vld [vmem:[%s2934_s5 + $0x238] sm:$0xff]  }
  0x65   : >> { %2126 = vmatpush3.bf16.msra.mxu0 %v2293_v25  ;;  %2047 = vmatprep.subr.bf16.mxu1 %v2394_v9  ;;  %v2342_v25 = vld [vmem:[%s2934_s5 + $0xe0] sm:$0xff]   ;;  %v2347_v34 = vld [vmem:[%s2934_s5 + $0x1f0] sm:$0xff]  }
  0x66   : >> { %2127 = vmatprep.subr.bf16.mxu0 %v2394_v9 }
  0x68   : >> { %2048 = vmatpush3.bf16.msra.mxu1 %v2294_v28  ;;  %v1888_v28 = vld [vmem:[%s2609_s9 + $0x14] sm:$0x1] }
  0x69   : >> { %2128 = vmatpush3.bf16.msra.mxu0 %v2295_v30  ;;  %2049 = vmatprep.subr.bf16.mxu1 %v2394_v9  ;;  %v1905_v30 = vcombine.low %v1887_v27, %v1888_v28 }
  0x6a   : >> { %2129 = vmatprep.subr.bf16.mxu0 %v2394_v9 }
  0x6b   : >> { %v1382_v33 = vshll.u32 %v1905_v30, 16 }
  0x6c   : >> { %2050 = vmatpush3.bf16.msra.mxu1 %v2296_v31  ;;  %v2345_v31 = vld [vmem:[%s2934_s5 + $0x1e8] sm:$0xff]  }
  0x6d   : >> { %2130 = vmatpush3.bf16.msra.mxu0 %v2297_v36  ;;  %2055 = vmatprep.subr.bf16.mxu1 %v2394_v9  ;;  %v1380_v36 = vshrl.u32 %v1905_v30, 16 }
  0x6e   : >> { %2135 = vmatprep.subr.bf16.mxu0 %v2394_v9 }
  0x6f   : >> { %2052 = vmatmul.mubr.bf16.vlgmr.msra.gmra.mrb[0].mxu1 %v610_v37  ;;  %v1384_v37 = vrot.slane %v1382_v33, 1 }
  0x70   : >> { %2056 = vmatpush3.bf16.msra.mxu1 %v2299_v38  ;;  %2132 = vmatmul.mubr.bf16.vlgmr.msra.gmra.mrb[0].mxu0 %v1041_v39  ;;  %v2349_v38 = vld [vmem:[%s2934_s5 + $0x1f8] sm:$0xff]   ;;  %v1783_v39 = vld [vmem:[%s2609_s9 + $0x8] sm:$0xf] }
  0x71   : >> { %2136 = vmatpush3.bf16.msra.mxu0 %v2301_v40  ;;  %2057 = vmatprep.subr.bf16.mxu1 %v2394_v9  ;;  %v1385_v40 = vor.u32 %v1384_v37, %v1380_v36 }
  0x72   : >> { %2137 = vmatprep.subr.bf16.mxu0 %v2394_v9  ;;  %2071 = vmatprep.mubr.msk.bf16.mxu1 %vm2395_vm7, %v2394_v9 }
  0x73   : >> { %2151 = vmatprep.mubr.msk.bf16.mxu0 %vm2395_vm7, %v2394_v9 }
  0x74   : >> { %2058 = vmatpush3.bf16.msra.mxu1 %v2302_v41  ;;  %v2351_v41 = vld [vmem:[%s2934_s5 + $0x200] sm:$0xff]  }
  0x75   : >> { %2138 = vmatpush3.bf16.msra.mxu0 %v2303_v42  ;;  %2059 = vmatprep.subr.bf16.mxu1 %v2394_v9  ;;  %v2352_v42 = vld [vmem:[%s2934_s5 + $0x208] sm:$0xff]  }
  0x76   : >> { %2139 = vmatprep.subr.bf16.mxu0 %v2394_v9 }
  0x78   : >> { %2060 = vmatpush3.bf16.msra.mxu1 %v2304_v43  ;;  %v2353_v43 = vld [vmem:[%s2934_s5 + $0x210] sm:$0xff]  }
  0x79   : >> { %2140 = vmatpush3.bf16.msra.mxu0 %v2305_v44  ;;  %2061 = vmatprep.subr.bf16.mxu1 %v2394_v9  ;;  %v2354_v44 = vld [vmem:[%s2934_s5 + $0x218] sm:$0xff]  }
  0x7a   : >> { %2141 = vmatprep.subr.bf16.mxu0 %v2394_v9 }
  0x7c   : >> { %2062 = vmatpush3.bf16.msra.mxu1 %v2306_v45  ;;  %v2355_v45 = vld [vmem:[%s2934_s5 + $0x220] sm:$0xff]  }
  0x7d   : >> { %2142 = vmatpush3.bf16.msra.mxu0 %v2307_v46  ;;  %2063 = vmatprep.subr.bf16.mxu1 %v2394_v9  ;;  %v2356_v46 = vld [vmem:[%s2934_s5 + $0x228] sm:$0xff]  }
  0x7e   : >> { %2143 = vmatprep.subr.bf16.mxu0 %v2394_v9 }
  0x80   : >> { %2064 = vmatpush3.bf16.msra.mxu1 %v2308_v47  ;;  %v2357_v47 = vld [vmem:[%s2934_s5 + $0x230] sm:$0xff]  }
  0x81   : >> { %2144 = vmatpush3.bf16.msra.mxu0 %v2309_v48  ;;  %2065 = vmatprep.subr.bf16.mxu1 %v2394_v9  ;;  %v1914_v48 = vld [vmem:[%s2609_s9 + $0x10] sm:$0xe]  ;;  %s1589_s9 = scalar_lea.vmem %s2457_s14, %s1953_s22 }
  0x82   : >> { %2145 = vmatprep.subr.bf16.mxu0 %v2394_v9 }
  0x84   : >> { %2066 = vmatpush3.bf16.msra.mxu1 %v2310_v49  ;;  %v1931_v49 = vcombine.low %v1914_v48, %v1888_v28 }
  0x85   : >> { %2146 = vmatpush3.bf16.msra.mxu0 %v2311_v51  ;;  %2067 = vmatprep.subr.bf16.mxu1 %v2394_v9 }
  0x86   : >> { %2147 = vmatprep.subr.bf16.mxu0 %v2394_v9  ;;  %v1497_v51 = vrot.slane %v1931_v49, 1 }
  0x88   : >> { %2068 = vmatpush3.bf16.msra.mxu1 %v2312_v53 }
  0x89   : >> { %2148 = vmatpush3.bf16.msra.mxu0 %v2313_v54  ;;  %2069 = vmatprep.subr.bf16.mxu1 %v2394_v9 }
  0x8a   : >> { %2149 = vmatprep.subr.bf16.mxu0 %v2394_v9 }
  0x8c   : >> { %2070 = vmatpush3.bf16.msra.mxu1 %v2314_v56 }
  0x8d   : >> { %2150 = vmatpush3.bf16.msra.mxu0 %v2315_v58  ;;  %2075 = vmatprep.subr.bf16.mxu1 %v2394_v9 }
  0x8e   : >> { %2155 = vmatprep.subr.bf16.mxu0 %v2394_v9 }
  0x8f   : >> { %2072 = vmatmul.mubr.bf16.vlgmr.msra.gmra.mrb[0].mxu1 %v2612_v19  ;;  %v2336_v19 = vld [vmem:[%s2934_s5 + $0xc8] sm:$0xff]  }
  0x90   : >> { %2076 = vmatpush3.bf16.msra.mxu1 %v2316_v59  ;;  %2152 = vmatmul.mubr.bf16.vlgmr.msra.gmra.mrb[0].mxu0 %v1153_v60 }
  0x91   : >> { %2156 = vmatpush3.bf16.msra.mxu0 %v2318_v61  ;;  %2077 = vmatprep.subr.bf16.mxu1 %v2394_v9 }
  0x92   : >> { %2157 = vmatprep.subr.bf16.mxu0 %v2394_v9  ;;  %2091 = vmatprep.mubr.msk.bf16.mxu1 %vm2395_vm7, %v2394_v9 }
  0x93   : >> { %2171 = vmatprep.mubr.msk.bf16.mxu0 %vm2395_vm7, %v2394_v9 }
  0x94   : >> { %2078 = vmatpush3.bf16.msra.mxu1 %v2319_v62 }
  0x95   : >> { %2158 = vmatpush3.bf16.msra.mxu0 %v2320_v63  ;;  %2079 = vmatprep.subr.bf16.mxu1 %v2394_v9 }
  0x96   : >> { %2159 = vmatprep.subr.bf16.mxu0 %v2394_v9 }
  0x98   : >> { %2080 = vmatpush3.bf16.msra.mxu1 %v2321_v0 }
  0x99   : >> { %2160 = vmatpush3.bf16.msra.mxu0 %v2322_v1  ;;  %2081 = vmatprep.subr.bf16.mxu1 %v2394_v9 }
  0x9a   : >> { %2161 = vmatprep.subr.bf16.mxu0 %v2394_v9 }
  0x9c   : >> { %2082 = vmatpush3.bf16.msra.mxu1 %v2323_v2 }
  0x9d   : >> { %2162 = vmatpush3.bf16.msra.mxu0 %v2324_v3  ;;  %2083 = vmatprep.subr.bf16.mxu1 %v2394_v9 }
  0x9e   : >> { %2163 = vmatprep.subr.bf16.mxu0 %v2394_v9 }
  0xa0   : >> { %2084 = vmatpush3.bf16.msra.mxu1 %v2325_v4 }
  0xa1   : >> { %2164 = vmatpush3.bf16.msra.mxu0 %v2326_v5  ;;  %2085 = vmatprep.subr.bf16.mxu1 %v2394_v9 }
  0xa2   : >> { %2165 = vmatprep.subr.bf16.mxu0 %v2394_v9 }
  0xa4   : >> { %2086 = vmatpush3.bf16.msra.mxu1 %v2327_v8 }
  0xa5   : >> { %2166 = vmatpush3.bf16.msra.mxu0 %v2328_v10  ;;  %2087 = vmatprep.subr.bf16.mxu1 %v2394_v9 }
  0xa6   : >> { %2167 = vmatprep.subr.bf16.mxu0 %v2394_v9 }
  0xa8   : >> { %2088 = vmatpush3.bf16.msra.mxu1 %v2329_v11 }
  0xa9   : >> { %2168 = vmatpush3.bf16.msra.mxu0 %v2330_v12  ;;  %2089 = vmatprep.subr.bf16.mxu1 %v2394_v9 }
  0xaa   : >> { %2169 = vmatprep.subr.bf16.mxu0 %v2394_v9 }
  0xac   : >> { %2090 = vmatpush3.bf16.msra.mxu1 %v2331_v13 }
  0xad   : >> { %2170 = vmatpush3.bf16.msra.mxu0 %v2332_v14  ;;  %2095 = vmatprep.subr.bf16.mxu1 %v2394_v9 }
  0xae   : >> { %2175 = vmatprep.subr.bf16.mxu0 %v2394_v9 }
  0xaf   : >> { %2092 = vmatmul.mubr.bf16.vlgmr.msra.gmra.mrb[0].mxu1 %v809_v15 }
  0xb0   : >> { %2096 = vmatpush3.bf16.msra.mxu1 %v2334_v16  ;;  %2172 = vmatmul.mubr.bf16.vlgmr.msra.gmra.mrb[0].mxu0 %v1862_v17  ;;  %v1609_v16 = vld [vmem:[%s2936_s7] sm:$0x1] (%p555_p5) }
  0xb1   : >> { %2176 = vmatpush3.bf16.msra.mxu0 %v2335_v18  ;;  %2097 = vmatprep.subr.bf16.mxu1 %v2394_v9 }
  0xb2   : >> { %2177 = vmatprep.subr.bf16.mxu0 %v2394_v9  ;;  %2111 = vmatprep.mubr.msk.bf16.mxu1 %vm2395_vm7, %v2394_v9 }
  0xb3   : >> { %2191 = vmatprep.mubr.msk.bf16.mxu0 %vm2395_vm7, %v2394_v9 }
  0xb4   : >> { %2098 = vmatpush3.bf16.msra.mxu1 %v2336_v19 }
  0xb5   : >> { %2178 = vmatpush3.bf16.msra.mxu0 %v2337_v20  ;;  %2099 = vmatprep.subr.bf16.mxu1 %v2394_v9 }
  0xb6   : >> { %2179 = vmatprep.subr.bf16.mxu0 %v2394_v9 }
  0xb8   : >> { %2100 = vmatpush3.bf16.msra.mxu1 %v2338_v21 }
  0xb9   : >> { %2180 = vmatpush3.bf16.msra.mxu0 %v2339_v22  ;;  %2101 = vmatprep.subr.bf16.mxu1 %v2394_v9 }
  0xba   : >> { %2181 = vmatprep.subr.bf16.mxu0 %v2394_v9 }
  0xbc   : >> { %2102 = vmatpush3.bf16.msra.mxu1 %v2340_v23 }
  0xbd   : >> { %2182 = vmatpush3.bf16.msra.mxu0 %v2341_v24  ;;  %2103 = vmatprep.subr.bf16.mxu1 %v2394_v9 }
  0xbe   : >> { %2183 = vmatprep.subr.bf16.mxu0 %v2394_v9 }
  0xc0   : >> { %2104 = vmatpush3.bf16.msra.mxu1 %v2342_v25 }
  0xc1   : >> { %2184 = vmatpush3.bf16.msra.mxu0 %v2343_v26  ;;  %2105 = vmatprep.subr.bf16.mxu1 %v2394_v9 }
  0xc2   : >> { %2185 = vmatprep.subr.bf16.mxu0 %v2394_v9 }
  0xc4   : >> { %2106 = vmatpush3.bf16.msra.mxu1 %v2344_v29 }
  0xc5   : >> { %2186 = vmatpush3.bf16.msra.mxu0 %v2345_v31  ;;  %2107 = vmatprep.subr.bf16.mxu1 %v2394_v9 }
  0xc6   : >> { %2187 = vmatprep.subr.bf16.mxu0 %v2394_v9 }
  0xc8   : >> { %2108 = vmatpush3.bf16.msra.mxu1 %v2346_v32 }
  0xc9   : >> { %2188 = vmatpush3.bf16.msra.mxu0 %v2347_v34  ;;  %2109 = vmatprep.subr.bf16.mxu1 %v2394_v9 }
  0xca   : >> { %2189 = vmatprep.subr.bf16.mxu0 %v2394_v9 }
  0xcc   : >> { %2110 = vmatpush3.bf16.msra.mxu1 %v2348_v35 }
  0xcd   : >> { %2190 = vmatpush3.bf16.msra.mxu0 %v2349_v38 }
  0xce   : >> { %2195 = vmatprep.subr.bf16.mxu0 %v2394_v9 }
  0xcf   : >> { %2112 = vmatmul.mubr.bf16.vlgmr.msra.gmra.mrb[0].mxu1 %v1783_v39 }
  0xd0   : >> { %2192 = vmatmul.mubr.bf16.vlgmr.msra.gmra.mrb[0].mxu0 %v1385_v40 }
  0xd1   : >> { %2196 = vmatpush3.bf16.msra.mxu0 %v2351_v41  ;;  %2211 = vmatprep.mubr.msk.bf16.mxu0 %vm2395_vm7, %v2394_v9 }
  0xd2   : >> { %2197 = vmatprep.subr.bf16.mxu0 %v2394_v9 }
  0xd5   : >> { %2198 = vmatpush3.bf16.msra.mxu0 %v2352_v42 }
  0xd6   : >> { %2199 = vmatprep.subr.bf16.mxu0 %v2394_v9 }
  0xd9   : >> { %2200 = vmatpush3.bf16.msra.mxu0 %v2353_v43 }
  0xda   : >> { %2201 = vmatprep.subr.bf16.mxu0 %v2394_v9 }
  0xdd   : >> { %2202 = vmatpush3.bf16.msra.mxu0 %v2354_v44 }
  0xde   : >> { %2203 = vmatprep.subr.bf16.mxu0 %v2394_v9 }
  0xe1   : >> { %2204 = vmatpush3.bf16.msra.mxu0 %v2355_v45 }
  0xe2   : >> { %2205 = vmatprep.subr.bf16.mxu0 %v2394_v9 }
  0xe5   : >> { %2206 = vmatpush3.bf16.msra.mxu0 %v2356_v46 }
  0xe6   : >> { %2207 = vmatprep.subr.bf16.mxu0 %v2394_v9 }
  0xe9   : >> { %2208 = vmatpush3.bf16.msra.mxu0 %v2357_v47 }
  0xea   : >> { %2209 = vmatprep.subr.bf16.mxu0 %v2394_v9 }
  0xed   : >> { %2210 = vmatpush3.bf16.msra.mxu0 %v2358_v50 }
  0xf0   : >> { %2212 = vmatmul.mubr.bf16.vlgmr.msra.gmra.mrb[0].mxu0 %v1497_v51 }
 0x1a2   : >> { %v1004_v52 = vpop.f32.mrb[0].mxu1 }
 0x1a3   : >> { %v2113_v53 = vpop.f32.mrb[1].mxu1 }
 0x1a4   : >> { %v1007_v54 = vpop.f32.mrb[2].mxu1 }
 0x1a5   : >> { %v2114_v55 = vpop.f32.mrb[3].mxu1 }
 0x1c3   : >> { %v1581_v56 = vpop.f32.mrb[0].mxu0 }
 0x1c4   : >> { %v2215_v57 = vadd.f32 %v1581_v56, %v1004_v52  ;;  %v2213_v58 = vpop.f32.mrb[1].mxu0 }
 0x1c5   : >> { %v1584_v59 = vpop.f32.mrb[2].mxu0 }
 0x1c6   : >> { %1591 = vst.msk [vmem:[%s1589_s9] sm:$0xff] %vm1590_vm8, %v2215_v57  ;;  %v1592_v60 = vsel %vm1590_vm8, %v2215_v57, 0.0  ;;  %v1600_v61 = vmul.f32 %v2215_v57, %v2215_v57  ;;  %v2214_v62 = vpop.f32.mrb[3].mxu0 }
 0x1c7   : >> { %v1593_v63 = vrot.slane %v1592_v60, 4 }
 0x1c8   : >> { %v1601_v9 = vsel %vm1590_vm8, %v1600_v61, 0.0 }
 0x1c9   : >> { %v1594_v0 = vadd.f32 %v1593_v63, %v1592_v60  ;;  %v1602_v1 = vrot.slane %v1601_v9, 4 }
 0x1cb   : >> { %v1595_v2 = vrot.slane %v1594_v0, 2  ;;  %v1603_v3 = vadd.f32 %v1602_v1, %v1601_v9 }
 0x1cd   : >> { %v1596_v4 = vadd.f32 %v1595_v2, %v1594_v0  ;;  %v1604_v5 = vrot.slane %v1603_v3, 2 }
 0x1cf   : >> { %v1597_v8 = vrot.slane %v1596_v4, 1  ;;  %v1605_v10 = vadd.f32 %v1604_v5, %v1603_v3 }
 0x1d1   : >> { %v1598_v11 = vadd.f32 %v1597_v8, %v1596_v4  ;;  %v1606_v12 = vrot.slane %v1605_v10, 1  ;;  %557 = sbr.rel (!%p555_p5) target bundleno = 78 (0x4e), region = 114 }
 0x1d3   : >> { %v1599_v13 = vadd.f32 %v2386_v7, %v1598_v11   ;;  %v1607_v14 = vadd.f32 %v1606_v12, %v1605_v10 }
 0x1d5   : >> { %v1608_v15 = vadd.f32 %v2382_v6, %v1607_v14   ;;  %v2943_v7 = vmov %v1599_v13  ;;  %v1610_v17 = vadd.f32 (%p555_p5), %v1609_v16, %v1599_v13 }
 0x1d6   : > { %v1613_v7 = vld [vmem:[%s2937_s8] sm:$0x1] (%p555_p5) }
 0x1d7   : >> { %v2942_v6 = vmov %v1608_v15  ;;  %v1614_v18 = vadd.f32 (%p555_p5), %v1613_v7, %v1608_v15  ;;  %1612 = vst.msk [vmem:[%s2936_s7] sm:$0x1] (%p555_p5), %vm1611_vm9, %v1610_v17 }
 0x1d9   : > { %1615 = vst.msk [vmem:[%s2937_s8] sm:$0x1] %vm1611_vm9, %v1614_v18 }
 0x1da PF: > { %s19_s27 = sadd.s32 1, %s2378_s27  }
 0x1db   : > { %p16_p6 = scmp.ge.s32.totalorder %s19_s27, 4  }
 0x1dd   :  { %18 = sbr.rel (!%p16_p6) target bundleno = 1 (0x1), region = 125 }

// kernel: _lambda_.30
= control target key start
LH: loop header
LB: loop body
LE: loop exit
PB: predicated region body
PF: predicated region fallthrough
CT: control target
= control target key end

     0   :  { %s78_s0 = inlined_call_operand.vmem [shape: f32[8,1024], index: 0, kind: input, shape index: {}]   ;;  %s79_s1 = inlined_call_operand.vmem [shape: f32[8,512], index: 1, kind: output, shape index: {}]  }
   0x1   :  { %v8_v0 = vld [vmem:[%s78_s0] sm:$0xff]  ;;  %v9_v2 = vld [vmem:[%s78_s0 + $0x8] sm:$0xff]  ;;  %v10_v5 = vld [vmem:[%s78_s0 + $0x10] sm:$0xff] }
   0x2   :  { %v12_v1 = vld [vmem:[%s78_s0 + $0x20] sm:$0xff]  ;;  %v13_v4 = vld [vmem:[%s78_s0 + $0x28] sm:$0xff]  ;;  %v14_v6 = vld [vmem:[%s78_s0 + $0x30] sm:$0xff] }
   0x3   :  { %v16_v3 = vadd.f32 %v12_v1, %v8_v0  ;;  %v17_v7 = vadd.f32 %v13_v4, %v9_v2  ;;  %v18_v8 = vadd.f32 %v14_v6, %v10_v5  ;;  %v11_v9 = vld [vmem:[%s78_s0 + $0x18] sm:$0xff] }
   0x4   :  { %v15_v10 = vld [vmem:[%s78_s0 + $0x38] sm:$0xff] }
   0x5   :  { %v20_v11 = vmul.f32 0.5, %v16_v3  ;;  %v19_v12 = vadd.f32 %v15_v10, %v11_v9  ;;  %v21_v13 = vmul.f32 0.5, %v17_v7  ;;  %v22_v14 = vmul.f32 0.5, %v18_v8 }
   0x7   :  { %24 = vst [vmem:[%s79_s1] sm:$0xff] %v20_v11  ;;  %v23_v15 = vmul.f32 0.5, %v19_v12  ;;  %25 = vst [vmem:[%s79_s1 + $0x8] sm:$0xff] %v21_v13 }
   0x8   :  { %26 = vst [vmem:[%s79_s1 + $0x10] sm:$0xff] %v22_v14 }
   0x9   :  { %27 = vst [vmem:[%s79_s1 + $0x18] sm:$0xff] %v23_v15 }

// kernel: _lambda_.29
= control target key start
LH: loop header
LB: loop body
LE: loop exit
PB: predicated region body
PF: predicated region fallthrough
CT: control target
= control target key end

     0   :  { %v60_v7 = vlaneseq  ;;  %s877_s19 = smov 32   ;;  %vm197_vm0 = vcmask 261120   ;;  %vm343_vm1 = vcmask 523264   ;;  %s1307_s5 = inlined_call_operand.vmem [shape: f32[1,128], index: 5, kind: input, shape index: {}]   ;;  %s1308_s6 = inlined_call_operand.vmem [shape: f32[1,128], index: 6, kind: input, shape index: {}]   ;;  %s1309_s7 = inlined_call_operand.vmem [shape: bf16[128,64], index: 7, kind: input, shape index: {}]   ;;  %s1310_s3 = inlined_call_operand.vmem [shape: f32[1,128], index: 3, kind: input, shape index: {}]   ;;  %s1311_s4 = inlined_call_operand.vmem [shape: f32[1,128], index: 4, kind: input, shape index: {}]   ;;  %s1312_s0 = inlined_call_operand.vmem [shape: f32[128,64], index: 0, kind: input, shape index: {}]   ;;  %s1313_s1 = inlined_call_operand.vmem [shape: f32[128,32], index: 1, kind: input, shape index: {}]   ;;  %s1314_s2 = inlined_call_operand.vmem [shape: f32[128,32], index: 2, kind: input, shape index: {}]   ;;  %s1315_s8 = inlined_call_operand.vmem [shape: f32[128,64], index: 8, kind: output, shape index: {}]  }
   0x1   :  { %v30_v0 = vld [vmem:[%s1307_s5] sm:$0x1]  ;;  %v867_v10 = vld [vmem:[%s1309_s7 + $0x28] sm:$0xff]   ;;  %v946_v15 = vld [vmem:[%s1309_s7 + $0x30] sm:$0xff]  }
   0x2   :  { %v32_v1 = vld [vmem:[%s1308_s6] sm:$0x1]  ;;  %v31_v2 = vmul.f32 0.0078125, %v30_v0  ;;  %v61_v9 = vshrl.u32 %v60_v7, 7  ;;  %v44_v23 = vld [vmem:[%s1312_s0 + $0x8] sm:$0xff]  ;;  %v45_v24 = vld [vmem:[%s1312_s0 + $0x10] sm:$0xff] }
   0x3   :  { %v33_v3 = vmul.f32 0.0078125, %v32_v1  ;;  %v866_v8 = vld [vmem:[%s1309_s7 + $0x20] sm:$0xff]   ;;  %v46_v27 = vld [vmem:[%s1312_s0 + $0x18] sm:$0xff]  ;;  %v48_v35 = vld [vmem:[%s1312_s0 + $0x28] sm:$0xff] }
   0x4   :  { %v34_v4 = vmul.f32 %v31_v2, %v31_v2  ;;  %764 = vmatprep.subr.bf16.mxu0 %v866_v8  ;;  %828 = vmatprep.subr.bf16.mxu1 %v866_v8  ;;  %v36_v11 = vld [vmem:[%s1310_s3] sm:$0x1]  ;;  %v62_v12 = vsub.s32 0, %v61_v9  ;;  %s876_s3 = smov 64   ;;  %v49_v36 = vld [vmem:[%s1312_s0 + $0x30] sm:$0xff]  ;;  %v50_v40 = vld [vmem:[%s1312_s0 + $0x38] sm:$0xff] }
   0x5   :  { %765 = vmatpush3.bf16.msra.mxu0 %v866_v8  ;;  %830 = vmatpush3.bf16.msra.mxu1 %v866_v8  ;;  %v941_v13 = vld [vmem:[%s1309_s7] sm:$0xff]   ;;  %v52_v51 = vld [vmem:[%s1312_s0 + $0x48] sm:$0xff]  ;;  %v53_v52 = vld [vmem:[%s1312_s0 + $0x50] sm:$0xff] }
   0x6   :  { %v35_v5 = vsub.f32 %v33_v3, %v34_v4  ;;  %766 = vmatprep.subr.bf16.mxu0 %v867_v10  ;;  %829 = vmatprep.subr.bf16.mxu1 %v867_v10  ;;  %v40_v17 = vld [vmem:[%s1311_s4] sm:$0x1]  ;;  %v54_v55 = vld [vmem:[%s1312_s0 + $0x58] sm:$0xff]  ;;  %v56_v1 = vld [vmem:[%s1312_s0 + $0x68] sm:$0xff] }
   0x7   :  { %v43_v22 = vld [vmem:[%s1312_s0] sm:$0xff] }
   0x8   :  { %v37_v6 = vadd.f32 1e-05, %v35_v5  ;;  %v47_v34 = vld [vmem:[%s1312_s0 + $0x20] sm:$0xff]  ;;  %v58_v5 = vld [vmem:[%s1312_s0 + $0x78] sm:$0xff] }
   0x9   :  { %767 = vmatpush3.bf16.msra.mxu0 %v867_v10  ;;  %831 = vmatpush3.bf16.msra.mxu1 %v867_v10  ;;  %v51_v50 = vld [vmem:[%s1312_s0 + $0x40] sm:$0xff] }
   0xa   :  { %874 = vrsqrt.f32 %v37_v6  ;;  %784 = vmatprep.subr.bf16.mxu1 %v941_v13  ;;  %808 = vmatprep.subr.bf16.mxu0 %v946_v15  ;;  %v55_v0 = vld [vmem:[%s1312_s0 + $0x60] sm:$0xff] }
  0x14   :  { %v875_v14 = vpop.eup %874 }
  0x15   :  { %v39_v16 = vmul.f32 %v875_v14, %v36_v11 }
  0x17   :  { %v63_v18 = vrot.slane %v39_v16, %v62_v12  ;;  %v41_v19 = vmul.f32 %v39_v16, %v31_v2  ;;  %v57_v2 = vld [vmem:[%s1312_s0 + $0x70] sm:$0xff]  ;;  %v119_v16 = vld [vmem:[%s1313_s1] sm:$0xff] }
  0x19   :  { %135 = vrot.lane.b32.xlu0 %v63_v18, %s876_s3  ;;  %v42_v20 = vsub.f32 %v40_v17, %v41_v19  ;;  %481 = vrot.lane.b32.xlu1 %v63_v18, %s877_s19  ;;  %v65_v25 = vmul.f32 %v63_v18, %v43_v22  ;;  %v66_v26 = vmul.f32 %v63_v18, %v44_v23  ;;  %v120_v17 = vld [vmem:[%s1313_s1 + $0x8] sm:$0xff]  ;;  %v129_v23 = vld [vmem:[%s1313_s1 + $0x50] sm:$0xff] }
  0x1a   :  { %v67_v28 = vmul.f32 %v63_v18, %v45_v24  ;;  %v68_v29 = vmul.f32 %v63_v18, %v46_v27  ;;  %v69_v38 = vmul.f32 %v63_v18, %v47_v34  ;;  %v70_v39 = vmul.f32 %v63_v18, %v48_v35  ;;  %v128_v19 = vld [vmem:[%s1313_s1 + $0x48] sm:$0xff]  ;;  %v130_v24 = vld [vmem:[%s1313_s1 + $0x58] sm:$0xff]  ;;  %v131_v27 = vld [vmem:[%s1313_s1 + $0x60] sm:$0xff] }
  0x1b   :  { %v85_v21 = vrot.slane %v42_v20, %v62_v12  ;;  %v71_v41 = vmul.f32 %v63_v18, %v49_v36  ;;  %v72_v43 = vmul.f32 %v63_v18, %v50_v40  ;;  %v73_v53 = vmul.f32 %v63_v18, %v51_v50  ;;  %v121_v20 = vld [vmem:[%s1313_s1 + $0x10] sm:$0xff] }
  0x1c   :  { %v74_v54 = vmul.f32 %v63_v18, %v52_v51  ;;  %v75_v56 = vmul.f32 %v63_v18, %v53_v52  ;;  %v76_v57 = vmul.f32 %v63_v18, %v54_v55  ;;  %v77_v3 = vmul.f32 %v63_v18, %v55_v0 }
  0x1d   :  { %154 = vrot.lane.b32.xlu0 %v85_v21, %s876_s3  ;;  %500 = vrot.lane.b32.xlu1 %v85_v21, %s877_s19  ;;  %v965_v30 = vadd.f32 %v85_v21, %v65_v25  ;;  %v967_v31 = vadd.f32 %v85_v21, %v66_v26  ;;  %v969_v32 = vadd.f32 %v85_v21, %v67_v28  ;;  %v123_v25 = vld [vmem:[%s1313_s1 + $0x20] sm:$0xff]  ;;  %v124_v26 = vld [vmem:[%s1313_s1 + $0x28] sm:$0xff] }
  0x1e   :  { %v971_v33 = vadd.f32 %v85_v21, %v68_v29  ;;  %v989_v44 = vadd.f32 %v85_v21, %v69_v38  ;;  %v991_v45 = vadd.f32 %v85_v21, %v70_v39  ;;  %v993_v46 = vadd.f32 %v85_v21, %v71_v41  ;;  %v132_v28 = vld [vmem:[%s1313_s1 + $0x68] sm:$0xff] }
  0x1f   :  { %v103_v37 = vpack.c.bf16 %v967_v31, %v965_v30  ;;  %v995_v47 = vadd.f32 %v85_v21, %v72_v43  ;;  %v1013_v58 = vadd.f32 %v85_v21, %v73_v53  ;;  %v1015_v59 = vadd.f32 %v85_v21, %v74_v54  ;;  %v473_v30 = vld [vmem:[%s1314_s2 + $0x40] sm:$0xff]  ;;  %v474_v31 = vld [vmem:[%s1314_s2 + $0x48] sm:$0xff] }
  0x20   :  { %v104_v42 = vpack.c.bf16 %v971_v33, %v969_v32  ;;  %v105_v48 = vpack.c.bf16 %v991_v45, %v989_v44  ;;  %v1017_v60 = vadd.f32 %v85_v21, %v75_v56  ;;  %v1019_v61 = vadd.f32 %v85_v21, %v76_v57  ;;  %v475_v32 = vld [vmem:[%s1314_s2 + $0x50] sm:$0xff]  ;;  %v476_v33 = vld [vmem:[%s1314_s2 + $0x58] sm:$0xff]  ;;  %v478_v44 = vld [vmem:[%s1314_s2 + $0x68] sm:$0xff] }
  0x21   :  { %v106_v49 = vpack.c.bf16 %v995_v47, %v993_v46  ;;  %v107_v62 = vpack.c.bf16 %v1015_v59, %v1013_v58  ;;  %v78_v4 = vmul.f32 %v63_v18, %v56_v1  ;;  %v79_v6 = vmul.f32 %v63_v18, %v57_v2  ;;  %v479_v46 = vld [vmem:[%s1314_s2 + $0x70] sm:$0xff]  ;;  %v480_v47 = vld [vmem:[%s1314_s2 + $0x78] sm:$0xff] }
  0x22   :  { %v108_v63 = vpack.c.bf16 %v1019_v61, %v1017_v60  ;;  %v80_v7 = vmul.f32 %v63_v18, %v58_v5  ;;  %v1037_v8 = vadd.f32 %v85_v21, %v77_v3  ;;  %v127_v18 = vld [vmem:[%s1313_s1 + $0x40] sm:$0xff]  ;;  %v125_v5 = vld [vmem:[%s1313_s1 + $0x30] sm:$0xff] }
  0x23   :  { %v1039_v9 = vadd.f32 %v85_v21, %v78_v4  ;;  %v1041_v10 = vadd.f32 %v85_v21, %v79_v6  ;;  %v126_v6 = vld [vmem:[%s1313_s1 + $0x38] sm:$0xff] }
  0x24   :  { %v1043_v11 = vadd.f32 %v85_v21, %v80_v7  ;;  %v122_v21 = vld [vmem:[%s1313_s1 + $0x18] sm:$0xff]  ;;  %v133_v7 = vld [vmem:[%s1313_s1 + $0x70] sm:$0xff] }
  0x25   :  { %v109_v12 = vpack.c.bf16 %v1039_v9, %v1037_v8 }
  0x26   :  { %v110_v14 = vpack.c.bf16 %v1043_v11, %v1041_v10 }
  0x8b   :  { %v136_v22 = vpop.permute.xlu0 %135  ;;  %v1085_v54 = vpop.permute.xlu1 %481 }
  0x8c   :  { %v138_v29 = vmul.f32 %v136_v22, %v119_v16  ;;  %v139_v34 = vmul.f32 %v136_v22, %v120_v17  ;;  %v146_v35 = vmul.f32 %v136_v22, %v127_v18  ;;  %v147_v36 = vmul.f32 %v136_v22, %v128_v19 }
  0x8d   :  { %v140_v38 = vmul.f32 %v136_v22, %v121_v20  ;;  %v141_v39 = vmul.f32 %v136_v22, %v122_v21  ;;  %v148_v40 = vmul.f32 %v136_v22, %v129_v23  ;;  %v149_v41 = vmul.f32 %v136_v22, %v130_v24  ;;  %v134_v20 = vld [vmem:[%s1313_s1 + $0x78] sm:$0xff] }
  0x8e   :  { %v142_v50 = vmul.f32 %v136_v22, %v123_v25  ;;  %v143_v51 = vmul.f32 %v136_v22, %v124_v26  ;;  %v150_v52 = vmul.f32 %v136_v22, %v131_v27  ;;  %v151_v53 = vmul.f32 %v136_v22, %v132_v28  ;;  %v465_v26 = vld [vmem:[%s1314_s2] sm:$0xff]  ;;  %v466_v27 = vld [vmem:[%s1314_s2 + $0x8] sm:$0xff] }
  0x8f   :  { %v155_v43 = vpop.permute.xlu0 %154  ;;  %v870_v28 = vld [vmem:[%s1309_s7 + $0x8] sm:$0xff]   ;;  %v498_v58 = vmul.f32 %v1085_v54, %v479_v46  ;;  %v499_v59 = vmul.f32 %v1085_v54, %v480_v47 }
  0x90   :  { %v157_v55 = vadd.f32 %v155_v43, %v138_v29  ;;  %v158_v56 = vadd.f32 %v155_v43, %v139_v34  ;;  %v165_v57 = vadd.f32 %v155_v43, %v146_v35  ;;  %v166_v0 = vadd.f32 %v155_v43, %v147_v36  ;;  %v872_v29 = vld [vmem:[%s1309_s7 + $0x38] sm:$0xff]  }
  0x91   :  { %v159_v1 = vadd.f32 %v155_v43, %v140_v38  ;;  %v160_v2 = vadd.f32 %v155_v43, %v141_v39  ;;  %v167_v3 = vadd.f32 %v155_v43, %v148_v40  ;;  %v168_v4 = vadd.f32 %v155_v43, %v149_v41  ;;  %v1115_v40 = vpop.permute.xlu1 %500 }
  0x92   :  { %v173_v16 = vpack.c.bf16 %v158_v56, %v157_v55  ;;  %v177_v17 = vpack.c.bf16 %v166_v0, %v165_v57  ;;  %v161_v18 = vadd.f32 %v155_v43, %v142_v50  ;;  %v162_v19 = vadd.f32 %v155_v43, %v143_v51  ;;  %v467_v57 = vld [vmem:[%s1314_s2 + $0x10] sm:$0xff]  ;;  %v468_v0 = vld [vmem:[%s1314_s2 + $0x18] sm:$0xff] }
  0x93   :  { %v174_v21 = vpack.c.bf16 %v160_v2, %v159_v1  ;;  %v178_v23 = vpack.c.bf16 %v168_v4, %v167_v3  ;;  %v169_v24 = vadd.f32 %v155_v43, %v150_v52  ;;  %v170_v25 = vadd.f32 %v155_v43, %v151_v53  ;;  %v871_v53 = vld [vmem:[%s1309_s7 + $0x10] sm:$0xff]   ;;  %v469_v1 = vld [vmem:[%s1314_s2 + $0x20] sm:$0xff] }
  0x94   :  { %768 = vmatprep.mubr.msk.bf16.mxu0 %vm197_vm0, %v173_v16  ;;  %776 = vmatprep.mubr.msk.bf16.mxu1 %vm197_vm0, %v177_v17  ;;  %v144_v34 = vmul.f32 %v136_v22, %v125_v5  ;;  %v145_v35 = vmul.f32 %v136_v22, %v126_v6  ;;  %v152_v36 = vmul.f32 %v136_v22, %v133_v7  ;;  %v873_v5 = vld [vmem:[%s1309_s7 + $0x18] sm:$0xff]  }
  0x95   :  { %769 = vmatmul.mubr.msk.bf16.vlgmr.msra.gmra.mrb[0].mxu0 %vm197_vm0, %v174_v21  ;;  %777 = vmatmul.mubr.msk.bf16.vlgmr.msra.gmra.mrb[0].mxu1 %vm197_vm0, %v178_v23  ;;  %v175_v38 = vpack.c.bf16 %v162_v19, %v161_v18  ;;  %v179_v39 = vpack.c.bf16 %v170_v25, %v169_v24  ;;  %v153_v41 = vmul.f32 %v136_v22, %v134_v20  ;;  %v471_v23 = vld [vmem:[%s1314_s2 + $0x30] sm:$0xff]  ;;  %v472_v24 = vld [vmem:[%s1314_s2 + $0x38] sm:$0xff] }
  0x96   :  { %785 = vmatpush3.bf16.msra.mxu1 %v941_v13  ;;  %809 = vmatpush3.bf16.msra.mxu0 %v946_v15  ;;  %v163_v50 = vadd.f32 %v155_v43, %v144_v34  ;;  %v484_v51 = vmul.f32 %v1085_v54, %v465_v26  ;;  %v485_v52 = vmul.f32 %v1085_v54, %v466_v27 }
  0x97   :  { %772 = vmatprep.mubr.msk.bf16.mxu0 %vm197_vm0, %v175_v38  ;;  %780 = vmatprep.mubr.msk.bf16.mxu1 %vm197_vm0, %v179_v39  ;;  %v164_v55 = vadd.f32 %v155_v43, %v145_v35  ;;  %v171_v56 = vadd.f32 %v155_v43, %v152_v36  ;;  %v172_v22 = vadd.f32 %v155_v43, %v153_v41  ;;  %v470_v43 = vld [vmem:[%s1314_s2 + $0x28] sm:$0xff] }
  0x98   :  { %786 = vmatprep.subr.bf16.mxu1 %v870_v28  ;;  %810 = vmatprep.subr.bf16.mxu0 %v872_v29  ;;  %v503_v13 = vadd.f32 %v1115_v40, %v484_v51  ;;  %v504_v15 = vadd.f32 %v1115_v40, %v485_v52  ;;  %v486_v6 = vmul.f32 %v1085_v54, %v467_v57 }
  0x99   :  { %v176_v3 = vpack.c.bf16 %v164_v55, %v163_v50  ;;  %v180_v4 = vpack.c.bf16 %v172_v22, %v171_v56  ;;  %v487_v7 = vmul.f32 %v1085_v54, %v468_v0  ;;  %v488_v16 = vmul.f32 %v1085_v54, %v469_v1 }
  0x9a   :  { %787 = vmatpush3.bf16.msra.mxu1 %v870_v28  ;;  %811 = vmatpush3.bf16.msra.mxu0 %v872_v29  ;;  %v519_v2 = vpack.c.bf16 %v504_v15, %v503_v13  ;;  %v489_v17 = vmul.f32 %v1085_v54, %v470_v43  ;;  %v505_v18 = vadd.f32 %v1115_v40, %v486_v6 }
  0x9b   :  { %788 = vmatprep.subr.bf16.mxu1 %v871_v53  ;;  %v506_v19 = vadd.f32 %v1115_v40, %v487_v7  ;;  %v507_v20 = vadd.f32 %v1115_v40, %v488_v16  ;;  %v490_v25 = vmul.f32 %v1085_v54, %v471_v23  ;;  %v491_v26 = vmul.f32 %v1085_v54, %v472_v24 }
  0x9c   :  { %v508_v21 = vadd.f32 %v1115_v40, %v489_v17  ;;  %v492_v28 = vmul.f32 %v1085_v54, %v473_v30  ;;  %v493_v29 = vmul.f32 %v1085_v54, %v474_v31  ;;  %v495_v39 = vmul.f32 %v1085_v54, %v476_v33 }
  0x9d   :  { %773 = vmatmul.mubr.msk.bf16.gmra.mrb[4].mxu0 %vm197_vm0, %v176_v3  ;;  %781 = vmatmul.mubr.msk.bf16.gmra.mrb[4].mxu1 %vm197_vm0, %v180_v4  ;;  %v509_v34 = vadd.f32 %v1115_v40, %v490_v25  ;;  %v510_v35 = vadd.f32 %v1115_v40, %v491_v26  ;;  %v497_v51 = vmul.f32 %v1085_v54, %v478_v44 }
  0x9e   :  { %789 = vmatpush3.bf16.msra.mxu1 %v871_v53  ;;  %812 = vmatprep.mubr.msk.bf16.mxu0 %vm197_vm0, %v519_v2  ;;  %v521_v27 = vpack.c.bf16 %v508_v21, %v507_v20  ;;  %v511_v36 = vadd.f32 %v1115_v40, %v492_v28  ;;  %v512_v38 = vadd.f32 %v1115_v40, %v493_v29 }
  0x9f   :  { %790 = vmatprep.subr.bf16.mxu1 %v873_v5  ;;  %792 = vmatprep.mubr.msk.bf16.mxu1 %vm343_vm1, %v103_v37  ;;  %v520_v37 = vpack.c.bf16 %v506_v19, %v505_v18  ;;  %v522_v45 = vpack.c.bf16 %v510_v35, %v509_v34  ;;  %v514_v53 = vadd.f32 %v1115_v40, %v495_v39 }
  0xa0   :  { %v523_v41 = vpack.c.bf16 %v512_v38, %v511_v36  ;;  %v516_v56 = vadd.f32 %v1115_v40, %v497_v51  ;;  %v517_v22 = vadd.f32 %v1115_v40, %v498_v58  ;;  %v518_v13 = vadd.f32 %v1115_v40, %v499_v59 }
  0xa2   :  { %791 = vmatpush3.bf16.msra.mxu1 %v873_v5 }
  0xa5   :  { %793 = vmatmul.mubr.msk.bf16.vlgmr.msra.gmra.mrb[8].mxu1 %vm343_vm1, %v104_v42  ;;  %813 = vmatmul.mubr.msk.bf16.vlgmr.msra.gmra.mrb[8].mxu0 %vm197_vm0, %v520_v37  ;;  %v477_v42 = vld [vmem:[%s1314_s2 + $0x60] sm:$0xff] }
  0xa6   :  { %816 = vmatprep.mubr.msk.bf16.mxu0 %vm197_vm0, %v521_v27  ;;  %796 = vmatprep.mubr.msk.bf16.mxu1 %vm343_vm1, %v105_v48  ;;  %v494_v48 = vmul.f32 %v1085_v54, %v475_v32  ;;  %v496_v50 = vmul.f32 %v1085_v54, %v477_v42  ;;  %v526_v54 = vpack.c.bf16 %v518_v13, %v517_v22 }
  0xa8   :  { %v513_v52 = vadd.f32 %v1115_v40, %v494_v48  ;;  %v515_v55 = vadd.f32 %v1115_v40, %v496_v50 }
  0xad   :  { %797 = vmatmul.mubr.msk.bf16.gmra.mrb[12].mxu1 %vm343_vm1, %v106_v49  ;;  %817 = vmatmul.mubr.msk.bf16.gmra.mrb[12].mxu0 %vm197_vm0, %v522_v45  ;;  %v524_v49 = vpack.c.bf16 %v514_v53, %v513_v52 }
  0xae   :  { %820 = vmatprep.mubr.msk.bf16.mxu0 %vm197_vm0, %v523_v41  ;;  %800 = vmatprep.mubr.msk.bf16.mxu1 %vm343_vm1, %v107_v62  ;;  %v525_v62 = vpack.c.bf16 %v516_v56, %v515_v55 }
  0xb5   :  { %801 = vmatmul.mubr.msk.bf16.gmra.mrb[0].mxu1 %vm343_vm1, %v108_v63  ;;  %821 = vmatmul.mubr.msk.bf16.gmra.mrb[16].mxu0 %vm197_vm0, %v524_v49 }
  0xb6   :  { %824 = vmatprep.mubr.msk.bf16.mxu0 %vm197_vm0, %v525_v62  ;;  %804 = vmatprep.mubr.msk.bf16.mxu1 %vm343_vm1, %v109_v12 }
  0xbd   :  { %805 = vmatmul.mubr.msk.bf16.gmra.mrb[4].mxu1 %vm343_vm1, %v110_v14  ;;  %825 = vmatmul.mubr.msk.bf16.gmra.mrb[20].mxu0 %vm197_vm0, %v526_v54 }
 0x168   :  { %v770_v60 = vpop.f32.mrb[0].mxu0 }
 0x169   :  { %v256_v61 = vpop.f32.mrb[1].mxu0 }
 0x16a   :  { %v771_v63 = vpop.f32.mrb[2].mxu0 }
 0x16b   :  { %v259_v15 = vpop.f32.mrb[3].mxu0 }
 0x170   :  { %v774_v57 = vpop.f32.mrb[4].mxu0 }
 0x171   :  { %v272_v8 = vpop.f32.mrb[5].mxu0 }
 0x172   :  { %v775_v9 = vpop.f32.mrb[6].mxu0 }
 0x173   :  { %v275_v12 = vpop.f32.mrb[7].mxu0 }
 0x178   :  { %v794_v0 = vpop.f32.mrb[8].mxu1  ;;  %v814_v1 = vpop.f32.mrb[8].mxu0 }
 0x179   :  { %v411_v43 = vadd.f32 %v794_v0, %v770_v60  ;;  %v402_v40 = vpop.f32.mrb[9].mxu1  ;;  %v601_v2 = vpop.f32.mrb[9].mxu0 }
 0x17a   :  { %v403_v3 = vadd.f32 %v402_v40, %v256_v61  ;;  %v795_v4 = vpop.f32.mrb[10].mxu1  ;;  %v815_v10 = vpop.f32.mrb[10].mxu0 }
 0x17b   :  { %v666_v11 = vadd.f32 %v814_v1, %v411_v43  ;;  %v414_v14 = vadd.f32 %v795_v4, %v771_v63  ;;  %v405_v5 = vpop.f32.mrb[11].mxu1  ;;  %v604_v6 = vpop.f32.mrb[11].mxu0 }
 0x17c   :  { %v664_v7 = vadd.f32 %v601_v2, %v403_v3  ;;  %v406_v16 = vadd.f32 %v405_v5, %v259_v15 }
 0x17d   :  { %682 = vst.msk [vmem:[%s1315_s8 + $0x10] sm:$0xff] %vm343_vm1, %v666_v11  ;;  %v667_v17 = vadd.f32 %v815_v10, %v414_v14 }
 0x17e   :  { %680 = vst.msk [vmem:[%s1315_s8] sm:$0xff] %vm343_vm1, %v664_v7  ;;  %v665_v18 = vadd.f32 %v604_v6, %v406_v16 }
 0x17f   :  { %683 = vst.msk [vmem:[%s1315_s8 + $0x18] sm:$0xff] %vm343_vm1, %v667_v17 }
 0x180   :  { %681 = vst.msk [vmem:[%s1315_s8 + $0x8] sm:$0xff] %vm343_vm1, %v665_v18  ;;  %v798_v19 = vpop.f32.mrb[12].mxu1  ;;  %v818_v20 = vpop.f32.mrb[12].mxu0 }
 0x181   :  { %v427_v21 = vadd.f32 %v798_v19, %v774_v57  ;;  %v418_v23 = vpop.f32.mrb[13].mxu1  ;;  %v617_v24 = vpop.f32.mrb[13].mxu0 }
 0x182   :  { %v419_v30 = vadd.f32 %v418_v23, %v272_v8  ;;  %v799_v31 = vpop.f32.mrb[14].mxu1  ;;  %v819_v37 = vpop.f32.mrb[14].mxu0 }
 0x183   :  { %v670_v25 = vadd.f32 %v818_v20, %v427_v21  ;;  %v430_v26 = vadd.f32 %v799_v31, %v775_v9  ;;  %v421_v27 = vpop.f32.mrb[15].mxu1  ;;  %v620_v28 = vpop.f32.mrb[15].mxu0 }
 0x184   :  { %v668_v29 = vadd.f32 %v617_v24, %v419_v30  ;;  %v422_v34 = vadd.f32 %v421_v27, %v275_v12 }
 0x185   :  { %686 = vst.msk [vmem:[%s1315_s8 + $0x30] sm:$0xff] %vm343_vm1, %v670_v25  ;;  %v671_v35 = vadd.f32 %v819_v37, %v430_v26 }
 0x186   :  { %684 = vst.msk [vmem:[%s1315_s8 + $0x20] sm:$0xff] %vm343_vm1, %v668_v29  ;;  %v669_v36 = vadd.f32 %v620_v28, %v422_v34 }
 0x187   :  { %687 = vst.msk [vmem:[%s1315_s8 + $0x38] sm:$0xff] %vm343_vm1, %v671_v35 }
 0x188   :  { %685 = vst.msk [vmem:[%s1315_s8 + $0x28] sm:$0xff] %vm343_vm1, %v669_v36  ;;  %v802_v38 = vpop.f32.mrb[0].mxu1  ;;  %v822_v32 = vpop.f32.mrb[16].mxu0 }
 0x189   :  { %v848_v33 = vadd.f32 %v822_v32, %v802_v38  ;;  %v434_v42 = vpop.f32.mrb[1].mxu1  ;;  %v633_v44 = vpop.f32.mrb[17].mxu0 }
 0x18a   :  { %v849_v45 = vadd.f32 %v633_v44, %v434_v42  ;;  %v803_v48 = vpop.f32.mrb[2].mxu1  ;;  %v823_v39 = vpop.f32.mrb[18].mxu0 }
 0x18b   :  { %690 = vst.msk [vmem:[%s1315_s8 + $0x50] sm:$0xff] %vm343_vm1, %v848_v33  ;;  %v850_v41 = vadd.f32 %v823_v39, %v803_v48  ;;  %v437_v50 = vpop.f32.mrb[3].mxu1  ;;  %v636_v51 = vpop.f32.mrb[19].mxu0 }
 0x18c   :  { %688 = vst.msk [vmem:[%s1315_s8 + $0x40] sm:$0xff] %vm343_vm1, %v849_v45  ;;  %v851_v52 = vadd.f32 %v636_v51, %v437_v50 }
 0x18d   :  { %691 = vst.msk [vmem:[%s1315_s8 + $0x58] sm:$0xff] %vm343_vm1, %v850_v41 }
 0x18e   :  { %689 = vst.msk [vmem:[%s1315_s8 + $0x48] sm:$0xff] %vm343_vm1, %v851_v52 }
 0x190   :  { %v806_v53 = vpop.f32.mrb[4].mxu1  ;;  %v826_v55 = vpop.f32.mrb[20].mxu0 }
 0x191   :  { %v852_v56 = vadd.f32 %v826_v55, %v806_v53  ;;  %v450_v46 = vpop.f32.mrb[5].mxu1  ;;  %v649_v47 = vpop.f32.mrb[21].mxu0 }
 0x192   :  { %v853_v49 = vadd.f32 %v649_v47, %v450_v46  ;;  %v807_v58 = vpop.f32.mrb[6].mxu1  ;;  %v827_v59 = vpop.f32.mrb[22].mxu0 }
 0x193   :  { %694 = vst.msk [vmem:[%s1315_s8 + $0x70] sm:$0xff] %vm343_vm1, %v852_v56  ;;  %v854_v62 = vadd.f32 %v827_v59, %v807_v58  ;;  %v453_v22 = vpop.f32.mrb[7].mxu1  ;;  %v652_v13 = vpop.f32.mrb[23].mxu0 }
 0x194   :  { %692 = vst.msk [vmem:[%s1315_s8 + $0x60] sm:$0xff] %vm343_vm1, %v853_v49  ;;  %v855_v54 = vadd.f32 %v652_v13, %v453_v22 }
 0x195   :  { %695 = vst.msk [vmem:[%s1315_s8 + $0x78] sm:$0xff] %vm343_vm1, %v854_v62 }
 0x196   :  { %693 = vst.msk [vmem:[%s1315_s8 + $0x68] sm:$0xff] %vm343_vm1, %v855_v54 }

// kernel: _lambda_.31
= control target key start
LH: loop header
LB: loop body
LE: loop exit
PB: predicated region body
PF: predicated region fallthrough
CT: control target
= control target key end

     0   :  { %vm48_vm0 = vcmask 516096   ;;  %s102_s16 = smov 64   ;;  %v103_v2 = vmov 0.0   ;;  %vm39_vm1 = vcmask 523264   ;;  %s182_s0 = inlined_call_operand.vmem [shape: f32[32,128], index: 0, kind: input, shape index: {}]   ;;  %s183_s2 = inlined_call_operand.vmem [shape: f32[1,64], index: 2, kind: output, shape index: {1}]   ;;  %s184_s3 = inlined_call_operand.vmem [shape: f32[1,64], index: 3, kind: output, shape index: {2}]   ;;  %s185_s1 = inlined_call_operand.vmem [shape: f32[32,64], index: 1, kind: output, shape index: {0}]  }
   0x1   :  { %v11_v0 = vld [vmem:[%s182_s0] sm:$0xff]  ;;  %v13_v1 = vld [vmem:[%s182_s0 + $0x10] sm:$0xff]  ;;  %49 = vst.msk [vmem:[%s183_s2] sm:$0x1] %vm48_vm0, %v103_v2  ;;  %50 = vst.msk [vmem:[%s184_s3] sm:$0x1] %vm48_vm0, %v103_v2 }
   0x2   :  { %19 = vrot.lane.b32.xlu0 %v11_v0, %s102_s16  ;;  %23 = vrot.lane.b32.xlu1 %v13_v1, %s102_s16  ;;  %v12_v3 = vld [vmem:[%s182_s0 + $0x8] sm:$0xff]  ;;  %v14_v4 = vld [vmem:[%s182_s0 + $0x18] sm:$0xff] }
   0x6   :  { %21 = vrot.lane.b32.xlu0 %v12_v3, %s102_s16  ;;  %25 = vrot.lane.b32.xlu1 %v14_v4, %s102_s16 }
   0x8   :  { %v51_v44 = vld [vmem:[%s183_s2] sm:$0x1] }
   0x9   :  { %v68_v47 = vld [vmem:[%s184_s3] sm:$0x1] }
  0x74   :  { %v20_v5 = vpop.permute.xlu0 %19  ;;  %v24_v6 = vpop.permute.xlu1 %23 }
  0x75   :  { %v31_v7 = vadd.f32 %v20_v5, %v11_v0  ;;  %v33_v8 = vadd.f32 %v24_v6, %v13_v1 }
  0x77   :  { %v35_v9 = vmul.f32 0.5, %v31_v7  ;;  %v37_v10 = vmul.f32 0.5, %v33_v8 }
  0x78   :  { %v22_v11 = vpop.permute.xlu0 %21  ;;  %v26_v12 = vpop.permute.xlu1 %25 }
  0x79   :  { %40 = vst.msk [vmem:[%s185_s1] sm:$0xff] %vm39_vm1, %v35_v9  ;;  %42 = vst.msk [vmem:[%s185_s1 + $0x10] sm:$0xff] %vm39_vm1, %v37_v10  ;;  %v32_v13 = vadd.f32 %v22_v11, %v12_v3  ;;  %v34_v14 = vadd.f32 %v26_v12, %v14_v4  ;;  %v69_v15 = vmul.f32 %v35_v9, %v35_v9  ;;  %v52_v18 = vsel %vm39_vm1, %v35_v9, 0.0 }
  0x7a   :  { %v71_v19 = vmul.f32 %v37_v10, %v37_v10  ;;  %v55_v25 = vsel %vm39_vm1, %v37_v10, 0.0 }
  0x7b   :  { %v36_v16 = vmul.f32 0.5, %v32_v13  ;;  %v38_v17 = vmul.f32 0.5, %v34_v14  ;;  %v73_v24 = vsel %vm39_vm1, %v69_v15, 0.0 }
  0x7c   :  { %v76_v30 = vsel %vm39_vm1, %v71_v19, 0.0 }
  0x7d   :  { %41 = vst.msk [vmem:[%s185_s1 + $0x8] sm:$0xff] %vm39_vm1, %v36_v16  ;;  %v53_v20 = vsel %vm39_vm1, %v36_v16, 0.0  ;;  %v70_v21 = vmul.f32 %v36_v16, %v36_v16  ;;  %43 = vst.msk [vmem:[%s185_s1 + $0x18] sm:$0xff] %vm39_vm1, %v38_v17  ;;  %v72_v22 = vmul.f32 %v38_v17, %v38_v17  ;;  %v57_v27 = vsel %vm39_vm1, %v38_v17, 0.0 }
  0x7e   :  { %v54_v23 = vadd.f32 %v53_v20, %v52_v18 }
  0x7f   :  { %v74_v26 = vsel %vm39_vm1, %v70_v21, 0.0  ;;  %v78_v31 = vsel %vm39_vm1, %v72_v22, 0.0 }
  0x80   :  { %v75_v28 = vadd.f32 %v74_v26, %v73_v24  ;;  %v56_v29 = vadd.f32 %v55_v25, %v54_v23 }
  0x82   :  { %v58_v32 = vadd.f32 %v57_v27, %v56_v29  ;;  %v77_v33 = vadd.f32 %v76_v30, %v75_v28 }
  0x84   :  { %v59_v34 = vrot.slane %v58_v32, 4  ;;  %v79_v35 = vadd.f32 %v78_v31, %v77_v33 }
  0x86   :  { %v60_v36 = vadd.f32 %v59_v34, %v58_v32  ;;  %v80_v37 = vrot.slane %v79_v35, 4 }
  0x88   :  { %v61_v38 = vrot.slane %v60_v36, 2  ;;  %v81_v39 = vadd.f32 %v80_v37, %v79_v35 }
  0x8a   :  { %v62_v40 = vadd.f32 %v61_v38, %v60_v36  ;;  %v82_v41 = vrot.slane %v81_v39, 2 }
  0x8c   :  { %v63_v42 = vrot.slane %v62_v40, 1  ;;  %v83_v43 = vadd.f32 %v82_v41, %v81_v39 }
  0x8e   :  { %v64_v45 = vadd.f32 %v63_v42, %v62_v40  ;;  %v84_v46 = vrot.slane %v83_v43, 1 }
  0x90   :  { %v65_v48 = vadd.f32 %v64_v45, %v51_v44  ;;  %v85_v49 = vadd.f32 %v84_v46, %v83_v43 }
  0x92   :  { %67 = vst.msk [vmem:[%s183_s2] sm:$0x1] %vm48_vm0, %v65_v48  ;;  %v86_v50 = vadd.f32 %v85_v49, %v68_v47 }
  0x94   :  { %87 = vst.msk [vmem:[%s184_s3] sm:$0x1] %vm48_vm0, %v86_v50 }

// kernel: _lambda_.32
= control target key start
LH: loop header
LB: loop body
LE: loop exit
PB: predicated region body
PF: predicated region fallthrough
CT: control target
= control target key end

     0   :  { %v45_v11 = vlaneseq  ;;  %vm102_vm0 = vcmask 523264   ;;  %v239_v40 = vmov 0.0   ;;  %s351_s5 = inlined_call_operand.vmem [shape: bf16[64,128], index: 5, kind: input, shape index: {}]   ;;  %s352_s3 = inlined_call_operand.vmem [shape: f32[1,64], index: 3, kind: input, shape index: {}]   ;;  %s353_s4 = inlined_call_operand.vmem [shape: f32[1,64], index: 4, kind: input, shape index: {}]   ;;  %s354_s1 = inlined_call_operand.vmem [shape: f32[1,64], index: 1, kind: input, shape index: {}]   ;;  %s355_s2 = inlined_call_operand.vmem [shape: f32[1,64], index: 2, kind: input, shape index: {}]   ;;  %s356_s0 = inlined_call_operand.vmem [shape: f32[32,64], index: 0, kind: input, shape index: {}]   ;;  %s357_s7 = inlined_call_operand.vmem [shape: f32[1,128], index: 7, kind: output, shape index: {1}]   ;;  %s358_s8 = inlined_call_operand.vmem [shape: f32[1,128], index: 8, kind: output, shape index: {2}]   ;;  %s359_s6 = inlined_call_operand.vmem [shape: f32[32,128], index: 6, kind: output, shape index: {0}]  }
   0x1   :  { %v233_v0 = vld [vmem:[%s351_s5] sm:$0xff]   ;;  %v234_v1 = vld [vmem:[%s351_s5 + $0x8] sm:$0xff]   ;;  %v235_v2 = vld [vmem:[%s351_s5 + $0x10] sm:$0xff]   ;;  %166 = vst [vmem:[%s357_s7] sm:$0x1] %v239_v40 }
   0x2   :  { %220 = vmatprep.subr.bf16.mxu0 %v233_v0  ;;  %v27_v3 = vld [vmem:[%s352_s3] sm:$0x1]  ;;  %v236_v8 = vld [vmem:[%s351_s5 + $0x18] sm:$0xff]   ;;  %v46_v12 = vshrl.u32 %v45_v11, 7  ;;  %v41_v19 = vld [vmem:[%s356_s0 + $0x8] sm:$0xff]  ;;  %167 = vst [vmem:[%s358_s8] sm:$0x1] %v239_v40 }
   0x3   :  { %221 = vmatpush3.bf16.msra.mxu0 %v233_v0  ;;  %v29_v4 = vld [vmem:[%s353_s4] sm:$0x1]  ;;  %v28_v5 = vmul.f32 0.03125, %v27_v3  ;;  %v42_v20 = vld [vmem:[%s356_s0 + $0x10] sm:$0xff]  ;;  %v43_v23 = vld [vmem:[%s356_s0 + $0x18] sm:$0xff] }
   0x4   :  { %222 = vmatprep.subr.bf16.mxu0 %v234_v1  ;;  %v30_v6 = vmul.f32 0.03125, %v29_v4  ;;  %v33_v13 = vld [vmem:[%s354_s1] sm:$0x1]  ;;  %v47_v14 = vsub.s32 0, %v46_v12 }
   0x5   :  { %v31_v7 = vmul.f32 %v28_v5, %v28_v5  ;;  %v37_v17 = vld [vmem:[%s355_s2] sm:$0x1] }
   0x6   :  { %v40_v18 = vld [vmem:[%s356_s0] sm:$0xff] }
   0x7   :  { %223 = vmatpush3.bf16.msra.mxu0 %v234_v1  ;;  %v32_v9 = vsub.f32 %v30_v6, %v31_v7 }
   0x8   :  { %224 = vmatprep.subr.bf16.mxu0 %v235_v2  ;;  %v168_v0 = vld [vmem:[%s357_s7] sm:$0x1] }
   0x9   :  { %v34_v10 = vadd.f32 1e-05, %v32_v9  ;;  %v180_v3 = vld [vmem:[%s358_s8] sm:$0x1] }
   0xb   :  { %225 = vmatpush3.bf16.msra.mxu0 %v235_v2  ;;  %237 = vrsqrt.f32 %v34_v10 }
   0xc   :  { %226 = vmatprep.subr.bf16.mxu0 %v236_v8 }
   0xf   :  { %227 = vmatpush3.bf16.msra.mxu0 %v236_v8 }
  0x15   :  { %v238_v15 = vpop.eup %237 }
  0x16   :  { %v36_v16 = vmul.f32 %v238_v15, %v33_v13 }
  0x18   :  { %v38_v21 = vmul.f32 %v36_v16, %v28_v5  ;;  %v48_v22 = vrot.slane %v36_v16, %v47_v14 }
  0x1a   :  { %v39_v24 = vsub.f32 %v37_v17, %v38_v21  ;;  %v50_v25 = vmul.f32 %v48_v22, %v40_v18  ;;  %v51_v26 = vmul.f32 %v48_v22, %v41_v19  ;;  %v52_v27 = vmul.f32 %v48_v22, %v42_v20 }
  0x1b   :  { %v53_v28 = vmul.f32 %v48_v22, %v43_v23 }
  0x1c   :  { %v58_v29 = vrot.slane %v39_v24, %v47_v14 }
  0x1e   :  { %v60_v30 = vadd.f32 %v58_v29, %v50_v25  ;;  %v61_v31 = vadd.f32 %v58_v29, %v51_v26  ;;  %v62_v32 = vadd.f32 %v58_v29, %v52_v27  ;;  %v63_v33 = vadd.f32 %v58_v29, %v53_v28 }
  0x20   :  { %v64_v34 = vmax.f32 %v60_v30, 0.0  ;;  %v65_v35 = vmax.f32 %v61_v31, 0.0  ;;  %v66_v36 = vmax.f32 %v62_v32, 0.0  ;;  %v67_v37 = vmax.f32 %v63_v33, 0.0 }
  0x22   :  { %v68_v38 = vpack.c.bf16 %v65_v35, %v64_v34  ;;  %v69_v39 = vpack.c.bf16 %v67_v37, %v66_v36 }
  0x24   :  { %228 = vmatprep.mubr.msk.bf16.mxu0 %vm102_vm0, %v68_v38 }
  0x25   :  { %229 = vmatmul.mubr.msk.bf16.vlgmr.msra.gmra.mrb[0].mxu0 %vm102_vm0, %v69_v39 }
  0xf8   :  { %v230_v41 = vpop.f32.mrb[0].mxu0 }
  0xf9   :  { %160 = vst [vmem:[%s359_s6 + $0x10] sm:$0xff] %v230_v41  ;;  %v143_v42 = vpop.f32.mrb[1].mxu0  ;;  %v183_v48 = vmul.f32 %v230_v41, %v230_v41 }
  0xfa   :  { %158 = vst [vmem:[%s359_s6] sm:$0xff] %v143_v42  ;;  %v231_v43 = vpop.f32.mrb[2].mxu0  ;;  %v181_v45 = vmul.f32 %v143_v42, %v143_v42 }
  0xfb   :  { %161 = vst [vmem:[%s359_s6 + $0x18] sm:$0xff] %v231_v43  ;;  %v146_v44 = vpop.f32.mrb[3].mxu0  ;;  %v184_v51 = vmul.f32 %v231_v43, %v231_v43 }
  0xfc   :  { %159 = vst [vmem:[%s359_s6 + $0x8] sm:$0xff] %v146_v44  ;;  %v169_v46 = vadd.f32 %v146_v44, %v143_v42  ;;  %v182_v47 = vmul.f32 %v146_v44, %v146_v44 }
  0xfe   :  { %v170_v49 = vadd.f32 %v230_v41, %v169_v46  ;;  %v185_v50 = vadd.f32 %v182_v47, %v181_v45 }
 0x100   :  { %v171_v52 = vadd.f32 %v231_v43, %v170_v49  ;;  %v186_v53 = vadd.f32 %v185_v50, %v183_v48 }
 0x102   :  { %v172_v54 = vrot.slane %v171_v52, 4  ;;  %v187_v55 = vadd.f32 %v186_v53, %v184_v51 }
 0x104   :  { %v173_v56 = vadd.f32 %v172_v54, %v171_v52  ;;  %v188_v57 = vrot.slane %v187_v55, 4 }
 0x106   :  { %v174_v58 = vrot.slane %v173_v56, 2  ;;  %v189_v59 = vadd.f32 %v188_v57, %v187_v55 }
 0x108   :  { %v175_v60 = vadd.f32 %v174_v58, %v173_v56  ;;  %v190_v61 = vrot.slane %v189_v59, 2 }
 0x10a   :  { %v176_v62 = vrot.slane %v175_v60, 1  ;;  %v191_v63 = vadd.f32 %v190_v61, %v189_v59 }
 0x10c   :  { %v177_v1 = vadd.f32 %v176_v62, %v175_v60  ;;  %v192_v2 = vrot.slane %v191_v63, 1 }
 0x10e   :  { %v178_v4 = vadd.f32 %v177_v1, %v168_v0  ;;  %v193_v5 = vadd.f32 %v192_v2, %v191_v63 }
 0x110   :  { %179 = vst [vmem:[%s357_s7] sm:$0x1] %v178_v4  ;;  %v194_v6 = vadd.f32 %v193_v5, %v180_v3 }
 0x112   :  { %195 = vst [vmem:[%s358_s8] sm:$0x1] %v194_v6 }

// kernel: _lambda_.34
= control target key start
LH: loop header
LB: loop body
LE: loop exit
PB: predicated region body
PF: predicated region fallthrough
CT: control target
= control target key end

     0   :  { %v48_v10 = vlaneseq  ;;  %s361_s12 = smov 64   ;;  %vm201_vm0 = vcmask 523264   ;;  %vm121_vm1 = vcmask 261120   ;;  %v362_v62 = vmov 0.0   ;;  %s497_s4 = inlined_call_operand.vmem [shape: f32[1,96], index: 4, kind: input, shape index: {}]   ;;  %s498_s5 = inlined_call_operand.vmem [shape: f32[1,96], index: 5, kind: input, shape index: {}]   ;;  %s499_s6 = inlined_call_operand.vmem [shape: bf16[96,128], index: 6, kind: input, shape index: {}]   ;;  %s500_s2 = inlined_call_operand.vmem [shape: f32[1,96], index: 2, kind: input, shape index: {}]   ;;  %s501_s3 = inlined_call_operand.vmem [shape: f32[1,96], index: 3, kind: input, shape index: {}]   ;;  %s502_s0 = inlined_call_operand.vmem [shape: f32[32,64], index: 0, kind: input, shape index: {}]   ;;  %s503_s1 = inlined_call_operand.vmem [shape: f32[32,32], index: 1, kind: input, shape index: {}]   ;;  %s504_s8 = inlined_call_operand.vmem [shape: f32[1,128], index: 8, kind: output, shape index: {1}]   ;;  %s505_s9 = inlined_call_operand.vmem [shape: f32[1,128], index: 9, kind: output, shape index: {2}]   ;;  %s506_s7 = inlined_call_operand.vmem [shape: f32[32,128], index: 7, kind: output, shape index: {0}]  }
   0x1   :  { %v30_v0 = vld [vmem:[%s497_s4] sm:$0x1]  ;;  %v354_v6 = vld [vmem:[%s499_s6 + $0x8] sm:$0xff]   ;;  %v355_v9 = vld [vmem:[%s499_s6 + $0x10] sm:$0xff]   ;;  %265 = vst [vmem:[%s504_s8] sm:$0x1] %v362_v62 }
   0x2   :  { %v32_v1 = vld [vmem:[%s498_s5] sm:$0x1]  ;;  %v31_v2 = vmul.f32 0.03125, %v30_v0  ;;  %v357_v12 = vld [vmem:[%s499_s6 + $0x18] sm:$0xff]   ;;  %v49_v13 = vshrl.u32 %v48_v10, 7  ;;  %v358_v14 = vld [vmem:[%s499_s6 + $0x28] sm:$0xff]  }
   0x3   :  { %v33_v3 = vmul.f32 0.03125, %v32_v1  ;;  %v353_v4 = vld [vmem:[%s499_s6] sm:$0xff]   ;;  %v44_v21 = vld [vmem:[%s502_s0 + $0x8] sm:$0xff]  ;;  %v45_v22 = vld [vmem:[%s502_s0 + $0x10] sm:$0xff]  ;;  %266 = vst [vmem:[%s505_s9] sm:$0x1] %v362_v62 }
   0x4   :  { %v34_v5 = vmul.f32 %v31_v2, %v31_v2  ;;  %335 = vmatprep.subr.bf16.mxu0 %v353_v4  ;;  %v356_v11 = vld [vmem:[%s499_s6 + $0x20] sm:$0xff]   ;;  %v50_v16 = vsub.s32 0, %v49_v13  ;;  %v46_v25 = vld [vmem:[%s502_s0 + $0x18] sm:$0xff]  ;;  %v82_v44 = vld [vmem:[%s503_s1 + $0x8] sm:$0xff] }
   0x5   :  { %336 = vmatpush3.bf16.msra.mxu0 %v353_v4  ;;  %327 = vmatprep.subr.bf16.mxu1 %v356_v11  ;;  %v36_v15 = vld [vmem:[%s500_s2] sm:$0x1]  ;;  %v83_v45 = vld [vmem:[%s503_s1 + $0x10] sm:$0xff]  ;;  %v84_v46 = vld [vmem:[%s503_s1 + $0x18] sm:$0xff] }
   0x6   :  { %v35_v7 = vsub.f32 %v33_v3, %v34_v5  ;;  %337 = vmatprep.subr.bf16.mxu0 %v354_v6  ;;  %328 = vmatpush3.bf16.msra.mxu1 %v356_v11  ;;  %v40_v19 = vld [vmem:[%s501_s3] sm:$0x1] }
   0x7   :  { %329 = vmatprep.subr.bf16.mxu1 %v358_v14  ;;  %v43_v20 = vld [vmem:[%s502_s0] sm:$0xff] }
   0x8   :  { %v37_v8 = vadd.f32 1e-05, %v35_v7  ;;  %v81_v42 = vld [vmem:[%s503_s1] sm:$0xff] }
   0x9   :  { %338 = vmatpush3.bf16.msra.mxu0 %v354_v6 }
   0xa   :  { %359 = vrsqrt.f32 %v37_v8  ;;  %339 = vmatprep.subr.bf16.mxu0 %v355_v9  ;;  %330 = vmatpush3.bf16.msra.mxu1 %v358_v14 }
   0xd   :  { %340 = vmatpush3.bf16.msra.mxu0 %v355_v9 }
   0xe   :  { %341 = vmatprep.subr.bf16.mxu0 %v357_v12 }
  0x11   :  { %342 = vmatpush3.bf16.msra.mxu0 %v357_v12 }
  0x14   :  { %v360_v17 = vpop.eup %359 }
  0x15   :  { %v39_v18 = vmul.f32 %v360_v17, %v36_v15 }
  0x17   :  { %v51_v23 = vrot.slane %v39_v18, %v50_v16  ;;  %v41_v24 = vmul.f32 %v39_v18, %v31_v2 }
  0x19   :  { %85 = vrot.lane.b32.xlu0 %v51_v23, %s361_s12  ;;  %v42_v26 = vsub.f32 %v40_v19, %v41_v24  ;;  %v53_v27 = vmul.f32 %v51_v23, %v43_v20  ;;  %v54_v28 = vmul.f32 %v51_v23, %v44_v21  ;;  %v55_v29 = vmul.f32 %v51_v23, %v45_v22 }
  0x1a   :  { %v56_v30 = vmul.f32 %v51_v23, %v46_v25 }
  0x1b   :  { %v61_v31 = vrot.slane %v42_v26, %v50_v16 }
  0x1d   :  { %92 = vrot.lane.b32.xlu0 %v61_v31, %s361_s12  ;;  %v63_v32 = vadd.f32 %v61_v31, %v53_v27  ;;  %v64_v33 = vadd.f32 %v61_v31, %v54_v28  ;;  %v65_v34 = vadd.f32 %v61_v31, %v55_v29  ;;  %v66_v35 = vadd.f32 %v61_v31, %v56_v30  ;;  %v267_v30 = vld [vmem:[%s504_s8] sm:$0x1] }
  0x1f   :  { %v67_v36 = vmax.f32 %v63_v32, 0.0  ;;  %v68_v37 = vmax.f32 %v64_v33, 0.0  ;;  %v69_v38 = vmax.f32 %v65_v34, 0.0  ;;  %v70_v39 = vmax.f32 %v66_v35, 0.0  ;;  %v279_v33 = vld [vmem:[%s505_s9] sm:$0x1] }
  0x21   :  { %v71_v40 = vpack.c.bf16 %v68_v37, %v67_v36  ;;  %v72_v41 = vpack.c.bf16 %v70_v39, %v69_v38 }
  0x23   :  { %343 = vmatprep.mubr.msk.bf16.mxu0 %vm201_vm0, %v71_v40 }
  0x24   :  { %344 = vmatmul.mubr.msk.bf16.vlgmr.msra.gmra.mrb[0].mxu0 %vm201_vm0, %v72_v41 }
  0x8b   :  { %v86_v43 = vpop.permute.xlu0 %85 }
  0x8c   :  { %v88_v47 = vmul.f32 %v86_v43, %v81_v42  ;;  %v89_v48 = vmul.f32 %v86_v43, %v82_v44  ;;  %v90_v49 = vmul.f32 %v86_v43, %v83_v45  ;;  %v91_v50 = vmul.f32 %v86_v43, %v84_v46 }
  0x8f   :  { %v93_v51 = vpop.permute.xlu0 %92 }
  0x90   :  { %v95_v52 = vadd.f32 %v93_v51, %v88_v47  ;;  %v96_v53 = vadd.f32 %v93_v51, %v89_v48  ;;  %v97_v54 = vadd.f32 %v93_v51, %v90_v49  ;;  %v98_v55 = vadd.f32 %v93_v51, %v91_v50 }
  0x92   :  { %v101_v56 = vmax.f32 %v97_v54, 0.0  ;;  %v102_v57 = vmax.f32 %v98_v55, 0.0  ;;  %v99_v58 = vmax.f32 %v95_v52, 0.0  ;;  %v100_v59 = vmax.f32 %v96_v53, 0.0 }
  0x94   :  { %v104_v60 = vpack.c.bf16 %v102_v57, %v101_v56  ;;  %v103_v61 = vpack.c.bf16 %v100_v59, %v99_v58 }
  0x96   :  { %331 = vmatprep.mubr.msk.bf16.mxu1 %vm121_vm1, %v103_v61 }
  0x97   :  { %332 = vmatmul.mubr.msk.bf16.vlgmr.msra.gmra.mrb[0].mxu1 %vm121_vm1, %v104_v60 }
  0xf7   :  { %v345_v63 = vpop.f32.mrb[0].mxu0 }
  0xf8   :  { %v242_v0 = vpop.f32.mrb[1].mxu0 }
  0xf9   :  { %v346_v1 = vpop.f32.mrb[2].mxu0 }
  0xfa   :  { %v245_v2 = vpop.f32.mrb[3].mxu0 }
 0x16a   :  { %v333_v3 = vpop.f32.mrb[0].mxu1 }
 0x16b   :  { %v251_v4 = vadd.f32 %v345_v63, %v333_v3  ;;  %v162_v5 = vpop.f32.mrb[1].mxu1 }
 0x16c   :  { %v243_v6 = vadd.f32 %v242_v0, %v162_v5  ;;  %v334_v7 = vpop.f32.mrb[2].mxu1 }
 0x16d   :  { %259 = vst [vmem:[%s506_s7 + $0x10] sm:$0xff] %v251_v4  ;;  %v254_v8 = vadd.f32 %v346_v1, %v334_v7  ;;  %v165_v9 = vpop.f32.mrb[3].mxu1  ;;  %v282_v14 = vmul.f32 %v251_v4, %v251_v4 }
 0x16e   :  { %257 = vst [vmem:[%s506_s7] sm:$0xff] %v243_v6  ;;  %v246_v10 = vadd.f32 %v245_v2, %v165_v9  ;;  %v280_v11 = vmul.f32 %v243_v6, %v243_v6 }
 0x16f   :  { %260 = vst [vmem:[%s506_s7 + $0x18] sm:$0xff] %v254_v8  ;;  %v283_v17 = vmul.f32 %v254_v8, %v254_v8 }
 0x170   :  { %258 = vst [vmem:[%s506_s7 + $0x8] sm:$0xff] %v246_v10  ;;  %v268_v12 = vadd.f32 %v246_v10, %v243_v6  ;;  %v281_v13 = vmul.f32 %v246_v10, %v246_v10 }
 0x172   :  { %v269_v15 = vadd.f32 %v268_v12, %v251_v4  ;;  %v284_v16 = vadd.f32 %v281_v13, %v280_v11 }
 0x174   :  { %v270_v18 = vadd.f32 %v269_v15, %v254_v8  ;;  %v285_v19 = vadd.f32 %v284_v16, %v282_v14 }
 0x176   :  { %v271_v20 = vrot.slane %v270_v18, 4  ;;  %v286_v21 = vadd.f32 %v285_v19, %v283_v17 }
 0x178   :  { %v272_v22 = vadd.f32 %v271_v20, %v270_v18  ;;  %v287_v23 = vrot.slane %v286_v21, 4 }
 0x17a   :  { %v273_v24 = vrot.slane %v272_v22, 2  ;;  %v288_v25 = vadd.f32 %v287_v23, %v286_v21 }
 0x17c   :  { %v274_v26 = vadd.f32 %v273_v24, %v272_v22  ;;  %v289_v27 = vrot.slane %v288_v25, 2 }
 0x17e   :  { %v275_v28 = vrot.slane %v274_v26, 1  ;;  %v290_v29 = vadd.f32 %v289_v27, %v288_v25 }
 0x180   :  { %v276_v31 = vadd.f32 %v275_v28, %v274_v26  ;;  %v291_v32 = vrot.slane %v290_v29, 1 }
 0x182   :  { %v277_v34 = vadd.f32 %v276_v31, %v267_v30  ;;  %v292_v35 = vadd.f32 %v291_v32, %v290_v29 }
 0x184   :  { %278 = vst [vmem:[%s504_s8] sm:$0x1] %v277_v34  ;;  %v293_v36 = vadd.f32 %v292_v35, %v279_v33 }
 0x186   :  { %294 = vst [vmem:[%s505_s9] sm:$0x1] %v293_v36 }

// kernel: _lambda_.36
= control target key start
LH: loop header
LB: loop body
LE: loop exit
PB: predicated region body
PF: predicated region fallthrough
CT: control target
= control target key end

     0   :  { %v48_v9 = vlaneseq  ;;  %s428_s10 = smov 64   ;;  %vm193_vm0 = vcmask 523264   ;;  %vm113_vm1 = vcmask 261120   ;;  %s573_s5 = inlined_call_operand.vmem [shape: f32[1,128], index: 5, kind: input, shape index: {}]   ;;  %s574_s6 = inlined_call_operand.vmem [shape: f32[1,128], index: 6, kind: input, shape index: {}]   ;;  %s575_s7 = inlined_call_operand.vmem [shape: bf16[128,64], index: 7, kind: input, shape index: {}]   ;;  %s576_s3 = inlined_call_operand.vmem [shape: f32[1,128], index: 3, kind: input, shape index: {}]   ;;  %s577_s4 = inlined_call_operand.vmem [shape: f32[1,128], index: 4, kind: input, shape index: {}]   ;;  %s578_s0 = inlined_call_operand.vmem [shape: f32[32,64], index: 0, kind: input, shape index: {}]   ;;  %s579_s1 = inlined_call_operand.vmem [shape: f32[32,32], index: 1, kind: input, shape index: {}]   ;;  %s580_s2 = inlined_call_operand.vmem [shape: f32[32,32], index: 2, kind: input, shape index: {}]   ;;  %s581_s8 = inlined_call_operand.vmem [shape: f32[32,64], index: 8, kind: output, shape index: {}]  }
   0x1   :  { %v30_v0 = vld [vmem:[%s573_s5] sm:$0x1]  ;;  %v419_v6 = vld [vmem:[%s575_s7 + $0x8] sm:$0xff]   ;;  %v421_v11 = vld [vmem:[%s575_s7 + $0x10] sm:$0xff]  }
   0x2   :  { %v32_v1 = vld [vmem:[%s574_s6] sm:$0x1]  ;;  %v31_v2 = vmul.f32 0.03125, %v30_v0  ;;  %v49_v12 = vshrl.u32 %v48_v9, 7  ;;  %v422_v13 = vld [vmem:[%s575_s7 + $0x28] sm:$0xff]   ;;  %v423_v14 = vld [vmem:[%s575_s7 + $0x18] sm:$0xff]  }
   0x3   :  { %v33_v3 = vmul.f32 0.03125, %v32_v1  ;;  %v418_v4 = vld [vmem:[%s575_s7] sm:$0xff]   ;;  %v505_v17 = vld [vmem:[%s575_s7 + $0x30] sm:$0xff]   ;;  %v44_v22 = vld [vmem:[%s578_s0 + $0x8] sm:$0xff] }
   0x4   :  { %v34_v5 = vmul.f32 %v31_v2, %v31_v2  ;;  %388 = vmatprep.subr.bf16.mxu1 %v418_v4  ;;  %v420_v10 = vld [vmem:[%s575_s7 + $0x20] sm:$0xff]   ;;  %v50_v16 = vsub.s32 0, %v49_v12  ;;  %v45_v25 = vld [vmem:[%s578_s0 + $0x10] sm:$0xff]  ;;  %v46_v26 = vld [vmem:[%s578_s0 + $0x18] sm:$0xff] }
   0x5   :  { %389 = vmatpush3.bf16.msra.mxu1 %v418_v4  ;;  %380 = vmatprep.subr.bf16.mxu0 %v420_v10  ;;  %v36_v15 = vld [vmem:[%s576_s3] sm:$0x1]  ;;  %v79_v39 = vld [vmem:[%s579_s1 + $0x10] sm:$0xff]  ;;  %v250_v41 = vld [vmem:[%s580_s2 + $0x8] sm:$0xff] }
   0x6   :  { %v35_v7 = vsub.f32 %v33_v3, %v34_v5  ;;  %390 = vmatprep.subr.bf16.mxu1 %v419_v6  ;;  %381 = vmatpush3.bf16.msra.mxu0 %v420_v10  ;;  %v40_v20 = vld [vmem:[%s577_s4] sm:$0x1]  ;;  %s429_s4 = smov 32   ;;  %v80_v43 = vld [vmem:[%s579_s1 + $0x18] sm:$0xff]  ;;  %v78_v46 = vld [vmem:[%s579_s1 + $0x8] sm:$0xff] }
   0x7   :  { %382 = vmatprep.subr.bf16.mxu0 %v422_v13  ;;  %v43_v21 = vld [vmem:[%s578_s0] sm:$0xff]  ;;  %v251_v59 = vld [vmem:[%s580_s2 + $0x10] sm:$0xff]  ;;  %v252_v60 = vld [vmem:[%s580_s2 + $0x18] sm:$0xff] }
   0x8   :  { %v37_v8 = vadd.f32 1e-05, %v35_v7  ;;  %v249_v40 = vld [vmem:[%s580_s2] sm:$0xff]  ;;  %v425_v4 = vld [vmem:[%s575_s7 + $0x38] sm:$0xff]  }
   0x9   :  { %391 = vmatpush3.bf16.msra.mxu1 %v419_v6  ;;  %v77_v45 = vld [vmem:[%s579_s1] sm:$0xff] }
   0xa   :  { %426 = vrsqrt.f32 %v37_v8  ;;  %392 = vmatprep.subr.bf16.mxu1 %v421_v11  ;;  %383 = vmatpush3.bf16.msra.mxu0 %v422_v13 }
   0xb   :  { %400 = vmatprep.subr.bf16.mxu0 %v505_v17 }
   0xd   :  { %393 = vmatpush3.bf16.msra.mxu1 %v421_v11 }
   0xe   :  { %394 = vmatprep.subr.bf16.mxu1 %v423_v14 }
  0x11   :  { %395 = vmatpush3.bf16.msra.mxu1 %v423_v14 }
  0x14   :  { %v427_v18 = vpop.eup %426 }
  0x15   :  { %v39_v19 = vmul.f32 %v427_v18, %v36_v15 }
  0x17   :  { %v51_v23 = vrot.slane %v39_v19, %v50_v16  ;;  %v41_v24 = vmul.f32 %v39_v19, %v31_v2 }
  0x19   :  { %81 = vrot.lane.b32.xlu0 %v51_v23, %s428_s10  ;;  %v42_v27 = vsub.f32 %v40_v20, %v41_v24  ;;  %253 = vrot.lane.b32.xlu1 %v51_v23, %s429_s4  ;;  %v53_v28 = vmul.f32 %v51_v23, %v43_v21  ;;  %v54_v29 = vmul.f32 %v51_v23, %v44_v22 }
  0x1a   :  { %v55_v30 = vmul.f32 %v51_v23, %v45_v25  ;;  %v56_v31 = vmul.f32 %v51_v23, %v46_v26 }
  0x1b   :  { %v61_v32 = vrot.slane %v42_v27, %v50_v16 }
  0x1d   :  { %88 = vrot.lane.b32.xlu0 %v61_v32, %s428_s10  ;;  %260 = vrot.lane.b32.xlu1 %v61_v32, %s429_s4  ;;  %v63_v33 = vadd.f32 %v61_v32, %v53_v28  ;;  %v64_v34 = vadd.f32 %v61_v32, %v54_v29  ;;  %v65_v35 = vadd.f32 %v61_v32, %v55_v30 }
  0x1e   :  { %v66_v36 = vadd.f32 %v61_v32, %v56_v31 }
  0x1f   :  { %v67_v37 = vpack.c.bf16 %v64_v34, %v63_v33 }
  0x20   :  { %v68_v38 = vpack.c.bf16 %v66_v36, %v65_v35 }
  0x21   :  { %396 = vmatprep.mubr.msk.bf16.mxu1 %vm193_vm0, %v67_v37 }
  0x22   :  { %397 = vmatmul.mubr.msk.bf16.vlgmr.msra.gmra.mrb[0].mxu1 %vm193_vm0, %v68_v38 }
  0x8b   :  { %v82_v42 = vpop.permute.xlu0 %81  ;;  %v254_v44 = vpop.permute.xlu1 %253 }
  0x8c   :  { %v256_v47 = vmul.f32 %v254_v44, %v249_v40  ;;  %v257_v48 = vmul.f32 %v254_v44, %v250_v41  ;;  %v86_v49 = vmul.f32 %v82_v42, %v79_v39  ;;  %v87_v50 = vmul.f32 %v82_v42, %v80_v43 }
  0x8d   :  { %v84_v51 = vmul.f32 %v82_v42, %v77_v45  ;;  %v85_v52 = vmul.f32 %v82_v42, %v78_v46  ;;  %v258_v1 = vmul.f32 %v254_v44, %v251_v59  ;;  %v259_v2 = vmul.f32 %v254_v44, %v252_v60 }
  0x8f   :  { %v89_v53 = vpop.permute.xlu0 %88  ;;  %v261_v54 = vpop.permute.xlu1 %260 }
  0x90   :  { %v93_v55 = vadd.f32 %v89_v53, %v86_v49  ;;  %v94_v56 = vadd.f32 %v89_v53, %v87_v50  ;;  %v91_v57 = vadd.f32 %v89_v53, %v84_v51  ;;  %v92_v58 = vadd.f32 %v89_v53, %v85_v52 }
  0x91   :  { %v263_v61 = vadd.f32 %v261_v54, %v256_v47  ;;  %v264_v62 = vadd.f32 %v261_v54, %v257_v48  ;;  %v265_v5 = vadd.f32 %v261_v54, %v258_v1  ;;  %v266_v6 = vadd.f32 %v261_v54, %v259_v2 }
  0x92   :  { %v96_v63 = vpack.c.bf16 %v94_v56, %v93_v55  ;;  %v95_v0 = vpack.c.bf16 %v92_v58, %v91_v57 }
  0x93   :  { %v267_v3 = vpack.c.bf16 %v264_v62, %v263_v61  ;;  %v268_v7 = vpack.c.bf16 %v266_v6, %v265_v5 }
  0x94   :  { %384 = vmatprep.mubr.msk.bf16.mxu0 %vm113_vm1, %v95_v0 }
  0x95   :  { %385 = vmatmul.mubr.msk.bf16.vlgmr.msra.gmra.mrb[0].mxu0 %vm113_vm1, %v96_v63 }
  0x96   :  { %401 = vmatpush3.bf16.msra.mxu0 %v505_v17  ;;  %404 = vmatprep.mubr.msk.bf16.mxu0 %vm113_vm1, %v267_v3 }
  0x97   :  { %402 = vmatprep.subr.bf16.mxu0 %v425_v4 }
  0x9a   :  { %403 = vmatpush3.bf16.msra.mxu0 %v425_v4 }
  0x9d   :  { %405 = vmatmul.mubr.msk.bf16.vlgmr.msra.gmra.mrb[4].mxu0 %vm113_vm1, %v268_v7 }
  0xf5   :  { %v398_v8 = vpop.f32.mrb[0].mxu1 }
  0xf6   :  { %v234_v9 = vpop.f32.mrb[1].mxu1 }
  0xf7   :  { %v399_v10 = vpop.f32.mrb[2].mxu1 }
  0xf8   :  { %v237_v11 = vpop.f32.mrb[3].mxu1 }
 0x168   :  { %v386_v12 = vpop.f32.mrb[0].mxu0 }
 0x169   :  { %v243_v13 = vadd.f32 %v398_v8, %v386_v12  ;;  %v154_v14 = vpop.f32.mrb[1].mxu0 }
 0x16a   :  { %v235_v15 = vadd.f32 %v234_v9, %v154_v14  ;;  %v387_v16 = vpop.f32.mrb[2].mxu0 }
 0x16b   :  { %v246_v18 = vadd.f32 %v399_v10, %v387_v16  ;;  %v157_v17 = vpop.f32.mrb[3].mxu0 }
 0x16c   :  { %v238_v19 = vadd.f32 %v237_v11, %v157_v17 }
 0x170   :  { %v406_v20 = vpop.f32.mrb[4].mxu0 }
 0x171   :  { %v342_v21 = vadd.f32 %v406_v20, %v243_v13  ;;  %v325_v22 = vpop.f32.mrb[5].mxu0 }
 0x172   :  { %v340_v23 = vadd.f32 %v325_v22, %v235_v15  ;;  %v407_v24 = vpop.f32.mrb[6].mxu0 }
 0x173   :  { %346 = vst.msk [vmem:[%s581_s8 + $0x10] sm:$0xff] %vm193_vm0, %v342_v21  ;;  %v343_v25 = vadd.f32 %v407_v24, %v246_v18  ;;  %v328_v26 = vpop.f32.mrb[7].mxu0 }
 0x174   :  { %344 = vst.msk [vmem:[%s581_s8] sm:$0xff] %vm193_vm0, %v340_v23  ;;  %v341_v27 = vadd.f32 %v328_v26, %v238_v19 }
 0x175   :  { %347 = vst.msk [vmem:[%s581_s8 + $0x18] sm:$0xff] %vm193_vm0, %v343_v25 }
 0x176   :  { %345 = vst.msk [vmem:[%s581_s8 + $0x8] sm:$0xff] %vm193_vm0, %v341_v27 }

// kernel: _lambda_.37
= control target key start
LH: loop header
LB: loop body
LE: loop exit
PB: predicated region body
PF: predicated region fallthrough
CT: control target
= control target key end

     0   :  { %s36_s0 = inlined_call_operand.vmem [shape: f32[4,512], index: 0, kind: input, shape index: {}]   ;;  %s37_s1 = inlined_call_operand.vmem [shape: f32[4,256], index: 1, kind: output, shape index: {}]  }
   0x1   :  { %v8_v0 = vld [vmem:[%s36_s0] sm:$0xff]  ;;  %v9_v1 = vld [vmem:[%s36_s0 + $0x8] sm:$0xff] }
   0x2   :  { %v10_v2 = vadd.f32 %v9_v1, %v8_v0 }
   0x4   :  { %v11_v3 = vmul.f32 0.5, %v10_v2 }
   0x6   :  { %12 = vst [vmem:[%s37_s1] sm:$0xff] %v11_v3 }

// kernel: _lambda_.38
= control target key start
LH: loop header
LB: loop body
LE: loop exit
PB: predicated region body
PF: predicated region fallthrough
CT: control target
= control target key end

     0   :  { %vm24_vm0 = vcmask 516096   ;;  %v63_v1 = vmov 0.0   ;;  %s64_s18 = smov 64   ;;  %vm18_vm1 = vcmask 523264   ;;  %s113_s0 = inlined_call_operand.vmem [shape: f32[8,128], index: 0, kind: input, shape index: {}]   ;;  %s114_s2 = inlined_call_operand.vmem [shape: f32[1,64], index: 2, kind: output, shape index: {1}]   ;;  %s115_s3 = inlined_call_operand.vmem [shape: f32[1,64], index: 3, kind: output, shape index: {2}]   ;;  %s116_s1 = inlined_call_operand.vmem [shape: f32[8,64], index: 1, kind: output, shape index: {0}]  }
   0x1   :  { %v11_v0 = vld [vmem:[%s113_s0] sm:$0xff]  ;;  %25 = vst.msk [vmem:[%s114_s2] sm:$0x1] %vm24_vm0, %v63_v1  ;;  %26 = vst.msk [vmem:[%s115_s3] sm:$0x1] %vm24_vm0, %v63_v1 }
   0x2   :  { %13 = vrot.lane.b32.xlu0 %v11_v0, %s64_s18 }
   0x8   :  { %v27_v17 = vld [vmem:[%s114_s2] sm:$0x1] }
   0x9   :  { %v38_v20 = vld [vmem:[%s115_s3] sm:$0x1] }
  0x74   :  { %v14_v2 = vpop.permute.xlu0 %13 }
  0x75   :  { %v16_v3 = vadd.f32 %v14_v2, %v11_v0 }
  0x77   :  { %v17_v4 = vmul.f32 0.5, %v16_v3 }
  0x79   :  { %19 = vst.msk [vmem:[%s116_s1] sm:$0xff] %vm18_vm1, %v17_v4  ;;  %v28_v5 = vsel %vm18_vm1, %v17_v4, 0.0  ;;  %v39_v6 = vmul.f32 %v17_v4, %v17_v4 }
  0x7a   :  { %v29_v7 = vrot.slane %v28_v5, 4 }
  0x7b   :  { %v40_v8 = vsel %vm18_vm1, %v39_v6, 0.0 }
  0x7c   :  { %v30_v9 = vadd.f32 %v29_v7, %v28_v5  ;;  %v41_v10 = vrot.slane %v40_v8, 4 }
  0x7e   :  { %v31_v11 = vrot.slane %v30_v9, 2  ;;  %v42_v12 = vadd.f32 %v41_v10, %v40_v8 }
  0x80   :  { %v32_v13 = vadd.f32 %v31_v11, %v30_v9  ;;  %v43_v14 = vrot.slane %v42_v12, 2 }
  0x82   :  { %v33_v15 = vrot.slane %v32_v13, 1  ;;  %v44_v16 = vadd.f32 %v43_v14, %v42_v12 }
  0x84   :  { %v34_v18 = vadd.f32 %v33_v15, %v32_v13  ;;  %v45_v19 = vrot.slane %v44_v16, 1 }
  0x86   :  { %v35_v21 = vadd.f32 %v34_v18, %v27_v17  ;;  %v46_v22 = vadd.f32 %v45_v19, %v44_v16 }
  0x88   :  { %37 = vst.msk [vmem:[%s114_s2] sm:$0x1] %vm24_vm0, %v35_v21  ;;  %v47_v23 = vadd.f32 %v46_v22, %v38_v20 }
  0x8a   :  { %48 = vst.msk [vmem:[%s115_s3] sm:$0x1] %vm24_vm0, %v47_v23 }

// kernel: _lambda_.33
= control target key start
LH: loop header
LB: loop body
LE: loop exit
PB: predicated region body
PF: predicated region fallthrough
CT: control target
= control target key end

     0   :  { %s2285_s27 = smov 0   ;;  %s2699_s0 = inlined_call_operand.vmem [shape: f32[2,4,4,128], index: 0, kind: input, shape index: {}]   ;;  %s2700_s1 = inlined_call_operand.vmem [shape: f32[1,128], index: 1, kind: input, shape index: {}]   ;;  %s2701_s2 = inlined_call_operand.vmem [shape: f32[1,128], index: 2, kind: input, shape index: {}]   ;;  %s2702_s3 = inlined_call_operand.vmem [shape: f32[1,128], index: 3, kind: input, shape index: {}]   ;;  %s2703_s4 = inlined_call_operand.vmem [shape: f32[1,128], index: 4, kind: input, shape index: {}]   ;;  %s2704_s5 = inlined_call_operand.vmem [shape: bf16[9,128,32], index: 5, kind: input, shape index: {}]   ;;  %s2705_s6 = inlined_call_operand.vmem [shape: f32[2,4,4,32], index: 6, kind: output, shape index: {0}]   ;;  %s2706_s7 = inlined_call_operand.vmem [shape: f32[1,32], index: 7, kind: output, shape index: {1}]   ;;  %s2707_s8 = inlined_call_operand.vmem [shape: f32[1,32], index: 8, kind: output, shape index: {2}]  }
   0x1 LB: > { %s1560_s28 = sadd.s32 4294967295, %s2222_s27   ;;  %p1564_p0 = scmp.ge.s32.totalorder %s2222_s27, 1  ;;  %s2222_s27 = sphi %s2285_s27, %s19_s27  }
   0x2   : > { %p257_p1 = scmp.lt.s32.totalorder %s2222_s27, 3 }
   0x4   : > { %p258_p2 = pnand %p1564_p0, %p257_p1 }
   0x5   : > { %p291_p3 = scmp.lt.s32.totalorder (!%p258_p2), %s1560_s28, 1  ;;  %p1569_p4 = scmp.ne.s32.totalorder (!%p258_p2), %s1560_s28, 0 }
   0x6   : > { %261 = sbr.rel (%p258_p2) target bundleno = 460 (0x1cc), region = 44 }
   0xd   : > { %s292_s29 = scalar_select %p291_p3, %s1560_s28, 1 }
   0xe   : > { %305 = sbr.rel (%p1569_p4) target bundleno = 21 (0x15), region = 48  ;;  %vm312_vm0 = vcmask (!%p1569_p4), 253952   ;;  %v2236_v0 = vmov (!%p1569_p4), 0   ;;  %v2237_v1 = vmov (!%p1569_p4), 0.0  }
   0xf   : > { %s1792_s30 = sshll.u32 %s292_s29, 4  ;;  %306 = vst [vmem:[#allocation2] sm:$0x7] (!%p1569_p4), %v2236_v0  ;;  %307 = vst [vmem:[#allocation2 + $0x4] sm:$0x7] (!%p1569_p4), %v2236_v0 }
  0x10   : > { %s2296_s11 = scalar_lea.vmem %s2699_s0, %s1792_s30  ;;  %s2301_s14 = scalar_lea.vmem %s2705_s6, %s1792_s30  ;;  %308 = vst [vmem:[#allocation2 + $0x8] sm:$0x7] (!%p1569_p4), %v2236_v0  ;;  %309 = vst [vmem:[#allocation2 + $0xc] sm:$0x7] (!%p1569_p4), %v2236_v0 }
  0x11   : > { %310 = vst [vmem:[#allocation2 + $0x10] sm:$0x7] (!%p1569_p4), %v2236_v0  ;;  %311 = vst [vmem:[#allocation2 + $0x14] sm:$0x7] (!%p1569_p4), %v2236_v0 }
  0x12   : > { %313 = vst.msk [vmem:[%s2706_s7] sm:$0x1] (!%p1569_p4), %vm312_vm0, %v2237_v1  ;;  %314 = vst.msk [vmem:[%s2707_s8] sm:$0x1] (!%p1569_p4), %vm312_vm0, %v2237_v1 }
  0x15 PF: > { %v315_v2 = vld [vmem:[%s2702_s3] sm:$0x1]  ;;  %v333_v9 = vlaneseq  ;;  %v329_v17 = vld [vmem:[%s2296_s11 + $0x4] sm:$0xf]  ;;  %v330_v18 = vld [vmem:[%s2296_s11 + $0x8] sm:$0xf] }
  0x16   : > { %v317_v3 = vld [vmem:[%s2703_s4] sm:$0x1]  ;;  %v316_v4 = vmul.f32 0.03125, %v315_v2  ;;  %v331_v21 = vld [vmem:[%s2296_s11 + $0xc] sm:$0xf]  ;;  %vm405_vm1 = vcmask 1042432  }
  0x17   : > { %v318_v5 = vmul.f32 0.03125, %v317_v3  ;;  %v334_v10 = vshrl.u32 %v333_v9, 7  ;;  %v321_v11 = vld [vmem:[%s2700_s1] sm:$0x1]  ;;  %vm406_vm2 = vsmask.f32 2306 }
  0x18   : > { %v319_v6 = vmul.f32 %v316_v4, %v316_v4  ;;  %v325_v15 = vld [vmem:[%s2701_s2] sm:$0x1]  ;;  %vm2325_vm3 = vmand %vm405_vm1, %vm406_vm2  ;;  %v408_v51 = vld [vmem:[#allocation2 + $0x4] sm:$0x7]  ;;  %v2337_v1 = vmov 0.0   ;;  %v2339_v2 = vmov 0.0  }
  0x19   : > { %v335_v12 = vsub.s32 0, %v334_v10  ;;  %v328_v16 = vld [vmem:[%s2296_s11] sm:$0xf]  ;;  %v411_v52 = vld [vmem:[#allocation2 + $0x8] sm:$0x7]  ;;  %s2341_s28 = smov 0  }
  0x1a   : > { %v320_v7 = vsub.f32 %v318_v5, %v319_v6  ;;  %v414_v57 = vld [vmem:[#allocation2 + $0xc] sm:$0x7]  ;;  %v417_v58 = vld [vmem:[#allocation2 + $0x10] sm:$0x7] }
  0x1c   : > { %v322_v8 = vadd.f32 1e-05, %v320_v7 }
  0x1e   : > { %2124 = vrsqrt.f32 %v322_v8 }
  0x28   : > { %v2125_v13 = vpop.eup %2124 }
  0x29   : > { %v324_v14 = vmul.f32 %v2125_v13, %v321_v11 }
  0x2b   : > { %v326_v19 = vmul.f32 %v324_v14, %v316_v4  ;;  %v336_v20 = vrot.slane %v324_v14, %v335_v12 }
  0x2d   : > { %v327_v22 = vsub.f32 %v325_v15, %v326_v19  ;;  %v338_v23 = vmul.f32 %v336_v20, %v328_v16  ;;  %v339_v24 = vmul.f32 %v336_v20, %v329_v17  ;;  %v340_v25 = vmul.f32 %v336_v20, %v330_v18 }
  0x2e   : > { %v341_v26 = vmul.f32 %v336_v20, %v331_v21 }
  0x2f   : > { %v346_v27 = vrot.slane %v327_v22, %v335_v12 }
  0x31   : > { %v348_v28 = vadd.f32 %v346_v27, %v338_v23  ;;  %v349_v29 = vadd.f32 %v346_v27, %v339_v24  ;;  %v350_v30 = vadd.f32 %v346_v27, %v340_v25  ;;  %v351_v31 = vadd.f32 %v346_v27, %v341_v26 }
  0x33   : > { %v352_v32 = vmax.f32 %v348_v28, 0.0  ;;  %v353_v33 = vmax.f32 %v349_v29, 0.0  ;;  %v354_v34 = vmax.f32 %v350_v30, 0.0  ;;  %v355_v35 = vmax.f32 %v351_v31, 0.0 }
  0x35   : > { %v1794_v36 = vpack.c.bf16 %v352_v32, %v352_v32  ;;  %v1795_v37 = vpack.c.bf16 %v353_v33, %v353_v33  ;;  %v1796_v38 = vpack.c.bf16 %v354_v34, %v354_v34  ;;  %v1797_v39 = vpack.c.bf16 %v355_v35, %v355_v35 }
  0x37   : > { %v373_v40 = vshrl.u32 %v1794_v36, 16  ;;  %v376_v41 = vshll.u32 %v1794_v36, 16  ;;  %v380_v42 = vshrl.u32 %v1795_v37, 16  ;;  %v383_v43 = vshll.u32 %v1795_v37, 16 }
  0x38   : > { %v387_v44 = vshrl.u32 %v1796_v38, 16  ;;  %v390_v45 = vshll.u32 %v1796_v38, 16  ;;  %v394_v46 = vshrl.u32 %v1797_v39, 16  ;;  %v397_v47 = vshll.u32 %v1797_v39, 16 }
  0x39   : > { %v375_v48 = vrot.slane %v373_v40, 7  ;;  %v382_v49 = vrot.slane %v380_v42, 7 }
  0x3a   : > { %v389_v53 = vrot.slane %v387_v44, 7  ;;  %v396_v54 = vrot.slane %v394_v46, 7 }
  0x3b   : > { %v378_v55 = vor.u32 %v376_v41, %v375_v48  ;;  %v385_v56 = vor.u32 %v383_v43, %v382_v49 }
  0x3c   : > { %v392_v59 = vor.u32 %v390_v45, %v389_v53  ;;  %v399_v60 = vor.u32 %v397_v47, %v396_v54 }
  0x3d   : > { %v409_v61 = vsel %vm2325_vm3, %v378_v55, %v408_v51  ;;  %v412_v62 = vsel %vm2325_vm3, %v385_v56, %v411_v52 }
  0x3e   : > { %410 = vst [vmem:[#allocation2 + $0x4] sm:$0x7] %v409_v61  ;;  %413 = vst [vmem:[#allocation2 + $0x8] sm:$0x7] %v412_v62  ;;  %v415_v63 = vsel %vm2325_vm3, %v392_v59, %v414_v57  ;;  %v418_v0 = vsel %vm2325_vm3, %v399_v60, %v417_v58 }
  0x3f   : > { %416 = vst [vmem:[#allocation2 + $0xc] sm:$0x7] %v415_v63  ;;  %419 = vst [vmem:[#allocation2 + $0x10] sm:$0x7] %v418_v0 }
  0x40 LB: >> { %v2126_v3 = vld [vmem:[%s2704_s5 + $0x40] sm:$0xff]   ;;  %v2238_v4 = vmov 0.0   ;;  %v2128_v6 = vld [vmem:[%s2704_s5 + $0x48] sm:$0xff]   ;;  %vm2239_vm4 = vmmov 0   ;;  %v2130_v8 = vld [vmem:[%s2704_s5 + $0x50] sm:$0xff]   ;;  %s1574_s22 = sshll.u32 %s2234_s28, 2  ;;  %s2234_s28 = sphi %s2341_s28, %s425_s28   ;;  %v2230_v2 = vphi %v2339_v2, %v2711_v2   ;;  %v2226_v1 = vphi %v2337_v1, %v2710_v1  }
  0x41   : >> { %1879 = vmatprep.subr.bf16.mxu1 %v2238_v4  ;;  %1959 = vmatprep.subr.bf16.mxu0 %v2238_v4  ;;  %v2127_v5 = vld [vmem:[%s2704_s5 + $0x100] sm:$0xff]   ;;  %v2129_v7 = vld [vmem:[%s2704_s5 + $0x108] sm:$0xff]   ;;  %v2131_v9 = vld [vmem:[%s2704_s5 + $0x110] sm:$0xff]   ;;  %s2399_s9 = scalar_lea.vmem [#allocation2], %s1574_s22  ;;  %s1445_s16 = scalar_lea.vmem %s2301_s14, %s1574_s22  ;;  %vm1446_vm5 = vcmask 257024  }
  0x42   : >> { %1880 = vmatpush3.bf16.msra.mxu1 %v2126_v3  ;;  %1895 = vmatprep.mubr.msk.bf16.mxu1 %vm2239_vm4, %v2238_v4  ;;  %v2132_v10 = vld [vmem:[%s2704_s5 + $0x58] sm:$0xff]   ;;  %v2134_v12 = vld [vmem:[%s2704_s5 + $0x60] sm:$0xff]   ;;  %v2136_v15 = vld [vmem:[%s2704_s5 + $0x68] sm:$0xff]   ;;  %s425_s28 = sadd.s32 1, %s2234_s28  }
  0x43   : >> { %1960 = vmatpush3.bf16.msra.mxu0 %v2127_v5  ;;  %1881 = vmatprep.subr.bf16.mxu1 %v2238_v4  ;;  %v2133_v11 = vld [vmem:[%s2704_s5 + $0x118] sm:$0xff]   ;;  %v2135_v13 = vld [vmem:[%s2704_s5 + $0x120] sm:$0xff]   ;;  %v2137_v16 = vld [vmem:[%s2704_s5 + $0x128] sm:$0xff]   ;;  %p422_p5 = scmp.ge.s32.totalorder %s425_s28, 4  }
  0x44   : >> { %1961 = vmatprep.subr.bf16.mxu0 %v2238_v4  ;;  %1975 = vmatprep.mubr.msk.bf16.mxu0 %vm2239_vm4, %v2238_v4  ;;  %v2138_v19 = vld [vmem:[%s2704_s5 + $0x70] sm:$0xff]   ;;  %v2140_v22 = vld [vmem:[%s2704_s5 + $0x78] sm:$0xff]   ;;  %v2143_v29 = vld [vmem:[%s2704_s5] sm:$0xff]   ;;  %vm1467_vm6 = vcmask (%p422_p5), 253952  }
  0x45   : >> { %v2139_v21 = vld [vmem:[%s2704_s5 + $0x130] sm:$0xff]   ;;  %v2141_v27 = vld [vmem:[%s2704_s5 + $0x138] sm:$0xff]   ;;  %v2145_v31 = vld [vmem:[%s2704_s5 + $0x140] sm:$0xff]  }
  0x46   : >> { %1882 = vmatpush3.bf16.msra.mxu1 %v2128_v6  ;;  %v2142_v14 = vld [vmem:[%s2399_s9] ss:$0 sps:$4 sm:$0x77]   ;;  %v2144_v17 = vld [vmem:[%s2399_s9 + $0x4] ss:$0 sps:$4 sm:$0x77]  }
  0x47   : >> { %1962 = vmatpush3.bf16.msra.mxu0 %v2129_v7  ;;  %1883 = vmatprep.subr.bf16.mxu1 %v2238_v4  ;;  %v471_v18 = vshll.u32 %v2142_v14, 16  ;;  %v898_v20 = vshll.u32 %v2144_v17, 16  ;;  %v469_v23 = vshrl.u32 %v2142_v14, 16  ;;  %v896_v25 = vshrl.u32 %v2144_v17, 16  ;;  %v2146_v32 = vld [vmem:[%s2704_s5 + $0x8] sm:$0xff]   ;;  %v2148_v34 = vld [vmem:[%s2704_s5 + $0x10] sm:$0xff]  }
  0x48   : >> { %1963 = vmatprep.subr.bf16.mxu0 %v2238_v4  ;;  %v2147_v33 = vld [vmem:[%s2704_s5 + $0x148] sm:$0xff]   ;;  %v2149_v35 = vld [vmem:[%s2704_s5 + $0x150] sm:$0xff]   ;;  %v2150_v36 = vld [vmem:[%s2704_s5 + $0x18] sm:$0xff]  }
  0x49   : >> { %v473_v24 = vrot.slane %v471_v18, 1  ;;  %v900_v26 = vrot.slane %v898_v20, 1  ;;  %v2151_v37 = vld [vmem:[%s2704_s5 + $0x158] sm:$0xff]   ;;  %v2152_v38 = vld [vmem:[%s2704_s5 + $0x20] sm:$0xff]   ;;  %v2154_v40 = vld [vmem:[%s2704_s5 + $0x28] sm:$0xff]  }
  0x4a   : >> { %1884 = vmatpush3.bf16.msra.mxu1 %v2130_v8  ;;  %v2153_v39 = vld [vmem:[%s2704_s5 + $0x160] sm:$0xff]   ;;  %v2155_v41 = vld [vmem:[%s2704_s5 + $0x168] sm:$0xff]   ;;  %v2156_v42 = vld [vmem:[%s2704_s5 + $0x30] sm:$0xff]  }
  0x4b   : >> { %1964 = vmatpush3.bf16.msra.mxu0 %v2131_v9  ;;  %1885 = vmatprep.subr.bf16.mxu1 %v2238_v4  ;;  %v474_v28 = vor.u32 %v473_v24, %v469_v23  ;;  %v901_v30 = vor.u32 %v900_v26, %v896_v25  ;;  %v2157_v43 = vld [vmem:[%s2704_s5 + $0x170] sm:$0xff]   ;;  %v2161_v44 = vld [vmem:[%s2399_s9 + $0x4] ss:$0 sps:$4 sm:$0x66]   ;;  %v2158_v45 = vld [vmem:[%s2704_s5 + $0x38] sm:$0xff]  }
  0x4c   : >> { %1965 = vmatprep.subr.bf16.mxu0 %v2238_v4  ;;  %v2159_v46 = vld [vmem:[%s2704_s5 + $0x178] sm:$0xff]   ;;  %v430_v47 = vld [vmem:[%s2399_s9] sm:$0x3]  ;;  %v1013_v49 = vrot.slane %v2161_v44, 1  ;;  %v2163_v51 = vld [vmem:[%s2704_s5 + $0x88] sm:$0xff]  }
  0x4d   : >> { %v2160_v48 = vld [vmem:[%s2704_s5 + $0x80] sm:$0xff]   ;;  %v2164_v52 = vld [vmem:[%s2704_s5 + $0x188] sm:$0xff]   ;;  %v2165_v53 = vld [vmem:[%s2704_s5 + $0x90] sm:$0xff]  }
  0x4e   : >> { %1886 = vmatpush3.bf16.msra.mxu1 %v2132_v10  ;;  %v2162_v50 = vld [vmem:[%s2704_s5 + $0x180] sm:$0xff]   ;;  %v2166_v54 = vld [vmem:[%s2704_s5 + $0x190] sm:$0xff]   ;;  %v2167_v55 = vld [vmem:[%s2704_s5 + $0x98] sm:$0xff]  }
  0x4f   : >> { %1966 = vmatpush3.bf16.msra.mxu0 %v2133_v11  ;;  %1887 = vmatprep.subr.bf16.mxu1 %v2238_v4  ;;  %v2168_v56 = vld [vmem:[%s2704_s5 + $0x198] sm:$0xff]   ;;  %v2169_v57 = vld [vmem:[%s2704_s5 + $0xa0] sm:$0xff]   ;;  %v2171_v59 = vld [vmem:[%s2704_s5 + $0xa8] sm:$0xff]  }
  0x50   : >> { %1967 = vmatprep.subr.bf16.mxu0 %v2238_v4  ;;  %v2170_v58 = vld [vmem:[%s2704_s5 + $0x1a0] sm:$0xff]   ;;  %v2172_v60 = vld [vmem:[%s2704_s5 + $0x1a8] sm:$0xff]   ;;  %v2173_v61 = vld [vmem:[%s2704_s5 + $0xb0] sm:$0xff]  }
  0x51   : >> { %v2174_v62 = vld [vmem:[%s2704_s5 + $0x1b0] sm:$0xff]   ;;  %v2177_v63 = vld [vmem:[%s2399_s9] ss:$0 sps:$4 sm:$0x66]   ;;  %v2175_v0 = vld [vmem:[%s2704_s5 + $0xb8] sm:$0xff]  }
  0x52   : >> { %1888 = vmatpush3.bf16.msra.mxu1 %v2134_v12  ;;  %v2176_v3 = vld [vmem:[%s2704_s5 + $0x1b8] sm:$0xff]   ;;  %v673_v5 = vrot.slane %v2177_v63, 1  ;;  %v2178_v6 = vld [vmem:[%s2704_s5 + $0xc0] sm:$0xff]   ;;  %v1712_v7 = vld [vmem:[%s2399_s9 + $0x8] sm:$0x3] }
  0x53   : >> { %1968 = vmatpush3.bf16.msra.mxu0 %v2135_v13  ;;  %1889 = vmatprep.subr.bf16.mxu1 %v2238_v4  ;;  %v2179_v8 = vld [vmem:[%s2704_s5 + $0x1c0] sm:$0xff]   ;;  %v2180_v9 = vld [vmem:[%s2704_s5 + $0xc8] sm:$0xff]   ;;  %v2182_v11 = vld [vmem:[%s2704_s5 + $0xd0] sm:$0xff]  }
  0x54   : >> { %1969 = vmatprep.subr.bf16.mxu0 %v2238_v4  ;;  %v2181_v10 = vld [vmem:[%s2704_s5 + $0x1c8] sm:$0xff]   ;;  %v2183_v12 = vld [vmem:[%s2704_s5 + $0x1d0] sm:$0xff]   ;;  %v2184_v13 = vld [vmem:[%s2704_s5 + $0xd8] sm:$0xff]  }
  0x55   : >> { %v2185_v14 = vld [vmem:[%s2704_s5 + $0x1d8] sm:$0xff]   ;;  %v2188_v17 = vld [vmem:[%s2704_s5 + $0xe8] sm:$0xff]   ;;  %v2190_v20 = vld [vmem:[%s2704_s5 + $0xf0] sm:$0xff]  }
  0x56   : >> { %1890 = vmatpush3.bf16.msra.mxu1 %v2136_v15  ;;  %v2186_v15 = vld [vmem:[%s2704_s5 + $0xe0] sm:$0xff]   ;;  %v2194_v18 = vld [vmem:[%s2399_s9 + $0x8] ss:$0 sps:$4 sm:$0x77]   ;;  %v2192_v23 = vld [vmem:[%s2704_s5 + $0xf8] sm:$0xff]  }
  0x57   : >> { %1970 = vmatpush3.bf16.msra.mxu0 %v2137_v16  ;;  %1891 = vmatprep.subr.bf16.mxu1 %v2238_v4  ;;  %v2187_v16 = vld [vmem:[%s2704_s5 + $0x1e0] sm:$0xff]   ;;  %v1236_v24 = vshrl.u32 %v2194_v18, 16  ;;  %v2193_v26 = vld [vmem:[%s2704_s5 + $0x1f8] sm:$0xff]  }
  0x58   : >> { %1971 = vmatprep.subr.bf16.mxu0 %v2238_v4 }
  0x5a   : >> { %1892 = vmatpush3.bf16.msra.mxu1 %v2138_v19  ;;  %v2189_v19 = vld [vmem:[%s2704_s5 + $0x1e8] sm:$0xff]  }
  0x5b   : >> { %1972 = vmatpush3.bf16.msra.mxu0 %v2139_v21  ;;  %1893 = vmatprep.subr.bf16.mxu1 %v2238_v4  ;;  %v1238_v21 = vshll.u32 %v2194_v18, 16 }
  0x5c   : >> { %1973 = vmatprep.subr.bf16.mxu0 %v2238_v4 }
  0x5d   : >> { %v1240_v25 = vrot.slane %v1238_v21, 1 }
  0x5e   : >> { %1894 = vmatpush3.bf16.msra.mxu1 %v2140_v22  ;;  %v2191_v22 = vld [vmem:[%s2704_s5 + $0x1f0] sm:$0xff]  }
  0x5f   : >> { %1974 = vmatpush3.bf16.msra.mxu0 %v2141_v27  ;;  %1899 = vmatprep.subr.bf16.mxu1 %v2238_v4  ;;  %v1634_v27 = vld [vmem:[%s2399_s9 + $0x4] sm:$0x3] }
  0x60   : >> { %1979 = vmatprep.subr.bf16.mxu0 %v2238_v4 }
  0x61   : >> { %1896 = vmatmul.mubr.bf16.vlgmr.msra.gmra.mrb[0].mxu1 %v474_v28  ;;  %v1241_v28 = vor.u32 %v1240_v25, %v1236_v24 }
  0x62   : >> { %1900 = vmatpush3.bf16.msra.mxu1 %v2143_v29  ;;  %1976 = vmatmul.mubr.bf16.vlgmr.msra.gmra.mrb[0].mxu0 %v901_v30  ;;  %v2195_v29 = vld [vmem:[%s2704_s5 + $0x200] sm:$0xff]   ;;  %v2196_v30 = vld [vmem:[%s2704_s5 + $0x208] sm:$0xff]  }
  0x63   : >> { %1980 = vmatpush3.bf16.msra.mxu0 %v2145_v31  ;;  %1901 = vmatprep.subr.bf16.mxu1 %v2238_v4  ;;  %v2197_v31 = vld [vmem:[%s2704_s5 + $0x210] sm:$0xff]  }
  0x64   : >> { %1981 = vmatprep.subr.bf16.mxu0 %v2238_v4  ;;  %1915 = vmatprep.mubr.msk.bf16.mxu1 %vm2239_vm4, %v2238_v4 }
  0x65   : >> { %1995 = vmatprep.mubr.msk.bf16.mxu0 %vm2239_vm4, %v2238_v4 }
  0x66   : >> { %1902 = vmatpush3.bf16.msra.mxu1 %v2146_v32  ;;  %v2198_v32 = vld [vmem:[%s2704_s5 + $0x218] sm:$0xff]  }
  0x67   : >> { %1982 = vmatpush3.bf16.msra.mxu0 %v2147_v33  ;;  %1903 = vmatprep.subr.bf16.mxu1 %v2238_v4  ;;  %v2199_v33 = vld [vmem:[%s2704_s5 + $0x220] sm:$0xff]  }
  0x68   : >> { %1983 = vmatprep.subr.bf16.mxu0 %v2238_v4 }
  0x6a   : >> { %1904 = vmatpush3.bf16.msra.mxu1 %v2148_v34  ;;  %v2200_v34 = vld [vmem:[%s2704_s5 + $0x228] sm:$0xff]  }
  0x6b   : >> { %1984 = vmatpush3.bf16.msra.mxu0 %v2149_v35  ;;  %1905 = vmatprep.subr.bf16.mxu1 %v2238_v4  ;;  %v2201_v35 = vld [vmem:[%s2704_s5 + $0x230] sm:$0xff]  }
  0x6c   : >> { %1985 = vmatprep.subr.bf16.mxu0 %v2238_v4 }
  0x6e   : >> { %1906 = vmatpush3.bf16.msra.mxu1 %v2150_v36  ;;  %v2203_v36 = vld [vmem:[%s2399_s9 + $0x8] ss:$0 sps:$4 sm:$0x66]  }
  0x6f   : >> { %1986 = vmatpush3.bf16.msra.mxu0 %v2151_v37  ;;  %1907 = vmatprep.subr.bf16.mxu1 %v2238_v4  ;;  %v2202_v37 = vld [vmem:[%s2704_s5 + $0x238] sm:$0xff]  }
  0x70   : >> { %1987 = vmatprep.subr.bf16.mxu0 %v2238_v4 }
  0x72   : >> { %1908 = vmatpush3.bf16.msra.mxu1 %v2152_v38  ;;  %v1353_v38 = vrot.slane %v2203_v36, 1 }
  0x73   : >> { %1988 = vmatpush3.bf16.msra.mxu0 %v2153_v39  ;;  %1909 = vmatprep.subr.bf16.mxu1 %v2238_v4 }
  0x74   : >> { %1989 = vmatprep.subr.bf16.mxu0 %v2238_v4 }
  0x76   : >> { %1910 = vmatpush3.bf16.msra.mxu1 %v2154_v40 }
  0x77   : >> { %1990 = vmatpush3.bf16.msra.mxu0 %v2155_v41  ;;  %1911 = vmatprep.subr.bf16.mxu1 %v2238_v4 }
  0x78   : >> { %1991 = vmatprep.subr.bf16.mxu0 %v2238_v4 }
  0x7a   : >> { %1912 = vmatpush3.bf16.msra.mxu1 %v2156_v42 }
  0x7b   : >> { %1992 = vmatpush3.bf16.msra.mxu0 %v2157_v43  ;;  %1913 = vmatprep.subr.bf16.mxu1 %v2238_v4 }
  0x7c   : >> { %1993 = vmatprep.subr.bf16.mxu0 %v2238_v4 }
  0x7e   : >> { %1914 = vmatpush3.bf16.msra.mxu1 %v2158_v45 }
  0x7f   : >> { %1994 = vmatpush3.bf16.msra.mxu0 %v2159_v46  ;;  %1919 = vmatprep.subr.bf16.mxu1 %v2238_v4 }
  0x80   : >> { %1999 = vmatprep.subr.bf16.mxu0 %v2238_v4 }
  0x81   : >> { %1916 = vmatmul.mubr.bf16.vlgmr.msra.gmra.mrb[0].mxu1 %v430_v47 }
  0x82   : >> { %1920 = vmatpush3.bf16.msra.mxu1 %v2160_v48  ;;  %1996 = vmatmul.mubr.bf16.vlgmr.msra.gmra.mrb[0].mxu0 %v1013_v49 }
  0x83   : >> { %2000 = vmatpush3.bf16.msra.mxu0 %v2162_v50  ;;  %1921 = vmatprep.subr.bf16.mxu1 %v2238_v4 }
  0x84   : >> { %2001 = vmatprep.subr.bf16.mxu0 %v2238_v4  ;;  %1935 = vmatprep.mubr.msk.bf16.mxu1 %vm2239_vm4, %v2238_v4 }
  0x85   : >> { %2015 = vmatprep.mubr.msk.bf16.mxu0 %vm2239_vm4, %v2238_v4 }
  0x86   : >> { %1922 = vmatpush3.bf16.msra.mxu1 %v2163_v51 }
  0x87   : >> { %2002 = vmatpush3.bf16.msra.mxu0 %v2164_v52  ;;  %1923 = vmatprep.subr.bf16.mxu1 %v2238_v4 }
  0x88   : >> { %2003 = vmatprep.subr.bf16.mxu0 %v2238_v4 }
  0x8a   : >> { %1924 = vmatpush3.bf16.msra.mxu1 %v2165_v53 }
  0x8b   : >> { %2004 = vmatpush3.bf16.msra.mxu0 %v2166_v54  ;;  %1925 = vmatprep.subr.bf16.mxu1 %v2238_v4 }
  0x8c   : >> { %2005 = vmatprep.subr.bf16.mxu0 %v2238_v4 }
  0x8e   : >> { %1926 = vmatpush3.bf16.msra.mxu1 %v2167_v55 }
  0x8f   : >> { %2006 = vmatpush3.bf16.msra.mxu0 %v2168_v56  ;;  %1927 = vmatprep.subr.bf16.mxu1 %v2238_v4 }
  0x90   : >> { %2007 = vmatprep.subr.bf16.mxu0 %v2238_v4 }
  0x92   : >> { %1928 = vmatpush3.bf16.msra.mxu1 %v2169_v57 }
  0x93   : >> { %2008 = vmatpush3.bf16.msra.mxu0 %v2170_v58  ;;  %1929 = vmatprep.subr.bf16.mxu1 %v2238_v4 }
  0x94   : >> { %2009 = vmatprep.subr.bf16.mxu0 %v2238_v4 }
  0x96   : >> { %1930 = vmatpush3.bf16.msra.mxu1 %v2171_v59 }
  0x97   : >> { %2010 = vmatpush3.bf16.msra.mxu0 %v2172_v60  ;;  %1931 = vmatprep.subr.bf16.mxu1 %v2238_v4 }
  0x98   : >> { %2011 = vmatprep.subr.bf16.mxu0 %v2238_v4 }
  0x9a   : >> { %1932 = vmatpush3.bf16.msra.mxu1 %v2173_v61 }
  0x9b   : >> { %2012 = vmatpush3.bf16.msra.mxu0 %v2174_v62  ;;  %1933 = vmatprep.subr.bf16.mxu1 %v2238_v4 }
  0x9c   : >> { %2013 = vmatprep.subr.bf16.mxu0 %v2238_v4 }
  0x9e   : >> { %1934 = vmatpush3.bf16.msra.mxu1 %v2175_v0  ;;  %v1465_v0 = vld [vmem:[%s2706_s7] sm:$0x1] (%p422_p5) }
  0x9f   : >> { %2014 = vmatpush3.bf16.msra.mxu0 %v2176_v3  ;;  %1939 = vmatprep.subr.bf16.mxu1 %v2238_v4 }
  0xa0   : >> { %2019 = vmatprep.subr.bf16.mxu0 %v2238_v4 }
  0xa1   : >> { %1936 = vmatmul.mubr.bf16.vlgmr.msra.gmra.mrb[0].mxu1 %v673_v5 }
  0xa2   : >> { %1940 = vmatpush3.bf16.msra.mxu1 %v2178_v6  ;;  %2016 = vmatmul.mubr.bf16.vlgmr.msra.gmra.mrb[0].mxu0 %v1712_v7 }
  0xa3   : >> { %2020 = vmatpush3.bf16.msra.mxu0 %v2179_v8  ;;  %1941 = vmatprep.subr.bf16.mxu1 %v2238_v4 }
  0xa4   : >> { %2021 = vmatprep.subr.bf16.mxu0 %v2238_v4  ;;  %1955 = vmatprep.mubr.msk.bf16.mxu1 %vm2239_vm4, %v2238_v4 }
  0xa5   : >> { %2035 = vmatprep.mubr.msk.bf16.mxu0 %vm2239_vm4, %v2238_v4 }
  0xa6   : >> { %1942 = vmatpush3.bf16.msra.mxu1 %v2180_v9 }
  0xa7   : >> { %2022 = vmatpush3.bf16.msra.mxu0 %v2181_v10  ;;  %1943 = vmatprep.subr.bf16.mxu1 %v2238_v4 }
  0xa8   : >> { %2023 = vmatprep.subr.bf16.mxu0 %v2238_v4 }
  0xaa   : >> { %1944 = vmatpush3.bf16.msra.mxu1 %v2182_v11 }
  0xab   : >> { %2024 = vmatpush3.bf16.msra.mxu0 %v2183_v12  ;;  %1945 = vmatprep.subr.bf16.mxu1 %v2238_v4 }
  0xac   : >> { %2025 = vmatprep.subr.bf16.mxu0 %v2238_v4 }
  0xae   : >> { %1946 = vmatpush3.bf16.msra.mxu1 %v2184_v13 }
  0xaf   : >> { %2026 = vmatpush3.bf16.msra.mxu0 %v2185_v14  ;;  %1947 = vmatprep.subr.bf16.mxu1 %v2238_v4 }
  0xb0   : >> { %2027 = vmatprep.subr.bf16.mxu0 %v2238_v4 }
  0xb2   : >> { %1948 = vmatpush3.bf16.msra.mxu1 %v2186_v15 }
  0xb3   : >> { %2028 = vmatpush3.bf16.msra.mxu0 %v2187_v16  ;;  %1949 = vmatprep.subr.bf16.mxu1 %v2238_v4 }
  0xb4   : >> { %2029 = vmatprep.subr.bf16.mxu0 %v2238_v4 }
  0xb6   : >> { %1950 = vmatpush3.bf16.msra.mxu1 %v2188_v17 }
  0xb7   : >> { %2030 = vmatpush3.bf16.msra.mxu0 %v2189_v19  ;;  %1951 = vmatprep.subr.bf16.mxu1 %v2238_v4 }
  0xb8   : >> { %2031 = vmatprep.subr.bf16.mxu0 %v2238_v4 }
  0xba   : >> { %1952 = vmatpush3.bf16.msra.mxu1 %v2190_v20 }
  0xbb   : >> { %2032 = vmatpush3.bf16.msra.mxu0 %v2191_v22  ;;  %1953 = vmatprep.subr.bf16.mxu1 %v2238_v4 }
  0xbc   : >> { %2033 = vmatprep.subr.bf16.mxu0 %v2238_v4 }
  0xbe   : >> { %1954 = vmatpush3.bf16.msra.mxu1 %v2192_v23 }
  0xbf   : >> { %2034 = vmatpush3.bf16.msra.mxu0 %v2193_v26 }
  0xc0   : >> { %2039 = vmatprep.subr.bf16.mxu0 %v2238_v4 }
  0xc1   : >> { %1956 = vmatmul.mubr.bf16.vlgmr.msra.gmra.mrb[0].mxu1 %v1634_v27 }
  0xc2   : >> { %2036 = vmatmul.mubr.bf16.vlgmr.msra.gmra.mrb[0].mxu0 %v1241_v28 }
  0xc3   : >> { %2040 = vmatpush3.bf16.msra.mxu0 %v2195_v29  ;;  %2055 = vmatprep.mubr.msk.bf16.mxu0 %vm2239_vm4, %v2238_v4 }
  0xc4   : >> { %2041 = vmatprep.subr.bf16.mxu0 %v2238_v4 }
  0xc7   : >> { %2042 = vmatpush3.bf16.msra.mxu0 %v2196_v30 }
  0xc8   : >> { %2043 = vmatprep.subr.bf16.mxu0 %v2238_v4 }
  0xcb   : >> { %2044 = vmatpush3.bf16.msra.mxu0 %v2197_v31 }
  0xcc   : >> { %2045 = vmatprep.subr.bf16.mxu0 %v2238_v4 }
  0xcf   : >> { %2046 = vmatpush3.bf16.msra.mxu0 %v2198_v32 }
  0xd0   : >> { %2047 = vmatprep.subr.bf16.mxu0 %v2238_v4 }
  0xd3   : >> { %2048 = vmatpush3.bf16.msra.mxu0 %v2199_v33 }
  0xd4   : >> { %2049 = vmatprep.subr.bf16.mxu0 %v2238_v4 }
  0xd7   : >> { %2050 = vmatpush3.bf16.msra.mxu0 %v2200_v34 }
  0xd8   : >> { %2051 = vmatprep.subr.bf16.mxu0 %v2238_v4 }
  0xdb   : >> { %2052 = vmatpush3.bf16.msra.mxu0 %v2201_v35 }
  0xdc   : >> { %2053 = vmatprep.subr.bf16.mxu0 %v2238_v4 }
  0xdf   : >> { %2054 = vmatpush3.bf16.msra.mxu0 %v2202_v37 }
  0xe2   : >> { %2056 = vmatmul.mubr.bf16.vlgmr.msra.gmra.mrb[0].mxu0 %v1353_v38 }
 0x194   : >> { %v867_v39 = vpop.f32.mrb[0].mxu1 }
 0x195   : >> { %v1957_v40 = vpop.f32.mrb[1].mxu1 }
 0x196   : >> { %v870_v41 = vpop.f32.mrb[2].mxu1 }
 0x197   : >> { %v1958_v42 = vpop.f32.mrb[3].mxu1 }
 0x1b5   : >> { %v1437_v43 = vpop.f32.mrb[0].mxu0 }
 0x1b6   : >> { %v2059_v44 = vadd.f32 %v1437_v43, %v867_v39  ;;  %v2057_v45 = vpop.f32.mrb[1].mxu0 }
 0x1b7   : >> { %v1440_v46 = vpop.f32.mrb[2].mxu0 }
 0x1b8   : >> { %1447 = vst.msk [vmem:[%s1445_s16] sm:$0xf] %vm1446_vm5, %v2059_v44  ;;  %v1448_v47 = vsel %vm1446_vm5, %v2059_v44, 0.0  ;;  %v1456_v48 = vmul.f32 %v2059_v44, %v2059_v44  ;;  %v2058_v49 = vpop.f32.mrb[3].mxu0 }
 0x1b9   : >> { %v1449_v50 = vrot.slane %v1448_v47, 4 }
 0x1ba   : >> { %v1457_v4 = vsel %vm1446_vm5, %v1456_v48, 0.0 }
 0x1bb   : >> { %v1450_v51 = vadd.f32 %v1449_v50, %v1448_v47  ;;  %v1458_v52 = vrot.slane %v1457_v4, 4 }
 0x1bd   : >> { %v1451_v53 = vrot.slane %v1450_v51, 2  ;;  %v1459_v54 = vadd.f32 %v1458_v52, %v1457_v4 }
 0x1bf   : >> { %v1452_v55 = vadd.f32 %v1451_v53, %v1450_v51  ;;  %v1460_v56 = vrot.slane %v1459_v54, 2 }
 0x1c1   : >> { %v1453_v57 = vrot.slane %v1452_v55, 1  ;;  %v1461_v58 = vadd.f32 %v1460_v56, %v1459_v54 }
 0x1c3   : >> { %v1454_v59 = vadd.f32 %v1453_v57, %v1452_v55  ;;  %v1462_v60 = vrot.slane %v1461_v58, 1  ;;  %424 = sbr.rel (!%p422_p5) target bundleno = 64 (0x40), region = 114 }
 0x1c5   : >> { %v1455_v61 = vadd.f32 %v2230_v2, %v1454_v59   ;;  %v1463_v62 = vadd.f32 %v1462_v60, %v1461_v58 }
 0x1c7   : >> { %v1464_v63 = vadd.f32 %v2226_v1, %v1463_v62   ;;  %v2711_v2 = vmov %v1455_v61  ;;  %v1466_v3 = vadd.f32 (%p422_p5), %v1465_v0, %v1455_v61 }
 0x1c8   : > { %v1469_v2 = vld [vmem:[%s2707_s8] sm:$0x1] (%p422_p5) }
 0x1c9   : >> { %v2710_v1 = vmov %v1464_v63  ;;  %v1470_v5 = vadd.f32 (%p422_p5), %v1469_v2, %v1464_v63  ;;  %1468 = vst.msk [vmem:[%s2706_s7] sm:$0x1] (%p422_p5), %vm1467_vm6, %v1466_v3 }
 0x1cb   : > { %1471 = vst.msk [vmem:[%s2707_s8] sm:$0x1] %vm1467_vm6, %v1470_v5 }
 0x1cc PF: > { %s19_s27 = sadd.s32 1, %s2222_s27  }
 0x1cd   : > { %p16_p6 = scmp.ge.s32.totalorder %s19_s27, 4  }
 0x1cf   :  { %18 = sbr.rel (!%p16_p6) target bundleno = 1 (0x1), region = 125 }

// kernel: _lambda_.39
= control target key start
LH: loop header
LB: loop body
LE: loop exit
PB: predicated region body
PF: predicated region fallthrough
CT: control target
= control target key end

     0   :  { %v201_v0 = vmov 0.0   ;;  %vm202_vm0 = vmmov 0   ;;  %v42_v12 = vlaneseq  ;;  %vm89_vm1 = vcmask 523264   ;;  %s296_s5 = inlined_call_operand.vmem [shape: bf16[64,128], index: 5, kind: input, shape index: {}]   ;;  %s297_s7 = inlined_call_operand.vmem [shape: f32[1,128], index: 7, kind: output, shape index: {1}]   ;;  %s298_s8 = inlined_call_operand.vmem [shape: f32[1,128], index: 8, kind: output, shape index: {2}]   ;;  %s299_s3 = inlined_call_operand.vmem [shape: f32[1,64], index: 3, kind: input, shape index: {}]   ;;  %s300_s4 = inlined_call_operand.vmem [shape: f32[1,64], index: 4, kind: input, shape index: {}]   ;;  %s301_s1 = inlined_call_operand.vmem [shape: f32[1,64], index: 1, kind: input, shape index: {}]   ;;  %s302_s0 = inlined_call_operand.vmem [shape: f32[8,64], index: 0, kind: input, shape index: {}]   ;;  %s303_s2 = inlined_call_operand.vmem [shape: f32[1,64], index: 2, kind: input, shape index: {}]   ;;  %s304_s6 = inlined_call_operand.vmem [shape: f32[8,128], index: 6, kind: output, shape index: {0}]  }
   0x1   :  { %181 = vmatprep.subr.bf16.mxu0 %v201_v0  ;;  %v195_v1 = vld [vmem:[%s296_s5] sm:$0xff]   ;;  %189 = vmatprep.mubr.msk.bf16.mxu0 %vm202_vm0, %v201_v0  ;;  %138 = vst [vmem:[%s297_s7] sm:$0x1] %v201_v0  ;;  %139 = vst [vmem:[%s298_s8] sm:$0x1] %v201_v0  ;;  %v196_v2 = vld [vmem:[%s296_s5 + $0x8] sm:$0xff]  }
   0x2   :  { %182 = vmatpush3.bf16.msra.mxu0 %v195_v1  ;;  %v27_v3 = vld [vmem:[%s299_s3] sm:$0x1]  ;;  %v197_v7 = vld [vmem:[%s296_s5 + $0x10] sm:$0xff]   ;;  %v198_v10 = vld [vmem:[%s296_s5 + $0x18] sm:$0xff]   ;;  %v43_v13 = vshrl.u32 %v42_v12, 7 }
   0x3   :  { %183 = vmatprep.subr.bf16.mxu0 %v201_v0  ;;  %v29_v4 = vld [vmem:[%s300_s4] sm:$0x1]  ;;  %v28_v5 = vmul.f32 0.125, %v27_v3 }
   0x4   :  { %v30_v6 = vmul.f32 0.125, %v29_v4  ;;  %v33_v14 = vld [vmem:[%s301_s1] sm:$0x1]  ;;  %v44_v15 = vsub.s32 0, %v43_v13 }
   0x5   :  { %v31_v8 = vmul.f32 %v28_v5, %v28_v5  ;;  %v37_v18 = vld [vmem:[%s303_s2] sm:$0x1] }
   0x6   :  { %184 = vmatpush3.bf16.msra.mxu0 %v196_v2  ;;  %v40_v19 = vld [vmem:[%s302_s0] sm:$0xff] }
   0x7   :  { %185 = vmatprep.subr.bf16.mxu0 %v201_v0  ;;  %v32_v9 = vsub.f32 %v30_v6, %v31_v8 }
   0x8   :  { %v140_v42 = vld [vmem:[%s297_s7] sm:$0x1] }
   0x9   :  { %v34_v11 = vadd.f32 1e-05, %v32_v9  ;;  %v149_v45 = vld [vmem:[%s298_s8] sm:$0x1] }
   0xa   :  { %186 = vmatpush3.bf16.msra.mxu0 %v197_v7 }
   0xb   :  { %187 = vmatprep.subr.bf16.mxu0 %v201_v0  ;;  %199 = vrsqrt.f32 %v34_v11 }
   0xe   :  { %188 = vmatpush3.bf16.msra.mxu0 %v198_v10 }
  0x15   :  { %v200_v16 = vpop.eup %199 }
  0x16   :  { %v36_v17 = vmul.f32 %v200_v16, %v33_v14 }
  0x18   :  { %v38_v20 = vmul.f32 %v36_v17, %v28_v5  ;;  %v45_v21 = vrot.slane %v36_v17, %v44_v15 }
  0x1a   :  { %v39_v22 = vsub.f32 %v37_v18, %v38_v20  ;;  %v47_v23 = vmul.f32 %v45_v21, %v40_v19 }
  0x1c   :  { %v52_v24 = vrot.slane %v39_v22, %v44_v15 }
  0x1e   :  { %v54_v25 = vadd.f32 %v52_v24, %v47_v23 }
  0x20   :  { %v55_v26 = vmax.f32 %v54_v25, 0.0 }
  0x22   :  { %v56_v27 = vpack.c.bf16 %v55_v26, %v55_v26 }
  0x24   :  { %190 = vmatmul.mubr.msk.bf16.vlgmr.msra.gmra.mrb[0].mxu0 %vm89_vm1, %v56_v27 }
  0xf7   :  { %v127_v28 = vpop.f32.mrb[0].mxu0 }
  0xf8   :  { %133 = vst [vmem:[%s304_s6] sm:$0xff] %v127_v28  ;;  %v141_v29 = vrot.slane %v127_v28, 4  ;;  %v150_v30 = vmul.f32 %v127_v28, %v127_v28  ;;  %v191_v31 = vpop.f32.mrb[1].mxu0 }
  0xf9   :  { %v130_v32 = vpop.f32.mrb[2].mxu0 }
  0xfa   :  { %v142_v33 = vadd.f32 %v141_v29, %v127_v28  ;;  %v151_v34 = vrot.slane %v150_v30, 4  ;;  %v192_v35 = vpop.f32.mrb[3].mxu0 }
  0xfc   :  { %v143_v36 = vrot.slane %v142_v33, 2  ;;  %v152_v37 = vadd.f32 %v151_v34, %v150_v30 }
  0xfe   :  { %v144_v38 = vadd.f32 %v143_v36, %v142_v33  ;;  %v153_v39 = vrot.slane %v152_v37, 2 }
 0x100   :  { %v145_v40 = vrot.slane %v144_v38, 1  ;;  %v154_v41 = vadd.f32 %v153_v39, %v152_v37 }
 0x102   :  { %v146_v43 = vadd.f32 %v145_v40, %v144_v38  ;;  %v155_v44 = vrot.slane %v154_v41, 1 }
 0x104   :  { %v147_v46 = vadd.f32 %v146_v43, %v140_v42  ;;  %v156_v47 = vadd.f32 %v155_v44, %v154_v41 }
 0x106   :  { %148 = vst [vmem:[%s297_s7] sm:$0x1] %v147_v46  ;;  %v157_v48 = vadd.f32 %v156_v47, %v149_v45 }
 0x108   :  { %158 = vst [vmem:[%s298_s8] sm:$0x1] %v157_v48 }

// kernel: _lambda_.41
= control target key start
LH: loop header
LB: loop body
LE: loop exit
PB: predicated region body
PF: predicated region fallthrough
CT: control target
= control target key end

     0   :  { %v293_v2 = vmov 0.0   ;;  %v45_v11 = vlaneseq  ;;  %vm294_vm0 = vmmov 0   ;;  %vm163_vm1 = vcmask 523264   ;;  %s403_s4 = inlined_call_operand.vmem [shape: f32[1,96], index: 4, kind: input, shape index: {}]   ;;  %s404_s5 = inlined_call_operand.vmem [shape: f32[1,96], index: 5, kind: input, shape index: {}]   ;;  %s405_s6 = inlined_call_operand.vmem [shape: bf16[96,128], index: 6, kind: input, shape index: {}]   ;;  %s406_s2 = inlined_call_operand.vmem [shape: f32[1,96], index: 2, kind: input, shape index: {}]   ;;  %s407_s0 = inlined_call_operand.vmem [shape: f32[8,64], index: 0, kind: input, shape index: {}]   ;;  %s408_s3 = inlined_call_operand.vmem [shape: f32[1,96], index: 3, kind: input, shape index: {}]   ;;  %s409_s8 = inlined_call_operand.vmem [shape: f32[1,128], index: 8, kind: output, shape index: {1}]   ;;  %s410_s9 = inlined_call_operand.vmem [shape: f32[1,128], index: 9, kind: output, shape index: {2}]   ;;  %s411_s1 = inlined_call_operand.vmem [shape: f32[8,32], index: 1, kind: input, shape index: {}]   ;;  %s412_s7 = inlined_call_operand.vmem [shape: f32[8,128], index: 7, kind: output, shape index: {0}]  }
   0x1   :  { %v30_v0 = vld [vmem:[%s403_s4] sm:$0x1]  ;;  %269 = vmatprep.subr.bf16.mxu0 %v293_v2  ;;  %261 = vmatprep.subr.bf16.mxu1 %v293_v2  ;;  %v286_v7 = vld [vmem:[%s405_s6 + $0x8] sm:$0xff]   ;;  %v287_v10 = vld [vmem:[%s405_s6 + $0x10] sm:$0xff]   ;;  %212 = vst [vmem:[%s409_s8] sm:$0x1] %v293_v2  ;;  %vm95_vm2 = vcmask 261120  }
   0x2   :  { %v32_v1 = vld [vmem:[%s404_s5] sm:$0x1]  ;;  %v31_v3 = vmul.f32 0.125, %v30_v0  ;;  %v289_v13 = vld [vmem:[%s405_s6 + $0x18] sm:$0xff]   ;;  %v46_v14 = vshrl.u32 %v45_v11, 7  ;;  %v290_v15 = vld [vmem:[%s405_s6 + $0x28] sm:$0xff]   ;;  %277 = vmatprep.mubr.msk.bf16.mxu0 %vm294_vm0, %v293_v2  ;;  %265 = vmatprep.mubr.msk.bf16.mxu1 %vm294_vm0, %v293_v2 }
   0x3   :  { %v33_v4 = vmul.f32 0.125, %v32_v1  ;;  %v285_v5 = vld [vmem:[%s405_s6] sm:$0xff]   ;;  %213 = vst [vmem:[%s410_s9] sm:$0x1] %v293_v2 }
   0x4   :  { %v34_v6 = vmul.f32 %v31_v3, %v31_v3  ;;  %270 = vmatpush3.bf16.msra.mxu0 %v285_v5  ;;  %v288_v12 = vld [vmem:[%s405_s6 + $0x20] sm:$0xff]   ;;  %v47_v17 = vsub.s32 0, %v46_v14  ;;  %s295_s6 = smov 64  }
   0x5   :  { %271 = vmatprep.subr.bf16.mxu0 %v293_v2  ;;  %262 = vmatpush3.bf16.msra.mxu1 %v288_v12  ;;  %v36_v16 = vld [vmem:[%s406_s2] sm:$0x1] }
   0x6   :  { %v35_v8 = vsub.f32 %v33_v4, %v34_v6  ;;  %263 = vmatprep.subr.bf16.mxu1 %v293_v2  ;;  %v43_v20 = vld [vmem:[%s407_s0] sm:$0xff] }
   0x7   :  { %v40_v21 = vld [vmem:[%s408_s3] sm:$0x1] }
   0x8   :  { %v37_v9 = vadd.f32 1e-05, %v35_v8  ;;  %272 = vmatpush3.bf16.msra.mxu0 %v286_v7  ;;  %v68_v31 = vld [vmem:[%s411_s1] sm:$0xff] }
   0x9   :  { %273 = vmatprep.subr.bf16.mxu0 %v293_v2  ;;  %264 = vmatpush3.bf16.msra.mxu1 %v290_v15  ;;  %v214_v56 = vld [vmem:[%s409_s8] sm:$0x1] }
   0xa   :  { %291 = vrsqrt.f32 %v37_v9  ;;  %v223_v59 = vld [vmem:[%s410_s9] sm:$0x1] }
   0xc   :  { %274 = vmatpush3.bf16.msra.mxu0 %v287_v10 }
   0xd   :  { %275 = vmatprep.subr.bf16.mxu0 %v293_v2 }
  0x10   :  { %276 = vmatpush3.bf16.msra.mxu0 %v289_v13 }
  0x14   :  { %v292_v18 = vpop.eup %291 }
  0x15   :  { %v39_v19 = vmul.f32 %v292_v18, %v36_v16 }
  0x17   :  { %v48_v22 = vrot.slane %v39_v19, %v47_v17  ;;  %v41_v23 = vmul.f32 %v39_v19, %v31_v3 }
  0x19   :  { %69 = vrot.lane.b32.xlu0 %v48_v22, %s295_s6  ;;  %v50_v24 = vmul.f32 %v48_v22, %v43_v20  ;;  %v42_v25 = vsub.f32 %v40_v21, %v41_v23 }
  0x1b   :  { %v55_v26 = vrot.slane %v42_v25, %v47_v17 }
  0x1d   :  { %73 = vrot.lane.b32.xlu0 %v55_v26, %s295_s6  ;;  %v57_v27 = vadd.f32 %v55_v26, %v50_v24 }
  0x1f   :  { %v58_v28 = vmax.f32 %v57_v27, 0.0 }
  0x21   :  { %v59_v29 = vpack.c.bf16 %v58_v28, %v58_v28 }
  0x23   :  { %278 = vmatmul.mubr.msk.bf16.vlgmr.msra.gmra.mrb[0].mxu0 %vm163_vm1, %v59_v29 }
  0x8b   :  { %v70_v30 = vpop.permute.xlu0 %69 }
  0x8c   :  { %v72_v32 = vmul.f32 %v70_v30, %v68_v31 }
  0x8f   :  { %v74_v33 = vpop.permute.xlu0 %73 }
  0x90   :  { %v76_v34 = vadd.f32 %v74_v33, %v72_v32 }
  0x92   :  { %v77_v35 = vmax.f32 %v76_v34, 0.0 }
  0x94   :  { %v78_v36 = vpack.c.bf16 %v77_v35, %v77_v35 }
  0x96   :  { %266 = vmatmul.mubr.msk.bf16.vlgmr.msra.gmra.mrb[0].mxu1 %vm95_vm2, %v78_v36 }
  0xf6   :  { %v201_v37 = vpop.f32.mrb[0].mxu0 }
  0xf7   :  { %v279_v38 = vpop.f32.mrb[1].mxu0 }
  0xf8   :  { %v204_v39 = vpop.f32.mrb[2].mxu0 }
  0xf9   :  { %v280_v40 = vpop.f32.mrb[3].mxu0 }
 0x169   :  { %v133_v41 = vpop.f32.mrb[0].mxu1 }
 0x16a   :  { %v202_v42 = vadd.f32 %v201_v37, %v133_v41  ;;  %v267_v43 = vpop.f32.mrb[1].mxu1 }
 0x16b   :  { %v136_v44 = vpop.f32.mrb[2].mxu1 }
 0x16c   :  { %207 = vst [vmem:[%s412_s7] sm:$0xff] %v202_v42  ;;  %v215_v45 = vrot.slane %v202_v42, 4  ;;  %v224_v46 = vmul.f32 %v202_v42, %v202_v42  ;;  %v268_v47 = vpop.f32.mrb[3].mxu1 }
 0x16e   :  { %v216_v48 = vadd.f32 %v215_v45, %v202_v42  ;;  %v225_v49 = vrot.slane %v224_v46, 4 }
 0x170   :  { %v217_v50 = vrot.slane %v216_v48, 2  ;;  %v226_v51 = vadd.f32 %v225_v49, %v224_v46 }
 0x172   :  { %v218_v52 = vadd.f32 %v217_v50, %v216_v48  ;;  %v227_v53 = vrot.slane %v226_v51, 2 }
 0x174   :  { %v219_v54 = vrot.slane %v218_v52, 1  ;;  %v228_v55 = vadd.f32 %v227_v53, %v226_v51 }
 0x176   :  { %v220_v57 = vadd.f32 %v219_v54, %v218_v52  ;;  %v229_v58 = vrot.slane %v228_v55, 1 }
 0x178   :  { %v221_v60 = vadd.f32 %v220_v57, %v214_v56  ;;  %v230_v61 = vadd.f32 %v229_v58, %v228_v55 }
 0x17a   :  { %222 = vst [vmem:[%s409_s8] sm:$0x1] %v221_v60  ;;  %v231_v62 = vadd.f32 %v230_v61, %v223_v59 }
 0x17c   :  { %232 = vst [vmem:[%s410_s9] sm:$0x1] %v231_v62 }

// kernel: _lambda_.43
= control target key start
LH: loop header
LB: loop body
LE: loop exit
PB: predicated region body
PF: predicated region fallthrough
CT: control target
= control target key end

     0   :  { %s621_s0 = inlined_call_operand.vmem [shape: f32[2,4,64], index: 0, kind: input, shape index: {}]   ;;  %s622_s1 = inlined_call_operand.vmem [shape: f32[2,4,32], index: 1, kind: input, shape index: {}]   ;;  %s623_s2 = inlined_call_operand.vmem [shape: f32[2,4,32], index: 2, kind: input, shape index: {}]   ;;  %s624_s3 = inlined_call_operand.vmem [shape: f32[1,128], index: 3, kind: input, shape index: {}]   ;;  %s625_s4 = inlined_call_operand.vmem [shape: f32[1,128], index: 4, kind: input, shape index: {}, may-alias: {4,8}]   ;;  %s626_s5 = inlined_call_operand.vmem [shape: f32[1,128], index: 5, kind: input, shape index: {}]   ;;  %s627_s6 = inlined_call_operand.vmem [shape: f32[1,128], index: 6, kind: input, shape index: {}]   ;;  %s628_s7 = inlined_call_operand.vmem [shape: bf16[128,128], index: 7, kind: input, shape index: {}]   ;;  %s629_s8 = inlined_call_operand.vmem [shape: f32[1,128], index: 8, kind: input, shape index: {}, may-alias: {4,8}]   ;;  %s630_s9 = inlined_call_operand.hbm [shape: f32[2,128], index: 9, kind: output, shape index: {}]  }
   0x1   :  { %v34_v0 = vld [vmem:[%s626_s5] sm:$0x1] }
   0x2   :  { %v36_v1 = vld [vmem:[%s627_s6] sm:$0x1]  ;;  %v35_v2 = vmul.f32 0.125, %v34_v0 }
   0x3   :  { %v37_v3 = vmul.f32 0.125, %v36_v1 }
   0x4   :  { %v38_v4 = vmul.f32 %v35_v2, %v35_v2 }
   0x6   :  { %v39_v5 = vsub.f32 %v37_v3, %v38_v4 }
   0x8   :  { %v41_v6 = vadd.f32 1e-05, %v39_v5 }
   0xa   :  { %454 = vrsqrt.f32 %v41_v6 }
   0xb   :  { %14 = vsyncpa [#allocation3], 0  ;;  %v50_v7 = vlaneseq  ;;  %v40_v9 = vld [vmem:[%s624_s3] sm:$0x1]  ;;  %v48_v14 = vld [vmem:[%s621_s0 + $0x4] sm:$0xf] }
   0xc   :  { %v47_v13 = vld [vmem:[%s621_s0] sm:$0xf]  ;;  %s480_s19 = smov 32   ;;  %s481_s3 = smov 64   ;;  %v482_v22 = vmov 0.0   ;;  %v447_v26 = vld [vmem:[%s628_s7 + $0x8] sm:$0xff]  }
   0xd   :  { %v51_v8 = vshrl.u32 %v50_v7, 7  ;;  %v44_v15 = vld [vmem:[%s625_s4] sm:$0x1]  ;;  %421 = vmatprep.subr.bf16.mxu1 %v482_v22  ;;  %413 = vmatprep.subr.bf16.mxu0 %v482_v22  ;;  %vm67_vm0 = vcmask 519168   ;;  %v449_v32 = vld [vmem:[%s628_s7 + $0x10] sm:$0xff]   ;;  %v450_v37 = vld [vmem:[%s628_s7 + $0x28] sm:$0xff]  }
   0xe   :  { %v446_v21 = vld [vmem:[%s628_s7] sm:$0xff]   ;;  %v451_v38 = vld [vmem:[%s628_s7 + $0x18] sm:$0xff]   ;;  %vm483_vm1 = vmmov 0   ;;  %vm136_vm2 = vcmask 1041409   ;;  %vm225_vm3 = vcmask 523264   ;;  %vm109_vm4 = vcmask 257024  }
   0xf   :  { %v52_v10 = vsub.s32 0, %v51_v8  ;;  %422 = vmatpush3.bf16.msra.mxu1 %v446_v21  ;;  %v448_v31 = vld [vmem:[%s628_s7 + $0x20] sm:$0xff]   ;;  %417 = vmatprep.mubr.msk.bf16.mxu0 %vm483_vm1, %v482_v22  ;;  %vm151_vm5 = vcmask 261120   ;;  %s484_s18 = smov [#allocation2]  }
  0x10   :  { %423 = vmatprep.subr.bf16.mxu1 %v482_v22  ;;  %414 = vmatpush3.bf16.msra.mxu0 %v448_v31  ;;  %v269_v55 = vld [vmem:[%s623_s2] sm:$0xf]  ;;  %v270_v56 = vld [vmem:[%s623_s2 + $0x4] sm:$0xf] }
  0x11   :  { %415 = vmatprep.subr.bf16.mxu0 %v482_v22  ;;  %429 = vmatprep.mubr.msk.bf16.mxu1 %vm483_vm1, %v482_v22  ;;  %v95_v58 = vld [vmem:[%s622_s1] sm:$0xf]  ;;  %v96_v59 = vld [vmem:[%s622_s1 + $0x4] sm:$0xf] }
  0x13   :  { %424 = vmatpush3.bf16.msra.mxu1 %v447_v26 }
  0x14   :  { %v455_v11 = vpop.eup %454  ;;  %425 = vmatprep.subr.bf16.mxu1 %v482_v22  ;;  %416 = vmatpush3.bf16.msra.mxu0 %v450_v37 }
  0x15   :  { %v43_v12 = vmul.f32 %v455_v11, %v40_v9  ;;  %433 = vmatprep.subr.bf16.mxu0 %v482_v22 }
  0x17   :  { %v53_v16 = vrot.slane %v43_v12, %v52_v10  ;;  %v45_v17 = vmul.f32 %v43_v12, %v35_v2  ;;  %426 = vmatpush3.bf16.msra.mxu1 %v449_v32 }
  0x18   :  { %427 = vmatprep.subr.bf16.mxu1 %v482_v22 }
  0x19   :  { %271 = vrot.lane.b32.xlu1 %v53_v16, %s480_s19  ;;  %v55_v18 = vmul.f32 %v53_v16, %v47_v13  ;;  %v56_v19 = vmul.f32 %v53_v16, %v48_v14  ;;  %97 = vrot.lane.b32.xlu0 %v53_v16, %s481_s3  ;;  %v46_v20 = vsub.f32 %v44_v15, %v45_v17 }
  0x1b   :  { %v61_v23 = vrot.slane %v46_v20, %v52_v10  ;;  %428 = vmatpush3.bf16.msra.mxu1 %v451_v38 }
  0x1d   :  { %276 = vrot.lane.b32.xlu1 %v61_v23, %s480_s19  ;;  %v63_v24 = vadd.f32 %v61_v23, %v55_v18  ;;  %v64_v25 = vadd.f32 %v61_v23, %v56_v19  ;;  %102 = vrot.lane.b32.xlu0 %v61_v23, %s481_s3  ;;  %s382_s19 = sshll.u32 %s484_s18, 4  ;;  %s383_s19 = int_to_ptr.vmem [resolvable:$true] %s382_s19 }
  0x1e   :  { %s456_s3 = scalar_lea.vmem %s383_s19, 32  ;;  %p461_p1 = scmp.lt.s32.totalorder %s383_s19, %s383_s19 }
  0x1f   :  { %v65_v27 = vmax.f32 %v63_v24, 0.0  ;;  %v66_v28 = vmax.f32 %v64_v25, 0.0  ;;  %p457_p0 = scmp.ne.s32.totalorder %s383_s19, %s456_s3  ;;  %p462_p2 = scmp.lt.s32.totalorder %s456_s3, %s456_s3 }
  0x21   :  { %v68_v29 = vsel %vm67_vm0, %v65_v27, 0.0  ;;  %v75_v30 = vsel %vm67_vm0, %v66_v28, 0.0  ;;  %p463_p3 = por %p462_p2, %p461_p1 }
  0x22   :  { %v69_v33 = vrot.slane %v68_v29, 4  ;;  %v76_v34 = vrot.slane %v75_v30, 4 }
  0x23   :  { %p464_p4 = pnand %p463_p3, %p457_p0 }
  0x24   :  { %v70_v35 = vadd.f32 %v69_v33, %v68_v29  ;;  %v77_v36 = vadd.f32 %v76_v34, %v75_v30 }
  0x26   :  { %v71_v39 = vrot.slane %v70_v35, 2  ;;  %v78_v40 = vrot.slane %v77_v36, 2 }
  0x28   :  { %v72_v41 = vadd.f32 %v71_v39, %v70_v35  ;;  %v79_v42 = vadd.f32 %v78_v40, %v77_v36 }
  0x2a   :  { %v73_v43 = vrot.slane %v72_v41, 1  ;;  %v80_v44 = vrot.slane %v79_v42, 1 }
  0x2c   :  { %v74_v45 = vadd.f32 %v73_v43, %v72_v41  ;;  %v81_v46 = vadd.f32 %v80_v44, %v79_v42 }
  0x2e   :  { %v83_v47 = vmul.f32 0.25, %v74_v45  ;;  %v84_v48 = vmul.f32 0.25, %v81_v46 }
  0x30   :  { %v85_v49 = vpack.c.bf16 %v83_v47, %v83_v47  ;;  %v86_v50 = vpack.c.bf16 %v84_v48, %v84_v48 }
  0x32   :  { %v197_v51 = vunpack.c.l.b16 %v85_v49  ;;  %v198_v52 = vunpack.c.l.b16 %v86_v50 }
  0x34   :  { %v199_v53 = vsel %vm136_vm2, %v198_v52, %v197_v51  ;;  %v452_v51 = vld [vmem:[%s628_s7 + $0x30] sm:$0xff]  }
  0x35   :  { %v200_v54 = vpack.c.b16 %v199_v53, %v199_v53 }
  0x37   :  { %430 = vmatmul.mubr.msk.bf16.vlgmr.msra.gmra.mrb[0].mxu1 %vm225_vm3, %v200_v54 }
  0x8b   :  { %v272_v57 = vpop.permute.xlu1 %271  ;;  %v98_v60 = vpop.permute.xlu0 %97 }
  0x8c   :  { %v274_v61 = vmul.f32 %v272_v57, %v269_v55  ;;  %v275_v62 = vmul.f32 %v272_v57, %v270_v56  ;;  %v100_v63 = vmul.f32 %v98_v60, %v95_v58  ;;  %v101_v0 = vmul.f32 %v98_v60, %v96_v59  ;;  %v453_v55 = vld [vmem:[%s628_s7 + $0x38] sm:$0xff]  }
  0x8f   :  { %v277_v1 = vpop.permute.xlu1 %276  ;;  %v103_v2 = vpop.permute.xlu0 %102 }
  0x90   :  { %v279_v3 = vadd.f32 %v277_v1, %v274_v61  ;;  %v280_v4 = vadd.f32 %v277_v1, %v275_v62  ;;  %v105_v5 = vadd.f32 %v103_v2, %v100_v63  ;;  %v106_v6 = vadd.f32 %v103_v2, %v101_v0 }
  0x92   :  { %v281_v7 = vmax.f32 %v279_v3, 0.0  ;;  %v282_v8 = vmax.f32 %v280_v4, 0.0  ;;  %v107_v9 = vmax.f32 %v105_v5, 0.0  ;;  %v108_v10 = vmax.f32 %v106_v6, 0.0  ;;  %v401_v4 = vld [vmem:[%s629_s8] ss:$0 sm:$0xff] }
  0x94   :  { %v283_v11 = vsel %vm109_vm4, %v281_v7, 0.0  ;;  %v290_v12 = vsel %vm109_vm4, %v282_v8, 0.0  ;;  %v110_v13 = vsel %vm109_vm4, %v107_v9, 0.0  ;;  %v117_v14 = vsel %vm109_vm4, %v108_v10, 0.0 }
  0x95   :  { %v284_v15 = vrot.slane %v283_v11, 4  ;;  %v291_v16 = vrot.slane %v290_v12, 4  ;;  %v111_v17 = vrot.slane %v110_v13, 4  ;;  %v118_v18 = vrot.slane %v117_v14, 4 }
  0x97   :  { %v285_v19 = vadd.f32 %v284_v15, %v283_v11  ;;  %v292_v20 = vadd.f32 %v291_v16, %v290_v12  ;;  %v112_v21 = vadd.f32 %v111_v17, %v110_v13  ;;  %v119_v23 = vadd.f32 %v118_v18, %v117_v14 }
  0x99   :  { %v286_v24 = vrot.slane %v285_v19, 2  ;;  %v293_v25 = vrot.slane %v292_v20, 2  ;;  %v113_v26 = vrot.slane %v112_v21, 2  ;;  %v120_v27 = vrot.slane %v119_v23, 2 }
  0x9b   :  { %v287_v28 = vadd.f32 %v286_v24, %v285_v19  ;;  %v294_v29 = vadd.f32 %v293_v25, %v292_v20  ;;  %v114_v30 = vadd.f32 %v113_v26, %v112_v21  ;;  %v121_v31 = vadd.f32 %v120_v27, %v119_v23 }
  0x9d   :  { %v288_v32 = vrot.slane %v287_v28, 1  ;;  %v295_v33 = vrot.slane %v294_v29, 1  ;;  %v115_v34 = vrot.slane %v114_v30, 1  ;;  %v122_v35 = vrot.slane %v121_v31, 1 }
  0x9f   :  { %v289_v36 = vadd.f32 %v288_v32, %v287_v28  ;;  %v296_v37 = vadd.f32 %v295_v33, %v294_v29  ;;  %v116_v38 = vadd.f32 %v115_v34, %v114_v30  ;;  %v123_v39 = vadd.f32 %v122_v35, %v121_v31 }
  0xa1   :  { %v297_v40 = vmul.f32 0.25, %v289_v36  ;;  %v298_v41 = vmul.f32 0.25, %v296_v37  ;;  %v124_v42 = vmul.f32 0.25, %v116_v38  ;;  %v125_v43 = vmul.f32 0.25, %v123_v39 }
  0xa3   :  { %v126_v44 = vpack.c.bf16 %v124_v42, %v124_v42  ;;  %v127_v45 = vpack.c.bf16 %v125_v43, %v125_v43  ;;  %v299_v46 = vpack.c.bf16 %v297_v40, %v297_v40  ;;  %v300_v47 = vpack.c.bf16 %v298_v41, %v298_v41 }
  0xa5   :  { %v134_v48 = vunpack.c.l.b16 %v126_v44  ;;  %v135_v49 = vunpack.c.l.b16 %v127_v45  ;;  %v307_v53 = vunpack.c.l.b16 %v299_v46  ;;  %v308_v54 = vunpack.c.l.b16 %v300_v47 }
  0xa7   :  { %v137_v50 = vsel %vm136_vm2, %v135_v49, %v134_v48  ;;  %v309_v56 = vsel %vm136_vm2, %v308_v54, %v307_v53 }
  0xa8   :  { %v138_v52 = vpack.c.b16 %v137_v50, %v137_v50  ;;  %v310_v57 = vpack.c.b16 %v309_v56, %v309_v56 }
  0xaa   :  { %418 = vmatmul.mubr.msk.bf16.vlgmr.msra.gmra.mrb[0].mxu0 %vm151_vm5, %v138_v52 }
  0xab   :  { %434 = vmatpush3.bf16.msra.mxu0 %v452_v51  ;;  %437 = vmatprep.mubr.msk.bf16.mxu0 %vm483_vm1, %v482_v22 }
  0xac   :  { %435 = vmatprep.subr.bf16.mxu0 %v482_v22 }
  0xaf   :  { %436 = vmatpush3.bf16.msra.mxu0 %v453_v55 }
  0xb2   :  { %438 = vmatmul.mubr.msk.bf16.vlgmr.msra.gmra.mrb[4].mxu0 %vm151_vm5, %v310_v57 }
 0x10a   :  { %v263_v58 = vpop.f32.mrb[0].mxu1 }
 0x10b   :  { %v431_v59 = vpop.f32.mrb[1].mxu1 }
 0x10c   :  { %v266_v60 = vpop.f32.mrb[2].mxu1 }
 0x10d   :  { %v432_v61 = vpop.f32.mrb[3].mxu1 }
 0x17d   :  { %v189_v62 = vpop.f32.mrb[0].mxu0 }
 0x17e   :  { %v264_v63 = vadd.f32 %v263_v58, %v189_v62  ;;  %v419_v0 = vpop.f32.mrb[1].mxu0 }
 0x17f   :  { %v192_v1 = vpop.f32.mrb[2].mxu0 }
 0x180   :  { %v420_v2 = vpop.f32.mrb[3].mxu0 }
 0x185   :  { %v360_v3 = vpop.f32.mrb[4].mxu0 }
 0x186   :  { %v366_v22 = vadd.f32 %v360_v3, %v264_v63  ;;  %v439_v5 = vpop.f32.mrb[5].mxu0 }
 0x187   :  { %v363_v6 = vpop.f32.mrb[6].mxu0 }
 0x188   :  { %v440_v7 = vpop.f32.mrb[7].mxu0  ;;  %v374_v8 = vadd.f32 %v401_v4, %v366_v22 }
 0x18a   :  { %375 = vst [vmem:[#allocation2] sm:$0x3] %v374_v8 }
 0x18b   :  { %467 = shalt.err (!%p464_p4)
}
 0x18c   :  { %s468_s8 = scalar_lea.hbm %s630_s9, 32 }
 0x18d   :  { %p469_p5 = scmp.ne.s32.totalorder %s630_s9, %s468_s8  ;;  %p472_p6 = scmp.lt.u32.totalorder %s468_s8, %s630_s9 }
 0x18f   :  { %p474_p7 = pnand %p472_p6, %p469_p5 }
 0x191   :  { %477 = shalt.err (!%p474_p7)
}
 0x192   :  { %385 = dma.vmem_to_hbm [thread:$0]  %s383_s19, 32, %s630_s9, [#allocation3]  }
 0x193   :  { %478 = dma.done.wait [#allocation3], 32  }
 0x194   :  { %479 = vsyncadd [#allocation3], 4294967264 }
 0x195   :  { %389 = vsyncpa [#allocation3], 1 }

// kernel: _lambda_.40
= control target key start
LH: loop header
LB: loop body
LE: loop exit
PB: predicated region body
PF: predicated region fallthrough
CT: control target
= control target key end

     0   :  { %s2273_s27 = smov 0   ;;  %s2669_s0 = inlined_call_operand.vmem [shape: f32[2,2,2,128], index: 0, kind: input, shape index: {}]   ;;  %s2670_s1 = inlined_call_operand.vmem [shape: f32[1,128], index: 1, kind: input, shape index: {}]   ;;  %s2671_s2 = inlined_call_operand.vmem [shape: f32[1,128], index: 2, kind: input, shape index: {}]   ;;  %s2672_s3 = inlined_call_operand.vmem [shape: f32[1,128], index: 3, kind: input, shape index: {}]   ;;  %s2673_s4 = inlined_call_operand.vmem [shape: f32[1,128], index: 4, kind: input, shape index: {}]   ;;  %s2674_s5 = inlined_call_operand.vmem [shape: bf16[9,128,32], index: 5, kind: input, shape index: {}]   ;;  %s2675_s6 = inlined_call_operand.vmem [shape: f32[2,2,2,32], index: 6, kind: output, shape index: {0}]   ;;  %s2676_s7 = inlined_call_operand.vmem [shape: f32[1,32], index: 7, kind: output, shape index: {1}]   ;;  %s2677_s8 = inlined_call_operand.vmem [shape: f32[1,32], index: 8, kind: output, shape index: {2}]  }
   0x1 LB: > { %s1560_s28 = sadd.s32 4294967295, %s2209_s27   ;;  %p1564_p0 = scmp.ge.s32.totalorder %s2209_s27, 1  ;;  %s2209_s27 = sphi %s2273_s27, %s19_s27  }
   0x2   : > { %p257_p1 = scmp.lt.s32.totalorder %s2209_s27, 3 }
   0x4   : > { %p258_p2 = pnand %p1564_p0, %p257_p1 }
   0x5   : > { %p291_p3 = scmp.lt.s32.totalorder (!%p258_p2), %s1560_s28, 1  ;;  %p1569_p4 = scmp.ne.s32.totalorder (!%p258_p2), %s1560_s28, 0 }
   0x6   : > { %261 = sbr.rel (%p258_p2) target bundleno = 461 (0x1cd), region = 44 }
   0xd   : > { %s292_s29 = scalar_select %p291_p3, %s1560_s28, 1 }
   0xe   : > { %305 = sbr.rel (%p1569_p4) target bundleno = 21 (0x15), region = 48  ;;  %vm310_vm0 = vcmask (!%p1569_p4), 253952   ;;  %v2223_v0 = vmov (!%p1569_p4), 0   ;;  %v2224_v1 = vmov (!%p1569_p4), 0.0  }
   0xf   : > { %s1788_s30 = sshll.u32 %s292_s29, 2  ;;  %306 = vst [vmem:[#allocation2] sm:$0x3] (!%p1569_p4), %v2223_v0  ;;  %307 = vst [vmem:[#allocation2 + $0x2] sm:$0x3] (!%p1569_p4), %v2223_v0 }
  0x10   : > { %s295_s11 = scalar_lea.vmem %s2669_s0, %s1788_s30  ;;  %s2287_s14 = scalar_lea.vmem %s2675_s6, %s1788_s30  ;;  %308 = vst [vmem:[#allocation2 + $0x4] sm:$0x3] (!%p1569_p4), %v2223_v0  ;;  %309 = vst [vmem:[#allocation2 + $0x6] sm:$0x3] (!%p1569_p4), %v2223_v0 }
  0x11   : > { %311 = vst.msk [vmem:[%s2676_s7] sm:$0x1] (!%p1569_p4), %vm310_vm0, %v2224_v1  ;;  %312 = vst.msk [vmem:[%s2677_s8] sm:$0x1] (!%p1569_p4), %vm310_vm0, %v2224_v1 }
  0x15 PF: > { %v313_v2 = vld [vmem:[%s2672_s3] sm:$0x1]  ;;  %v329_v9 = vlaneseq  ;;  %v327_v17 = vld [vmem:[%s295_s11 + $0x2] sm:$0x3]  ;;  %v2225_v20 = vmov 1983009808  }
  0x16   : > { %v315_v3 = vld [vmem:[%s2673_s4] sm:$0x1]  ;;  %v314_v4 = vmul.f32 0.125, %v313_v2  ;;  %v351_v21 = vunpack.c.l.s4 %v2225_v20  ;;  %vm381_vm1 = vcmask 1041408   ;;  %vm382_vm2 = vsmask.f32 1282 }
  0x17   : > { %v316_v5 = vmul.f32 0.125, %v315_v3  ;;  %v330_v10 = vshrl.u32 %v329_v9, 7  ;;  %v319_v11 = vld [vmem:[%s2670_s1] sm:$0x1]  ;;  %vm383_vm3 = vmand %vm381_vm1, %vm382_vm2  ;;  %v384_v42 = vld [vmem:[#allocation2 + $0x2] sm:$0x3] }
  0x18   : > { %v317_v6 = vmul.f32 %v314_v4, %v314_v4  ;;  %v323_v15 = vld [vmem:[%s2671_s2] sm:$0x1]  ;;  %v352_v26 = vunpack.c.0.s8 %v351_v21  ;;  %v387_v43 = vld [vmem:[#allocation2 + $0x4] sm:$0x3]  ;;  %v2307_v48 = vmov 0.0   ;;  %v2309_v49 = vmov 0.0  }
  0x19   : > { %v331_v12 = vsub.s32 0, %v330_v10  ;;  %v326_v16 = vld [vmem:[%s295_s11] sm:$0x3]  ;;  %s2311_s28 = smov 0  }
  0x1a   : > { %v318_v7 = vsub.f32 %v316_v5, %v317_v6  ;;  %v355_v30 = vsub.s32 %v352_v26, %v330_v10 }
  0x1c   : > { %v320_v8 = vadd.f32 1e-05, %v318_v7 }
  0x1e   : > { %2117 = vrsqrt.f32 %v320_v8 }
  0x28   : > { %v2118_v13 = vpop.eup %2117 }
  0x29   : > { %v322_v14 = vmul.f32 %v2118_v13, %v319_v11 }
  0x2b   : > { %v324_v18 = vmul.f32 %v322_v14, %v314_v4  ;;  %v332_v19 = vrot.slane %v322_v14, %v331_v12 }
  0x2d   : > { %v325_v22 = vsub.f32 %v323_v15, %v324_v18  ;;  %v334_v23 = vmul.f32 %v332_v19, %v326_v16  ;;  %v335_v24 = vmul.f32 %v332_v19, %v327_v17 }
  0x2f   : > { %v340_v25 = vrot.slane %v325_v22, %v331_v12 }
  0x31   : > { %v342_v27 = vadd.f32 %v340_v25, %v334_v23  ;;  %v343_v28 = vadd.f32 %v340_v25, %v335_v24 }
  0x33   : > { %v344_v29 = vmax.f32 %v342_v27, 0.0  ;;  %v345_v31 = vmax.f32 %v343_v28, 0.0 }
  0x35   : > { %v346_v32 = vpack.c.bf16 %v344_v29, %v344_v29  ;;  %v347_v33 = vpack.c.bf16 %v345_v31, %v345_v31 }
  0x37   : > { %v356_v34 = vrot.slane %v346_v32, %v355_v30  ;;  %v363_v35 = vrot.slane %v347_v33, %v355_v30 }
  0x39   : > { %v365_v36 = vshrl.u32 %v356_v34, 16  ;;  %v368_v37 = vshll.u32 %v356_v34, 16  ;;  %v372_v38 = vshrl.u32 %v363_v35, 16  ;;  %v375_v39 = vshll.u32 %v363_v35, 16 }
  0x3b   : > { %v367_v40 = vrot.slane %v365_v36, 7  ;;  %v374_v41 = vrot.slane %v372_v38, 7 }
  0x3d   : > { %v370_v44 = vor.u32 %v368_v37, %v367_v40  ;;  %v377_v45 = vor.u32 %v375_v39, %v374_v41 }
  0x3f   : > { %v385_v46 = vsel %vm383_vm3, %v370_v44, %v384_v42  ;;  %v388_v47 = vsel %vm383_vm3, %v377_v45, %v387_v43 }
  0x40   : > { %386 = vst [vmem:[#allocation2 + $0x2] sm:$0x3] %v385_v46  ;;  %389 = vst [vmem:[#allocation2 + $0x4] sm:$0x3] %v388_v47 }
  0x41 LB: >> { %v2119_v50 = vld [vmem:[%s2674_s5 + $0x40] sm:$0xff]   ;;  %v2226_v51 = vmov 0.0   ;;  %v2121_v53 = vld [vmem:[%s2674_s5 + $0x48] sm:$0xff]   ;;  %vm2227_vm4 = vmmov 0   ;;  %v2123_v55 = vld [vmem:[%s2674_s5 + $0x50] sm:$0xff]   ;;  %s1570_s24 = sshll.u32 %s2221_s28, 1  ;;  %s2221_s28 = sphi %s2311_s28, %s395_s28   ;;  %v2217_v49 = vphi %v2309_v49, %v2679_v49   ;;  %v2213_v48 = vphi %v2307_v48, %v2678_v48  }
  0x42   : >> { %1871 = vmatprep.subr.bf16.mxu1 %v2226_v51  ;;  %1951 = vmatprep.subr.bf16.mxu0 %v2226_v51  ;;  %v2120_v52 = vld [vmem:[%s2674_s5 + $0x100] sm:$0xff]   ;;  %v2122_v54 = vld [vmem:[%s2674_s5 + $0x108] sm:$0xff]   ;;  %v2124_v56 = vld [vmem:[%s2674_s5 + $0x110] sm:$0xff]   ;;  %s2375_s13 = scalar_lea.vmem [#allocation2], %s1570_s24  ;;  %s1445_s16 = scalar_lea.vmem %s2287_s14, %s1570_s24  ;;  %vm1446_vm5 = vcmask 254976  }
  0x43   : >> { %1872 = vmatpush3.bf16.msra.mxu1 %v2119_v50  ;;  %1887 = vmatprep.mubr.msk.bf16.mxu1 %vm2227_vm4, %v2226_v51  ;;  %v2125_v57 = vld [vmem:[%s2674_s5 + $0x58] sm:$0xff]   ;;  %v2127_v59 = vld [vmem:[%s2674_s5 + $0x60] sm:$0xff]   ;;  %v2129_v61 = vld [vmem:[%s2674_s5 + $0x68] sm:$0xff]   ;;  %s395_s28 = sadd.s32 1, %s2221_s28  }
  0x44   : >> { %1952 = vmatpush3.bf16.msra.mxu0 %v2120_v52  ;;  %1873 = vmatprep.subr.bf16.mxu1 %v2226_v51  ;;  %v2126_v58 = vld [vmem:[%s2674_s5 + $0x118] sm:$0xff]   ;;  %v2128_v60 = vld [vmem:[%s2674_s5 + $0x120] sm:$0xff]   ;;  %v2130_v62 = vld [vmem:[%s2674_s5 + $0x128] sm:$0xff]   ;;  %p392_p5 = scmp.ge.s32.totalorder %s395_s28, 2  }
  0x45   : >> { %1953 = vmatprep.subr.bf16.mxu0 %v2226_v51  ;;  %1967 = vmatprep.mubr.msk.bf16.mxu0 %vm2227_vm4, %v2226_v51  ;;  %v2131_v2 = vld [vmem:[%s2674_s5 + $0x70] sm:$0xff]   ;;  %v2133_v5 = vld [vmem:[%s2674_s5 + $0x78] sm:$0xff]   ;;  %v2135_v12 = vld [vmem:[%s2674_s5] sm:$0xff]   ;;  %vm1467_vm6 = vcmask (%p392_p5), 253952  }
  0x46   : >> { %v2132_v4 = vld [vmem:[%s2674_s5 + $0x130] sm:$0xff]   ;;  %v2134_v10 = vld [vmem:[%s2674_s5 + $0x138] sm:$0xff]   ;;  %v2136_v14 = vld [vmem:[%s2674_s5 + $0x140] sm:$0xff]  }
  0x47   : >> { %1874 = vmatpush3.bf16.msra.mxu1 %v2121_v53  ;;  %v1587_v63 = vld.sshfl [vmem:[%s2375_s13] sm:$0x3 pattern:$0x76325410]  ;;  %v2137_v15 = vld [vmem:[%s2674_s5 + $0x8] sm:$0xff]   ;;  %v2139_v17 = vld [vmem:[%s2674_s5 + $0x10] sm:$0xff]  }
  0x48   : >> { %1954 = vmatpush3.bf16.msra.mxu0 %v2122_v54  ;;  %1875 = vmatprep.subr.bf16.mxu1 %v2226_v51  ;;  %v1672_v0 = vld.sshfl [vmem:[%s2375_s13 + $0x2] sm:$0x3 pattern:$0x76325410]  ;;  %v446_v1 = vshll.u32 %v1587_v63, 16  ;;  %v444_v6 = vshrl.u32 %v1587_v63, 16 }
  0x49   : >> { %1955 = vmatprep.subr.bf16.mxu0 %v2226_v51  ;;  %v883_v3 = vshll.u32 %v1672_v0, 16  ;;  %v881_v8 = vshrl.u32 %v1672_v0, 16  ;;  %v2138_v16 = vld [vmem:[%s2674_s5 + $0x148] sm:$0xff]   ;;  %v2140_v18 = vld [vmem:[%s2674_s5 + $0x150] sm:$0xff]   ;;  %v2141_v19 = vld [vmem:[%s2674_s5 + $0x18] sm:$0xff]  }
  0x4a   : >> { %v448_v7 = vrot.slane %v446_v1, 1  ;;  %v2142_v20 = vld [vmem:[%s2674_s5 + $0x158] sm:$0xff]   ;;  %v2143_v21 = vld [vmem:[%s2674_s5 + $0x20] sm:$0xff]   ;;  %v2145_v23 = vld [vmem:[%s2674_s5 + $0x28] sm:$0xff]  }
  0x4b   : >> { %1876 = vmatpush3.bf16.msra.mxu1 %v2123_v55  ;;  %v885_v9 = vrot.slane %v883_v3, 1  ;;  %v2144_v22 = vld [vmem:[%s2674_s5 + $0x160] sm:$0xff]   ;;  %v2146_v24 = vld [vmem:[%s2674_s5 + $0x168] sm:$0xff]   ;;  %v2147_v25 = vld [vmem:[%s2674_s5 + $0x30] sm:$0xff]  }
  0x4c   : >> { %1956 = vmatpush3.bf16.msra.mxu0 %v2124_v56  ;;  %1877 = vmatprep.subr.bf16.mxu1 %v2226_v51  ;;  %v449_v11 = vor.u32 %v448_v7, %v444_v6  ;;  %v2148_v26 = vld [vmem:[%s2674_s5 + $0x170] sm:$0xff]   ;;  %v1698_v27 = vld.sshfl [vmem:[%s2375_s13 + $0x2] sm:$0x2 pattern:$0x76325410]  ;;  %v2149_v28 = vld [vmem:[%s2674_s5 + $0x38] sm:$0xff]  }
  0x4d   : >> { %1957 = vmatprep.subr.bf16.mxu0 %v2226_v51  ;;  %v886_v13 = vor.u32 %v885_v9, %v881_v8  ;;  %v2150_v29 = vld [vmem:[%s2674_s5 + $0x178] sm:$0xff]   ;;  %v400_v30 = vld [vmem:[%s2375_s13] sm:$0x1]  ;;  %v1003_v32 = vrot.slane %v1698_v27, 1  ;;  %v2153_v34 = vld [vmem:[%s2674_s5 + $0x88] sm:$0xff]  }
  0x4e   : >> { %v2151_v31 = vld [vmem:[%s2674_s5 + $0x80] sm:$0xff]   ;;  %v2154_v35 = vld [vmem:[%s2674_s5 + $0x188] sm:$0xff]   ;;  %v2155_v36 = vld [vmem:[%s2674_s5 + $0x90] sm:$0xff]  }
  0x4f   : >> { %1878 = vmatpush3.bf16.msra.mxu1 %v2125_v57  ;;  %v2152_v33 = vld [vmem:[%s2674_s5 + $0x180] sm:$0xff]   ;;  %v2156_v37 = vld [vmem:[%s2674_s5 + $0x190] sm:$0xff]   ;;  %v2157_v38 = vld [vmem:[%s2674_s5 + $0x98] sm:$0xff]  }
  0x50   : >> { %1958 = vmatpush3.bf16.msra.mxu0 %v2126_v58  ;;  %1879 = vmatprep.subr.bf16.mxu1 %v2226_v51  ;;  %v2158_v39 = vld [vmem:[%s2674_s5 + $0x198] sm:$0xff]   ;;  %v2159_v40 = vld [vmem:[%s2674_s5 + $0xa0] sm:$0xff]   ;;  %v2161_v42 = vld [vmem:[%s2674_s5 + $0xa8] sm:$0xff]  }
  0x51   : >> { %1959 = vmatprep.subr.bf16.mxu0 %v2226_v51  ;;  %v2160_v41 = vld [vmem:[%s2674_s5 + $0x1a0] sm:$0xff]   ;;  %v2162_v43 = vld [vmem:[%s2674_s5 + $0x1a8] sm:$0xff]   ;;  %v2163_v44 = vld [vmem:[%s2674_s5 + $0xb0] sm:$0xff]  }
  0x52   : >> { %v2164_v45 = vld [vmem:[%s2674_s5 + $0x1b0] sm:$0xff]   ;;  %v2165_v46 = vld [vmem:[%s2674_s5 + $0xb8] sm:$0xff]   ;;  %v1620_v47 = vld.sshfl [vmem:[%s2375_s13] sm:$0x2 pattern:$0x76325410] }
  0x53   : >> { %1880 = vmatpush3.bf16.msra.mxu1 %v2127_v59  ;;  %v2166_v50 = vld [vmem:[%s2674_s5 + $0x1b8] sm:$0xff]   ;;  %v653_v52 = vrot.slane %v1620_v47, 1  ;;  %v2167_v53 = vld [vmem:[%s2674_s5 + $0xc0] sm:$0xff]   ;;  %v2169_v56 = vld [vmem:[%s2674_s5 + $0xc8] sm:$0xff]  }
  0x54   : >> { %1960 = vmatpush3.bf16.msra.mxu0 %v2128_v60  ;;  %1881 = vmatprep.subr.bf16.mxu1 %v2226_v51  ;;  %v1708_v54 = vld [vmem:[%s2375_s13 + $0x4] sm:$0x1]  ;;  %v2170_v57 = vld [vmem:[%s2674_s5 + $0x1c8] sm:$0xff]   ;;  %v2171_v58 = vld [vmem:[%s2674_s5 + $0xd0] sm:$0xff]  }
  0x55   : >> { %1961 = vmatprep.subr.bf16.mxu0 %v2226_v51  ;;  %v2168_v55 = vld [vmem:[%s2674_s5 + $0x1c0] sm:$0xff]   ;;  %v2172_v59 = vld [vmem:[%s2674_s5 + $0x1d0] sm:$0xff]   ;;  %v2173_v60 = vld [vmem:[%s2674_s5 + $0xd8] sm:$0xff]  }
  0x56   : >> { %v2176_v63 = vld [vmem:[%s2674_s5 + $0x1e0] sm:$0xff]   ;;  %v2177_v0 = vld [vmem:[%s2674_s5 + $0xe8] sm:$0xff]   ;;  %v2179_v3 = vld [vmem:[%s2674_s5 + $0xf0] sm:$0xff]  }
  0x57   : >> { %1882 = vmatpush3.bf16.msra.mxu1 %v2129_v61  ;;  %v2174_v61 = vld [vmem:[%s2674_s5 + $0x1d8] sm:$0xff]   ;;  %v2178_v1 = vld [vmem:[%s2674_s5 + $0x1e8] sm:$0xff]   ;;  %v1465_v47 = vld [vmem:[%s2676_s7] sm:$0x1] (%p392_p5) }
  0x58   : >> { %1962 = vmatpush3.bf16.msra.mxu0 %v2130_v62  ;;  %1883 = vmatprep.subr.bf16.mxu1 %v2226_v51  ;;  %v2175_v62 = vld [vmem:[%s2674_s5 + $0xe0] sm:$0xff]   ;;  %v2181_v6 = vld [vmem:[%s2674_s5 + $0xf8] sm:$0xff]  }
  0x59   : >> { %1963 = vmatprep.subr.bf16.mxu0 %v2226_v51  ;;  %v2182_v9 = vld [vmem:[%s2674_s5 + $0x1f8] sm:$0xff]  }
  0x5b   : >> { %1884 = vmatpush3.bf16.msra.mxu1 %v2131_v2  ;;  %v1750_v2 = vld.sshfl [vmem:[%s2375_s13 + $0x4] sm:$0x3 pattern:$0x76325410] }
  0x5c   : >> { %1964 = vmatpush3.bf16.msra.mxu0 %v2132_v4  ;;  %1885 = vmatprep.subr.bf16.mxu1 %v2226_v51  ;;  %v1233_v4 = vshll.u32 %v1750_v2, 16  ;;  %v1231_v7 = vshrl.u32 %v1750_v2, 16 }
  0x5d   : >> { %1965 = vmatprep.subr.bf16.mxu0 %v2226_v51 }
  0x5e   : >> { %v1235_v8 = vrot.slane %v1233_v4, 1 }
  0x5f   : >> { %1886 = vmatpush3.bf16.msra.mxu1 %v2133_v5  ;;  %v2180_v5 = vld [vmem:[%s2674_s5 + $0x1f0] sm:$0xff]  }
  0x60   : >> { %1966 = vmatpush3.bf16.msra.mxu0 %v2134_v10  ;;  %1891 = vmatprep.subr.bf16.mxu1 %v2226_v51  ;;  %v1630_v10 = vld [vmem:[%s2375_s13 + $0x2] sm:$0x1] }
  0x61   : >> { %1971 = vmatprep.subr.bf16.mxu0 %v2226_v51 }
  0x62   : >> { %1888 = vmatmul.mubr.bf16.vlgmr.msra.gmra.mrb[0].mxu1 %v449_v11  ;;  %v1236_v11 = vor.u32 %v1235_v8, %v1231_v7 }
  0x63   : >> { %1892 = vmatpush3.bf16.msra.mxu1 %v2135_v12  ;;  %1968 = vmatmul.mubr.bf16.vlgmr.msra.gmra.mrb[0].mxu0 %v886_v13  ;;  %v2183_v12 = vld [vmem:[%s2674_s5 + $0x200] sm:$0xff]   ;;  %v2184_v13 = vld [vmem:[%s2674_s5 + $0x208] sm:$0xff]  }
  0x64   : >> { %1972 = vmatpush3.bf16.msra.mxu0 %v2136_v14  ;;  %1893 = vmatprep.subr.bf16.mxu1 %v2226_v51  ;;  %v2185_v14 = vld [vmem:[%s2674_s5 + $0x210] sm:$0xff]  }
  0x65   : >> { %1973 = vmatprep.subr.bf16.mxu0 %v2226_v51  ;;  %1907 = vmatprep.mubr.msk.bf16.mxu1 %vm2227_vm4, %v2226_v51 }
  0x66   : >> { %1987 = vmatprep.mubr.msk.bf16.mxu0 %vm2227_vm4, %v2226_v51 }
  0x67   : >> { %1894 = vmatpush3.bf16.msra.mxu1 %v2137_v15  ;;  %v2186_v15 = vld [vmem:[%s2674_s5 + $0x218] sm:$0xff]  }
  0x68   : >> { %1974 = vmatpush3.bf16.msra.mxu0 %v2138_v16  ;;  %1895 = vmatprep.subr.bf16.mxu1 %v2226_v51  ;;  %v2187_v16 = vld [vmem:[%s2674_s5 + $0x220] sm:$0xff]  }
  0x69   : >> { %1975 = vmatprep.subr.bf16.mxu0 %v2226_v51 }
  0x6b   : >> { %1896 = vmatpush3.bf16.msra.mxu1 %v2139_v17  ;;  %v2188_v17 = vld [vmem:[%s2674_s5 + $0x228] sm:$0xff]  }
  0x6c   : >> { %1976 = vmatpush3.bf16.msra.mxu0 %v2140_v18  ;;  %1897 = vmatprep.subr.bf16.mxu1 %v2226_v51  ;;  %v2189_v18 = vld [vmem:[%s2674_s5 + $0x230] sm:$0xff]  }
  0x6d   : >> { %1977 = vmatprep.subr.bf16.mxu0 %v2226_v51 }
  0x6f   : >> { %1898 = vmatpush3.bf16.msra.mxu1 %v2141_v19  ;;  %v2190_v19 = vld [vmem:[%s2674_s5 + $0x238] sm:$0xff]  }
  0x70   : >> { %1978 = vmatpush3.bf16.msra.mxu0 %v2142_v20  ;;  %1899 = vmatprep.subr.bf16.mxu1 %v2226_v51  ;;  %v1776_v20 = vld.sshfl [vmem:[%s2375_s13 + $0x4] sm:$0x2 pattern:$0x76325410] }
  0x71   : >> { %1979 = vmatprep.subr.bf16.mxu0 %v2226_v51 }
  0x73   : >> { %1900 = vmatpush3.bf16.msra.mxu1 %v2143_v21  ;;  %v1353_v21 = vrot.slane %v1776_v20, 1 }
  0x74   : >> { %1980 = vmatpush3.bf16.msra.mxu0 %v2144_v22  ;;  %1901 = vmatprep.subr.bf16.mxu1 %v2226_v51 }
  0x75   : >> { %1981 = vmatprep.subr.bf16.mxu0 %v2226_v51 }
  0x77   : >> { %1902 = vmatpush3.bf16.msra.mxu1 %v2145_v23 }
  0x78   : >> { %1982 = vmatpush3.bf16.msra.mxu0 %v2146_v24  ;;  %1903 = vmatprep.subr.bf16.mxu1 %v2226_v51 }
  0x79   : >> { %1983 = vmatprep.subr.bf16.mxu0 %v2226_v51 }
  0x7b   : >> { %1904 = vmatpush3.bf16.msra.mxu1 %v2147_v25 }
  0x7c   : >> { %1984 = vmatpush3.bf16.msra.mxu0 %v2148_v26  ;;  %1905 = vmatprep.subr.bf16.mxu1 %v2226_v51 }
  0x7d   : >> { %1985 = vmatprep.subr.bf16.mxu0 %v2226_v51 }
  0x7f   : >> { %1906 = vmatpush3.bf16.msra.mxu1 %v2149_v28 }
  0x80   : >> { %1986 = vmatpush3.bf16.msra.mxu0 %v2150_v29  ;;  %1911 = vmatprep.subr.bf16.mxu1 %v2226_v51 }
  0x81   : >> { %1991 = vmatprep.subr.bf16.mxu0 %v2226_v51 }
  0x82   : >> { %1908 = vmatmul.mubr.bf16.vlgmr.msra.gmra.mrb[0].mxu1 %v400_v30 }
  0x83   : >> { %1912 = vmatpush3.bf16.msra.mxu1 %v2151_v31  ;;  %1988 = vmatmul.mubr.bf16.vlgmr.msra.gmra.mrb[0].mxu0 %v1003_v32 }
  0x84   : >> { %1992 = vmatpush3.bf16.msra.mxu0 %v2152_v33  ;;  %1913 = vmatprep.subr.bf16.mxu1 %v2226_v51 }
  0x85   : >> { %1993 = vmatprep.subr.bf16.mxu0 %v2226_v51  ;;  %1927 = vmatprep.mubr.msk.bf16.mxu1 %vm2227_vm4, %v2226_v51 }
  0x86   : >> { %2007 = vmatprep.mubr.msk.bf16.mxu0 %vm2227_vm4, %v2226_v51 }
  0x87   : >> { %1914 = vmatpush3.bf16.msra.mxu1 %v2153_v34 }
  0x88   : >> { %1994 = vmatpush3.bf16.msra.mxu0 %v2154_v35  ;;  %1915 = vmatprep.subr.bf16.mxu1 %v2226_v51 }
  0x89   : >> { %1995 = vmatprep.subr.bf16.mxu0 %v2226_v51 }
  0x8b   : >> { %1916 = vmatpush3.bf16.msra.mxu1 %v2155_v36 }
  0x8c   : >> { %1996 = vmatpush3.bf16.msra.mxu0 %v2156_v37  ;;  %1917 = vmatprep.subr.bf16.mxu1 %v2226_v51 }
  0x8d   : >> { %1997 = vmatprep.subr.bf16.mxu0 %v2226_v51 }
  0x8f   : >> { %1918 = vmatpush3.bf16.msra.mxu1 %v2157_v38 }
  0x90   : >> { %1998 = vmatpush3.bf16.msra.mxu0 %v2158_v39  ;;  %1919 = vmatprep.subr.bf16.mxu1 %v2226_v51 }
  0x91   : >> { %1999 = vmatprep.subr.bf16.mxu0 %v2226_v51 }
  0x93   : >> { %1920 = vmatpush3.bf16.msra.mxu1 %v2159_v40 }
  0x94   : >> { %2000 = vmatpush3.bf16.msra.mxu0 %v2160_v41  ;;  %1921 = vmatprep.subr.bf16.mxu1 %v2226_v51 }
  0x95   : >> { %2001 = vmatprep.subr.bf16.mxu0 %v2226_v51 }
  0x97   : >> { %1922 = vmatpush3.bf16.msra.mxu1 %v2161_v42 }
  0x98   : >> { %2002 = vmatpush3.bf16.msra.mxu0 %v2162_v43  ;;  %1923 = vmatprep.subr.bf16.mxu1 %v2226_v51 }
  0x99   : >> { %2003 = vmatprep.subr.bf16.mxu0 %v2226_v51 }
  0x9b   : >> { %1924 = vmatpush3.bf16.msra.mxu1 %v2163_v44 }
  0x9c   : >> { %2004 = vmatpush3.bf16.msra.mxu0 %v2164_v45  ;;  %1925 = vmatprep.subr.bf16.mxu1 %v2226_v51 }
  0x9d   : >> { %2005 = vmatprep.subr.bf16.mxu0 %v2226_v51 }
  0x9f   : >> { %1926 = vmatpush3.bf16.msra.mxu1 %v2165_v46 }
  0xa0   : >> { %2006 = vmatpush3.bf16.msra.mxu0 %v2166_v50  ;;  %1931 = vmatprep.subr.bf16.mxu1 %v2226_v51 }
  0xa1   : >> { %2011 = vmatprep.subr.bf16.mxu0 %v2226_v51 }
  0xa2   : >> { %1928 = vmatmul.mubr.bf16.vlgmr.msra.gmra.mrb[0].mxu1 %v653_v52 }
  0xa3   : >> { %1932 = vmatpush3.bf16.msra.mxu1 %v2167_v53  ;;  %2008 = vmatmul.mubr.bf16.vlgmr.msra.gmra.mrb[0].mxu0 %v1708_v54 }
  0xa4   : >> { %2012 = vmatpush3.bf16.msra.mxu0 %v2168_v55  ;;  %1933 = vmatprep.subr.bf16.mxu1 %v2226_v51 }
  0xa5   : >> { %2013 = vmatprep.subr.bf16.mxu0 %v2226_v51  ;;  %1947 = vmatprep.mubr.msk.bf16.mxu1 %vm2227_vm4, %v2226_v51 }
  0xa6   : >> { %2027 = vmatprep.mubr.msk.bf16.mxu0 %vm2227_vm4, %v2226_v51 }
  0xa7   : >> { %1934 = vmatpush3.bf16.msra.mxu1 %v2169_v56 }
  0xa8   : >> { %2014 = vmatpush3.bf16.msra.mxu0 %v2170_v57  ;;  %1935 = vmatprep.subr.bf16.mxu1 %v2226_v51 }
  0xa9   : >> { %2015 = vmatprep.subr.bf16.mxu0 %v2226_v51 }
  0xab   : >> { %1936 = vmatpush3.bf16.msra.mxu1 %v2171_v58 }
  0xac   : >> { %2016 = vmatpush3.bf16.msra.mxu0 %v2172_v59  ;;  %1937 = vmatprep.subr.bf16.mxu1 %v2226_v51 }
  0xad   : >> { %2017 = vmatprep.subr.bf16.mxu0 %v2226_v51 }
  0xaf   : >> { %1938 = vmatpush3.bf16.msra.mxu1 %v2173_v60 }
  0xb0   : >> { %2018 = vmatpush3.bf16.msra.mxu0 %v2174_v61  ;;  %1939 = vmatprep.subr.bf16.mxu1 %v2226_v51 }
  0xb1   : >> { %2019 = vmatprep.subr.bf16.mxu0 %v2226_v51 }
  0xb3   : >> { %1940 = vmatpush3.bf16.msra.mxu1 %v2175_v62 }
  0xb4   : >> { %2020 = vmatpush3.bf16.msra.mxu0 %v2176_v63  ;;  %1941 = vmatprep.subr.bf16.mxu1 %v2226_v51 }
  0xb5   : >> { %2021 = vmatprep.subr.bf16.mxu0 %v2226_v51 }
  0xb7   : >> { %1942 = vmatpush3.bf16.msra.mxu1 %v2177_v0 }
  0xb8   : >> { %2022 = vmatpush3.bf16.msra.mxu0 %v2178_v1  ;;  %1943 = vmatprep.subr.bf16.mxu1 %v2226_v51 }
  0xb9   : >> { %2023 = vmatprep.subr.bf16.mxu0 %v2226_v51 }
  0xbb   : >> { %1944 = vmatpush3.bf16.msra.mxu1 %v2179_v3 }
  0xbc   : >> { %2024 = vmatpush3.bf16.msra.mxu0 %v2180_v5  ;;  %1945 = vmatprep.subr.bf16.mxu1 %v2226_v51 }
  0xbd   : >> { %2025 = vmatprep.subr.bf16.mxu0 %v2226_v51 }
  0xbf   : >> { %1946 = vmatpush3.bf16.msra.mxu1 %v2181_v6 }
  0xc0   : >> { %2026 = vmatpush3.bf16.msra.mxu0 %v2182_v9 }
  0xc1   : >> { %2031 = vmatprep.subr.bf16.mxu0 %v2226_v51 }
  0xc2   : >> { %1948 = vmatmul.mubr.bf16.vlgmr.msra.gmra.mrb[0].mxu1 %v1630_v10 }
  0xc3   : >> { %2028 = vmatmul.mubr.bf16.vlgmr.msra.gmra.mrb[0].mxu0 %v1236_v11 }
  0xc4   : >> { %2032 = vmatpush3.bf16.msra.mxu0 %v2183_v12  ;;  %2047 = vmatprep.mubr.msk.bf16.mxu0 %vm2227_vm4, %v2226_v51 }
  0xc5   : >> { %2033 = vmatprep.subr.bf16.mxu0 %v2226_v51 }
  0xc8   : >> { %2034 = vmatpush3.bf16.msra.mxu0 %v2184_v13 }
  0xc9   : >> { %2035 = vmatprep.subr.bf16.mxu0 %v2226_v51 }
  0xcc   : >> { %2036 = vmatpush3.bf16.msra.mxu0 %v2185_v14 }
  0xcd   : >> { %2037 = vmatprep.subr.bf16.mxu0 %v2226_v51 }
  0xd0   : >> { %2038 = vmatpush3.bf16.msra.mxu0 %v2186_v15 }
  0xd1   : >> { %2039 = vmatprep.subr.bf16.mxu0 %v2226_v51 }
  0xd4   : >> { %2040 = vmatpush3.bf16.msra.mxu0 %v2187_v16 }
  0xd5   : >> { %2041 = vmatprep.subr.bf16.mxu0 %v2226_v51 }
  0xd8   : >> { %2042 = vmatpush3.bf16.msra.mxu0 %v2188_v17 }
  0xd9   : >> { %2043 = vmatprep.subr.bf16.mxu0 %v2226_v51 }
  0xdc   : >> { %2044 = vmatpush3.bf16.msra.mxu0 %v2189_v18 }
  0xdd   : >> { %2045 = vmatprep.subr.bf16.mxu0 %v2226_v51 }
  0xe0   : >> { %2046 = vmatpush3.bf16.msra.mxu0 %v2190_v19 }
  0xe3   : >> { %2048 = vmatmul.mubr.bf16.vlgmr.msra.gmra.mrb[0].mxu0 %v1353_v21 }
 0x195   : >> { %v847_v22 = vpop.f32.mrb[0].mxu1 }
 0x196   : >> { %v1949_v23 = vpop.f32.mrb[1].mxu1 }
 0x197   : >> { %v850_v24 = vpop.f32.mrb[2].mxu1 }
 0x198   : >> { %v1950_v25 = vpop.f32.mrb[3].mxu1 }
 0x1b6   : >> { %v1437_v26 = vpop.f32.mrb[0].mxu0 }
 0x1b7   : >> { %v2051_v27 = vadd.f32 %v1437_v26, %v847_v22  ;;  %v2049_v28 = vpop.f32.mrb[1].mxu0 }
 0x1b8   : >> { %v1440_v29 = vpop.f32.mrb[2].mxu0 }
 0x1b9   : >> { %1447 = vst.msk [vmem:[%s1445_s16] sm:$0x3] %vm1446_vm5, %v2051_v27  ;;  %v1448_v30 = vsel %vm1446_vm5, %v2051_v27, 0.0  ;;  %v1456_v31 = vmul.f32 %v2051_v27, %v2051_v27  ;;  %v2050_v32 = vpop.f32.mrb[3].mxu0 }
 0x1ba   : >> { %v1449_v33 = vrot.slane %v1448_v30, 4 }
 0x1bb   : >> { %v1457_v51 = vsel %vm1446_vm5, %v1456_v31, 0.0 }
 0x1bc   : >> { %v1450_v34 = vadd.f32 %v1449_v33, %v1448_v30  ;;  %v1458_v35 = vrot.slane %v1457_v51, 4 }
 0x1be   : >> { %v1451_v36 = vrot.slane %v1450_v34, 2  ;;  %v1459_v37 = vadd.f32 %v1458_v35, %v1457_v51 }
 0x1c0   : >> { %v1452_v38 = vadd.f32 %v1451_v36, %v1450_v34  ;;  %v1460_v39 = vrot.slane %v1459_v37, 2 }
 0x1c2   : >> { %v1453_v40 = vrot.slane %v1452_v38, 1  ;;  %v1461_v41 = vadd.f32 %v1460_v39, %v1459_v37 }
 0x1c4   : >> { %v1454_v42 = vadd.f32 %v1453_v40, %v1452_v38  ;;  %v1462_v43 = vrot.slane %v1461_v41, 1  ;;  %394 = sbr.rel (!%p392_p5) target bundleno = 65 (0x41), region = 114 }
 0x1c6   : >> { %v1455_v44 = vadd.f32 %v2217_v49, %v1454_v42   ;;  %v1463_v45 = vadd.f32 %v1462_v43, %v1461_v41 }
 0x1c8   : >> { %v1464_v46 = vadd.f32 %v2213_v48, %v1463_v45   ;;  %v2679_v49 = vmov %v1455_v44  ;;  %v1466_v50 = vadd.f32 (%p392_p5), %v1465_v47, %v1455_v44 }
 0x1c9   : > { %v1469_v49 = vld [vmem:[%s2677_s8] sm:$0x1] (%p392_p5) }
 0x1ca   : >> { %v2678_v48 = vmov %v1464_v46  ;;  %v1470_v52 = vadd.f32 (%p392_p5), %v1469_v49, %v1464_v46  ;;  %1468 = vst.msk [vmem:[%s2676_s7] sm:$0x1] (%p392_p5), %vm1467_vm6, %v1466_v50 }
 0x1cc   : > { %1471 = vst.msk [vmem:[%s2677_s8] sm:$0x1] %vm1467_vm6, %v1470_v52 }
 0x1cd PF: > { %s19_s27 = sadd.s32 1, %s2209_s27  }
 0x1ce   : > { %p16_p6 = scmp.ge.s32.totalorder %s19_s27, 4  }
 0x1d0   :  { %18 = sbr.rel (!%p16_p6) target bundleno = 1 (0x1), region = 125 }

</bundles_post_ra>
